<compile_context>
chip_gen: v5e
topology: v5e:2x2
jax: 0.10.0
libtpu: 0.0.40
codegen_flags: <defaults>
</compile_context>

<pallas_src>
import jax
import jax.numpy as jnp
import numpy as np
from jax import lax
from jax.experimental import pallas as pl
from jax.experimental.pallas import tpu as pltpu

_LANE = 128  # lane-padded channel stride used for im2col K blocks


# -----------------------------------------------------------------------------
# In-kernel helper: conv3x3(SAME) + (BN shift) + ReLU + 2x2 maxpool
# -----------------------------------------------------------------------------
def _conv_bn_relu_pool(x_val, cin, xpad_ref, pat_ref, w_ref, t_ref):
    nb, hc, wc = x_val.shape[0], x_val.shape[1], x_val.shape[2]
    lp = xpad_ref.shape[3]                 # 128, lane-padded channel stride
    cout = w_ref.shape[1]

    # Zero the padded buffer once: gives the SAME-conv border zeros *and* the
    # zeros in the cin->128 padding lanes (those lanes multiply against zero
    # weight rows, so the lane padding is numerically inert).  Only the narrow
    # cin-wide interior stripe is written twice.
    xpad_ref[...] = jnp.zeros(xpad_ref.shape, xpad_ref.dtype)
    xpad_ref[:, 1:hc + 1, 1:wc + 1, 0:cin] = x_val.astype(xpad_ref.dtype)

    # im2col: every 3x3 tap is a full-width, 128-lane-aligned bf16 store
    # (unmasked vst, no lane rotate).
    for k in range(9):
        dy, dx = k // 3, k % 3
        pat_ref[:, :, :, k * lp:(k + 1) * lp] = \
            xpad_ref[:, dy:dy + hc, dx:dx + wc, :]

    patches = pat_ref[...].reshape(nb * hc * wc, 9 * lp)
    # One MXU pass per conv layer: M = n*h*w, K = 9*128; bf16 in, f32 acc.
    acc = jnp.dot(patches, w_ref[...], preferred_element_type=jnp.float32)
    # BN scale is folded into the weights host-side; only shift + ReLU here.
    y = jnp.maximum(acc + t_ref[...], 0.0)

    # 2x2 max pool; channels stay in the lane dim throughout.
    y = y.reshape(nb * hc * wc // 2, 2, cout)
    y = jnp.maximum(y[:, 0, :], y[:, 1, :])                  # pool over W
    y = y.reshape(nb * (hc // 2), 2, wc // 2, cout)
    y = jnp.maximum(y[:, 0, :, :], y[:, 1, :, :])            # pool over H
    return y.reshape(nb * (hc // 2) * (wc // 2), cout)       # rows = (n, h, w)


# -----------------------------------------------------------------------------
# Fused per-image kernel (grid over the batch, "parallel" for v7x dual-TC)
# -----------------------------------------------------------------------------
def _ani_cnn_kernel(x_ref, w1_ref, t1_ref, w2_ref, t2_ref,
                    wf1_hbm_ref, b1_ref, wf2_ref, b2_ref,
                    o_ref,
                    xpad1_ref, pat1_ref, xpad2_ref, pat2_ref,
                    wf1_buf, wf1_sem):
    # Kick off the ~1 MB fc1 weight copy first so it overlaps with both conv
    # stages (there is nothing else to pipeline it behind).
    wf1_copy = pltpu.make_async_copy(wf1_hbm_ref, wf1_buf, wf1_sem)
    wf1_copy.start()

    n, H, W, C0 = x_ref.shape              # block batch n == 1 (grid over images)
    C1 = w1_ref.shape[1]
    H2, W2 = H // 2, W // 2
    P, C2, NH = wf1_buf.shape               # (H4*W4, 64, 512)

    # conv1 -> bn1 -> relu -> pool            -> (n*H2*W2, 32) f32
    h1 = _conv_bn_relu_pool(x_ref[...], C0, xpad1_ref, pat1_ref, w1_ref, t1_ref)
    h1 = h1.reshape(n, H2, W2, C1)
    # conv2 -> bn2 -> relu -> pool            -> (n*H4*W4, 64) f32
    h2 = _conv_bn_relu_pool(h1, C1, xpad2_ref, pat2_ref, w2_ref, t2_ref)

    # fc1 weights must be resident now; everything above ran under the DMA.
    wf1_copy.wait()

    # dropout1 / dropout2 are identity in eval mode.
    # PyTorch's NCHW flatten is folded into wf1's host-side (h, w, c) grouping:
    # accumulate one (n, C2) x (C2, NH) dot per spatial position -> no flatten
    # relayout, no feature scratch, no masked 64-wide stores.
    h2r = h2.reshape(n, P, C2).astype(jnp.bfloat16)
    acc = jnp.zeros((n, NH), jnp.float32)
    for p in range(P):
        acc = acc + jnp.dot(h2r[:, p, :], wf1_buf[p],
                            preferred_element_type=jnp.float32)
    z = jnp.maximum(acc + b1_ref[...], 0.0)

    out = jnp.dot(z.astype(jnp.bfloat16), wf2_ref[...],
                  preferred_element_type=jnp.float32) + b2_ref[...]
    o_ref[...] = out.reshape(o_ref.shape).astype(o_ref.dtype)


# -----------------------------------------------------------------------------
# Wrapper / one-time parameter preparation
# -----------------------------------------------------------------------------
def prepare_params(p, spatial, eps=1e-5):
    """One-time prep: BN fusion (scale folded into conv weights), 3x3 tap
    folding with 128-lane padding, fc1 (c,h,w)->(h,w,c) regrouping, bf16 cast."""
    h4 = spatial // 4
    s1 = p["bn1_gamma"] / jnp.sqrt(p["bn1_var"] + eps)
    t1 = s1 * (p["b_conv1"] - p["bn1_mean"]) + p["bn1_beta"]
    s2 = p["bn2_gamma"] / jnp.sqrt(p["bn2_var"] + eps)
    t2 = s2 * (p["b_conv2"] - p["bn2_mean"]) + p["bn2_beta"]

    def fold_pad(w, scale, cin):
        # Fold BN scale into the output channels BEFORE the bf16 cast, then
        # lane-pad each (kh,kw) tap block from cin to 128 zero rows.
        w = (w * scale).reshape(9, cin, -1)
        w = jnp.pad(w, ((0, 0), (0, _LANE - cin), (0, 0)))
        return w.reshape(9 * _LANE, -1).astype(jnp.bfloat16)

    w1 = fold_pad(p["w_conv1"], s1, 3)       # (1152, 32)
    w2 = fold_pad(p["w_conv2"], s2, 32)      # (1152, 64)
    t1 = t1.reshape(1, -1).astype(jnp.float32)
    t2 = t2.reshape(1, -1).astype(jnp.float32)

    # fc1: PyTorch flattens NCHW (c,h,w); kernel activations are NHWC.  Regroup
    # rows as (position p = h*W4 + w, channel c): (P, 64, 512).
    wf1 = (p["w_fc1"].reshape(64, h4, h4, -1)     # (c, h, w, 512)
           .transpose(1, 2, 0, 3)                 # (h, w, c, 512)
           .reshape(h4 * h4, 64, -1)
           .astype(jnp.bfloat16))
    bf1 = p["b_fc1"].reshape(1, -1).astype(jnp.float32)
    wf2 = p["w_fc2"].astype(jnp.bfloat16)
    bf2 = p["b_fc2"].reshape(1, -1).astype(jnp.float32)
    return (w1, t1, w2, t2, wf1, bf1, wf2, bf2)


def ani_cnn_forward(x_nchw, prepped):
    w1, t1, w2, t2, wf1, bf1, wf2, bf2 = prepped
    x = jnp.transpose(x_nchw, (0, 2, 3, 1))       # NCHW -> NHWC (tiny edge glue)
    N, H, W, C0 = x.shape
    H2, W2 = H // 2, W // 2
    P, C2, NH = wf1.shape
    num_classes = wf2.shape[1]
    vmem = pl.BlockSpec(memory_space=pltpu.MemorySpace.VMEM)

    out = pl.pallas_call(
        _ani_cnn_kernel,
        out_shape=jax.ShapeDtypeStruct((N, 1, num_classes), jnp.float32),
        grid=(N,),
        in_specs=[
            pl.BlockSpec((1, H, W, C0), lambda b: (b, 0, 0, 0)),  # one image / step
            vmem,                                  # w1  (1152, 32)  bf16
            vmem,                                  # t1  (1, 32)     f32
            vmem,                                  # w2  (1152, 64)  bf16
            vmem,                                  # t2  (1, 64)     f32
            pl.BlockSpec(memory_space=pl.ANY),     # wf1 (P, 64, 512) bf16 -> manual DMA
            vmem,                                  # b1  (1, 512)    f32
            vmem,                                  # wf2 (512, cls)  bf16 (tiny, left auto)
            vmem,                                  # b2  (1, cls)    f32
        ],
        out_specs=pl.BlockSpec((1, 1, num_classes), lambda b: (b, 0, 0)),
        scratch_shapes=[
            pltpu.VMEM((1, H + 2, W + 2, _LANE), jnp.bfloat16),     # conv1 padded in
            pltpu.VMEM((1, H, W, 9 * _LANE), jnp.bfloat16),         # conv1 im2col
            pltpu.VMEM((1, H2 + 2, W2 + 2, _LANE), jnp.bfloat16),   # conv2 padded in
            pltpu.VMEM((1, H2, W2, 9 * _LANE), jnp.bfloat16),       # conv2 im2col
            pltpu.VMEM((P, C2, NH), jnp.bfloat16),                  # fc1 weight buffer
            pltpu.SemaphoreType.DMA,                                # fc1 DMA semaphore
        ],
        compiler_params=pltpu.CompilerParams(
            dimension_semantics=("parallel",)),    # per-image steps -> dual-TC on v7x
    )(x, w1, t1, w2, t2, wf1, bf1, wf2, bf2)
    return out.reshape(N, num_classes)


# -----------------------------------------------------------------------------
# Pure-JAX f32 reference (for correctness) and deterministic init
# -----------------------------------------------------------------------------
def reference_forward(x_nchw, p, eps=1e-5):
    x = jnp.transpose(x_nchw, (0, 2, 3, 1))

    def block(x, w, b, gamma, beta, mean, var):
        y = lax.conv_general_dilated(
            x, w, (1, 1), "SAME",
            dimension_numbers=("NHWC", "HWIO", "NHWC")) + b
        y = gamma * (y - mean) / jnp.sqrt(var + eps) + beta
        y = jnp.maximum(y, 0.0)
        return lax.reduce_window(y, -jnp.inf, lax.max,
                                 (1, 2, 2, 1), (1, 2, 2, 1), "VALID")

    x = block(x, p["w_conv1"], p["b_conv1"], p["bn1_gamma"], p["bn1_beta"],
              p["bn1_mean"], p["bn1_var"])
    x = block(x, p["w_conv2"], p["b_conv2"], p["bn2_gamma"], p["bn2_beta"],
              p["bn2_mean"], p["bn2_var"])
    x = jnp.transpose(x, (0, 3, 1, 2)).reshape(x.shape[0], -1)
    h = jnp.maximum(x @ p["w_fc1"] + p["b_fc1"], 0.0)
    return h @ p["w_fc2"] + p["b_fc2"]


def init_params(key, num_classes=8, spatial=16):
    ks = jax.random.split(key, 16)
    feat = 64 * (spatial // 4) * (spatial // 4)
    n = jax.random.normal
    return {
        "w_conv1": 0.10 * n(ks[0], (3, 3, 3, 32), jnp.float32),
        "b_conv1": 0.10 * n(ks[1], (32,), jnp.float32),
        "bn1_gamma": 1.0 + 0.1 * n(ks[2], (32,), jnp.float32),
        "bn1_beta": 0.1 * n(ks[3], (32,), jnp.float32),
        "bn1_mean": 0.1 * n(ks[4], (32,), jnp.float32),
        "bn1_var": jnp.abs(1.0 + 0.1 * n(ks[5], (32,), jnp.float32)),
        "w_conv2": 0.05 * n(ks[6], (3, 3, 32, 64), jnp.float32),
        "b_conv2": 0.10 * n(ks[7], (64,), jnp.float32),
        "bn2_gamma": 1.0 + 0.1 * n(ks[8], (64,), jnp.float32),
        "bn2_beta": 0.1 * n(ks[9], (64,), jnp.float32),
        "bn2_mean": 0.1 * n(ks[10], (64,), jnp.float32),
        "bn2_var": jnp.abs(1.0 + 0.1 * n(ks[11], (64,), jnp.float32)),
        "w_fc1": 0.02 * n(ks[12], (feat, 512), jnp.float32),
        "b_fc1": 0.02 * n(ks[13], (512,), jnp.float32),
        "w_fc2": 0.05 * n(ks[14], (512, num_classes), jnp.float32),
        "b_fc2": 0.05 * n(ks[15], (num_classes,), jnp.float32),
    }


if __name__ == "__main__":
    key = jax.random.PRNGKey(0)
    kx, kp = jax.random.split(key)

    N, CIN, S = 2, 3, 16
    NUM_CLASSES = 8  # len(set(dataset.labels)) unknown; synthetic 8-class head
    x = jax.random.normal(kx, (N, CIN, S, S), jnp.float32)
    params = init_params(kp, num_classes=NUM_CLASSES, spatial=S)
    prepped = prepare_params(params, spatial=S)

    fwd = jax.jit(ani_cnn_forward)
    out = jax.block_until_ready(fwd(x, prepped))
    ref = jax.block_until_ready(reference_forward(x, params))

    assert out.shape == (N, NUM_CLASSES), out.shape
    np.testing.assert_allclose(np.asarray(out), np.asarray(ref),
                               rtol=2e-2, atol=2e-2)
    print("KERNEL_OK")
</pallas_src>

<mosaic_0001>
module attributes {stable_mosaic.version = 11 : i64} {
  func.func @_ani_cnn_kernel(%arg0: i32, %arg1: memref<1x16x16x3xf32, #tpu.memory_space<vmem>>, %arg2: memref<1152x32xbf16, #tpu.memory_space<vmem>>, %arg3: memref<1x32xf32, #tpu.memory_space<vmem>>, %arg4: memref<1152x64xbf16, #tpu.memory_space<vmem>>, %arg5: memref<1x64xf32, #tpu.memory_space<vmem>>, %arg6: memref<16x64x512xbf16, #tpu.memory_space<any>>, %arg7: memref<1x512xf32, #tpu.memory_space<vmem>>, %arg8: memref<512x8xbf16, #tpu.memory_space<vmem>>, %arg9: memref<1x8xf32, #tpu.memory_space<vmem>>, %arg10: memref<1x1x8xf32, #tpu.memory_space<vmem>>, %arg11: memref<1x18x18x128xbf16, #tpu.memory_space<vmem>>, %arg12: memref<1x16x16x1152xbf16, #tpu.memory_space<vmem>>, %arg13: memref<1x10x10x128xbf16, #tpu.memory_space<vmem>>, %arg14: memref<1x8x8x1152xbf16, #tpu.memory_space<vmem>>, %arg15: memref<16x64x512xbf16, #tpu.memory_space<vmem>>, %arg16: memref<!tpu.dma_semaphore, #tpu.memory_space<semaphore_mem>>) attributes {dimension_semantics = [#tpu.dimension_semantics<parallel>], iteration_bounds = array<i64: 2>, scalar_prefetch = 0 : i64, scratch_operands = 6 : i64, tpu.core_type = #tpu.core_type<tc>, window_params = [{transform_indices = @transform_0, window_bounds = array<i64: 1, 16, 16, 3>}, {pipeline_mode = #tpu.pipeline_mode<synchronous>, transform_indices = @transform_1, window_bounds = array<i64: 1152, 32>}, {pipeline_mode = #tpu.pipeline_mode<synchronous>, transform_indices = @transform_2, window_bounds = array<i64: 1, 32>}, {pipeline_mode = #tpu.pipeline_mode<synchronous>, transform_indices = @transform_3, window_bounds = array<i64: 1152, 64>}, {pipeline_mode = #tpu.pipeline_mode<synchronous>, transform_indices = @transform_4, window_bounds = array<i64: 1, 64>}, {}, {pipeline_mode = #tpu.pipeline_mode<synchronous>, transform_indices = @transform_6, window_bounds = array<i64: 1, 512>}, {pipeline_mode = #tpu.pipeline_mode<synchronous>, transform_indices = @transform_7, window_bounds = array<i64: 512, 8>}, {pipeline_mode = #tpu.pipeline_mode<synchronous>, transform_indices = @transform_8, window_bounds = array<i64: 1, 8>}, {transform_indices = @transform_9, window_bounds = array<i64: 1, 1, 8>}]} {
    tpu.enqueue_dma source(%arg6 : memref<16x64x512xbf16, #tpu.memory_space<any>>) target(%arg15 : memref<16x64x512xbf16, #tpu.memory_space<vmem>>) target_semaphore(%arg16 : memref<!tpu.dma_semaphore, #tpu.memory_space<semaphore_mem>>)
    %c0 = arith.constant 0 : index
    %c0_0 = arith.constant 0 : index
    %c0_1 = arith.constant 0 : index
    %c0_2 = arith.constant 0 : index
    %0 = vector.load %arg1[%c0, %c0_0, %c0_1, %c0_2] : memref<1x16x16x3xf32, #tpu.memory_space<vmem>>, vector<1x16x16x3xf32>
    %cst = arith.constant 0.000000e+00 : bf16
    %1 = vector.broadcast %cst : bf16 to vector<1x18x18x128xbf16>
    %c0_3 = arith.constant 0 : index
    %c0_4 = arith.constant 0 : index
    %c0_5 = arith.constant 0 : index
    %c0_6 = arith.constant 0 : index
    %2 = vector.load %arg11[%c0_3, %c0_4, %c0_5, %c0_6] : memref<1x18x18x128xbf16, #tpu.memory_space<vmem>>, vector<1x18x18x128xbf16>
    tpu.vector_store %arg11[%c0_3, %c0_4, %c0_5, %c0_6], %1 {strides = array<i32>} : memref<1x18x18x128xbf16, #tpu.memory_space<vmem>>, vector<1x18x18x128xbf16>,
    %3 = arith.truncf %0 : vector<1x16x16x3xf32> to vector<1x16x16x3xbf16>
    %c0_7 = arith.constant 0 : index
    %c1 = arith.constant 1 : index
    %c1_8 = arith.constant 1 : index
    %c0_9 = arith.constant 0 : index
    %4 = vector.load %arg11[%c0_7, %c1, %c1_8, %c0_9] : memref<1x18x18x128xbf16, #tpu.memory_space<vmem>>, vector<1x16x16x3xbf16>
    tpu.vector_store %arg11[%c0_7, %c1, %c1_8, %c0_9], %3 {strides = array<i32>} : memref<1x18x18x128xbf16, #tpu.memory_space<vmem>>, vector<1x16x16x3xbf16>,
    %c0_10 = arith.constant 0 : index
    %c0_11 = arith.constant 0 : index
    %c0_12 = arith.constant 0 : index
    %c0_13 = arith.constant 0 : index
    %5 = vector.load %arg11[%c0_10, %c0_11, %c0_12, %c0_13] : memref<1x18x18x128xbf16, #tpu.memory_space<vmem>>, vector<1x16x16x128xbf16>
    %c0_14 = arith.constant 0 : index
    %c0_15 = arith.constant 0 : index
    %c0_16 = arith.constant 0 : index
    %c0_17 = arith.constant 0 : index
    %6 = vector.load %arg12[%c0_14, %c0_15, %c0_16, %c0_17] : memref<1x16x16x1152xbf16, #tpu.memory_space<vmem>>, vector<1x16x16x128xbf16>
    tpu.vector_store %arg12[%c0_14, %c0_15, %c0_16, %c0_17], %5 {strides = array<i32>} : memref<1x16x16x1152xbf16, #tpu.memory_space<vmem>>, vector<1x16x16x128xbf16>,
    %c0_18 = arith.constant 0 : index
    %c0_19 = arith.constant 0 : index
    %c1_20 = arith.constant 1 : index
    %c0_21 = arith.constant 0 : index
    %7 = vector.load %arg11[%c0_18, %c0_19, %c1_20, %c0_21] : memref<1x18x18x128xbf16, #tpu.memory_space<vmem>>, vector<1x16x16x128xbf16>
    %c0_22 = arith.constant 0 : index
    %c0_23 = arith.constant 0 : index
    %c0_24 = arith.constant 0 : index
    %c128 = arith.constant 128 : index
    %8 = vector.load %arg12[%c0_22, %c0_23, %c0_24, %c128] : memref<1x16x16x1152xbf16, #tpu.memory_space<vmem>>, vector<1x16x16x128xbf16>
    tpu.vector_store %arg12[%c0_22, %c0_23, %c0_24, %c128], %7 {strides = array<i32>} : memref<1x16x16x1152xbf16, #tpu.memory_space<vmem>>, vector<1x16x16x128xbf16>,
    %c0_25 = arith.constant 0 : index
    %c0_26 = arith.constant 0 : index
    %c2 = arith.constant 2 : index
    %c0_27 = arith.constant 0 : index
    %9 = vector.load %arg11[%c0_25, %c0_26, %c2, %c0_27] : memref<1x18x18x128xbf16, #tpu.memory_space<vmem>>, vector<1x16x16x128xbf16>
    %c0_28 = arith.constant 0 : index
    %c0_29 = arith.constant 0 : index
    %c0_30 = arith.constant 0 : index
    %c256 = arith.constant 256 : index
    %10 = vector.load %arg12[%c0_28, %c0_29, %c0_30, %c256] : memref<1x16x16x1152xbf16, #tpu.memory_space<vmem>>, vector<1x16x16x128xbf16>
    tpu.vector_store %arg12[%c0_28, %c0_29, %c0_30, %c256], %9 {strides = array<i32>} : memref<1x16x16x1152xbf16, #tpu.memory_space<vmem>>, vector<1x16x16x128xbf16>,
    %c0_31 = arith.constant 0 : index
    %c1_32 = arith.constant 1 : index
    %c0_33 = arith.constant 0 : index
    %c0_34 = arith.constant 0 : index
    %11 = vector.load %arg11[%c0_31, %c1_32, %c0_33, %c0_34] : memref<1x18x18x128xbf16, #tpu.memory_space<vmem>>, vector<1x16x16x128xbf16>
    %c0_35 = arith.constant 0 : index
    %c0_36 = arith.constant 0 : index
    %c0_37 = arith.constant 0 : index
    %c384 = arith.constant 384 : index
    %12 = vector.load %arg12[%c0_35, %c0_36, %c0_37, %c384] : memref<1x16x16x1152xbf16, #tpu.memory_space<vmem>>, vector<1x16x16x128xbf16>
    tpu.vector_store %arg12[%c0_35, %c0_36, %c0_37, %c384], %11 {strides = array<i32>} : memref<1x16x16x1152xbf16, #tpu.memory_space<vmem>>, vector<1x16x16x128xbf16>,
    %c0_38 = arith.constant 0 : index
    %c1_39 = arith.constant 1 : index
    %c1_40 = arith.constant 1 : index
    %c0_41 = arith.constant 0 : index
    %13 = vector.load %arg11[%c0_38, %c1_39, %c1_40, %c0_41] : memref<1x18x18x128xbf16, #tpu.memory_space<vmem>>, vector<1x16x16x128xbf16>
    %c0_42 = arith.constant 0 : index
    %c0_43 = arith.constant 0 : index
    %c0_44 = arith.constant 0 : index
    %c512 = arith.constant 512 : index
    %14 = vector.load %arg12[%c0_42, %c0_43, %c0_44, %c512] : memref<1x16x16x1152xbf16, #tpu.memory_space<vmem>>, vector<1x16x16x128xbf16>
    tpu.vector_store %arg12[%c0_42, %c0_43, %c0_44, %c512], %13 {strides = array<i32>} : memref<1x16x16x1152xbf16, #tpu.memory_space<vmem>>, vector<1x16x16x128xbf16>,
    %c0_45 = arith.constant 0 : index
    %c1_46 = arith.constant 1 : index
    %c2_47 = arith.constant 2 : index
    %c0_48 = arith.constant 0 : index
    %15 = vector.load %arg11[%c0_45, %c1_46, %c2_47, %c0_48] : memref<1x18x18x128xbf16, #tpu.memory_space<vmem>>, vector<1x16x16x128xbf16>
    %c0_49 = arith.constant 0 : index
    %c0_50 = arith.constant 0 : index
    %c0_51 = arith.constant 0 : index
    %c640 = arith.constant 640 : index
    %16 = vector.load %arg12[%c0_49, %c0_50, %c0_51, %c640] : memref<1x16x16x1152xbf16, #tpu.memory_space<vmem>>, vector<1x16x16x128xbf16>
    tpu.vector_store %arg12[%c0_49, %c0_50, %c0_51, %c640], %15 {strides = array<i32>} : memref<1x16x16x1152xbf16, #tpu.memory_space<vmem>>, vector<1x16x16x128xbf16>,
    %c0_52 = arith.constant 0 : index
    %c2_53 = arith.constant 2 : index
    %c0_54 = arith.constant 0 : index
    %c0_55 = arith.constant 0 : index
    %17 = vector.load %arg11[%c0_52, %c2_53, %c0_54, %c0_55] : memref<1x18x18x128xbf16, #tpu.memory_space<vmem>>, vector<1x16x16x128xbf16>
    %c0_56 = arith.constant 0 : index
    %c0_57 = arith.constant 0 : index
    %c0_58 = arith.constant 0 : index
    %c768 = arith.constant 768 : index
    %18 = vector.load %arg12[%c0_56, %c0_57, %c0_58, %c768] : memref<1x16x16x1152xbf16, #tpu.memory_space<vmem>>, vector<1x16x16x128xbf16>
    tpu.vector_store %arg12[%c0_56, %c0_57, %c0_58, %c768], %17 {strides = array<i32>} : memref<1x16x16x1152xbf16, #tpu.memory_space<vmem>>, vector<1x16x16x128xbf16>,
    %c0_59 = arith.constant 0 : index
    %c2_60 = arith.constant 2 : index
    %c1_61 = arith.constant 1 : index
    %c0_62 = arith.constant 0 : index
    %19 = vector.load %arg11[%c0_59, %c2_60, %c1_61, %c0_62] : memref<1x18x18x128xbf16, #tpu.memory_space<vmem>>, vector<1x16x16x128xbf16>
    %c0_63 = arith.constant 0 : index
    %c0_64 = arith.constant 0 : index
    %c0_65 = arith.constant 0 : index
    %c896 = arith.constant 896 : index
    %20 = vector.load %arg12[%c0_63, %c0_64, %c0_65, %c896] : memref<1x16x16x1152xbf16, #tpu.memory_space<vmem>>, vector<1x16x16x128xbf16>
    tpu.vector_store %arg12[%c0_63, %c0_64, %c0_65, %c896], %19 {strides = array<i32>} : memref<1x16x16x1152xbf16, #tpu.memory_space<vmem>>, vector<1x16x16x128xbf16>,
    %c0_66 = arith.constant 0 : index
    %c2_67 = arith.constant 2 : index
    %c2_68 = arith.constant 2 : index
    %c0_69 = arith.constant 0 : index
    %21 = vector.load %arg11[%c0_66, %c2_67, %c2_68, %c0_69] : memref<1x18x18x128xbf16, #tpu.memory_space<vmem>>, vector<1x16x16x128xbf16>
    %c0_70 = arith.constant 0 : index
    %c0_71 = arith.constant 0 : index
    %c0_72 = arith.constant 0 : index
    %c1024 = arith.constant 1024 : index
    %22 = vector.load %arg12[%c0_70, %c0_71, %c0_72, %c1024] : memref<1x16x16x1152xbf16, #tpu.memory_space<vmem>>, vector<1x16x16x128xbf16>
    tpu.vector_store %arg12[%c0_70, %c0_71, %c0_72, %c1024], %21 {strides = array<i32>} : memref<1x16x16x1152xbf16, #tpu.memory_space<vmem>>, vector<1x16x16x128xbf16>,
    %c0_73 = arith.constant 0 : index
    %c0_74 = arith.constant 0 : index
    %c0_75 = arith.constant 0 : index
    %c0_76 = arith.constant 0 : index
    %23 = vector.load %arg12[%c0_73, %c0_74, %c0_75, %c0_76] : memref<1x16x16x1152xbf16, #tpu.memory_space<vmem>>, vector<1x16x16x1152xbf16>
    %24 = vector.shape_cast %23 : vector<1x16x16x1152xbf16> to vector<256x1152xbf16>
    %c0_77 = arith.constant 0 : index
    %c0_78 = arith.constant 0 : index
    %25 = vector.load %arg2[%c0_77, %c0_78] : memref<1152x32xbf16, #tpu.memory_space<vmem>>, vector<1152x32xbf16>
    %cst_79 = arith.constant dense<0.000000e+00> : vector<256x32xf32>
    %26 = tpu.matmul %24, %25, %cst_79 {dimension_numbers = #tpu.dot_dimension_numbers<[1], [0], [0], [1], [0, 0, 1, 1], [], []>} : vector<256x1152xbf16>, vector<1152x32xbf16>, vector<256x32xf32> -> vector<256x32xf32>
    %c0_80 = arith.constant 0 : index
    %c0_81 = arith.constant 0 : index
    %27 = vector.load %arg3[%c0_80, %c0_81] : memref<1x32xf32, #tpu.memory_space<vmem>>, vector<1x32xf32>
    %28 = vector.broadcast %27 : vector<1x32xf32> to vector<256x32xf32>
    %29 = arith.addf %26, %28 : vector<256x32xf32>
    %cst_82 = arith.constant 0.000000e+00 : f32
    %30 = vector.broadcast %cst_82 : f32 to vector<256x32xf32>
    %31 = arith.maximumf %29, %30 : vector<256x32xf32>
    %32 = vector.shape_cast %31 : vector<256x32xf32> to vector<128x2x32xf32>
    %33 = vector.extract_strided_slice %32 {offsets = [0, 0, 0], sizes = [128, 1, 32], strides = [1, 1, 1]} : vector<128x2x32xf32> to vector<128x1x32xf32>
    %34 = vector.shape_cast %33 : vector<128x1x32xf32> to vector<128x32xf32>
    %35 = vector.extract_strided_slice %32 {offsets = [0, 1, 0], sizes = [128, 1, 32], strides = [1, 1, 1]} : vector<128x2x32xf32> to vector<128x1x32xf32>
    %36 = vector.shape_cast %35 : vector<128x1x32xf32> to vector<128x32xf32>
    %37 = arith.maximumf %34, %36 : vector<128x32xf32>
    %38 = vector.shape_cast %37 : vector<128x32xf32> to vector<8x2x8x32xf32>
    %39 = vector.extract_strided_slice %38 {offsets = [0, 0, 0, 0], sizes = [8, 1, 8, 32], strides = [1, 1, 1, 1]} : vector<8x2x8x32xf32> to vector<8x1x8x32xf32>
    %40 = vector.shape_cast %39 : vector<8x1x8x32xf32> to vector<8x8x32xf32>
    %41 = vector.extract_strided_slice %38 {offsets = [0, 1, 0, 0], sizes = [8, 1, 8, 32], strides = [1, 1, 1, 1]} : vector<8x2x8x32xf32> to vector<8x1x8x32xf32>
    %42 = vector.shape_cast %41 : vector<8x1x8x32xf32> to vector<8x8x32xf32>
    %43 = arith.maximumf %40, %42 : vector<8x8x32xf32>
    %44 = vector.shape_cast %43 : vector<8x8x32xf32> to vector<64x32xf32>
    %45 = vector.shape_cast %44 : vector<64x32xf32> to vector<1x8x8x32xf32>
    %cst_83 = arith.constant 0.000000e+00 : bf16
    %46 = vector.broadcast %cst_83 : bf16 to vector<1x10x10x128xbf16>
    %c0_84 = arith.constant 0 : index
    %c0_85 = arith.constant 0 : index
    %c0_86 = arith.constant 0 : index
    %c0_87 = arith.constant 0 : index
    %47 = vector.load %arg13[%c0_84, %c0_85, %c0_86, %c0_87] : memref<1x10x10x128xbf16, #tpu.memory_space<vmem>>, vector<1x10x10x128xbf16>
    tpu.vector_store %arg13[%c0_84, %c0_85, %c0_86, %c0_87], %46 {strides = array<i32>} : memref<1x10x10x128xbf16, #tpu.memory_space<vmem>>, vector<1x10x10x128xbf16>,
    %48 = arith.truncf %45 : vector<1x8x8x32xf32> to vector<1x8x8x32xbf16>
    %c0_88 = arith.constant 0 : index
    %c1_89 = arith.constant 1 : index
    %c1_90 = arith.constant 1 : index
    %c0_91 = arith.constant 0 : index
    %49 = vector.load %arg13[%c0_88, %c1_89, %c1_90, %c0_91] : memref<1x10x10x128xbf16, #tpu.memory_space<vmem>>, vector<1x8x8x32xbf16>
    tpu.vector_store %arg13[%c0_88, %c1_89, %c1_90, %c0_91], %48 {strides = array<i32>} : memref<1x10x10x128xbf16, #tpu.memory_space<vmem>>, vector<1x8x8x32xbf16>,
    %c0_92 = arith.constant 0 : index
    %c0_93 = arith.constant 0 : index
    %c0_94 = arith.constant 0 : index
    %c0_95 = arith.constant 0 : index
    %50 = vector.load %arg13[%c0_92, %c0_93, %c0_94, %c0_95] : memref<1x10x10x128xbf16, #tpu.memory_space<vmem>>, vector<1x8x8x128xbf16>
    %c0_96 = arith.constant 0 : index
    %c0_97 = arith.constant 0 : index
    %c0_98 = arith.constant 0 : index
    %c0_99 = arith.constant 0 : index
    %51 = vector.load %arg14[%c0_96, %c0_97, %c0_98, %c0_99] : memref<1x8x8x1152xbf16, #tpu.memory_space<vmem>>, vector<1x8x8x128xbf16>
    tpu.vector_store %arg14[%c0_96, %c0_97, %c0_98, %c0_99], %50 {strides = array<i32>} : memref<1x8x8x1152xbf16, #tpu.memory_space<vmem>>, vector<1x8x8x128xbf16>,
    %c0_100 = arith.constant 0 : index
    %c0_101 = arith.constant 0 : index
    %c1_102 = arith.constant 1 : index
    %c0_103 = arith.constant 0 : index
    %52 = vector.load %arg13[%c0_100, %c0_101, %c1_102, %c0_103] : memref<1x10x10x128xbf16, #tpu.memory_space<vmem>>, vector<1x8x8x128xbf16>
    %c0_104 = arith.constant 0 : index
    %c0_105 = arith.constant 0 : index
    %c0_106 = arith.constant 0 : index
    %c128_107 = arith.constant 128 : index
    %53 = vector.load %arg14[%c0_104, %c0_105, %c0_106, %c128_107] : memref<1x8x8x1152xbf16, #tpu.memory_space<vmem>>, vector<1x8x8x128xbf16>
    tpu.vector_store %arg14[%c0_104, %c0_105, %c0_106, %c128_107], %52 {strides = array<i32>} : memref<1x8x8x1152xbf16, #tpu.memory_space<vmem>>, vector<1x8x8x128xbf16>,
    %c0_108 = arith.constant 0 : index
    %c0_109 = arith.constant 0 : index
    %c2_110 = arith.constant 2 : index
    %c0_111 = arith.constant 0 : index
    %54 = vector.load %arg13[%c0_108, %c0_109, %c2_110, %c0_111] : memref<1x10x10x128xbf16, #tpu.memory_space<vmem>>, vector<1x8x8x128xbf16>
    %c0_112 = arith.constant 0 : index
    %c0_113 = arith.constant 0 : index
    %c0_114 = arith.constant 0 : index
    %c256_115 = arith.constant 256 : index
    %55 = vector.load %arg14[%c0_112, %c0_113, %c0_114, %c256_115] : memref<1x8x8x1152xbf16, #tpu.memory_space<vmem>>, vector<1x8x8x128xbf16>
    tpu.vector_store %arg14[%c0_112, %c0_113, %c0_114, %c256_115], %54 {strides = array<i32>} : memref<1x8x8x1152xbf16, #tpu.memory_space<vmem>>, vector<1x8x8x128xbf16>,
    %c0_116 = arith.constant 0 : index
    %c1_117 = arith.constant 1 : index
    %c0_118 = arith.constant 0 : index
    %c0_119 = arith.constant 0 : index
    %56 = vector.load %arg13[%c0_116, %c1_117, %c0_118, %c0_119] : memref<1x10x10x128xbf16, #tpu.memory_space<vmem>>, vector<1x8x8x128xbf16>
    %c0_120 = arith.constant 0 : index
    %c0_121 = arith.constant 0 : index
    %c0_122 = arith.constant 0 : index
    %c384_123 = arith.constant 384 : index
    %57 = vector.load %arg14[%c0_120, %c0_121, %c0_122, %c384_123] : memref<1x8x8x1152xbf16, #tpu.memory_space<vmem>>, vector<1x8x8x128xbf16>
    tpu.vector_store %arg14[%c0_120, %c0_121, %c0_122, %c384_123], %56 {strides = array<i32>} : memref<1x8x8x1152xbf16, #tpu.memory_space<vmem>>, vector<1x8x8x128xbf16>,
    %c0_124 = arith.constant 0 : index
    %c1_125 = arith.constant 1 : index
    %c1_126 = arith.constant 1 : index
    %c0_127 = arith.constant 0 : index
    %58 = vector.load %arg13[%c0_124, %c1_125, %c1_126, %c0_127] : memref<1x10x10x128xbf16, #tpu.memory_space<vmem>>, vector<1x8x8x128xbf16>
    %c0_128 = arith.constant 0 : index
    %c0_129 = arith.constant 0 : index
    %c0_130 = arith.constant 0 : index
    %c512_131 = arith.constant 512 : index
    %59 = vector.load %arg14[%c0_128, %c0_129, %c0_130, %c512_131] : memref<1x8x8x1152xbf16, #tpu.memory_space<vmem>>, vector<1x8x8x128xbf16>
    tpu.vector_store %arg14[%c0_128, %c0_129, %c0_130, %c512_131], %58 {strides = array<i32>} : memref<1x8x8x1152xbf16, #tpu.memory_space<vmem>>, vector<1x8x8x128xbf16>,
    %c0_132 = arith.constant 0 : index
    %c1_133 = arith.constant 1 : index
    %c2_134 = arith.constant 2 : index
    %c0_135 = arith.constant 0 : index
    %60 = vector.load %arg13[%c0_132, %c1_133, %c2_134, %c0_135] : memref<1x10x10x128xbf16, #tpu.memory_space<vmem>>, vector<1x8x8x128xbf16>
    %c0_136 = arith.constant 0 : index
    %c0_137 = arith.constant 0 : index
    %c0_138 = arith.constant 0 : index
    %c640_139 = arith.constant 640 : index
    %61 = vector.load %arg14[%c0_136, %c0_137, %c0_138, %c640_139] : memref<1x8x8x1152xbf16, #tpu.memory_space<vmem>>, vector<1x8x8x128xbf16>
    tpu.vector_store %arg14[%c0_136, %c0_137, %c0_138, %c640_139], %60 {strides = array<i32>} : memref<1x8x8x1152xbf16, #tpu.memory_space<vmem>>, vector<1x8x8x128xbf16>,
    %c0_140 = arith.constant 0 : index
    %c2_141 = arith.constant 2 : index
    %c0_142 = arith.constant 0 : index
    %c0_143 = arith.constant 0 : index
    %62 = vector.load %arg13[%c0_140, %c2_141, %c0_142, %c0_143] : memref<1x10x10x128xbf16, #tpu.memory_space<vmem>>, vector<1x8x8x128xbf16>
    %c0_144 = arith.constant 0 : index
    %c0_145 = arith.constant 0 : index
    %c0_146 = arith.constant 0 : index
    %c768_147 = arith.constant 768 : index
    %63 = vector.load %arg14[%c0_144, %c0_145, %c0_146, %c768_147] : memref<1x8x8x1152xbf16, #tpu.memory_space<vmem>>, vector<1x8x8x128xbf16>
    tpu.vector_store %arg14[%c0_144, %c0_145, %c0_146, %c768_147], %62 {strides = array<i32>} : memref<1x8x8x1152xbf16, #tpu.memory_space<vmem>>, vector<1x8x8x128xbf16>,
    %c0_148 = arith.constant 0 : index
    %c2_149 = arith.constant 2 : index
    %c1_150 = arith.constant 1 : index
    %c0_151 = arith.constant 0 : index
    %64 = vector.load %arg13[%c0_148, %c2_149, %c1_150, %c0_151] : memref<1x10x10x128xbf16, #tpu.memory_space<vmem>>, vector<1x8x8x128xbf16>
    %c0_152 = arith.constant 0 : index
    %c0_153 = arith.constant 0 : index
    %c0_154 = arith.constant 0 : index
    %c896_155 = arith.constant 896 : index
    %65 = vector.load %arg14[%c0_152, %c0_153, %c0_154, %c896_155] : memref<1x8x8x1152xbf16, #tpu.memory_space<vmem>>, vector<1x8x8x128xbf16>
    tpu.vector_store %arg14[%c0_152, %c0_153, %c0_154, %c896_155], %64 {strides = array<i32>} : memref<1x8x8x1152xbf16, #tpu.memory_space<vmem>>, vector<1x8x8x128xbf16>,
    %c0_156 = arith.constant 0 : index
    %c2_157 = arith.constant 2 : index
    %c2_158 = arith.constant 2 : index
    %c0_159 = arith.constant 0 : index
    %66 = vector.load %arg13[%c0_156, %c2_157, %c2_158, %c0_159] : memref<1x10x10x128xbf16, #tpu.memory_space<vmem>>, vector<1x8x8x128xbf16>
    %c0_160 = arith.constant 0 : index
    %c0_161 = arith.constant 0 : index
    %c0_162 = arith.constant 0 : index
    %c1024_163 = arith.constant 1024 : index
    %67 = vector.load %arg14[%c0_160, %c0_161, %c0_162, %c1024_163] : memref<1x8x8x1152xbf16, #tpu.memory_space<vmem>>, vector<1x8x8x128xbf16>
    tpu.vector_store %arg14[%c0_160, %c0_161, %c0_162, %c1024_163], %66 {strides = array<i32>} : memref<1x8x8x1152xbf16, #tpu.memory_space<vmem>>, vector<1x8x8x128xbf16>,
    %c0_164 = arith.constant 0 : index
    %c0_165 = arith.constant 0 : index
    %c0_166 = arith.constant 0 : index
    %c0_167 = arith.constant 0 : index
    %68 = vector.load %arg14[%c0_164, %c0_165, %c0_166, %c0_167] : memref<1x8x8x1152xbf16, #tpu.memory_space<vmem>>, vector<1x8x8x1152xbf16>
    %69 = vector.shape_cast %68 : vector<1x8x8x1152xbf16> to vector<64x1152xbf16>
    %c0_168 = arith.constant 0 : index
    %c0_169 = arith.constant 0 : index
    %70 = vector.load %arg4[%c0_168, %c0_169] : memref<1152x64xbf16, #tpu.memory_space<vmem>>, vector<1152x64xbf16>
    %cst_170 = arith.constant dense<0.000000e+00> : vector<64x64xf32>
    %71 = tpu.matmul %69, %70, %cst_170 {dimension_numbers = #tpu.dot_dimension_numbers<[1], [0], [0], [1], [0, 0, 1, 1], [], []>} : vector<64x1152xbf16>, vector<1152x64xbf16>, vector<64x64xf32> -> vector<64x64xf32>
    %c0_171 = arith.constant 0 : index
    %c0_172 = arith.constant 0 : index
    %72 = vector.load %arg5[%c0_171, %c0_172] : memref<1x64xf32, #tpu.memory_space<vmem>>, vector<1x64xf32>
    %73 = vector.broadcast %72 : vector<1x64xf32> to vector<64x64xf32>
    %74 = arith.addf %71, %73 : vector<64x64xf32>
    %cst_173 = arith.constant 0.000000e+00 : f32
    %75 = vector.broadcast %cst_173 : f32 to vector<64x64xf32>
    %76 = arith.maximumf %74, %75 : vector<64x64xf32>
    %77 = vector.shape_cast %76 : vector<64x64xf32> to vector<32x2x64xf32>
    %78 = vector.extract_strided_slice %77 {offsets = [0, 0, 0], sizes = [32, 1, 64], strides = [1, 1, 1]} : vector<32x2x64xf32> to vector<32x1x64xf32>
    %79 = vector.shape_cast %78 : vector<32x1x64xf32> to vector<32x64xf32>
    %80 = vector.extract_strided_slice %77 {offsets = [0, 1, 0], sizes = [32, 1, 64], strides = [1, 1, 1]} : vector<32x2x64xf32> to vector<32x1x64xf32>
    %81 = vector.shape_cast %80 : vector<32x1x64xf32> to vector<32x64xf32>
    %82 = arith.maximumf %79, %81 : vector<32x64xf32>
    %83 = vector.shape_cast %82 : vector<32x64xf32> to vector<4x2x4x64xf32>
    %84 = vector.extract_strided_slice %83 {offsets = [0, 0, 0, 0], sizes = [4, 1, 4, 64], strides = [1, 1, 1, 1]} : vector<4x2x4x64xf32> to vector<4x1x4x64xf32>
    %85 = vector.shape_cast %84 : vector<4x1x4x64xf32> to vector<4x4x64xf32>
    %86 = vector.extract_strided_slice %83 {offsets = [0, 1, 0, 0], sizes = [4, 1, 4, 64], strides = [1, 1, 1, 1]} : vector<4x2x4x64xf32> to vector<4x1x4x64xf32>
    %87 = vector.shape_cast %86 : vector<4x1x4x64xf32> to vector<4x4x64xf32>
    %88 = arith.maximumf %85, %87 : vector<4x4x64xf32>
    %89 = vector.shape_cast %88 : vector<4x4x64xf32> to vector<16x64xf32>
    tpu.wait_dma2 semaphore(%arg16 : memref<!tpu.dma_semaphore, #tpu.memory_space<semaphore_mem>>) src(%arg6 : memref<16x64x512xbf16, #tpu.memory_space<any>>) dst(%arg15 : memref<16x64x512xbf16, #tpu.memory_space<vmem>>)
    %90 = vector.shape_cast %89 : vector<16x64xf32> to vector<1x16x64xf32>
    %91 = arith.truncf %90 : vector<1x16x64xf32> to vector<1x16x64xbf16>
    %cst_174 = arith.constant 0.000000e+00 : f32
    %92 = vector.broadcast %cst_174 : f32 to vector<1x512xf32>
    %93 = vector.extract_strided_slice %91 {offsets = [0, 0, 0], sizes = [1, 1, 64], strides = [1, 1, 1]} : vector<1x16x64xbf16> to vector<1x1x64xbf16>
    %94 = vector.shape_cast %93 : vector<1x1x64xbf16> to vector<1x64xbf16>
    %c0_175 = arith.constant 0 : index
    %c0_176 = arith.constant 0 : index
    %c0_177 = arith.constant 0 : index
    %95 = vector.load %arg15[%c0_175, %c0_176, %c0_177] : memref<16x64x512xbf16, #tpu.memory_space<vmem>>, vector<1x64x512xbf16>
    %96 = vector.shape_cast %95 : vector<1x64x512xbf16> to vector<64x512xbf16>
    %cst_178 = arith.constant dense<0.000000e+00> : vector<1x512xf32>
    %97 = tpu.matmul %94, %96, %cst_178 {dimension_numbers = #tpu.dot_dimension_numbers<[1], [0], [0], [1], [0, 0, 1, 1], [], []>} : vector<1x64xbf16>, vector<64x512xbf16>, vector<1x512xf32> -> vector<1x512xf32>
    %98 = arith.addf %92, %97 : vector<1x512xf32>
    %99 = vector.extract_strided_slice %91 {offsets = [0, 1, 0], sizes = [1, 1, 64], strides = [1, 1, 1]} : vector<1x16x64xbf16> to vector<1x1x64xbf16>
    %100 = vector.shape_cast %99 : vector<1x1x64xbf16> to vector<1x64xbf16>
    %c1_179 = arith.constant 1 : index
    %c0_180 = arith.constant 0 : index
    %c0_181 = arith.constant 0 : index
    %101 = vector.load %arg15[%c1_179, %c0_180, %c0_181] : memref<16x64x512xbf16, #tpu.memory_space<vmem>>, vector<1x64x512xbf16>
    %102 = vector.shape_cast %101 : vector<1x64x512xbf16> to vector<64x512xbf16>
    %cst_182 = arith.constant dense<0.000000e+00> : vector<1x512xf32>
    %103 = tpu.matmul %100, %102, %cst_182 {dimension_numbers = #tpu.dot_dimension_numbers<[1], [0], [0], [1], [0, 0, 1, 1], [], []>} : vector<1x64xbf16>, vector<64x512xbf16>, vector<1x512xf32> -> vector<1x512xf32>
    %104 = arith.addf %98, %103 : vector<1x512xf32>
    %105 = vector.extract_strided_slice %91 {offsets = [0, 2, 0], sizes = [1, 1, 64], strides = [1, 1, 1]} : vector<1x16x64xbf16> to vector<1x1x64xbf16>
    %106 = vector.shape_cast %105 : vector<1x1x64xbf16> to vector<1x64xbf16>
    %c2_183 = arith.constant 2 : index
    %c0_184 = arith.constant 0 : index
    %c0_185 = arith.constant 0 : index
    %107 = vector.load %arg15[%c2_183, %c0_184, %c0_185] : memref<16x64x512xbf16, #tpu.memory_space<vmem>>, vector<1x64x512xbf16>
    %108 = vector.shape_cast %107 : vector<1x64x512xbf16> to vector<64x512xbf16>
    %cst_186 = arith.constant dense<0.000000e+00> : vector<1x512xf32>
    %109 = tpu.matmul %106, %108, %cst_186 {dimension_numbers = #tpu.dot_dimension_numbers<[1], [0], [0], [1], [0, 0, 1, 1], [], []>} : vector<1x64xbf16>, vector<64x512xbf16>, vector<1x512xf32> -> vector<1x512xf32>
    %110 = arith.addf %104, %109 : vector<1x512xf32>
    %111 = vector.extract_strided_slice %91 {offsets = [0, 3, 0], sizes = [1, 1, 64], strides = [1, 1, 1]} : vector<1x16x64xbf16> to vector<1x1x64xbf16>
    %112 = vector.shape_cast %111 : vector<1x1x64xbf16> to vector<1x64xbf16>
    %c3 = arith.constant 3 : index
    %c0_187 = arith.constant 0 : index
    %c0_188 = arith.constant 0 : index
    %113 = vector.load %arg15[%c3, %c0_187, %c0_188] : memref<16x64x512xbf16, #tpu.memory_space<vmem>>, vector<1x64x512xbf16>
    %114 = vector.shape_cast %113 : vector<1x64x512xbf16> to vector<64x512xbf16>
    %cst_189 = arith.constant dense<0.000000e+00> : vector<1x512xf32>
    %115 = tpu.matmul %112, %114, %cst_189 {dimension_numbers = #tpu.dot_dimension_numbers<[1], [0], [0], [1], [0, 0, 1, 1], [], []>} : vector<1x64xbf16>, vector<64x512xbf16>, vector<1x512xf32> -> vector<1x512xf32>
    %116 = arith.addf %110, %115 : vector<1x512xf32>
    %117 = vector.extract_strided_slice %91 {offsets = [0, 4, 0], sizes = [1, 1, 64], strides = [1, 1, 1]} : vector<1x16x64xbf16> to vector<1x1x64xbf16>
    %118 = vector.shape_cast %117 : vector<1x1x64xbf16> to vector<1x64xbf16>
    %c4 = arith.constant 4 : index
    %c0_190 = arith.constant 0 : index
    %c0_191 = arith.constant 0 : index
    %119 = vector.load %arg15[%c4, %c0_190, %c0_191] : memref<16x64x512xbf16, #tpu.memory_space<vmem>>, vector<1x64x512xbf16>
    %120 = vector.shape_cast %119 : vector<1x64x512xbf16> to vector<64x512xbf16>
    %cst_192 = arith.constant dense<0.000000e+00> : vector<1x512xf32>
    %121 = tpu.matmul %118, %120, %cst_192 {dimension_numbers = #tpu.dot_dimension_numbers<[1], [0], [0], [1], [0, 0, 1, 1], [], []>} : vector<1x64xbf16>, vector<64x512xbf16>, vector<1x512xf32> -> vector<1x512xf32>
    %122 = arith.addf %116, %121 : vector<1x512xf32>
    %123 = vector.extract_strided_slice %91 {offsets = [0, 5, 0], sizes = [1, 1, 64], strides = [1, 1, 1]} : vector<1x16x64xbf16> to vector<1x1x64xbf16>
    %124 = vector.shape_cast %123 : vector<1x1x64xbf16> to vector<1x64xbf16>
    %c5 = arith.constant 5 : index
    %c0_193 = arith.constant 0 : index
    %c0_194 = arith.constant 0 : index
    %125 = vector.load %arg15[%c5, %c0_193, %c0_194] : memref<16x64x512xbf16, #tpu.memory_space<vmem>>, vector<1x64x512xbf16>
    %126 = vector.shape_cast %125 : vector<1x64x512xbf16> to vector<64x512xbf16>
    %cst_195 = arith.constant dense<0.000000e+00> : vector<1x512xf32>
    %127 = tpu.matmul %124, %126, %cst_195 {dimension_numbers = #tpu.dot_dimension_numbers<[1], [0], [0], [1], [0, 0, 1, 1], [], []>} : vector<1x64xbf16>, vector<64x512xbf16>, vector<1x512xf32> -> vector<1x512xf32>
    %128 = arith.addf %122, %127 : vector<1x512xf32>
    %129 = vector.extract_strided_slice %91 {offsets = [0, 6, 0], sizes = [1, 1, 64], strides = [1, 1, 1]} : vector<1x16x64xbf16> to vector<1x1x64xbf16>
    %130 = vector.shape_cast %129 : vector<1x1x64xbf16> to vector<1x64xbf16>
    %c6 = arith.constant 6 : index
    %c0_196 = arith.constant 0 : index
    %c0_197 = arith.constant 0 : index
    %131 = vector.load %arg15[%c6, %c0_196, %c0_197] : memref<16x64x512xbf16, #tpu.memory_space<vmem>>, vector<1x64x512xbf16>
    %132 = vector.shape_cast %131 : vector<1x64x512xbf16> to vector<64x512xbf16>
    %cst_198 = arith.constant dense<0.000000e+00> : vector<1x512xf32>
    %133 = tpu.matmul %130, %132, %cst_198 {dimension_numbers = #tpu.dot_dimension_numbers<[1], [0], [0], [1], [0, 0, 1, 1], [], []>} : vector<1x64xbf16>, vector<64x512xbf16>, vector<1x512xf32> -> vector<1x512xf32>
    %134 = arith.addf %128, %133 : vector<1x512xf32>
    %135 = vector.extract_strided_slice %91 {offsets = [0, 7, 0], sizes = [1, 1, 64], strides = [1, 1, 1]} : vector<1x16x64xbf16> to vector<1x1x64xbf16>
    %136 = vector.shape_cast %135 : vector<1x1x64xbf16> to vector<1x64xbf16>
    %c7 = arith.constant 7 : index
    %c0_199 = arith.constant 0 : index
    %c0_200 = arith.constant 0 : index
    %137 = vector.load %arg15[%c7, %c0_199, %c0_200] : memref<16x64x512xbf16, #tpu.memory_space<vmem>>, vector<1x64x512xbf16>
    %138 = vector.shape_cast %137 : vector<1x64x512xbf16> to vector<64x512xbf16>
    %cst_201 = arith.constant dense<0.000000e+00> : vector<1x512xf32>
    %139 = tpu.matmul %136, %138, %cst_201 {dimension_numbers = #tpu.dot_dimension_numbers<[1], [0], [0], [1], [0, 0, 1, 1], [], []>} : vector<1x64xbf16>, vector<64x512xbf16>, vector<1x512xf32> -> vector<1x512xf32>
    %140 = arith.addf %134, %139 : vector<1x512xf32>
    %141 = vector.extract_strided_slice %91 {offsets = [0, 8, 0], sizes = [1, 1, 64], strides = [1, 1, 1]} : vector<1x16x64xbf16> to vector<1x1x64xbf16>
    %142 = vector.shape_cast %141 : vector<1x1x64xbf16> to vector<1x64xbf16>
    %c8 = arith.constant 8 : index
    %c0_202 = arith.constant 0 : index
    %c0_203 = arith.constant 0 : index
    %143 = vector.load %arg15[%c8, %c0_202, %c0_203] : memref<16x64x512xbf16, #tpu.memory_space<vmem>>, vector<1x64x512xbf16>
    %144 = vector.shape_cast %143 : vector<1x64x512xbf16> to vector<64x512xbf16>
    %cst_204 = arith.constant dense<0.000000e+00> : vector<1x512xf32>
    %145 = tpu.matmul %142, %144, %cst_204 {dimension_numbers = #tpu.dot_dimension_numbers<[1], [0], [0], [1], [0, 0, 1, 1], [], []>} : vector<1x64xbf16>, vector<64x512xbf16>, vector<1x512xf32> -> vector<1x512xf32>
    %146 = arith.addf %140, %145 : vector<1x512xf32>
    %147 = vector.extract_strided_slice %91 {offsets = [0, 9, 0], sizes = [1, 1, 64], strides = [1, 1, 1]} : vector<1x16x64xbf16> to vector<1x1x64xbf16>
    %148 = vector.shape_cast %147 : vector<1x1x64xbf16> to vector<1x64xbf16>
    %c9 = arith.constant 9 : index
    %c0_205 = arith.constant 0 : index
    %c0_206 = arith.constant 0 : index
    %149 = vector.load %arg15[%c9, %c0_205, %c0_206] : memref<16x64x512xbf16, #tpu.memory_space<vmem>>, vector<1x64x512xbf16>
    %150 = vector.shape_cast %149 : vector<1x64x512xbf16> to vector<64x512xbf16>
    %cst_207 = arith.constant dense<0.000000e+00> : vector<1x512xf32>
    %151 = tpu.matmul %148, %150, %cst_207 {dimension_numbers = #tpu.dot_dimension_numbers<[1], [0], [0], [1], [0, 0, 1, 1], [], []>} : vector<1x64xbf16>, vector<64x512xbf16>, vector<1x512xf32> -> vector<1x512xf32>
    %152 = arith.addf %146, %151 : vector<1x512xf32>
    %153 = vector.extract_strided_slice %91 {offsets = [0, 10, 0], sizes = [1, 1, 64], strides = [1, 1, 1]} : vector<1x16x64xbf16> to vector<1x1x64xbf16>
    %154 = vector.shape_cast %153 : vector<1x1x64xbf16> to vector<1x64xbf16>
    %c10 = arith.constant 10 : index
    %c0_208 = arith.constant 0 : index
    %c0_209 = arith.constant 0 : index
    %155 = vector.load %arg15[%c10, %c0_208, %c0_209] : memref<16x64x512xbf16, #tpu.memory_space<vmem>>, vector<1x64x512xbf16>
    %156 = vector.shape_cast %155 : vector<1x64x512xbf16> to vector<64x512xbf16>
    %cst_210 = arith.constant dense<0.000000e+00> : vector<1x512xf32>
    %157 = tpu.matmul %154, %156, %cst_210 {dimension_numbers = #tpu.dot_dimension_numbers<[1], [0], [0], [1], [0, 0, 1, 1], [], []>} : vector<1x64xbf16>, vector<64x512xbf16>, vector<1x512xf32> -> vector<1x512xf32>
    %158 = arith.addf %152, %157 : vector<1x512xf32>
    %159 = vector.extract_strided_slice %91 {offsets = [0, 11, 0], sizes = [1, 1, 64], strides = [1, 1, 1]} : vector<1x16x64xbf16> to vector<1x1x64xbf16>
    %160 = vector.shape_cast %159 : vector<1x1x64xbf16> to vector<1x64xbf16>
    %c11 = arith.constant 11 : index
    %c0_211 = arith.constant 0 : index
    %c0_212 = arith.constant 0 : index
    %161 = vector.load %arg15[%c11, %c0_211, %c0_212] : memref<16x64x512xbf16, #tpu.memory_space<vmem>>, vector<1x64x512xbf16>
    %162 = vector.shape_cast %161 : vector<1x64x512xbf16> to vector<64x512xbf16>
    %cst_213 = arith.constant dense<0.000000e+00> : vector<1x512xf32>
    %163 = tpu.matmul %160, %162, %cst_213 {dimension_numbers = #tpu.dot_dimension_numbers<[1], [0], [0], [1], [0, 0, 1, 1], [], []>} : vector<1x64xbf16>, vector<64x512xbf16>, vector<1x512xf32> -> vector<1x512xf32>
    %164 = arith.addf %158, %163 : vector<1x512xf32>
    %165 = vector.extract_strided_slice %91 {offsets = [0, 12, 0], sizes = [1, 1, 64], strides = [1, 1, 1]} : vector<1x16x64xbf16> to vector<1x1x64xbf16>
    %166 = vector.shape_cast %165 : vector<1x1x64xbf16> to vector<1x64xbf16>
    %c12 = arith.constant 12 : index
    %c0_214 = arith.constant 0 : index
    %c0_215 = arith.constant 0 : index
    %167 = vector.load %arg15[%c12, %c0_214, %c0_215] : memref<16x64x512xbf16, #tpu.memory_space<vmem>>, vector<1x64x512xbf16>
    %168 = vector.shape_cast %167 : vector<1x64x512xbf16> to vector<64x512xbf16>
    %cst_216 = arith.constant dense<0.000000e+00> : vector<1x512xf32>
    %169 = tpu.matmul %166, %168, %cst_216 {dimension_numbers = #tpu.dot_dimension_numbers<[1], [0], [0], [1], [0, 0, 1, 1], [], []>} : vector<1x64xbf16>, vector<64x512xbf16>, vector<1x512xf32> -> vector<1x512xf32>
    %170 = arith.addf %164, %169 : vector<1x512xf32>
    %171 = vector.extract_strided_slice %91 {offsets = [0, 13, 0], sizes = [1, 1, 64], strides = [1, 1, 1]} : vector<1x16x64xbf16> to vector<1x1x64xbf16>
    %172 = vector.shape_cast %171 : vector<1x1x64xbf16> to vector<1x64xbf16>
    %c13 = arith.constant 13 : index
    %c0_217 = arith.constant 0 : index
    %c0_218 = arith.constant 0 : index
    %173 = vector.load %arg15[%c13, %c0_217, %c0_218] : memref<16x64x512xbf16, #tpu.memory_space<vmem>>, vector<1x64x512xbf16>
    %174 = vector.shape_cast %173 : vector<1x64x512xbf16> to vector<64x512xbf16>
    %cst_219 = arith.constant dense<0.000000e+00> : vector<1x512xf32>
    %175 = tpu.matmul %172, %174, %cst_219 {dimension_numbers = #tpu.dot_dimension_numbers<[1], [0], [0], [1], [0, 0, 1, 1], [], []>} : vector<1x64xbf16>, vector<64x512xbf16>, vector<1x512xf32> -> vector<1x512xf32>
    %176 = arith.addf %170, %175 : vector<1x512xf32>
    %177 = vector.extract_strided_slice %91 {offsets = [0, 14, 0], sizes = [1, 1, 64], strides = [1, 1, 1]} : vector<1x16x64xbf16> to vector<1x1x64xbf16>
    %178 = vector.shape_cast %177 : vector<1x1x64xbf16> to vector<1x64xbf16>
    %c14 = arith.constant 14 : index
    %c0_220 = arith.constant 0 : index
    %c0_221 = arith.constant 0 : index
    %179 = vector.load %arg15[%c14, %c0_220, %c0_221] : memref<16x64x512xbf16, #tpu.memory_space<vmem>>, vector<1x64x512xbf16>
    %180 = vector.shape_cast %179 : vector<1x64x512xbf16> to vector<64x512xbf16>
    %cst_222 = arith.constant dense<0.000000e+00> : vector<1x512xf32>
    %181 = tpu.matmul %178, %180, %cst_222 {dimension_numbers = #tpu.dot_dimension_numbers<[1], [0], [0], [1], [0, 0, 1, 1], [], []>} : vector<1x64xbf16>, vector<64x512xbf16>, vector<1x512xf32> -> vector<1x512xf32>
    %182 = arith.addf %176, %181 : vector<1x512xf32>
    %183 = vector.extract_strided_slice %91 {offsets = [0, 15, 0], sizes = [1, 1, 64], strides = [1, 1, 1]} : vector<1x16x64xbf16> to vector<1x1x64xbf16>
    %184 = vector.shape_cast %183 : vector<1x1x64xbf16> to vector<1x64xbf16>
    %c15 = arith.constant 15 : index
    %c0_223 = arith.constant 0 : index
    %c0_224 = arith.constant 0 : index
    %185 = vector.load %arg15[%c15, %c0_223, %c0_224] : memref<16x64x512xbf16, #tpu.memory_space<vmem>>, vector<1x64x512xbf16>
    %186 = vector.shape_cast %185 : vector<1x64x512xbf16> to vector<64x512xbf16>
    %cst_225 = arith.constant dense<0.000000e+00> : vector<1x512xf32>
    %187 = tpu.matmul %184, %186, %cst_225 {dimension_numbers = #tpu.dot_dimension_numbers<[1], [0], [0], [1], [0, 0, 1, 1], [], []>} : vector<1x64xbf16>, vector<64x512xbf16>, vector<1x512xf32> -> vector<1x512xf32>
    %188 = arith.addf %182, %187 : vector<1x512xf32>
    %c0_226 = arith.constant 0 : index
    %c0_227 = arith.constant 0 : index
    %189 = vector.load %arg7[%c0_226, %c0_227] : memref<1x512xf32, #tpu.memory_space<vmem>>, vector<1x512xf32>
    %190 = arith.addf %188, %189 : vector<1x512xf32>
    %cst_228 = arith.constant 0.000000e+00 : f32
    %191 = vector.broadcast %cst_228 : f32 to vector<1x512xf32>
    %192 = arith.maximumf %190, %191 : vector<1x512xf32>
    %193 = arith.truncf %192 : vector<1x512xf32> to vector<1x512xbf16>
    %c0_229 = arith.constant 0 : index
    %c0_230 = arith.constant 0 : index
    %194 = vector.load %arg8[%c0_229, %c0_230] : memref<512x8xbf16, #tpu.memory_space<vmem>>, vector<512x8xbf16>
    %cst_231 = arith.constant dense<0.000000e+00> : vector<1x8xf32>
    %195 = tpu.matmul %193, %194, %cst_231 {dimension_numbers = #tpu.dot_dimension_numbers<[1], [0], [0], [1], [0, 0, 1, 1], [], []>} : vector<1x512xbf16>, vector<512x8xbf16>, vector<1x8xf32> -> vector<1x8xf32>
    %c0_232 = arith.constant 0 : index
    %c0_233 = arith.constant 0 : index
    %196 = vector.load %arg9[%c0_232, %c0_233] : memref<1x8xf32, #tpu.memory_space<vmem>>, vector<1x8xf32>
    %197 = arith.addf %195, %196 : vector<1x8xf32>
    %198 = vector.shape_cast %197 : vector<1x8xf32> to vector<1x1x8xf32>
    %c0_234 = arith.constant 0 : index
    %c0_235 = arith.constant 0 : index
    %c0_236 = arith.constant 0 : index
    %199 = vector.load %arg10[%c0_234, %c0_235, %c0_236] : memref<1x1x8xf32, #tpu.memory_space<vmem>>, vector<1x1x8xf32>
    tpu.vector_store %arg10[%c0_234, %c0_235, %c0_236], %198 {strides = array<i32>} : memref<1x1x8xf32, #tpu.memory_space<vmem>>, vector<1x1x8xf32>,
    return
  }
  func.func @transform_0(%arg0: i32) -> (i32, i32, i32, i32) {
    %c0_i32 = arith.constant 0 : i32
    %c0_i32_0 = arith.constant 0 : i32
    %c0_i32_1 = arith.constant 0 : i32
    %c0_i32_2 = arith.constant 0 : i32
    return %arg0, %c0_i32, %c0_i32_0, %c0_i32_1 : i32, i32, i32, i32
  }
  func.func @transform_1(%arg0: i32) -> (i32, i32) {
    %c0_i32 = arith.constant 0 : i32
    %c0_i32_0 = arith.constant 0 : i32
    %c0_i32_1 = arith.constant 0 : i32
    return %c0_i32, %c0_i32_0 : i32, i32
  }
  func.func @transform_2(%arg0: i32) -> (i32, i32) {
    %c0_i32 = arith.constant 0 : i32
    %c0_i32_0 = arith.constant 0 : i32
    %c0_i32_1 = arith.constant 0 : i32
    return %c0_i32, %c0_i32_0 : i32, i32
  }
  func.func @transform_3(%arg0: i32) -> (i32, i32) {
    %c0_i32 = arith.constant 0 : i32
    %c0_i32_0 = arith.constant 0 : i32
    %c0_i32_1 = arith.constant 0 : i32
    return %c0_i32, %c0_i32_0 : i32, i32
  }
  func.func @transform_4(%arg0: i32) -> (i32, i32) {
    %c0_i32 = arith.constant 0 : i32
    %c0_i32_0 = arith.constant 0 : i32
    %c0_i32_1 = arith.constant 0 : i32
    return %c0_i32, %c0_i32_0 : i32, i32
  }
  func.func @transform_6(%arg0: i32) -> (i32, i32) {
    %c0_i32 = arith.constant 0 : i32
    %c0_i32_0 = arith.constant 0 : i32
    %c0_i32_1 = arith.constant 0 : i32
    return %c0_i32, %c0_i32_0 : i32, i32
  }
  func.func @transform_7(%arg0: i32) -> (i32, i32) {
    %c0_i32 = arith.constant 0 : i32
    %c0_i32_0 = arith.constant 0 : i32
    %c0_i32_1 = arith.constant 0 : i32
    return %c0_i32, %c0_i32_0 : i32, i32
  }
  func.func @transform_8(%arg0: i32) -> (i32, i32) {
    %c0_i32 = arith.constant 0 : i32
    %c0_i32_0 = arith.constant 0 : i32
    %c0_i32_1 = arith.constant 0 : i32
    return %c0_i32, %c0_i32_0 : i32, i32
  }
  func.func @transform_9(%arg0: i32) -> (i32, i32, i32) {
    %c0_i32 = arith.constant 0 : i32
    %c0_i32_0 = arith.constant 0 : i32
    %c0_i32_1 = arith.constant 0 : i32
    return %arg0, %c0_i32, %c0_i32_0 : i32, i32, i32
  }
}

</mosaic_0001>

<bundles_post_ra>
// kernel: ani_cnn_forward.1
= control target key start
LH: loop header
LB: loop body
LE: loop exit
PB: predicated region body
PF: predicated region fallthrough
CT: control target
= control target key end

     0   :  { %14 = vsyncpa [#allocation9], 0  ;;  %s18110_s0 = inlined_call_operand.vmem [shape: f32[2,16,16,3], index: 0, kind: input, shape index: {}]   ;;  %s18111_s1 = inlined_call_operand.vmem [shape: bf16[1152,32], index: 1, kind: input, shape index: {}]   ;;  %s18112_s2 = inlined_call_operand.vmem [shape: f32[1,32], index: 2, kind: input, shape index: {}]   ;;  %s18113_s3 = inlined_call_operand.vmem [shape: bf16[1152,64], index: 3, kind: input, shape index: {}]   ;;  %s18114_s4 = inlined_call_operand.vmem [shape: f32[1,64], index: 4, kind: input, shape index: {}]   ;;  %s18115_s5 = inlined_call_operand.hbm [shape: bf16[16,64,512], index: 5, kind: input, shape index: {}]   ;;  %s18116_s6 = inlined_call_operand.vmem [shape: f32[1,512], index: 6, kind: input, shape index: {}]   ;;  %s18117_s7 = inlined_call_operand.vmem [shape: bf16[512,8], index: 7, kind: input, shape index: {}]   ;;  %s18118_s8 = inlined_call_operand.vmem [shape: f32[1,8], index: 8, kind: input, shape index: {}]   ;;  %s18119_s9 = inlined_call_operand.hbm [shape: f32[2,1,8], index: 9, kind: output, shape index: {}]  }
   0x1   :  { %16 = vsyncpa [#allocation9 + $0x1], 0  ;;  %s15361_s30 = smov 0   ;;  %s15363_s10 = smov 0  }
   0x2   :  { %s15365_s11 = smov 0   ;;  %s15367_s12 = smov 0  }
   0x3 LB: > { %s15382_s13 = sadd.s32 4294967295, %s15307_s12   ;;  %s11807_s14 = sadd.s32 4294967294, %s15307_s12   ;;  %s15307_s12 = sphi %s15367_s12, %s18157_s12   ;;  %s15303_s11 = sphi %s15365_s11, %s18156_s11   ;;  %s15299_s10 = sphi %s15363_s10, %s18155_s10   ;;  %s15295_s30 = sphi %s15361_s30, %s18154_s30  }
   0x4   : > { %s15386_s15 = sadd.s32 1, %s15307_s12   ;;  %s202_s16 = sadd.s32 1, %s15303_s11 }
   0x5   : > { %s199_s17 = ssub.s32 %s15307_s12, %s15386_s15  ;;  %p212_p0 = scmp.ne.s32.totalorder %s15303_s11, %s15299_s10 }
   0x6   : > { %p200_p1 = scmp.eq.s32.totalorder %s199_s17, 0  ;;  %p213_p2 = scmp.eq.s32.totalorder %s15382_s13, 1 }
   0x7   : > { %p218_p3 = scmp.ne.s32.totalorder %s15299_s10, %s15295_s30  ;;  %p219_p4 = scmp.eq.s32.totalorder %s11807_s14, 1 }
   0x8   : > { %s15397_s18 = scalar_select %p200_p1, %s15303_s11, %s202_s16  }
   0x9   : > { %p15399_p5 = por %p213_p2, %p212_p0  ;;  %p15403_p6 = por %p219_p4, %p218_p3 }
   0xa   : > { %p11810_p7 = scmp.ge.s32.totalorder %s15307_s12, 1  ;;  %p266_p8 = scmp.lt.s32.totalorder %s15307_s12, 3 }
   0xc   : > { %p267_p9 = pnand %p11810_p7, %p266_p8 }
   0xe   : > { %270 = sbr.rel (%p267_p9) target bundleno = 1866 (0x74a), region = 52 }
  0x13   : > { %v14712_v0 = vld [vmem:[%s18111_s1 + $0x38] sm:$0xff]  ;;  %v15309_v4 = vmov 0   ;;  %v14711_v5 = vld [vmem:[%s18111_s1 + $0x30] sm:$0xff]  ;;  %v14710_v9 = vld [vmem:[%s18111_s1 + $0x28] sm:$0xff]  ;;  %p299_p10 = scmp.lt.s32.totalorder %s15382_s13, 1  ;;  %vm1537_vm0 = vcmask 1042432  }
  0x14   : > { %v14728_v1 = vld [vmem:[%s18111_s1 + $0xb8] sm:$0xff]  ;;  %350 = vst [vmem:[#allocation2] sm:$0xf] %v15309_v4  ;;  %4857 = vmatpush.bf16.msra.mxu0 %v14712_v0  ;;  %v14727_v6 = vld [vmem:[%s18111_s1 + $0xb0] sm:$0xff]  ;;  %v14726_v10 = vld [vmem:[%s18111_s1 + $0xa8] sm:$0xff]  ;;  %vm1538_vm1 = vcmask 1046532  }
  0x15   : > { %v14720_v2 = vld [vmem:[%s18111_s1 + $0x78] sm:$0xff]  ;;  %5035 = vmatpush.bf16.msra.mxu2 %v14728_v1  ;;  %351 = vst [vmem:[#allocation2 + $0x4] sm:$0xf] %v15309_v4  ;;  %v14719_v7 = vld [vmem:[%s18111_s1 + $0x70] sm:$0xff]  ;;  %v14718_v11 = vld [vmem:[%s18111_s1 + $0x68] sm:$0xff]  ;;  %s300_s25 = scalar_select %p299_p10, %s15382_s13, 1 }
  0x16   : > { %v14736_v3 = vld [vmem:[%s18111_s1 + $0xf8] sm:$0xff]  ;;  %4946 = vmatpush.bf16.msra.mxu1 %v14720_v2  ;;  %v14735_v8 = vld [vmem:[%s18111_s1 + $0xf0] sm:$0xff]  ;;  %352 = vst [vmem:[#allocation2 + $0x8] sm:$0x1] %v15309_v4  ;;  %v14734_v12 = vld [vmem:[%s18111_s1 + $0xe8] sm:$0xff]  ;;  %vm760_vm8 = vcmask 19456  }
  0x17   : > { %5124 = vmatpush.bf16.msra.mxu3 %v14736_v3  ;;  %353 = vst [vmem:[#allocation2 + $0xc] sm:$0xf] %v15309_v4  ;;  %v14709_v13 = vld [vmem:[%s18111_s1 + $0x20] sm:$0xff]  ;;  %v14708_v19 = vld [vmem:[%s18111_s1 + $0x18] sm:$0xff]  ;;  %v14707_v23 = vld [vmem:[%s18111_s1 + $0x10] sm:$0xff]  ;;  %s14560_s26 = sshll.u32 %s300_s25, 8 }
  0x18   : > { %354 = vst [vmem:[#allocation2 + $0x10] sm:$0xf] %v15309_v4  ;;  %4858 = vmatpush.bf16.msra.mxu0 %v14711_v5  ;;  %v14725_v14 = vld [vmem:[%s18111_s1 + $0xa0] sm:$0xff]  ;;  %v14724_v20 = vld [vmem:[%s18111_s1 + $0x98] sm:$0xff]  ;;  %v14723_v24 = vld [vmem:[%s18111_s1 + $0x90] sm:$0xff]  ;;  %s15561_s29 = scalar_lea.vmem %s18110_s0, %s14560_s26  ;;  %vm768_vm10 = vcmask 16384  }
  0x19   : > { %5036 = vmatpush.bf16.msra.mxu2 %v14727_v6  ;;  %355 = vst [vmem:[#allocation2 + $0x14] sm:$0x1] %v15309_v4  ;;  %v14717_v16 = vld [vmem:[%s18111_s1 + $0x60] sm:$0xff]  ;;  %v14716_v21 = vld [vmem:[%s18111_s1 + $0x58] sm:$0xff]  ;;  %v14715_v25 = vld [vmem:[%s18111_s1 + $0x50] sm:$0xff]  ;;  %vm6704_vm14 = vcmask 1042434  }
  0x1a   : > { %4947 = vmatpush.bf16.msra.mxu1 %v14719_v7  ;;  %356 = vst [vmem:[#allocation2 + $0x18] sm:$0xf] %v15309_v4  ;;  %v14733_v17 = vld [vmem:[%s18111_s1 + $0xe0] sm:$0xff]  ;;  %v14732_v22 = vld [vmem:[%s18111_s1 + $0xd8] sm:$0xff]  ;;  %v14731_v26 = vld [vmem:[%s18111_s1 + $0xd0] sm:$0xff]  ;;  %vm6707_vm15 = vcmask 1043459  }
  0x1b   : > { %5125 = vmatpush.bf16.msra.mxu3 %v14735_v8  ;;  %357 = vst [vmem:[#allocation2 + $0x1c] sm:$0xf] %v15309_v4  ;;  %v878_v15 = vld [vmem:[#allocation2] sm:$0xf]  ;;  %v14706_v27 = vld [vmem:[%s18111_s1 + $0x8] sm:$0xff]  ;;  %v14744_v38 = vld [vmem:[%s18111_s1 + $0x138] sm:$0xff] }
  0x1c   : > { %358 = vst [vmem:[#allocation2 + $0x20] sm:$0x1] %v15309_v4  ;;  %4859 = vmatpush.bf16.msra.mxu0 %v14710_v9  ;;  %v879_v18 = vld [vmem:[#allocation2 + $0x4] sm:$0xf]  ;;  %v14722_v28 = vld [vmem:[%s18111_s1 + $0x88] sm:$0xff]  ;;  %v320_v52 = vld [vmem:[%s15561_s29 + $0x10] sm:$0xff] }
  0x1d   : > { %5037 = vmatpush.bf16.msra.mxu2 %v14726_v10  ;;  %359 = vst [vmem:[#allocation2 + $0x24] sm:$0xf] %v15309_v4  ;;  %v14714_v29 = vld [vmem:[%s18111_s1 + $0x48] sm:$0xff]  ;;  %v14705_v31 = vld [vmem:[%s18111_s1] sm:$0xff]  ;;  %v321_v56 = vld [vmem:[%s15561_s29 + $0x18] sm:$0xff]  ;;  %v406_v61 = vpack.c.bf16 %v320_v52, %v320_v52  ;;  %s297_s25 = sand.u32 1, %s15299_s10  }
  0x1e   : > { %4948 = vmatpush.bf16.msra.mxu1 %v14718_v11  ;;  %910 = vst [vmem:[#allocation3] sm:$0xf] %v878_v15  ;;  %v14730_v30 = vld [vmem:[%s18111_s1 + $0xc8] sm:$0xff]  ;;  %v14721_v32 = vld [vmem:[%s18111_s1 + $0x80] sm:$0xff]  ;;  %v15591_v0 = vpack.c.bf16 %v321_v56, %v321_v56  ;;  %vm436_vm2 = vsmask.f32 256  ;;  %vm15602_vm3 = vmor %vm1537_vm0, %vm1538_vm1 }
  0x1f   : > { %5126 = vmatpush.bf16.msra.mxu3 %v14734_v12  ;;  %911 = vst [vmem:[#allocation3 + $0x24] sm:$0xf] %v879_v18  ;;  %v14713_v35 = vld [vmem:[%s18111_s1 + $0x40] sm:$0xff]  ;;  %v319_v40 = vld [vmem:[%s15561_s29 + $0x8] sm:$0xff]  ;;  %vm990_vm4 = vsmask.f32 3328  ;;  %vm15648_vm13 = vmand %vm768_vm10, %vm436_vm2 }
  0x20   : > { %360 = vst [vmem:[#allocation2 + $0x28] sm:$0xf] %v15309_v4  ;;  %4860 = vmatpush.bf16.msra.mxu0 %v14709_v13  ;;  %v14729_v36 = vld [vmem:[%s18111_s1 + $0xc0] sm:$0xff]  ;;  %v15576_v45 = vpack.c.bf16 %v319_v40, %v319_v40  ;;  %v1443_v51 = vld [vmem:[#allocation2 + $0x8] sm:$0x1]  ;;  %v457_v11 = vshrl.u32 %v406_v61, 16 }
  0x21   : > { %5038 = vmatpush.bf16.msra.mxu2 %v14725_v14  ;;  %361 = vst [vmem:[#allocation2 + $0x2c] sm:$0x1] %v15309_v4  ;;  %v318_v39 = vld [vmem:[%s15561_s29] sm:$0xff]  ;;  %v944_v63 = vld [vmem:[#allocation2 + $0x8] sm:$0x1]  ;;  %v1545_v2 = vrot.slane %v1443_v51, 5 }
  0x22   : > { %4949 = vmatpush.bf16.msra.mxu1 %v14717_v16  ;;  %362 = vst [vmem:[#allocation2 + $0x30] sm:$0xf] %v15309_v4  ;;  %v942_v41 = vld [vmem:[#allocation2] sm:$0xf]  ;;  %v943_v42 = vld [vmem:[#allocation2 + $0x4] sm:$0xf]  ;;  %v15574_v44 = vpack.c.bf16 %v318_v39, %v318_v39 }
  0x23   : > { %5127 = vmatpush.bf16.msra.mxu3 %v14733_v17  ;;  %363 = vst [vmem:[#allocation2 + $0x34] sm:$0xf] %v15309_v4  ;;  %v1442_v43 = vld [vmem:[#allocation2 + $0x4] sm:$0xf]  ;;  %v994_v46 = vshrl.u32 %v942_v41, 16  ;;  %v997_v47 = vshll.u32 %v942_v41, 16 }
  0x24   : > { %364 = vst [vmem:[#allocation2 + $0x38] sm:$0x1] %v15309_v4  ;;  %4861 = vmatpush.bf16.msra.mxu0 %v14708_v19  ;;  %v1003_v48 = vshll.u32 %v943_v42, 16  ;;  %v1007_v49 = vshrl.u32 %v943_v42, 16  ;;  %v1441_v50 = vld [vmem:[#allocation2] sm:$0xe] }
  0x25   : > { %5039 = vmatpush.bf16.msra.mxu2 %v14724_v20  ;;  %365 = vst [vmem:[#allocation2 + $0x3c] sm:$0xf] %v15309_v4  ;;  %v11863_v33 = vld [vmem:[#allocation3] sm:$0xf]  ;;  %v1542_v53 = vrot.slane %v1442_v43, 5  ;;  %v440_v54 = vshrl.u32 %v15574_v44, 16 }
  0x26   : > { %4950 = vmatpush.bf16.msra.mxu1 %v14716_v21  ;;  %366 = vst [vmem:[#allocation2 + $0x40] sm:$0xf] %v15309_v4  ;;  %v14565_v34 = vld [vmem:[#allocation3 + $0x20] sm:$0xf0]  ;;  %v448_v55 = vshrl.u32 %v15576_v45, 16  ;;  %v996_v57 = vrot.slane %v994_v46, 4 }
  0x27   : > { %5128 = vmatpush.bf16.msra.mxu3 %v14732_v22  ;;  %367 = vst [vmem:[#allocation2 + $0x44] sm:$0x1] %v15309_v4  ;;  %v11864_v37 = vor.u32 %v14565_v34, %v11863_v33  ;;  %v999_v58 = vrot.slane %v997_v47, 5  ;;  %v15587_v59 = vrot.slane %v1003_v48, 5  ;;  %v1009_v60 = vrot.slane %v1007_v49, 4  ;;  %v322_v17 = vld [vmem:[%s15561_s29 + $0x20] sm:$0xff] }
  0x28   : > { %368 = vst [vmem:[#allocation2 + $0x48] sm:$0xf] %v15309_v4  ;;  %4862 = vmatpush.bf16.msra.mxu0 %v14707_v23  ;;  %v11813_v62 = vrot.slane %v1441_v50, 9  ;;  %v1544_v1 = vrot.slane %v1542_v53, 4  ;;  %v15594_v3 = vrot.slane %v440_v54, 7  ;;  %v443_v5 = vshll.u32 %v15574_v44, 16 }
  0x29   : > { %5040 = vmatpush.bf16.msra.mxu2 %v14723_v24  ;;  %369 = vst [vmem:[#allocation2 + $0x4c] sm:$0xf] %v15309_v4  ;;  %v1000_v6 = vor.u32 %v999_v58, %v996_v57  ;;  %v1010_v7 = vor.u32 %v1009_v60, %v15587_v59  ;;  %v450_v8 = vrot.slane %v448_v55, 7  ;;  %v1013_v10 = vshll.u32 %v944_v63, 16  ;;  %v773_v44 = vld [vmem:[#allocation2 + $0x18] sm:$0xf] }
  0x2a   : > { %4951 = vmatpush.bf16.msra.mxu1 %v14715_v25  ;;  %370 = vst [vmem:[#allocation2 + $0x50] sm:$0x1] %v15309_v4  ;;  %vm991_vm5 = vsmask.f32 7440  ;;  %v451_v12 = vshll.u32 %v15576_v45, 16  ;;  %v465_v13 = vshrl.u32 %v15591_v0, 16  ;;  %v1543_v14 = vsel %vm15602_vm3, %v11813_v62, %v1542_v53 }
  0x2b   : > { %5129 = vmatpush.bf16.msra.mxu3 %v14731_v26  ;;  %371 = vst [vmem:[#allocation2 + $0x54] sm:$0xf] %v15309_v4  ;;  %vm437_vm6 = vsmask.f32 4368  ;;  %vm761_vm7 = vsmask.f32 7938  ;;  %vm15616_vm9 = vmor %vm990_vm4, %vm991_vm5  ;;  %v408_v22 = vpack.c.bf16 %v322_v17, %v322_v17  ;;  %v445_v23 = vor.u32 %v443_v5, %v15594_v3 }
  0x2c   : > { %372 = vst [vmem:[#allocation2 + $0x58] sm:$0xf] %v15309_v4  ;;  %4863 = vmatpush.bf16.msra.mxu0 %v14706_v27  ;;  %v1001_v15 = vrot.slane %v1000_v6, 4  ;;  %v1011_v16 = vrot.slane %v1010_v7, 4  ;;  %v1015_v19 = vrot.slane %v1013_v10, 5  ;;  %v459_v20 = vrot.slane %v457_v11, 7  ;;  %vm15629_vm11 = vmand %vm760_vm8, %vm761_vm7 }
  0x2d   : > { %5041 = vmatpush.bf16.msra.mxu2 %v14722_v28  ;;  %373 = vst [vmem:[#allocation2 + $0x5c] sm:$0x1] %v15309_v4  ;;  %v460_v21 = vshll.u32 %v406_v61, 16  ;;  %v467_v24 = vrot.slane %v465_v13, 7  ;;  %v468_v25 = vshll.u32 %v15591_v0, 16  ;;  %v1546_v26 = vsel %vm15602_vm3, %v1544_v1, %v1545_v2  ;;  %vm15639_vm12 = vmor %vm436_vm2, %vm437_vm6  ;;  %s312_s27 = sshll.u32 %s18115_s5, 4  ;;  %s313_s27 = int_to_ptr.hbm [resolvable:$true] %s312_s27 }
  0x2e   : > { %4952 = vmatpush.bf16.msra.mxu1 %v14714_v29  ;;  %374 = vst [vmem:[#allocation2 + $0x60] sm:$0xf] %v15309_v4  ;;  %v446_v27 = vrot.slane %v15594_v3, 4  ;;  %v453_v28 = vor.u32 %v451_v12, %v450_v8  ;;  %v455_v34 = vrot.slane %v450_v8, 4  ;;  %v477_v40 = vshll.u32 %v408_v22, 16  ;;  %v14743_v12 = vld [vmem:[%s18111_s1 + $0x130] sm:$0xff] }
  0x2f   : > { %5130 = vmatpush.bf16.msra.mxu3 %v14730_v30  ;;  %375 = vst [vmem:[#allocation2 + $0x64] sm:$0xf] %v15309_v4  ;;  %v763_v30 = vld [vmem:[#allocation2 + $0xc] sm:$0xf]  ;;  %v463_v42 = vrot.slane %v459_v20, 4  ;;  %v470_v43 = vor.u32 %v468_v25, %v467_v24  ;;  %v472_v46 = vrot.slane %v467_v24, 4 }
  0x30   : > { %376 = vst [vmem:[#allocation2 + $0x68] sm:$0x1] %v15309_v4  ;;  %4864 = vmatpush.bf16.msra.mxu0 %v14705_v31  ;;  %v474_v31 = vshrl.u32 %v408_v22, 16  ;;  %v764_v41 = vsel %vm15629_vm11, %v445_v23, %v763_v30  ;;  %v454_v45 = vsel %vm15639_vm12, %v446_v27, %v453_v28  ;;  %v777_v49 = vld [vmem:[#allocation2 + $0x20] sm:$0x1]  ;;  %vm6710_vm0 = vcmask 1044484  }
  0x31   : > { %5042 = vmatpush.bf16.msra.mxu2 %v14721_v32  ;;  %377 = vst [vmem:[#allocation2 + $0x6c] sm:$0xf] %v15309_v4  ;;  %v1006_v32 = vsel %vm15616_vm9, %v1001_v15, %v15587_v59  ;;  %v780_v52 = vld [vmem:[#allocation2 + $0x24] sm:$0xf]  ;;  %v471_v53 = vsel %vm15639_vm12, %v463_v42, %v470_v43  ;;  %v778_v54 = vsel %vm15648_vm13, %v472_v46, %v777_v49  ;;  %vm6713_vm1 = vcmask 1045509   ;;  %s15310_s28 = smov [#allocation6]  }
  0x32   : > { %4953 = vmatpush.bf16.msra.mxu1 %v14713_v35  ;;  %378 = vst [vmem:[#allocation2 + $0x70] sm:$0xf] %v15309_v4  ;;  %v323_v35 = vld [vmem:[%s15561_s29 + $0x28] sm:$0xff]  ;;  %v15652_v39 = vrot.slane %v474_v31, 7  ;;  %vm6716_vm4 = vcmask 1046534   ;;  %vm6850_vm5 = vcmask 253952  }
  0x33   : > { %5131 = vmatpush.bf16.msra.mxu3 %v14729_v36  ;;  %379 = vst [vmem:[#allocation2 + $0x74] sm:$0x1] %v15309_v4  ;;  %4865 = vmatmul.bf16.vlgmr.msra.gmra.mxu0 %v11864_v37  ;;  %v1016_v36 = vsel %vm15616_vm9, %v1011_v16, %v1015_v19  ;;  %v770_v37 = vld [vmem:[#allocation2 + $0x14] sm:$0x1]  ;;  %v15658_v47 = vpack.c.bf16 %v323_v35, %v323_v35  ;;  %vm6719_vm6 = vcmask 1047559   ;;  %vm16795_vm10 = vmand %vm6850_vm5, %vm436_vm2  ;;  %s314_s14 = sshll.u32 %s15310_s28, 4  ;;  %s315_s14 = int_to_ptr.vmem [resolvable:$true] %s314_s14 }
  0x34   : > { %380 = vst [vmem:[#allocation2 + $0x78] sm:$0xf] %v15309_v4  ;;  %5213 = vmatpush.bf16.msrb.mxu0 %v14744_v38  ;;  %v462_v38 = vor.u32 %v460_v21, %v459_v20  ;;  %v771_v48 = vsel %vm15648_vm13, %v455_v34, %v770_v37  ;;  %v479_v50 = vor.u32 %v477_v40, %v15652_v39  ;;  %v324_v21 = vld [vmem:[%s15561_s29 + $0x30] sm:$0xff]  ;;  %v480_v49 = vrot.slane %v15652_v39, 4  ;;  %317 = dma.hbm_to_vmem [thread:$0]  %s313_s27, 32768, %s315_s14, [#allocation7] }
  0x35   : > { %381 = vst [vmem:[#allocation2 + $0x7c] sm:$0xf] %v15309_v4  ;;  %v482_v55 = vshrl.u32 %v15658_v47, 16  ;;  %v485_v25 = vshll.u32 %v15658_v47, 16  ;;  %s17683_s16 = scalar_lea.vmem [#allocation8], %s297_s25 }
  0x36   : > { %382 = vst [vmem:[#allocation2 + $0x80] sm:$0x1] %v15309_v4  ;;  %v774_v51 = vsel %vm15629_vm11, %v462_v38, %v773_v44  ;;  %v781_v57 = vsel %vm15629_vm11, %v479_v50, %v780_v52 }
  0x37   : > { %383 = vst [vmem:[#allocation2 + $0x84] sm:$0xf] %v15309_v4  ;;  %v15674_v62 = vrot.slane %v482_v55, 7 }
  0x38   : > { %384 = vst [vmem:[#allocation2 + $0x88] sm:$0xf] %v15309_v4  ;;  %5214 = vmatpush.bf16.msrb.mxu0 %v14743_v12 }
  0x39   : > { %385 = vst [vmem:[#allocation2 + $0x8c] sm:$0x1] %v15309_v4  ;;  %v487_v50 = vor.u32 %v485_v25, %v15674_v62 }
  0x3a   : > { %386 = vst [vmem:[#allocation2 + $0x90] sm:$0xf] %v15309_v4 }
  0x3b   : > { %387 = vst [vmem:[#allocation2 + $0x94] sm:$0xf] %v15309_v4 }
  0x3c   : > { %388 = vst [vmem:[#allocation2 + $0x98] sm:$0x1] %v15309_v4 }
  0x3d   : > { %389 = vst [vmem:[#allocation2 + $0x9c] sm:$0xf] %v15309_v4 }
  0x3e   : > { %390 = vst [vmem:[#allocation2 + $0xa0] sm:$0xf] %v15309_v4 }
  0x3f   : > { %391 = vst [vmem:[#allocation2 + $0xa4] sm:$0x1] %v15309_v4 }
  0x40   : > { %392 = vst [vmem:[#allocation2 + $0xa8] sm:$0xf] %v15309_v4 }
  0x41   : > { %393 = vst [vmem:[#allocation2 + $0xac] sm:$0xf] %v15309_v4 }
  0x42   : > { %394 = vst [vmem:[#allocation2 + $0xb0] sm:$0x1] %v15309_v4 }
  0x43   : > { %395 = vst [vmem:[#allocation2 + $0xb4] sm:$0xf] %v15309_v4 }
  0x44   : > { %396 = vst [vmem:[#allocation2 + $0xb8] sm:$0xf] %v15309_v4 }
  0x45   : > { %397 = vst [vmem:[#allocation2 + $0xbc] sm:$0x1] %v15309_v4 }
  0x46   : > { %398 = vst [vmem:[#allocation2 + $0xc0] sm:$0xf] %v15309_v4 }
  0x47   : > { %399 = vst [vmem:[#allocation2 + $0xc4] sm:$0xf] %v15309_v4 }
  0x48   : > { %400 = vst [vmem:[#allocation2 + $0xc8] sm:$0x1] %v15309_v4 }
  0x49   : > { %401 = vst [vmem:[#allocation2 + $0xcc] sm:$0xf] %v15309_v4 }
  0x4a   : > { %402 = vst [vmem:[#allocation2 + $0xd0] sm:$0xf] %v15309_v4 }
  0x4b   : > { %403 = vst [vmem:[#allocation2 + $0xd4] sm:$0x1] %v15309_v4 }
  0x4c   : > { %6490 = vst [vmem:[#allocation4] sm:$0xf] %v15309_v4 }
  0x4d   : > { %6491 = vst [vmem:[#allocation4 + $0x4] sm:$0x1] %v15309_v4 }
  0x4e   : > { %6492 = vst [vmem:[#allocation4 + $0x8] sm:$0xf] %v15309_v4 }
  0x4f   : > { %6493 = vst [vmem:[#allocation4 + $0xc] sm:$0x1] %v15309_v4 }
  0x50   : > { %6494 = vst [vmem:[#allocation4 + $0x10] sm:$0xf] %v15309_v4 }
  0x51   : > { %6495 = vst [vmem:[#allocation4 + $0x14] sm:$0x1] %v15309_v4 }
  0x52   : > { %6496 = vst [vmem:[#allocation4 + $0x18] sm:$0xf] %v15309_v4 }
  0x53   : > { %6497 = vst [vmem:[#allocation4 + $0x1c] sm:$0x1] %v15309_v4 }
  0x54   : > { %6498 = vst [vmem:[#allocation4 + $0x20] sm:$0xf] %v15309_v4 }
  0x55   : > { %6499 = vst [vmem:[#allocation4 + $0x24] sm:$0x1] %v15309_v4 }
  0x56   : > { %6500 = vst [vmem:[#allocation4 + $0x28] sm:$0xf] %v15309_v4 }
  0x57   : > { %6501 = vst [vmem:[#allocation4 + $0x2c] sm:$0x1] %v15309_v4 }
  0x58   : > { %6502 = vst [vmem:[#allocation4 + $0x30] sm:$0xf] %v15309_v4 }
  0x59   : > { %6503 = vst [vmem:[#allocation4 + $0x34] sm:$0x1] %v15309_v4 }
  0x5a   : > { %6504 = vst [vmem:[#allocation4 + $0x38] sm:$0xf] %v15309_v4 }
  0x5b   : > { %6505 = vst [vmem:[#allocation4 + $0x3c] sm:$0x1] %v15309_v4 }
  0x5c   : > { %6506 = vst [vmem:[#allocation4 + $0x40] sm:$0xf] %v15309_v4 }
  0x5d   : > { %6507 = vst [vmem:[#allocation4 + $0x44] sm:$0x1] %v15309_v4 }
  0x5e   : > { %6508 = vst [vmem:[#allocation4 + $0x48] sm:$0xf] %v15309_v4 }
  0x5f   : > { %6509 = vst [vmem:[#allocation4 + $0x4c] sm:$0x1] %v15309_v4 }
  0x60   : > { %1684 = vst [vmem:[#allocation3 + $0x8] sm:$0xf] %v1543_v14 }
  0x61   : > { %1685 = vst [vmem:[#allocation3 + $0x2c] sm:$0xf] %v1546_v26 }
  0x62   : > { %1409 = vst [vmem:[#allocation3 + $0x4] sm:$0xf] %v1006_v32 }
  0x63   : > { %1410 = vst [vmem:[#allocation3 + $0x28] sm:$0xf] %v1016_v36  ;;  %v15685_v36 = vpack.c.bf16 %v324_v21, %v324_v21 }
  0x64   : > { %765 = vst [vmem:[#allocation2 + $0xc] sm:$0xf] %v764_v41  ;;  %v325_v41 = vld [vmem:[%s15561_s29 + $0x38] sm:$0xff] }
  0x65   : > { %767 = vst.msk [vmem:[#allocation2 + $0x10] sm:$0xf] %vm760_vm8, %v454_v45 }
  0x66   : > { %772 = vst [vmem:[#allocation2 + $0x14] sm:$0x1] %v771_v48 }
  0x67   : > { %v11871_v56 = vld [vmem:[#allocation3 + $0x8] sm:$0xf]  ;;  %775 = vst [vmem:[#allocation2 + $0x18] sm:$0xf] %v774_v51 }
  0x68   : > { %v14566_v58 = vld [vmem:[#allocation3 + $0x28] sm:$0xf0]  ;;  %776 = vst.msk [vmem:[#allocation2 + $0x1c] sm:$0xf] %vm760_vm8, %v471_v53 }
  0x69   : > { %v11872_v59 = vor.u32 %v14566_v58, %v11871_v56  ;;  %v14561_v60 = vld [vmem:[#allocation3 + $0x4] sm:$0xf]  ;;  %779 = vst [vmem:[#allocation2 + $0x20] sm:$0x1] %v778_v54  ;;  %v491_v54 = vshrl.u32 %v15685_v36, 16  ;;  %v15693_v58 = vpack.c.bf16 %v325_v41, %v325_v41 }
  0x6a   : > { %v11865_v61 = vld [vmem:[#allocation3 + $0x24] sm:$0xf0]  ;;  %782 = vst [vmem:[#allocation2 + $0x24] sm:$0xf] %v781_v57  ;;  %v784_v41 = vld [vmem:[#allocation2 + $0x2c] sm:$0x1] }
  0x6b   : > { %5043 = vmatmul.bf16.vlgmr.msra.gmra.mxu2 %v11872_v59  ;;  %v11868_v63 = vor.u32 %v14561_v60, %v11865_v61  ;;  %v1716_v0 = vld [vmem:[#allocation2 + $0xc] sm:$0xf]  ;;  %v499_v12 = vshrl.u32 %v15693_v58, 16 }
  0x6c   : > { %v880_v1 = vld [vmem:[#allocation2 + $0xc] sm:$0xf]  ;;  %v1717_v3 = vld [vmem:[#allocation2 + $0x10] sm:$0xf]  ;;  %1748 = vst [vmem:[#allocation3 + $0xc] sm:$0xf] %v1716_v0 }
  0x6d   : > { %v1444_v2 = vld [vmem:[#allocation2 + $0xc] sm:$0xe]  ;;  %v881_v5 = vld [vmem:[#allocation2 + $0x10] sm:$0xf]  ;;  %4954 = vmatmul.bf16.vlgmr.msra.gmra.mxu1 %v11868_v63  ;;  %1749 = vst [vmem:[#allocation3 + $0x30] sm:$0xf] %v1717_v3 }
  0x6e   : > { %v1445_v6 = vld [vmem:[#allocation2 + $0x10] sm:$0xf]  ;;  %v1446_v7 = vld [vmem:[#allocation2 + $0x14] sm:$0x1]  ;;  %912 = vst [vmem:[#allocation3 + $0x48] sm:$0xf] %v880_v1  ;;  %v488_v1 = vsel %vm15639_vm12, %v480_v49, %v487_v50 }
  0x6f   : > { %v11814_v8 = vrot.slane %v1444_v2, 9  ;;  %v1549_v10 = vrot.slane %v1445_v6, 5  ;;  %v1552_v11 = vrot.slane %v1446_v7, 5  ;;  %913 = vst [vmem:[#allocation3 + $0x6c] sm:$0xf] %v881_v5  ;;  %v489_v2 = vrot.slane %v15674_v62, 4 }
  0x70   : > { %v945_v13 = vld [vmem:[#allocation2 + $0xc] sm:$0xf]  ;;  %v946_v14 = vld [vmem:[#allocation2 + $0x10] sm:$0xf]  ;;  %v947_v17 = vld [vmem:[#allocation2 + $0x14] sm:$0x1] }
  0x71   : > { %v1550_v15 = vsel %vm15602_vm3, %v11814_v8, %v1549_v10  ;;  %v1551_v16 = vrot.slane %v1549_v10, 4  ;;  %v1018_v19 = vshrl.u32 %v945_v13, 16  ;;  %v1021_v20 = vshll.u32 %v945_v13, 16  ;;  %v1718_v30 = vld [vmem:[#allocation2 + $0x18] sm:$0xf] }
  0x72   : > { %1686 = vst [vmem:[#allocation3 + $0x50] sm:$0xf] %v1550_v15  ;;  %v1027_v22 = vshll.u32 %v946_v14, 16  ;;  %v1031_v23 = vshrl.u32 %v946_v14, 16  ;;  %v1037_v24 = vshll.u32 %v947_v17, 16  ;;  %v15702_v8 = vrot.slane %v491_v54, 7 }
  0x73   : > { %v1553_v26 = vsel %vm15602_vm3, %v1551_v16, %v1552_v11  ;;  %v1020_v27 = vrot.slane %v1018_v19, 4  ;;  %v1023_v28 = vrot.slane %v1021_v20, 5  ;;  %v1719_v31 = vld [vmem:[#allocation2 + $0x1c] sm:$0xf]  ;;  %v14562_v32 = vld [vmem:[#allocation3 + $0xc] sm:$0xf] }
  0x74   : > { %1687 = vst [vmem:[#allocation3 + $0x74] sm:$0xf] %v1553_v26  ;;  %v1029_v34 = vrot.slane %v1027_v22, 5  ;;  %v1033_v35 = vrot.slane %v1031_v23, 4  ;;  %v11873_v37 = vld [vmem:[#allocation3 + $0x2c] sm:$0xf0] }
  0x75   : > { %v1024_v38 = vor.u32 %v1023_v28, %v1020_v27  ;;  %v1039_v40 = vrot.slane %v1037_v24, 5  ;;  %1750 = vst [vmem:[#allocation3 + $0x54] sm:$0xf] %v1718_v30  ;;  %v11876_v42 = vor.u32 %v14562_v32, %v11873_v37  ;;  %v11899_v43 = vld [vmem:[#allocation3 + $0x48] sm:$0xf]  ;;  %v494_v11 = vshll.u32 %v15685_v36, 16 }
  0x76   : > { %v1034_v44 = vor.u32 %v1033_v35, %v1029_v34  ;;  %1751 = vst [vmem:[#allocation3 + $0x78] sm:$0xf] %v1719_v31  ;;  %v882_v45 = vld [vmem:[#allocation2 + $0x18] sm:$0xf]  ;;  %v14574_v46 = vld [vmem:[#allocation3 + $0x68] sm:$0xf0] }
  0x77   : > { %v1025_v47 = vrot.slane %v1024_v38, 4  ;;  %v883_v48 = vld [vmem:[#allocation2 + $0x1c] sm:$0xf]  ;;  %5132 = vmatmul.bf16.vlgmr.msra.gmra.mxu3 %v11876_v42  ;;  %v11900_v51 = vor.u32 %v14574_v46, %v11899_v43  ;;  %914 = vst [vmem:[#allocation3 + $0x90] sm:$0xf] %v882_v45  ;;  %v497_v24 = vrot.slane %v15702_v8, 4 }
  0x78   : > { %v1035_v52 = vrot.slane %v1034_v44, 4  ;;  %v1447_v53 = vld [vmem:[#allocation2 + $0x18] sm:$0xe]  ;;  %915 = vst [vmem:[#allocation3 + $0xb4] sm:$0xf] %v883_v48  ;;  %v15710_v36 = vrot.slane %v499_v12, 7 }
  0x79   : > { %v11907_v55 = vld [vmem:[#allocation3 + $0x50] sm:$0xf]  ;;  %v1030_v56 = vsel %vm15616_vm9, %v1025_v47, %v1029_v34  ;;  %v1448_v57 = vld [vmem:[#allocation2 + $0x1c] sm:$0xf]  ;;  %4870 = vmatmul.bf16.gmra.mxu0 %v11900_v51  ;;  %v1449_v59 = vld [vmem:[#allocation2 + $0x20] sm:$0x1] }
  0x7a   : > { %v1040_v39 = vsel %vm15616_vm9, %v1035_v52, %v1039_v40  ;;  %1411 = vst [vmem:[#allocation3 + $0x4c] sm:$0xf] %v1030_v56  ;;  %v11815_v60 = vrot.slane %v1447_v53, 9  ;;  %v1556_v61 = vrot.slane %v1448_v57, 5  ;;  %v1559_v0 = vrot.slane %v1449_v59, 5 }
  0x7b   : > { %v14575_v63 = vld [vmem:[#allocation3 + $0x70] sm:$0xf0]  ;;  %1412 = vst [vmem:[#allocation3 + $0x70] sm:$0xf] %v1040_v39  ;;  %v948_v7 = vld [vmem:[#allocation2 + $0x18] sm:$0xf]  ;;  %v785_v56 = vsel %vm15648_vm13, %v489_v2, %v784_v41 }
  0x7c   : > { %v11908_v3 = vor.u32 %v14575_v63, %v11907_v55  ;;  %v1557_v5 = vsel %vm15602_vm3, %v11815_v60, %v1556_v61  ;;  %v1558_v6 = vrot.slane %v1556_v61, 4  ;;  %v949_v10 = vld [vmem:[#allocation2 + $0x1c] sm:$0xf]  ;;  %v950_v14 = vld [vmem:[#allocation2 + $0x20] sm:$0x1]  ;;  %v1042_v62 = vshrl.u32 %v948_v7, 16 }
  0x7d   : > { %1688 = vst [vmem:[#allocation3 + $0x98] sm:$0xf] %v1557_v5  ;;  %v1045_v15 = vshll.u32 %v948_v7, 16  ;;  %v14571_v16 = vld [vmem:[#allocation3 + $0x54] sm:$0xf]  ;;  %v1051_v17 = vshll.u32 %v949_v10, 16 }
  0x7e   : > { %5048 = vmatmul.bf16.gmra.mxu2 %v11908_v3  ;;  %v1560_v13 = vsel %vm15602_vm3, %v1558_v6, %v1559_v0  ;;  %783 = vst.msk [vmem:[#allocation2 + $0x28] sm:$0xf] %vm760_vm8, %v488_v1  ;;  %v1055_v19 = vshrl.u32 %v949_v10, 16  ;;  %v11909_v20 = vld [vmem:[#allocation3 + $0x74] sm:$0xf0]  ;;  %v1044_v21 = vrot.slane %v1042_v62, 4  ;;  %v496_v0 = vor.u32 %v494_v11, %v15702_v8 }
  0x7f   : > { %1689 = vst [vmem:[#allocation3 + $0xbc] sm:$0xf] %v1560_v13  ;;  %v1047_v22 = vrot.slane %v1045_v15, 5  ;;  %v1061_v23 = vshll.u32 %v950_v14, 16  ;;  %v11935_v26 = vld [vmem:[#allocation3 + $0x90] sm:$0xf]  ;;  %v11912_v43 = vor.u32 %v14571_v16, %v11909_v20 }
  0x80   : > { %v14583_v27 = vld [vmem:[#allocation3 + $0xb0] sm:$0xf0]  ;;  %v1053_v28 = vrot.slane %v1051_v17, 5  ;;  %v1057_v30 = vrot.slane %v1055_v19, 4  ;;  %v1720_v31 = vld [vmem:[#allocation2 + $0x24] sm:$0xf] }
  0x81   : > { %v14570_v25 = vld [vmem:[#allocation3 + $0x4c] sm:$0xf]  ;;  %v1048_v34 = vor.u32 %v1047_v22, %v1044_v21  ;;  %v1063_v35 = vrot.slane %v1061_v23, 5  ;;  %1752 = vst [vmem:[#allocation3 + $0x9c] sm:$0xf] %v1720_v31  ;;  %v502_v50 = vshll.u32 %v15693_v58, 16  ;;  %v11936_v51 = vor.u32 %v14583_v27, %v11935_v26 }
  0x82   : > { %v11901_v32 = vld [vmem:[#allocation3 + $0x6c] sm:$0xf0]  ;;  %v1058_v38 = vor.u32 %v1057_v30, %v1053_v28  ;;  %v884_v40 = vld [vmem:[#allocation2 + $0x24] sm:$0xf]  ;;  %786 = vst [vmem:[#allocation2 + $0x2c] sm:$0x1] %v785_v56 }
  0x83   : > { %v11904_v37 = vor.u32 %v14570_v25, %v11901_v32  ;;  %v1450_v42 = vld [vmem:[#allocation2 + $0x24] sm:$0xe]  ;;  %v1049_v45 = vrot.slane %v1048_v34, 4  ;;  %916 = vst [vmem:[#allocation3 + $0xd8] sm:$0xf] %v884_v40  ;;  %v504_v59 = vor.u32 %v502_v50, %v15710_v36  ;;  %v506_v13 = vrot.slane %v15710_v36, 4 }
  0x84   : > { %v11943_v44 = vld [vmem:[#allocation3 + $0x98] sm:$0xf]  ;;  %v11816_v46 = vrot.slane %v1450_v42, 9  ;;  %v1059_v47 = vrot.slane %v1058_v38, 4  ;;  %v951_v39 = vld [vmem:[#allocation2 + $0x24] sm:$0xf] }
  0x85   : > { %4959 = vmatmul.bf16.gmra.mxu1 %v11904_v37  ;;  %v1721_v48 = vld [vmem:[#allocation2 + $0x28] sm:$0xf]  ;;  %v1054_v53 = vsel %vm15616_vm9, %v1049_v45, %v1053_v28  ;;  %v326_v60 = vld [vmem:[%s15561_s29 + $0x40] sm:$0xff]  ;;  %v1066_v61 = vshrl.u32 %v951_v39, 16  ;;  %v1069_v63 = vshll.u32 %v951_v39, 16  ;;  %v505_v6 = vsel %vm15639_vm12, %v497_v24, %v504_v59 }
  0x86   : > { %v885_v49 = vld [vmem:[#allocation2 + $0x28] sm:$0xf]  ;;  %v14584_v52 = vld [vmem:[#allocation3 + $0xb8] sm:$0xf0]  ;;  %1753 = vst [vmem:[#allocation3 + $0xc0] sm:$0xf] %v1721_v48  ;;  %v1064_v55 = vsel %vm15616_vm9, %v1059_v47, %v1063_v35  ;;  %v412_v1 = vpack.c.bf16 %v326_v60, %v326_v60 }
  0x87   : > { %v1451_v54 = vld [vmem:[#allocation2 + $0x28] sm:$0xf]  ;;  %1413 = vst [vmem:[#allocation3 + $0x94] sm:$0xf] %v1054_v53  ;;  %5137 = vmatmul.bf16.gmra.mxu3 %v11912_v43  ;;  %v11944_v3 = vor.u32 %v14584_v52, %v11943_v44  ;;  %v1068_v7 = vrot.slane %v1066_v61, 4  ;;  %v1071_v10 = vrot.slane %v1069_v63, 5 }
  0x88   : > { %v1563_v57 = vrot.slane %v1451_v54, 5  ;;  %1414 = vst [vmem:[#allocation3 + $0xb8] sm:$0xf] %v1064_v55  ;;  %v952_v58 = vld [vmem:[#allocation2 + $0x28] sm:$0xf]  ;;  %v508_v16 = vshrl.u32 %v412_v1, 16 }
  0x89   : > { %917 = vst [vmem:[#allocation3 + $0xfc] sm:$0xf] %v885_v49  ;;  %v1075_v2 = vshll.u32 %v952_v58, 16  ;;  %4875 = vmatmul.bf16.gmra.mxu0 %v11936_v51  ;;  %v1079_v12 = vshrl.u32 %v952_v58, 16  ;;  %v327_v8 = vld [vmem:[%s15561_s29 + $0x48] sm:$0xff]  ;;  %v1072_v11 = vor.u32 %v1071_v10, %v1068_v7  ;;  %v511_v34 = vshll.u32 %v412_v1, 16 }
  0x8a   : > { %v1564_v5 = vsel %vm15602_vm3, %v11816_v46, %v1563_v57  ;;  %v787_v15 = vld [vmem:[#allocation2 + $0x30] sm:$0xf]  ;;  %790 = vst.msk [vmem:[#allocation2 + $0x34] sm:$0xf] %vm760_vm8, %v505_v6  ;;  %v791_v19 = vld [vmem:[#allocation2 + $0x38] sm:$0x1]  ;;  %v15733_v25 = vpack.c.bf16 %v327_v8, %v327_v8 }
  0x8b   : > { %1690 = vst [vmem:[#allocation3 + $0xe0] sm:$0xf] %v1564_v5  ;;  %v1077_v14 = vrot.slane %v1075_v2, 5  ;;  %v1081_v62 = vrot.slane %v1079_v12, 4  ;;  %v788_v17 = vsel %vm15629_vm11, %v496_v0, %v787_v15  ;;  %v14580_v21 = vld [vmem:[#allocation3 + $0x9c] sm:$0xf]  ;;  %v792_v24 = vsel %vm15648_vm13, %v506_v13, %v791_v19 }
  0x8c   : > { %v1073_v22 = vrot.slane %v1072_v11, 4  ;;  %789 = vst [vmem:[#allocation2 + $0x30] sm:$0xf] %v788_v17  ;;  %v14742_v27 = vld [vmem:[%s18111_s1 + $0x128] sm:$0xff]  ;;  %v1565_v30 = vrot.slane %v1563_v57, 4  ;;  %v15740_v32 = vrot.slane %v508_v16, 7 }
  0x8d   : > { %v1082_v23 = vor.u32 %v1081_v62, %v1077_v14  ;;  %793 = vst [vmem:[#allocation2 + $0x38] sm:$0x1] %v792_v24  ;;  %v11945_v28 = vld [vmem:[#allocation3 + $0xbc] sm:$0xf0]  ;;  %v11971_v36 = vld [vmem:[#allocation3 + $0xd8] sm:$0xf]  ;;  %5215 = vmatpush.bf16.msrb.mxu0 %v14742_v27 }
  0x8e   : > { %5053 = vmatmul.bf16.gmra.mxu2 %v11944_v3  ;;  %v14579_v20 = vld [vmem:[#allocation3 + $0x94] sm:$0xf]  ;;  %v1078_v31 = vsel %vm15616_vm9, %v1073_v22, %v1077_v14  ;;  %v516_v44 = vshrl.u32 %v15733_v25, 16  ;;  %v11948_v45 = vor.u32 %v14580_v21, %v11945_v28  ;;  %v794_v48 = vld [vmem:[#allocation2 + $0x3c] sm:$0xf]  ;;  %v513_v54 = vor.u32 %v511_v34, %v15740_v32  ;;  %v328_v58 = vld [vmem:[%s15561_s29 + $0x50] sm:$0xff] }
  0x8f   : > { %v11937_v26 = vld [vmem:[#allocation3 + $0xb4] sm:$0xf0]  ;;  %v1452_v37 = vld [vmem:[#allocation2 + $0x2c] sm:$0x1]  ;;  %1415 = vst [vmem:[#allocation3 + $0xdc] sm:$0xf] %v1078_v31  ;;  %v414_v21 = vpack.c.bf16 %v328_v58, %v328_v58 }
  0x90   : > { %v11940_v35 = vor.u32 %v14579_v20, %v11937_v26  ;;  %v953_v38 = vld [vmem:[#allocation2 + $0x2c] sm:$0x1]  ;;  %v14592_v40 = vld [vmem:[#allocation3 + $0xf8] sm:$0xf0]  ;;  %v1566_v41 = vrot.slane %v1452_v37, 5  ;;  %v1083_v42 = vrot.slane %v1082_v23, 4  ;;  %v795_v7 = vsel %vm15629_vm11, %v513_v54, %v794_v48 }
  0x91   : > { %v1085_v43 = vshll.u32 %v953_v38, 16  ;;  %v1723_v46 = vld [vmem:[#allocation2 + $0x34] sm:$0xf]  ;;  %v11972_v57 = vor.u32 %v14592_v40, %v11971_v36  ;;  %v514_v2 = vrot.slane %v15740_v32, 4  ;;  %v518_v6 = vrot.slane %v516_v44, 7  ;;  %v329_v10 = vld [vmem:[%s15561_s29 + $0x58] sm:$0xff] }
  0x92   : > { %v1454_v47 = vld [vmem:[#allocation2 + $0x34] sm:$0xf]  ;;  %v1567_v49 = vsel %vm15602_vm3, %v1565_v30, %v1566_v41  ;;  %1755 = vst [vmem:[#allocation3 + $0x108] sm:$0xf] %v1723_v46  ;;  %v11979_v3 = vld [vmem:[#allocation3 + $0xe0] sm:$0xf]  ;;  %v415_v34 = vpack.c.bf16 %v329_v10, %v329_v10 }
  0x93   : > { %v1087_v50 = vrot.slane %v1085_v43, 5  ;;  %v887_v51 = vld [vmem:[#allocation2 + $0x34] sm:$0xf]  ;;  %v1570_v52 = vrot.slane %v1454_v47, 5  ;;  %1691 = vst [vmem:[#allocation3 + $0x104] sm:$0xf] %v1567_v49 }
  0x94   : > { %v955_v53 = vld [vmem:[#allocation2 + $0x34] sm:$0xf]  ;;  %v1722_v55 = vld [vmem:[#allocation2 + $0x30] sm:$0xf]  ;;  %v1455_v60 = vld [vmem:[#allocation2 + $0x38] sm:$0x1] }
  0x95   : > { %4964 = vmatmul.bf16.gmra.mxu1 %v11940_v35  ;;  %v886_v56 = vld [vmem:[#allocation2 + $0x30] sm:$0xf]  ;;  %v1088_v39 = vsel %vm15616_vm9, %v1083_v42, %v1087_v50  ;;  %1754 = vst [vmem:[#allocation3 + $0xe4] sm:$0xf] %v1722_v55  ;;  %v1572_v63 = vrot.slane %v1570_v52, 4  ;;  %v1573_v0 = vrot.slane %v1455_v60, 5 }
  0x96   : > { %v1453_v59 = vld [vmem:[#allocation2 + $0x30] sm:$0xe]  ;;  %1416 = vst [vmem:[#allocation3 + $0x100] sm:$0xf] %v1088_v39  ;;  %v1099_v1 = vshll.u32 %v955_v53, 16  ;;  %v1103_v15 = vshrl.u32 %v955_v53, 16 }
  0x97   : > { %v11817_v61 = vrot.slane %v1453_v59, 9  ;;  %5142 = vmatmul.bf16.gmra.mxu3 %v11948_v45  ;;  %918 = vst [vmem:[#allocation3 + $0x120] sm:$0xf] %v886_v56  ;;  %v954_v5 = vld [vmem:[#allocation2 + $0x30] sm:$0xf]  ;;  %v1574_v13 = vsel %vm15602_vm3, %v1572_v63, %v1573_v0  ;;  %v519_v17 = vshll.u32 %v15733_v25, 16 }
  0x98   : > { %919 = vst [vmem:[#allocation3 + $0x144] sm:$0xf] %v887_v51  ;;  %v956_v14 = vld [vmem:[#allocation2 + $0x38] sm:$0x1]  ;;  %v1090_v8 = vshrl.u32 %v954_v5, 16  ;;  %v1093_v11 = vshll.u32 %v954_v5, 16 }
  0x99   : > { %v1571_v12 = vsel %vm15602_vm3, %v11817_v61, %v1570_v52  ;;  %4880 = vmatmul.bf16.gmra.mxu0 %v11972_v57  ;;  %v1101_v62 = vrot.slane %v1099_v1, 5  ;;  %v1109_v16 = vshll.u32 %v956_v14, 16  ;;  %1693 = vst [vmem:[#allocation3 + $0x14c] sm:$0xf] %v1574_v13  ;;  %v1105_v23 = vrot.slane %v1103_v15, 4  ;;  %v330_v27 = vld [vmem:[%s15561_s29 + $0x60] sm:$0xff] }
  0x9a   : > { %1692 = vst [vmem:[#allocation3 + $0x128] sm:$0xf] %v1571_v12  ;;  %v1092_v19 = vrot.slane %v1090_v8, 4  ;;  %v1095_v20 = vrot.slane %v1093_v11, 5  ;;  %v14593_v22 = vld [vmem:[#allocation3 + $0x100] sm:$0xf0]  ;;  %v521_v24 = vor.u32 %v519_v17, %v518_v6  ;;  %v15764_v42 = vpack.c.bf16 %v330_v27, %v330_v27 }
  0x9b   : > { %v523_v26 = vrot.slane %v518_v6, 4  ;;  %v11980_v28 = vor.u32 %v14593_v22, %v11979_v3  ;;  %v14588_v30 = vld [vmem:[#allocation3 + $0xdc] sm:$0xf]  ;;  %796 = vst [vmem:[#allocation2 + $0x3c] sm:$0xf] %v795_v7  ;;  %v1106_v36 = vor.u32 %v1105_v23, %v1101_v62  ;;  %v1111_v37 = vrot.slane %v1109_v16, 5 }
  0x9c   : > { %v1096_v31 = vor.u32 %v1095_v20, %v1092_v19  ;;  %v798_v32 = vld [vmem:[#allocation2 + $0x44] sm:$0x1]  ;;  %v522_v25 = vsel %vm15639_vm12, %v514_v2, %v521_v24  ;;  %v525_v41 = vshrl.u32 %v414_v21, 16  ;;  %v11981_v44 = vld [vmem:[#allocation3 + $0x104] sm:$0xf0]  ;;  %v528_v49 = vshll.u32 %v414_v21, 16 }
  0x9d   : > { %v11973_v35 = vld [vmem:[#allocation3 + $0xfc] sm:$0xf0]  ;;  %v799_v38 = vsel %vm15648_vm13, %v523_v26, %v798_v32  ;;  %797 = vst.msk [vmem:[#allocation2 + $0x40] sm:$0xf] %vm760_vm8, %v522_v25  ;;  %v1107_v45 = vrot.slane %v1106_v36, 4  ;;  %v533_v50 = vshrl.u32 %v415_v34, 16 }
  0x9e   : > { %5058 = vmatmul.bf16.gmra.mxu2 %v11980_v28  ;;  %v1097_v40 = vrot.slane %v1096_v31, 4  ;;  %v11976_v43 = vor.u32 %v14588_v30, %v11973_v35  ;;  %800 = vst [vmem:[#allocation2 + $0x44] sm:$0x1] %v799_v38  ;;  %v14589_v46 = vld [vmem:[#allocation3 + $0xe4] sm:$0xf]  ;;  %v527_v48 = vrot.slane %v525_v41, 7 }
  0x9f   : > { %v12007_v51 = vld [vmem:[#allocation3 + $0x120] sm:$0xf]  ;;  %v14601_v52 = vld [vmem:[#allocation3 + $0x140] sm:$0xf0]  ;;  %v1112_v53 = vsel %vm15616_vm9, %v1107_v45, %v1111_v37  ;;  %v535_v55 = vrot.slane %v533_v50, 7  ;;  %v536_v56 = vshll.u32 %v415_v34, 16  ;;  %v11984_v59 = vor.u32 %v14589_v46, %v11981_v44 }
  0xa0   : > { %v1102_v47 = vsel %vm15616_vm9, %v1097_v40, %v1101_v62  ;;  %1418 = vst [vmem:[#allocation3 + $0x148] sm:$0xf] %v1112_v53  ;;  %v531_v54 = vrot.slane %v527_v48, 4  ;;  %v331_v57 = vld [vmem:[%s15561_s29 + $0x68] sm:$0xff]  ;;  %v542_v39 = vshrl.u32 %v15764_v42, 16  ;;  %v530_v2 = vor.u32 %v528_v49, %v527_v48  ;;  %v14741_v48 = vld [vmem:[%s18111_s1 + $0x120] sm:$0xff] }
  0xa1   : > { %1417 = vst [vmem:[#allocation3 + $0x124] sm:$0xf] %v1102_v47  ;;  %v12015_v60 = vld [vmem:[#allocation3 + $0x128] sm:$0xf]  ;;  %v14602_v58 = vld [vmem:[#allocation3 + $0x148] sm:$0xf0]  ;;  %v12008_v7 = vor.u32 %v14601_v52, %v12007_v51  ;;  %v538_v8 = vor.u32 %v536_v56, %v535_v55  ;;  %v15772_v16 = vpack.c.bf16 %v331_v57, %v331_v57  ;;  %5216 = vmatpush.bf16.msrb.mxu0 %v14741_v48 }
  0xa2   : > { %v1724_v61 = vld [vmem:[#allocation2 + $0x3c] sm:$0xf]  ;;  %v801_v1 = vld [vmem:[#allocation2 + $0x48] sm:$0xf]  ;;  %v540_v6 = vrot.slane %v535_v55, 4  ;;  %v12016_v17 = vor.u32 %v14602_v58, %v12015_v60  ;;  %v15785_v45 = vrot.slane %v542_v39, 7 }
  0xa3   : > { %v888_v63 = vld [vmem:[#allocation2 + $0x3c] sm:$0xf]  ;;  %1756 = vst [vmem:[#allocation3 + $0x12c] sm:$0xf] %v1724_v61  ;;  %v802_v22 = vsel %vm15629_vm11, %v530_v2, %v801_v1  ;;  %v805_v23 = vld [vmem:[#allocation2 + $0x50] sm:$0x1]  ;;  %v539_v34 = vsel %vm15639_vm12, %v531_v54, %v538_v8 }
  0xa4   : > { %v1456_v0 = vld [vmem:[#allocation2 + $0x3c] sm:$0xe]  ;;  %v1725_v10 = vld [vmem:[#allocation2 + $0x40] sm:$0xf]  ;;  %920 = vst [vmem:[#allocation3 + $0x168] sm:$0xf] %v888_v63  ;;  %v806_v25 = vsel %vm15648_vm13, %v540_v6, %v805_v23 }
  0xa5   : > { %4969 = vmatmul.bf16.gmra.mxu1 %v11976_v43  ;;  %v11818_v3 = vrot.slane %v1456_v0, 9  ;;  %v957_v5 = vld [vmem:[#allocation2 + $0x3c] sm:$0xf]  ;;  %v889_v12 = vld [vmem:[#allocation2 + $0x40] sm:$0xf]  ;;  %v550_v46 = vshrl.u32 %v15772_v16, 16 }
  0xa6   : > { %1757 = vst [vmem:[#allocation3 + $0x150] sm:$0xf] %v1725_v10  ;;  %v1457_v13 = vld [vmem:[#allocation2 + $0x40] sm:$0xf]  ;;  %v1458_v14 = vld [vmem:[#allocation2 + $0x44] sm:$0x1] }
  0xa7   : > { %5147 = vmatmul.bf16.gmra.mxu3 %v11984_v59  ;;  %921 = vst [vmem:[#allocation3 + $0x18c] sm:$0xf] %v889_v12  ;;  %v1577_v11 = vrot.slane %v1457_v13, 5  ;;  %v1580_v62 = vrot.slane %v1458_v14, 5  ;;  %v958_v15 = vld [vmem:[#allocation2 + $0x40] sm:$0xf] }
  0xa8   : > { %v959_v19 = vld [vmem:[#allocation2 + $0x44] sm:$0x1]  ;;  %v1114_v20 = vshrl.u32 %v957_v5, 16  ;;  %v1117_v21 = vshll.u32 %v957_v5, 16  ;;  %v1123_v27 = vshll.u32 %v958_v15, 16  ;;  %v1127_v28 = vshrl.u32 %v958_v15, 16 }
  0xa9   : > { %4885 = vmatmul.bf16.gmra.mxu0 %v12008_v7  ;;  %v1578_v24 = vsel %vm15602_vm3, %v11818_v3, %v1577_v11  ;;  %v1579_v26 = vrot.slane %v1577_v11, 4  ;;  %v1133_v32 = vshll.u32 %v959_v19, 16  ;;  %803 = vst [vmem:[#allocation2 + $0x48] sm:$0xf] %v802_v22  ;;  %v14597_v38 = vld [vmem:[#allocation3 + $0x124] sm:$0xf] }
  0xaa   : > { %1694 = vst [vmem:[#allocation3 + $0x170] sm:$0xf] %v1578_v24  ;;  %v1116_v30 = vrot.slane %v1114_v20, 4  ;;  %v1119_v31 = vrot.slane %v1117_v21, 5  ;;  %v1125_v36 = vrot.slane %v1123_v27, 5  ;;  %v1129_v37 = vrot.slane %v1127_v28, 4 }
  0xab   : > { %v1581_v35 = vsel %vm15602_vm3, %v1579_v26, %v1580_v62  ;;  %v12009_v40 = vld [vmem:[#allocation3 + $0x144] sm:$0xf0]  ;;  %v1135_v44 = vrot.slane %v1133_v32, 5  ;;  %804 = vst.msk [vmem:[#allocation2 + $0x4c] sm:$0xf] %vm760_vm8, %v539_v34  ;;  %v545_v51 = vshll.u32 %v15764_v42, 16 }
  0xac   : > { %1695 = vst [vmem:[#allocation3 + $0x194] sm:$0xf] %v1581_v35  ;;  %v1120_v41 = vor.u32 %v1119_v31, %v1116_v30  ;;  %v1130_v43 = vor.u32 %v1129_v37, %v1125_v36  ;;  %v14598_v49 = vld [vmem:[#allocation3 + $0x12c] sm:$0xf]  ;;  %v12012_v52 = vor.u32 %v14597_v38, %v12009_v40  ;;  %v12043_v54 = vld [vmem:[#allocation3 + $0x168] sm:$0xf] }
  0xad   : > { %807 = vst [vmem:[#allocation2 + $0x50] sm:$0x1] %v806_v25  ;;  %v12017_v53 = vld [vmem:[#allocation3 + $0x14c] sm:$0xf0]  ;;  %v548_v39 = vrot.slane %v15785_v45, 4  ;;  %v552_v59 = vrot.slane %v550_v46, 7  ;;  %v547_v1 = vor.u32 %v545_v51, %v15785_v45 }
  0xae   : > { %5063 = vmatmul.bf16.gmra.mxu2 %v12016_v17  ;;  %v1121_v47 = vrot.slane %v1120_v41, 4  ;;  %v1131_v50 = vrot.slane %v1130_v43, 4  ;;  %v14610_v55 = vld [vmem:[#allocation3 + $0x188] sm:$0xf0]  ;;  %v553_v60 = vshll.u32 %v15772_v16, 16  ;;  %v12020_v63 = vor.u32 %v14598_v49, %v12017_v53  ;;  %v332_v3 = vld [vmem:[%s15561_s29 + $0x70] sm:$0xff] }
  0xaf   : > { %v808_v61 = vld [vmem:[#allocation2 + $0x54] sm:$0xf]  ;;  %v333_v5 = vld [vmem:[%s15561_s29 + $0x78] sm:$0xff]  ;;  %v12044_v12 = vor.u32 %v14610_v55, %v12043_v54  ;;  %v557_v16 = vrot.slane %v552_v59, 4  ;;  %v15803_v22 = vpack.c.bf16 %v332_v3, %v332_v3 }
  0xb0   : > { %v1126_v56 = vsel %vm15616_vm9, %v1121_v47, %v1125_v36  ;;  %v1136_v57 = vsel %vm15616_vm9, %v1131_v50, %v1135_v44  ;;  %v1726_v42 = vld [vmem:[#allocation2 + $0x48] sm:$0xf]  ;;  %v555_v8 = vor.u32 %v553_v60, %v552_v59  ;;  %v809_v20 = vsel %vm15629_vm11, %v547_v1, %v808_v61  ;;  %v812_v21 = vld [vmem:[#allocation2 + $0x5c] sm:$0x1]  ;;  %v334_v1 = vld [vmem:[%s15561_s29 + $0x80] sm:$0xff] }
  0xb1   : > { %1419 = vst [vmem:[#allocation3 + $0x16c] sm:$0xf] %v1126_v56  ;;  %v890_v58 = vld [vmem:[#allocation2 + $0x48] sm:$0xf]  ;;  %v15805_v23 = vpack.c.bf16 %v333_v5, %v333_v5  ;;  %v813_v38 = vsel %vm15648_vm13, %v557_v16, %v812_v21  ;;  %v559_v47 = vshrl.u32 %v15803_v22, 16  ;;  %v562_v60 = vshll.u32 %v15803_v22, 16 }
  0xb2   : > { %1420 = vst [vmem:[#allocation3 + $0x190] sm:$0xf] %v1136_v57  ;;  %v1459_v0 = vld [vmem:[#allocation2 + $0x48] sm:$0xe]  ;;  %v1727_v7 = vld [vmem:[#allocation2 + $0x4c] sm:$0xf]  ;;  %v556_v35 = vsel %vm15639_vm12, %v548_v39, %v555_v8 }
  0xb3   : > { %1758 = vst [vmem:[#allocation3 + $0x174] sm:$0xf] %v1726_v42  ;;  %v12051_v2 = vld [vmem:[#allocation3 + $0x170] sm:$0xf]  ;;  %v14611_v6 = vld [vmem:[#allocation3 + $0x190] sm:$0xf0] }
  0xb4   : > { %v891_v10 = vld [vmem:[#allocation2 + $0x4c] sm:$0xf]  ;;  %922 = vst [vmem:[#allocation3 + $0x1b0] sm:$0xf] %v890_v58  ;;  %v1461_v14 = vld [vmem:[#allocation2 + $0x50] sm:$0x1]  ;;  %v12052_v30 = vor.u32 %v14611_v6, %v12051_v2 }
  0xb5   : > { %4974 = vmatmul.bf16.gmra.mxu1 %v12012_v52  ;;  %1759 = vst [vmem:[#allocation3 + $0x198] sm:$0xf] %v1727_v7  ;;  %v1460_v13 = vld [vmem:[#allocation2 + $0x4c] sm:$0xf]  ;;  %v11819_v11 = vrot.slane %v1459_v0, 9  ;;  %v1587_v15 = vrot.slane %v1461_v14, 5 }
  0xb6   : > { %923 = vst [vmem:[#allocation3 + $0x1d4] sm:$0xf] %v891_v10  ;;  %v1584_v62 = vrot.slane %v1460_v13, 5  ;;  %v960_v17 = vld [vmem:[#allocation2 + $0x48] sm:$0xf]  ;;  %v567_v49 = vshrl.u32 %v15805_v23, 16 }
  0xb7   : > { %5152 = vmatmul.bf16.gmra.mxu3 %v12020_v63  ;;  %v961_v19 = vld [vmem:[#allocation2 + $0x4c] sm:$0xf]  ;;  %v1138_v27 = vshrl.u32 %v960_v17, 16  ;;  %v1141_v28 = vshll.u32 %v960_v17, 16  ;;  %v962_v31 = vld [vmem:[#allocation2 + $0x50] sm:$0x1] }
  0xb8   : > { %v1585_v24 = vsel %vm15602_vm3, %v11819_v11, %v1584_v62  ;;  %v1586_v26 = vrot.slane %v1584_v62, 4  ;;  %v1147_v32 = vshll.u32 %v961_v19, 16  ;;  %v1151_v34 = vshrl.u32 %v961_v19, 16  ;;  %810 = vst [vmem:[#allocation2 + $0x54] sm:$0xf] %v809_v20 }
  0xb9   : > { %4890 = vmatmul.bf16.gmra.mxu0 %v12044_v12  ;;  %1696 = vst [vmem:[#allocation3 + $0x1b8] sm:$0xf] %v1585_v24  ;;  %v1140_v37 = vrot.slane %v1138_v27, 4  ;;  %v1143_v25 = vrot.slane %v1141_v28, 5  ;;  %v14606_v40 = vld [vmem:[#allocation3 + $0x16c] sm:$0xf]  ;;  %v420_v24 = vpack.c.bf16 %v334_v1, %v334_v1 }
  0xba   : > { %v1588_v36 = vsel %vm15602_vm3, %v1586_v26, %v1587_v15  ;;  %v1149_v41 = vrot.slane %v1147_v32, 5  ;;  %v1153_v43 = vrot.slane %v1151_v34, 4  ;;  %v12045_v44 = vld [vmem:[#allocation3 + $0x18c] sm:$0xf0]  ;;  %v1157_v46 = vshll.u32 %v962_v31, 16 }
  0xbb   : > { %1697 = vst [vmem:[#allocation3 + $0x1dc] sm:$0xf] %v1588_v36  ;;  %v1144_v45 = vor.u32 %v1143_v25, %v1140_v37  ;;  %v14607_v50 = vld [vmem:[#allocation3 + $0x174] sm:$0xf]  ;;  %v561_v53 = vrot.slane %v559_v47, 7  ;;  %v12048_v54 = vor.u32 %v14606_v40, %v12045_v44  ;;  %v569_v42 = vrot.slane %v567_v49, 7 }
  0xbc   : > { %811 = vst.msk [vmem:[#allocation2 + $0x58] sm:$0xf] %vm760_vm8, %v556_v35  ;;  %v1154_v48 = vor.u32 %v1153_v43, %v1149_v41  ;;  %v1159_v52 = vrot.slane %v1157_v46, 5  ;;  %v12053_v55 = vld [vmem:[#allocation3 + $0x194] sm:$0xf0]  ;;  %v570_v58 = vshll.u32 %v15805_v23, 16 }
  0xbd   : > { %814 = vst [vmem:[#allocation2 + $0x5c] sm:$0x1] %v813_v38  ;;  %v1145_v51 = vrot.slane %v1144_v45, 4  ;;  %v12079_v56 = vld [vmem:[#allocation3 + $0x1b0] sm:$0xf]  ;;  %v565_v0 = vrot.slane %v561_v53, 4  ;;  %v12056_v2 = vor.u32 %v14607_v50, %v12053_v55  ;;  %v564_v8 = vor.u32 %v562_v60, %v561_v53 }
  0xbe   : > { %5068 = vmatmul.bf16.gmra.mxu2 %v12052_v30  ;;  %v1155_v57 = vrot.slane %v1154_v48, 4  ;;  %v14619_v39 = vld [vmem:[#allocation3 + $0x1d0] sm:$0xf0]  ;;  %v815_v10 = vld [vmem:[#allocation2 + $0x60] sm:$0xf]  ;;  %v572_v11 = vor.u32 %v570_v58, %v569_v42  ;;  %v574_v20 = vrot.slane %v569_v42, 4 }
  0xbf   : > { %v1150_v59 = vsel %vm15616_vm9, %v1145_v51, %v1149_v41  ;;  %v1728_v63 = vld [vmem:[#allocation2 + $0x54] sm:$0xf]  ;;  %v12080_v12 = vor.u32 %v14619_v39, %v12079_v56  ;;  %v819_v21 = vld [vmem:[#allocation2 + $0x68] sm:$0x1]  ;;  %v816_v36 = vsel %vm15629_vm11, %v564_v8, %v815_v10  ;;  %v576_v49 = vshrl.u32 %v420_v24, 16 }
  0xc0   : > { %v1160_v61 = vsel %vm15616_vm9, %v1155_v57, %v1159_v52  ;;  %1421 = vst [vmem:[#allocation3 + $0x1b4] sm:$0xf] %v1150_v59  ;;  %v892_v3 = vld [vmem:[#allocation2 + $0x54] sm:$0xf]  ;;  %v12087_v62 = vld [vmem:[#allocation3 + $0x1b8] sm:$0xf]  ;;  %v573_v35 = vsel %vm15639_vm12, %v565_v0, %v572_v11  ;;  %v820_v46 = vsel %vm15648_vm13, %v574_v20, %v819_v21 }
  0xc1   : > { %1422 = vst [vmem:[#allocation3 + $0x1d8] sm:$0xf] %v1160_v61  ;;  %v1462_v5 = vld [vmem:[#allocation2 + $0x54] sm:$0xe]  ;;  %v335_v37 = vld [vmem:[%s15561_s29 + $0x88] sm:$0xff]  ;;  %v578_v55 = vrot.slane %v576_v49, 7 }
  0xc2   : > { %1760 = vst [vmem:[#allocation3 + $0x1bc] sm:$0xf] %v1728_v63  ;;  %v14620_v15 = vld [vmem:[#allocation3 + $0x1d8] sm:$0xf0]  ;;  %v11820_v16 = vrot.slane %v1462_v5, 9  ;;  %v421_v48 = vpack.c.bf16 %v335_v37, %v335_v37  ;;  %v14740_v57 = vld [vmem:[%s18111_s1 + $0x118] sm:$0xff] }
  0xc3   : > { %v1729_v6 = vld [vmem:[#allocation2 + $0x58] sm:$0xf]  ;;  %924 = vst [vmem:[#allocation3 + $0x1f8] sm:$0xf] %v892_v3  ;;  %v963_v22 = vld [vmem:[#allocation2 + $0x54] sm:$0xf]  ;;  %v12088_v43 = vor.u32 %v14620_v15, %v12087_v62  ;;  %5217 = vmatpush.bf16.msrb.mxu0 %v14740_v57 }
  0xc4   : > { %v893_v7 = vld [vmem:[#allocation2 + $0x58] sm:$0xf]  ;;  %1761 = vst [vmem:[#allocation3 + $0x1e0] sm:$0xf] %v1729_v6  ;;  %v1464_v14 = vld [vmem:[#allocation2 + $0x5c] sm:$0x1] }
  0xc5   : > { %4979 = vmatmul.bf16.gmra.mxu1 %v12048_v54  ;;  %v1463_v13 = vld [vmem:[#allocation2 + $0x58] sm:$0xf]  ;;  %v1594_v19 = vrot.slane %v1464_v14, 5  ;;  %925 = vst [vmem:[#allocation3 + $0x21c] sm:$0xf] %v893_v7  ;;  %v1162_v30 = vshrl.u32 %v963_v22, 16 }
  0xc6   : > { %v1591_v17 = vrot.slane %v1463_v13, 5  ;;  %v964_v23 = vld [vmem:[#allocation2 + $0x58] sm:$0xf]  ;;  %v965_v28 = vld [vmem:[#allocation2 + $0x5c] sm:$0x1]  ;;  %v1165_v31 = vshll.u32 %v963_v22, 16 }
  0xc7   : > { %5157 = vmatmul.bf16.gmra.mxu3 %v12056_v2  ;;  %v1171_v32 = vshll.u32 %v964_v23, 16  ;;  %v1175_v34 = vshrl.u32 %v964_v23, 16  ;;  %v1164_v38 = vrot.slane %v1162_v30, 4  ;;  %v1181_v41 = vshll.u32 %v965_v28, 16  ;;  %817 = vst [vmem:[#allocation2 + $0x60] sm:$0xf] %v816_v36 }
  0xc8   : > { %v1592_v26 = vsel %vm15602_vm3, %v11820_v16, %v1591_v17  ;;  %v1593_v27 = vrot.slane %v1591_v17, 4  ;;  %v1167_v40 = vrot.slane %v1165_v31, 5  ;;  %v14615_v50 = vld [vmem:[#allocation3 + $0x1b4] sm:$0xf]  ;;  %818 = vst.msk [vmem:[#allocation2 + $0x64] sm:$0xf] %vm760_vm8, %v573_v35 }
  0xc9   : > { %1698 = vst [vmem:[#allocation3 + $0x200] sm:$0xf] %v1592_v26  ;;  %4895 = vmatmul.bf16.gmra.mxu0 %v12080_v12  ;;  %v1173_v44 = vrot.slane %v1171_v32, 5  ;;  %v1177_v45 = vrot.slane %v1175_v34, 4  ;;  %v1183_v52 = vrot.slane %v1181_v41, 5  ;;  %v579_v39 = vshll.u32 %v420_v24, 16 }
  0xca   : > { %v1595_v25 = vsel %vm15602_vm3, %v1593_v27, %v1594_v19  ;;  %v1168_v47 = vor.u32 %v1167_v40, %v1164_v38  ;;  %v12081_v53 = vld [vmem:[#allocation3 + $0x1d4] sm:$0xf0]  ;;  %821 = vst [vmem:[#allocation2 + $0x68] sm:$0x1] %v820_v46  ;;  %v14616_v59 = vld [vmem:[#allocation3 + $0x1bc] sm:$0xf] }
  0xcb   : > { %1699 = vst [vmem:[#allocation3 + $0x224] sm:$0xf] %v1595_v25  ;;  %v1178_v51 = vor.u32 %v1177_v45, %v1173_v44  ;;  %v12089_v60 = vld [vmem:[#allocation3 + $0x1dc] sm:$0xf0]  ;;  %v584_v58 = vshrl.u32 %v421_v48, 16  ;;  %v12084_v61 = vor.u32 %v14615_v50, %v12081_v53  ;;  %v582_v3 = vrot.slane %v578_v55, 4 }
  0xcc   : > { %v1169_v54 = vrot.slane %v1168_v47, 4  ;;  %v12115_v63 = vld [vmem:[#allocation3 + $0x1f8] sm:$0xf]  ;;  %v14628_v0 = vld [vmem:[#allocation3 + $0x218] sm:$0xf0]  ;;  %v587_v2 = vshll.u32 %v421_v48, 16  ;;  %v581_v13 = vor.u32 %v579_v39, %v578_v55  ;;  %v12092_v8 = vor.u32 %v14616_v59, %v12089_v60 }
  0xcd   : > { %v1179_v56 = vrot.slane %v1178_v51, 4  ;;  %v15844_v5 = vrot.slane %v584_v58, 7  ;;  %v822_v6 = vld [vmem:[#allocation2 + $0x6c] sm:$0xf]  ;;  %v336_v14 = vld [vmem:[%s15561_s29 + $0x90] sm:$0xff]  ;;  %v12116_v15 = vor.u32 %v14628_v0, %v12115_v63  ;;  %v337_v23 = vld [vmem:[%s15561_s29 + $0x98] sm:$0xff] }
  0xce   : > { %5073 = vmatmul.bf16.gmra.mxu2 %v12088_v43  ;;  %v1174_v42 = vsel %vm15616_vm9, %v1169_v54, %v1173_v44  ;;  %v1730_v7 = vld [vmem:[#allocation2 + $0x60] sm:$0xf]  ;;  %v823_v27 = vsel %vm15629_vm11, %v581_v13, %v822_v6  ;;  %v422_v35 = vpack.c.bf16 %v336_v14, %v336_v14  ;;  %v423_v38 = vpack.c.bf16 %v337_v23, %v337_v23  ;;  %v826_v48 = vld [vmem:[#allocation2 + $0x74] sm:$0x1]  ;;  %v829_v6 = vld [vmem:[#allocation2 + $0x78] sm:$0xf] }
  0xcf   : > { %v1184_v1 = vsel %vm15616_vm9, %v1179_v56, %v1183_v52  ;;  %1423 = vst [vmem:[#allocation3 + $0x1fc] sm:$0xf] %v1174_v42  ;;  %v894_v10 = vld [vmem:[#allocation2 + $0x60] sm:$0xf]  ;;  %v1731_v11 = vld [vmem:[#allocation2 + $0x64] sm:$0xf]  ;;  %v589_v22 = vor.u32 %v587_v2, %v15844_v5 }
  0xd0   : > { %1424 = vst [vmem:[#allocation3 + $0x220] sm:$0xf] %v1184_v1  ;;  %v1465_v12 = vld [vmem:[#allocation2 + $0x60] sm:$0xe]  ;;  %v895_v62 = vld [vmem:[#allocation2 + $0x64] sm:$0xf] }
  0xd1   : > { %1762 = vst [vmem:[#allocation3 + $0x204] sm:$0xf] %v1730_v7  ;;  %v1466_v16 = vld [vmem:[#allocation2 + $0x64] sm:$0xf]  ;;  %v1467_v17 = vld [vmem:[#allocation2 + $0x68] sm:$0x1]  ;;  %v590_v44 = vsel %vm15639_vm12, %v582_v3, %v589_v22 }
  0xd2   : > { %1763 = vst [vmem:[#allocation3 + $0x228] sm:$0xf] %v1731_v11  ;;  %v11821_v19 = vrot.slane %v1465_v12, 9  ;;  %v1598_v20 = vrot.slane %v1466_v16, 5  ;;  %v1601_v21 = vrot.slane %v1467_v17, 5  ;;  %v591_v51 = vrot.slane %v15844_v5, 4 }
  0xd3   : > { %926 = vst [vmem:[#allocation3 + $0x240] sm:$0xf] %v894_v10  ;;  %v966_v24 = vld [vmem:[#allocation2 + $0x60] sm:$0xf]  ;;  %v967_v26 = vld [vmem:[#allocation2 + $0x64] sm:$0xf] }
  0xd4   : > { %927 = vst [vmem:[#allocation3 + $0x264] sm:$0xf] %v895_v62  ;;  %v12123_v28 = vld [vmem:[#allocation3 + $0x200] sm:$0xf]  ;;  %v14629_v30 = vld [vmem:[#allocation3 + $0x220] sm:$0xf0]  ;;  %v1599_v31 = vsel %vm15602_vm3, %v11821_v19, %v1598_v20  ;;  %v827_v60 = vsel %vm15648_vm13, %v591_v51, %v826_v48 }
  0xd5   : > { %4984 = vmatmul.bf16.gmra.mxu1 %v12084_v61  ;;  %v1600_v32 = vrot.slane %v1598_v20, 4  ;;  %v1186_v34 = vshrl.u32 %v966_v24, 16  ;;  %1700 = vst [vmem:[#allocation3 + $0x248] sm:$0xf] %v1599_v31  ;;  %v968_v36 = vld [vmem:[#allocation2 + $0x68] sm:$0x1]  ;;  %v12124_v45 = vor.u32 %v14629_v30, %v12123_v28 }
  0xd6   : > { %v1189_v37 = vshll.u32 %v966_v24, 16  ;;  %v1195_v25 = vshll.u32 %v967_v26, 16  ;;  %v1199_v43 = vshrl.u32 %v967_v26, 16  ;;  %824 = vst [vmem:[#allocation2 + $0x6c] sm:$0xf] %v823_v27  ;;  %v1205_v50 = vshll.u32 %v968_v36, 16 }
  0xd7   : > { %5162 = vmatmul.bf16.gmra.mxu3 %v12092_v8  ;;  %v1602_v40 = vsel %vm15602_vm3, %v1600_v32, %v1601_v21  ;;  %v1188_v41 = vrot.slane %v1186_v34, 4  ;;  %v593_v52 = vshrl.u32 %v422_v35, 16  ;;  %v14624_v53 = vld [vmem:[#allocation3 + $0x1fc] sm:$0xf]  ;;  %825 = vst.msk [vmem:[#allocation2 + $0x70] sm:$0xf] %vm760_vm8, %v590_v44  ;;  %v4866_v21 = vpop.f32.mrf.mxu0 }
  0xd8   : > { %1701 = vst [vmem:[#allocation3 + $0x26c] sm:$0xf] %v1602_v40  ;;  %v1191_v46 = vrot.slane %v1189_v37, 5  ;;  %v1197_v47 = vrot.slane %v1195_v25, 5  ;;  %v1201_v49 = vrot.slane %v1199_v43, 4  ;;  %v596_v55 = vshll.u32 %v422_v35, 16 }
  0xd9   : > { %4900 = vmatmul.bf16.gmra.mxu0 %v12116_v15  ;;  %v601_v56 = vshrl.u32 %v423_v38, 16  ;;  %v12117_v57 = vld [vmem:[#allocation3 + $0x21c] sm:$0xf0]  ;;  %v1207_v59 = vrot.slane %v1205_v50, 5  ;;  %v595_v42 = vrot.slane %v593_v52, 7  ;;  %v338_v58 = vld [vmem:[%s15561_s29 + $0xa0] sm:$0xff] }
  0xda   : > { %v1192_v54 = vor.u32 %v1191_v46, %v1188_v41  ;;  %v1202_v39 = vor.u32 %v1201_v49, %v1197_v47  ;;  %828 = vst [vmem:[#allocation2 + $0x74] sm:$0x1] %v827_v60  ;;  %v604_v0 = vshll.u32 %v423_v38, 16  ;;  %v14625_v1 = vld [vmem:[#allocation3 + $0x204] sm:$0xf]  ;;  %v15867_v7 = vpack.c.bf16 %v338_v58, %v338_v58  ;;  %v339_v20 = vld [vmem:[%s15561_s29 + $0xa8] sm:$0xff] }
  0xdb   : > { %v603_v63 = vrot.slane %v601_v56, 7  ;;  %v12125_v3 = vld [vmem:[#allocation3 + $0x224] sm:$0xf0]  ;;  %v12120_v10 = vor.u32 %v14624_v53, %v12117_v57  ;;  %v12151_v12 = vld [vmem:[#allocation3 + $0x240] sm:$0xf]  ;;  %v598_v62 = vor.u32 %v596_v55, %v595_v42  ;;  %v599_v19 = vrot.slane %v595_v42, 4 }
  0xdc   : > { %v1193_v61 = vrot.slane %v1192_v54, 4  ;;  %v15865_v5 = vld [vmem:[%s18112_s2] ss:$0 sm:$0xff]  ;;  %v1203_v2 = vrot.slane %v1202_v39, 4  ;;  %v14637_v13 = vld [vmem:[#allocation3 + $0x260] sm:$0xf0]  ;;  %v12128_v27 = vor.u32 %v14625_v1, %v12125_v3  ;;  %v15880_v48 = vpack.c.bf16 %v339_v20, %v339_v20 }
  0xdd   : > { %v1732_v8 = vld [vmem:[#allocation2 + $0x6c] sm:$0xf]  ;;  %v606_v23 = vor.u32 %v604_v0, %v603_v63  ;;  %v608_v24 = vrot.slane %v603_v63, 4  ;;  %v610_v26 = vshrl.u32 %v15867_v7, 16  ;;  %v833_v31 = vld [vmem:[#allocation2 + $0x80] sm:$0x1]  ;;  %v830_v35 = vsel %vm15629_vm11, %v598_v62, %v829_v6 }
  0xde   : > { %5078 = vmatmul.bf16.gmra.mxu2 %v12124_v45  ;;  %v1198_v14 = vsel %vm15616_vm9, %v1193_v61, %v1197_v47  ;;  %v1468_v11 = vld [vmem:[#allocation2 + $0x6c] sm:$0xe]  ;;  %v1208_v15 = vsel %vm15616_vm9, %v1203_v2, %v1207_v59  ;;  %v1733_v28 = vld [vmem:[#allocation2 + $0x70] sm:$0xf]  ;;  %1764 = vst [vmem:[#allocation3 + $0x24c] sm:$0xf] %v1732_v8  ;;  %v4867_v36 = vadd.f32 %v15865_v5, %v4866_v21 }
  0xdf   : > { %1425 = vst [vmem:[#allocation3 + $0x244] sm:$0xf] %v1198_v14  ;;  %v896_v16 = vld [vmem:[#allocation2 + $0x6c] sm:$0xf]  ;;  %v11822_v17 = vrot.slane %v1468_v11, 9  ;;  %v12152_v37 = vor.u32 %v14637_v13, %v12151_v12  ;;  %v607_v47 = vsel %vm15639_vm12, %v599_v19, %v606_v23  ;;  %v834_v55 = vsel %vm15648_vm13, %v608_v24, %v833_v31  ;;  %v15892_v1 = vpop.f32.mrf.mxu0 }
  0xe0   : > { %1426 = vst [vmem:[#allocation3 + $0x268] sm:$0xf] %v1208_v15  ;;  %v969_v22 = vld [vmem:[#allocation2 + $0x6c] sm:$0xf]  ;;  %v897_v30 = vld [vmem:[#allocation2 + $0x70] sm:$0xf] }
  0xe1   : > { %1765 = vst [vmem:[#allocation3 + $0x270] sm:$0xf] %v1733_v28  ;;  %v1469_v32 = vld [vmem:[#allocation2 + $0x70] sm:$0xf]  ;;  %v12159_v25 = vld [vmem:[#allocation3 + $0x248] sm:$0xf] }
  0xe2   : > { %v970_v34 = vld [vmem:[#allocation2 + $0x70] sm:$0xf]  ;;  %v14638_v38 = vld [vmem:[#allocation3 + $0x268] sm:$0xf0]  ;;  %928 = vst [vmem:[#allocation3 + $0x288] sm:$0xf] %v896_v16 }
  0xe3   : > { %v1470_v40 = vld [vmem:[#allocation2 + $0x74] sm:$0x1]  ;;  %v1605_v41 = vrot.slane %v1469_v32, 5  ;;  %v1210_v43 = vshrl.u32 %v969_v22, 16  ;;  %929 = vst [vmem:[#allocation3 + $0x2ac] sm:$0xf] %v897_v30  ;;  %v12160_v60 = vor.u32 %v14638_v38, %v12159_v25 }
  0xe4   : > { %v1608_v44 = vrot.slane %v1470_v40, 5  ;;  %v971_v45 = vld [vmem:[#allocation2 + $0x74] sm:$0x1]  ;;  %v1213_v46 = vshll.u32 %v969_v22, 16  ;;  %v1219_v52 = vshll.u32 %v970_v34, 16  ;;  %v1223_v54 = vshrl.u32 %v970_v34, 16 }
  0xe5   : > { %4989 = vmatmul.bf16.gmra.mxu1 %v12120_v10  ;;  %v1606_v49 = vsel %vm15602_vm3, %v11822_v17, %v1605_v41  ;;  %v1607_v50 = vrot.slane %v1605_v41, 4  ;;  %v1212_v51 = vrot.slane %v1210_v43, 4  ;;  %831 = vst [vmem:[#allocation2 + $0x78] sm:$0xf] %v830_v35  ;;  %v1229_v39 = vshll.u32 %v971_v45, 16  ;;  %v14739_v41 = vld [vmem:[%s18111_s1 + $0x110] sm:$0xff] }
  0xe6   : > { %1702 = vst [vmem:[#allocation3 + $0x290] sm:$0xf] %v1606_v49  ;;  %v1215_v53 = vrot.slane %v1213_v46, 5  ;;  %v1221_v57 = vrot.slane %v1219_v52, 5  ;;  %v1225_v58 = vrot.slane %v1223_v54, 4  ;;  %v15889_v61 = vrot.slane %v610_v26, 7  ;;  %5218 = vmatpush.bf16.msrb.mxu0 %v14739_v41 }
  0xe7   : > { %5167 = vmatmul.bf16.gmra.mxu3 %v12128_v27  ;;  %v1609_v56 = vsel %vm15602_vm3, %v1607_v50, %v1608_v44  ;;  %832 = vst.msk [vmem:[#allocation2 + $0x7c] sm:$0xf] %vm760_vm8, %v607_v47  ;;  %v618_v0 = vshrl.u32 %v15880_v48, 16  ;;  %v1231_v6 = vrot.slane %v1229_v39, 5  ;;  %v14633_v10 = vld [vmem:[#allocation3 + $0x244] sm:$0xf] }
  0xe8   : > { %1703 = vst [vmem:[#allocation3 + $0x2b4] sm:$0xf] %v1609_v56  ;;  %v1216_v42 = vor.u32 %v1215_v53, %v1212_v51  ;;  %v1226_v2 = vor.u32 %v1225_v58, %v1221_v57  ;;  %v12153_v12 = vld [vmem:[#allocation3 + $0x264] sm:$0xf0]  ;;  %v613_v13 = vshll.u32 %v15867_v7, 16  ;;  %v616_v17 = vrot.slane %v15889_v61, 4 }
  0xe9   : > { %4905 = vmatmul.bf16.gmra.mxu0 %v12152_v37  ;;  %835 = vst [vmem:[#allocation2 + $0x80] sm:$0x1] %v834_v55  ;;  %v14634_v14 = vld [vmem:[#allocation3 + $0x24c] sm:$0xf]  ;;  %v12161_v8 = vld [vmem:[#allocation3 + $0x26c] sm:$0xf0]  ;;  %v12156_v23 = vor.u32 %v14633_v10, %v12153_v12 }
  0xea   : > { %v4955_v59 = vpop.f32.mrf.mxu1  ;;  %v1217_v3 = vrot.slane %v1216_v42, 4  ;;  %v1227_v15 = vrot.slane %v1226_v2, 4  ;;  %v15900_v21 = vrot.slane %v618_v0, 7  ;;  %v621_v22 = vshll.u32 %v15880_v48, 16  ;;  %v340_v7 = vld [vmem:[%s15561_s29 + $0xb0] sm:$0xff]  ;;  %v341_v45 = vld [vmem:[%s15561_s29 + $0xb8] sm:$0xff] }
  0xeb   : > { %v4956_v63 = vadd.f32 %v4955_v59, %v4867_v36  ;;  %v12187_v24 = vld [vmem:[#allocation3 + $0x288] sm:$0xf]  ;;  %v14646_v26 = vld [vmem:[#allocation3 + $0x2a8] sm:$0xf0]  ;;  %v615_v35 = vor.u32 %v613_v13, %v15889_v61  ;;  %v12164_v38 = vor.u32 %v14634_v14, %v12161_v8  ;;  %v15914_v50 = vpack.c.bf16 %v340_v7, %v340_v7 }
  0xec   : > { %v1222_v62 = vsel %vm15616_vm9, %v1217_v3, %v1221_v57  ;;  %v1734_v16 = vld [vmem:[#allocation2 + $0x78] sm:$0xf]  ;;  %v1232_v27 = vsel %vm15616_vm9, %v1227_v15, %v1231_v6  ;;  %v836_v31 = vld [vmem:[#allocation2 + $0x84] sm:$0xf]  ;;  %v623_v44 = vor.u32 %v621_v22, %v15900_v21  ;;  %v12188_v51 = vor.u32 %v14646_v26, %v12187_v24 }
  0xed   : > { %1427 = vst [vmem:[#allocation3 + $0x28c] sm:$0xf] %v1222_v62  ;;  %v1471_v20 = vld [vmem:[#allocation2 + $0x78] sm:$0xe]  ;;  %v837_v55 = vsel %vm15629_vm11, %v615_v35, %v836_v31  ;;  %v12195_v39 = vld [vmem:[#allocation3 + $0x290] sm:$0xf]  ;;  %v427_v12 = vpack.c.bf16 %v341_v45, %v341_v45  ;;  %v4869_v14 = vadd.f32 %v15865_v5, %v15892_v1 }
  0xee   : > { %5083 = vmatmul.bf16.gmra.mxu2 %v12160_v60  ;;  %v5044_v11 = vpop.f32.mrf.mxu2  ;;  %v1735_v28 = vld [vmem:[#allocation2 + $0x7c] sm:$0xf]  ;;  %1766 = vst [vmem:[#allocation3 + $0x294] sm:$0xf] %v1734_v16  ;;  %v898_v30 = vld [vmem:[#allocation2 + $0x78] sm:$0xf]  ;;  %v624_v2 = vsel %vm15639_vm12, %v616_v17, %v623_v44 }
  0xef   : > { %v15898_v19 = vadd.f32 %v5044_v11, %v4956_v63  ;;  %1428 = vst [vmem:[#allocation3 + $0x2b0] sm:$0xf] %v1232_v27  ;;  %v899_v32 = vld [vmem:[#allocation2 + $0x7c] sm:$0xf]  ;;  %v11823_v37 = vrot.slane %v1471_v20, 9  ;;  %v625_v10 = vrot.slane %v15900_v21, 4 }
  0xf0   : > { %v1472_v34 = vld [vmem:[#allocation2 + $0x7c] sm:$0xf]  ;;  %1767 = vst [vmem:[#allocation3 + $0x2b8] sm:$0xf] %v1735_v28  ;;  %v1473_v36 = vld [vmem:[#allocation2 + $0x80] sm:$0x1] }
  0xf1   : > { %v1612_v25 = vrot.slane %v1472_v34, 5  ;;  %930 = vst [vmem:[#allocation3 + $0x2d0] sm:$0xf] %v898_v30  ;;  %v1615_v40 = vrot.slane %v1473_v36, 5  ;;  %v972_v43 = vld [vmem:[#allocation2 + $0x78] sm:$0xf] }
  0xf2   : > { %931 = vst [vmem:[#allocation3 + $0x2f4] sm:$0xf] %v899_v32  ;;  %v973_v48 = vld [vmem:[#allocation2 + $0x7c] sm:$0xf]  ;;  %v1234_v49 = vshrl.u32 %v972_v43, 16  ;;  %v1237_v53 = vshll.u32 %v972_v43, 16  ;;  %v4957_v61 = vpop.f32.mrf.mxu1 }
  0xf3   : > { %v1613_v46 = vsel %vm15602_vm3, %v11823_v37, %v1612_v25  ;;  %v1614_v47 = vrot.slane %v1612_v25, 4  ;;  %v974_v52 = vld [vmem:[#allocation2 + $0x80] sm:$0x1]  ;;  %v1243_v54 = vshll.u32 %v973_v48, 16  ;;  %v1247_v42 = vshrl.u32 %v973_v48, 16 }
  0xf4   : > { %1704 = vst [vmem:[#allocation3 + $0x2d8] sm:$0xf] %v1613_v46  ;;  %v1236_v60 = vrot.slane %v1234_v49, 4  ;;  %v1253_v58 = vshll.u32 %v974_v52, 16  ;;  %v14647_v63 = vld [vmem:[#allocation3 + $0x2b0] sm:$0xf0]  ;;  %v4958_v27 = vadd.f32 %v4957_v61, %v4869_v14 }
  0xf5   : > { %4994 = vmatmul.bf16.gmra.mxu1 %v12156_v23  ;;  %v1616_v59 = vsel %vm15602_vm3, %v1614_v47, %v1615_v40  ;;  %v1239_v0 = vrot.slane %v1237_v53, 5  ;;  %v1245_v3 = vrot.slane %v1243_v54, 5  ;;  %v1249_v6 = vrot.slane %v1247_v42, 4  ;;  %838 = vst [vmem:[#allocation2 + $0x84] sm:$0xf] %v837_v55  ;;  %v342_v25 = vld [vmem:[%s15561_s29 + $0xc0] sm:$0xff] }
  0xf6   : > { %v5046_v56 = vpop.f32.mrf.mxu2  ;;  %v4871_v57 = vpop.f32.mrf.mxu0  ;;  %1705 = vst [vmem:[#allocation3 + $0x2fc] sm:$0xf] %v1616_v59  ;;  %v627_v13 = vshrl.u32 %v15914_v50, 16  ;;  %v840_v11 = vld [vmem:[#allocation2 + $0x8c] sm:$0x1]  ;;  %v12196_v15 = vor.u32 %v14647_v63, %v12195_v39  ;;  %v1255_v20 = vrot.slane %v1253_v58, 5  ;;  %v15945_v54 = vpack.c.bf16 %v342_v25, %v342_v25 }
  0xf7   : > { %5172 = vmatmul.bf16.gmra.mxu3 %v12164_v38  ;;  %v1240_v8 = vor.u32 %v1239_v0, %v1236_v60  ;;  %v1250_v16 = vor.u32 %v1249_v6, %v1245_v3  ;;  %839 = vst.msk [vmem:[#allocation2 + $0x88] sm:$0xf] %vm760_vm8, %v624_v2  ;;  %v841_v17 = vsel %vm15648_vm13, %v625_v10, %v840_v11  ;;  %v14642_v1 = vld [vmem:[#allocation3 + $0x28c] sm:$0xf]  ;;  %v630_v24 = vshll.u32 %v15914_v50, 16 }
  0xf8   : > { %842 = vst [vmem:[#allocation2 + $0x8c] sm:$0x1] %v841_v17  ;;  %v15932_v7 = vrot.slane %v627_v13, 7  ;;  %v635_v26 = vshrl.u32 %v427_v12, 16  ;;  %v12189_v28 = vld [vmem:[#allocation3 + $0x2ac] sm:$0xf0]  ;;  %v5047_v38 = vadd.f32 %v5046_v56, %v4958_v27 }
  0xf9   : > { %4910 = vmatmul.bf16.gmra.mxu0 %v12188_v51  ;;  %v1241_v22 = vrot.slane %v1240_v8, 4  ;;  %v1251_v23 = vrot.slane %v1250_v16, 4  ;;  %v14643_v30 = vld [vmem:[#allocation3 + $0x294] sm:$0xf]  ;;  %v12197_v31 = vld [vmem:[#allocation3 + $0x2b4] sm:$0xf0]  ;;  %v12192_v45 = vor.u32 %v14642_v1, %v12189_v28 }
  0xfa   : > { %v5133_v62 = vpop.f32.mrf.mxu3  ;;  %v15940_v36 = vrot.slane %v635_v26, 7  ;;  %v638_v37 = vshll.u32 %v427_v12, 16  ;;  %v12223_v40 = vld [vmem:[#allocation3 + $0x2d0] sm:$0xf]  ;;  %v14655_v41 = vld [vmem:[#allocation3 + $0x2f0] sm:$0xf0]  ;;  %v632_v50 = vor.u32 %v630_v24, %v15932_v7 }
  0xfb   : > { %v15930_v21 = vadd.f32 %v5133_v62, %v15898_v19  ;;  %v1246_v32 = vsel %vm15616_vm9, %v1241_v22, %v1245_v3  ;;  %v4872_v19 = vadd.f32 %v15865_v5, %v4871_v57  ;;  %v1256_v35 = vsel %vm15616_vm9, %v1251_v23, %v1255_v20  ;;  %v843_v44 = vld [vmem:[#allocation2 + $0x90] sm:$0xf]  ;;  %v343_v62 = vld [vmem:[%s15561_s29 + $0xc8] sm:$0xff] }
  0xfc   : > { %1429 = vst [vmem:[#allocation3 + $0x2d4] sm:$0xf] %v1246_v32  ;;  %v633_v43 = vrot.slane %v15932_v7, 4  ;;  %v1736_v47 = vld [vmem:[#allocation2 + $0x84] sm:$0xf]  ;;  %v12200_v57 = vor.u32 %v14643_v30, %v12197_v31  ;;  %v640_v60 = vor.u32 %v638_v37, %v15940_v36  ;;  %v12224_v2 = vor.u32 %v14655_v41, %v12223_v40 }
  0xfd   : > { %1430 = vst [vmem:[#allocation3 + $0x2f8] sm:$0xf] %v1256_v35  ;;  %v900_v48 = vld [vmem:[#allocation2 + $0x84] sm:$0xf]  ;;  %v12231_v58 = vld [vmem:[#allocation3 + $0x2d8] sm:$0xf]  ;;  %v844_v12 = vsel %vm15629_vm11, %v632_v50, %v843_v44  ;;  %v429_v31 = vpack.c.bf16 %v343_v62, %v343_v62 }
  0xfe   : > { %5088 = vmatmul.bf16.gmra.mxu2 %v12196_v15  ;;  %v4873_v34 = vpop.f32.mrf.mxu0  ;;  %v1474_v49 = vld [vmem:[#allocation2 + $0x84] sm:$0xe]  ;;  %v1737_v52 = vld [vmem:[#allocation2 + $0x88] sm:$0xf]  ;;  %1768 = vst [vmem:[#allocation3 + $0x2dc] sm:$0xf] %v1736_v47  ;;  %v641_v24 = vsel %vm15639_vm12, %v633_v43, %v640_v60 }
  0xff   : > { %v901_v53 = vld [vmem:[#allocation2 + $0x88] sm:$0xf]  ;;  %1769 = vst [vmem:[#allocation3 + $0x300] sm:$0xf] %v1737_v52  ;;  %v1476_v59 = vld [vmem:[#allocation2 + $0x8c] sm:$0x1]  ;;  %v4874_v16 = vadd.f32 %v15865_v5, %v4873_v34 }
 0x100   : > { %v1475_v39 = vld [vmem:[#allocation2 + $0x88] sm:$0xf]  ;;  %932 = vst [vmem:[#allocation3 + $0x318] sm:$0xf] %v900_v48  ;;  %v11824_v61 = vrot.slane %v1474_v49, 9  ;;  %v1622_v0 = vrot.slane %v1476_v59, 5 }
 0x101   : > { %v5049_v46 = vpop.f32.mrf.mxu2  ;;  %v1619_v63 = vrot.slane %v1475_v39, 5  ;;  %933 = vst [vmem:[#allocation3 + $0x33c] sm:$0xf] %v901_v53  ;;  %v975_v6 = vld [vmem:[#allocation2 + $0x84] sm:$0xf]  ;;  %v644_v15 = vshrl.u32 %v15945_v54, 16 }
 0x102   : > { %v4960_v51 = vpop.f32.mrf.mxu1  ;;  %v5135_v55 = vpop.f32.mrf.mxu3  ;;  %v976_v10 = vld [vmem:[#allocation2 + $0x88] sm:$0xf]  ;;  %v14656_v13 = vld [vmem:[#allocation3 + $0x2f8] sm:$0xf0]  ;;  %v1258_v11 = vshrl.u32 %v975_v6, 16  ;;  %v1261_v22 = vshll.u32 %v975_v6, 16 }
 0x103   : > { %v4961_v56 = vadd.f32 %v4960_v51, %v4872_v19  ;;  %v15948_v42 = vadd.f32 %v5135_v55, %v5047_v38  ;;  %v1620_v14 = vsel %vm15602_vm3, %v11824_v61, %v1619_v63  ;;  %v1621_v8 = vrot.slane %v1619_v63, 4  ;;  %v977_v17 = vld [vmem:[#allocation2 + $0x8c] sm:$0x1]  ;;  %845 = vst [vmem:[#allocation2 + $0x90] sm:$0xf] %v844_v12 }
 0x104   : > { %1706 = vst [vmem:[#allocation3 + $0x320] sm:$0xf] %v1620_v14  ;;  %v1267_v7 = vshll.u32 %v976_v10, 16  ;;  %v1260_v23 = vrot.slane %v1258_v11, 4  ;;  %v12232_v27 = vor.u32 %v14656_v13, %v12231_v58  ;;  %v1263_v28 = vrot.slane %v1261_v22, 5 }
 0x105   : > { %4999 = vmatmul.bf16.gmra.mxu1 %v12192_v45  ;;  %v5050_v3 = vadd.f32 %v5049_v46, %v4961_v56  ;;  %v1623_v1 = vsel %vm15602_vm3, %v1621_v8, %v1622_v0  ;;  %v847_v30 = vld [vmem:[#allocation2 + $0x98] sm:$0x1]  ;;  %v1271_v34 = vshrl.u32 %v976_v10, 16  ;;  %v1277_v35 = vshll.u32 %v977_v17, 16  ;;  %846 = vst.msk [vmem:[#allocation2 + $0x94] sm:$0xf] %vm760_vm8, %v641_v24 }
 0x106   : > { %v4876_v20 = vpop.f32.mrf.mxu0  ;;  %1707 = vst [vmem:[#allocation3 + $0x344] sm:$0xf] %v1623_v1  ;;  %v1269_v19 = vrot.slane %v1267_v7, 5  ;;  %v642_v37 = vrot.slane %v15940_v36, 4  ;;  %v1264_v40 = vor.u32 %v1263_v28, %v1260_v23  ;;  %v15963_v41 = vrot.slane %v644_v15, 7  ;;  %v344_v10 = vld [vmem:[%s15561_s29 + $0xd0] sm:$0xff] }
 0x107   : > { %5177 = vmatmul.bf16.gmra.mxu3 %v12200_v57  ;;  %v647_v43 = vshll.u32 %v15945_v54, 16  ;;  %v14651_v45 = vld [vmem:[#allocation3 + $0x2d4] sm:$0xf]  ;;  %v1273_v46 = vrot.slane %v1271_v34, 4  ;;  %v12225_v49 = vld [vmem:[#allocation3 + $0x2f4] sm:$0xf0]  ;;  %v4877_v56 = vadd.f32 %v15865_v5, %v4876_v20 }
 0x108   : > { %v848_v47 = vsel %vm15648_vm13, %v642_v37, %v847_v30  ;;  %v1265_v50 = vrot.slane %v1264_v40, 4  ;;  %v1279_v51 = vrot.slane %v1277_v35, 5  ;;  %v652_v52 = vshrl.u32 %v429_v31, 16  ;;  %v850_v55 = vld [vmem:[#allocation2 + $0x9c] sm:$0xf] }
 0x109   : > { %v5051_v26 = vpop.f32.mrf.mxu2  ;;  %4915 = vmatmul.bf16.gmra.mxu0 %v12224_v2  ;;  %849 = vst [vmem:[#allocation2 + $0x98] sm:$0x1] %v848_v47  ;;  %v1274_v36 = vor.u32 %v1273_v46, %v1269_v19  ;;  %v655_v53 = vshll.u32 %v429_v31, 16  ;;  %v14652_v54 = vld [vmem:[#allocation3 + $0x2dc] sm:$0xf]  ;;  %v650_v6 = vrot.slane %v15963_v41, 4  ;;  %v12228_v12 = vor.u32 %v14651_v45, %v12225_v49 }
 0x10a   : > { %v4962_v32 = vpop.f32.mrf.mxu1  ;;  %v5138_v25 = vpop.f32.mrf.mxu3  ;;  %v12233_v57 = vld [vmem:[#allocation3 + $0x2fc] sm:$0xf0]  ;;  %v15971_v59 = vld [vmem:[#allocation3 + $0x318] sm:$0xf]  ;;  %v15973_v60 = vld [vmem:[#allocation3 + $0x338] sm:$0xf0]  ;;  %v1270_v58 = vsel %vm15616_vm9, %v1265_v50, %v1269_v19 }
 0x10b   : > { %v4963_v38 = vadd.f32 %v4962_v32, %v4874_v16  ;;  %v15966_v44 = vadd.f32 %v5138_v25, %v5050_v3  ;;  %v1738_v61 = vld [vmem:[#allocation2 + $0x90] sm:$0xf]  ;;  %v649_v3 = vor.u32 %v647_v43, %v15963_v41  ;;  %v1275_v2 = vrot.slane %v1274_v36, 4  ;;  %1431 = vst [vmem:[#allocation3 + $0x31c] sm:$0xf] %v1270_v58  ;;  %v14738_v19 = vld [vmem:[%s18111_s1 + $0x108] sm:$0xff] }
 0x10c   : > { %v902_v63 = vld [vmem:[#allocation2 + $0x90] sm:$0xf]  ;;  %1770 = vst [vmem:[#allocation3 + $0x324] sm:$0xf] %v1738_v61  ;;  %v15980_v11 = vrot.slane %v652_v52, 7  ;;  %v12236_v28 = vor.u32 %v14652_v54, %v12233_v57  ;;  %v12260_v30 = vor.u32 %v15973_v60, %v15971_v59  ;;  %5219 = vmatpush.bf16.msrb.mxu0 %v14738_v19 }
 0x10d   : > { %v5052_v48 = vadd.f32 %v5051_v26, %v4963_v38  ;;  %v1477_v0 = vld [vmem:[#allocation2 + $0x90] sm:$0xe]  ;;  %v1280_v15 = vsel %vm15616_vm9, %v1275_v2, %v1279_v51  ;;  %v1739_v16 = vld [vmem:[#allocation2 + $0x94] sm:$0xf]  ;;  %934 = vst [vmem:[#allocation3 + $0x360] sm:$0xf] %v902_v63  ;;  %v851_v24 = vsel %vm15629_vm11, %v649_v3, %v850_v55  ;;  %v15987_v26 = vpack.c.bf16 %v344_v10, %v344_v10 }
 0x10e   : > { %5093 = vmatmul.bf16.gmra.mxu2 %v12232_v27  ;;  %v4878_v39 = vpop.f32.mrf.mxu0  ;;  %v11825_v14 = vrot.slane %v1477_v0, 9  ;;  %v978_v8 = vld [vmem:[#allocation2 + $0x90] sm:$0xf]  ;;  %v903_v20 = vld [vmem:[#allocation2 + $0x94] sm:$0xf]  ;;  %v657_v23 = vor.u32 %v655_v53, %v15980_v11  ;;  %v345_v3 = vld [vmem:[%s15561_s29 + $0xd8] sm:$0xff] }
 0x10f   : > { %1432 = vst [vmem:[#allocation3 + $0x340] sm:$0xf] %v1280_v15  ;;  %v1478_v7 = vld [vmem:[#allocation2 + $0x94] sm:$0xf]  ;;  %v12267_v35 = vld [vmem:[#allocation3 + $0x320] sm:$0xf] }
 0x110   : > { %v979_v1 = vld [vmem:[#allocation2 + $0x94] sm:$0xf]  ;;  %1771 = vst [vmem:[#allocation3 + $0x348] sm:$0xf] %v1739_v16  ;;  %v1479_v31 = vld [vmem:[#allocation2 + $0x98] sm:$0x1]  ;;  %v658_v41 = vsel %vm15639_vm12, %v650_v6, %v657_v23 }
 0x111   : > { %v5054_v13 = vpop.f32.mrf.mxu2  ;;  %v1626_v32 = vrot.slane %v1478_v7, 5  ;;  %v14665_v37 = vld [vmem:[#allocation3 + $0x340] sm:$0xf0]  ;;  %935 = vst [vmem:[#allocation3 + $0x384] sm:$0xf] %v903_v20  ;;  %v1629_v25 = vrot.slane %v1479_v31, 5 }
 0x112   : > { %v4965_v62 = vpop.f32.mrf.mxu1  ;;  %v5140_v17 = vpop.f32.mrf.mxu3  ;;  %v980_v38 = vld [vmem:[#allocation2 + $0x98] sm:$0x1]  ;;  %v1282_v40 = vshrl.u32 %v978_v8, 16  ;;  %v1285_v46 = vshll.u32 %v978_v8, 16  ;;  %v1291_v47 = vshll.u32 %v979_v1, 16  ;;  %v1295_v36 = vshrl.u32 %v979_v1, 16 }
 0x113   : > { %v4966_v22 = vadd.f32 %v4965_v62, %v4877_v56  ;;  %v15989_v27 = vadd.f32 %v5140_v17, %v5052_v48  ;;  %v1627_v43 = vsel %vm15602_vm3, %v11825_v14, %v1626_v32  ;;  %v1628_v45 = vrot.slane %v1626_v32, 4  ;;  %852 = vst [vmem:[#allocation2 + $0x9c] sm:$0xf] %v851_v24  ;;  %v14660_v10 = vld [vmem:[#allocation3 + $0x31c] sm:$0xf]  ;;  %v346_v24 = vld [vmem:[%s15561_s29 + $0xe0] sm:$0xff] }
 0x114   : > { %v4879_v48 = vadd.f32 %v15865_v5, %v4878_v39  ;;  %1708 = vst [vmem:[#allocation3 + $0x368] sm:$0xf] %v1627_v43  ;;  %v1284_v50 = vrot.slane %v1282_v40, 4  ;;  %v661_v51 = vshrl.u32 %v15987_v26, 16  ;;  %v1287_v53 = vrot.slane %v1285_v46, 5 }
 0x115   : > { %5004 = vmatmul.bf16.gmra.mxu1 %v12228_v12  ;;  %v5055_v34 = vadd.f32 %v5054_v13, %v4966_v22  ;;  %v1630_v52 = vsel %vm15602_vm3, %v1628_v45, %v1629_v25  ;;  %v1293_v55 = vrot.slane %v1291_v47, 5  ;;  %853 = vst.msk [vmem:[#allocation2 + $0xa0] sm:$0xf] %vm760_vm8, %v658_v41  ;;  %v1297_v54 = vrot.slane %v1295_v36, 4  ;;  %v854_v8 = vld [vmem:[#allocation2 + $0xa4] sm:$0x1] }
 0x116   : > { %v4881_v49 = vpop.f32.mrf.mxu0  ;;  %1709 = vst [vmem:[#allocation3 + $0x38c] sm:$0xf] %v1630_v52  ;;  %v1301_v57 = vshll.u32 %v980_v38, 16  ;;  %v12268_v59 = vor.u32 %v14665_v37, %v12267_v35  ;;  %v1288_v60 = vor.u32 %v1287_v53, %v1284_v50  ;;  %v16006_v2 = vrot.slane %v661_v51, 7  ;;  %v12261_v12 = vld [vmem:[#allocation3 + $0x33c] sm:$0xf0] }
 0x117   : > { %5182 = vmatmul.bf16.gmra.mxu3 %v12236_v28  ;;  %v1298_v63 = vor.u32 %v1297_v54, %v1293_v55  ;;  %v659_v14 = vrot.slane %v15980_v11, 4  ;;  %v16011_v15 = vld [vmem:[#allocation3 + $0x324] sm:$0xf]  ;;  %v16013_v16 = vld [vmem:[#allocation3 + $0x344] sm:$0xf0]  ;;  %v664_v22 = vshll.u32 %v15987_v26, 16  ;;  %v4882_v11 = vadd.f32 %v15865_v5, %v4881_v49 }
 0x118   : > { %v1303_v0 = vrot.slane %v1301_v57, 5  ;;  %v1289_v13 = vrot.slane %v1288_v60, 4  ;;  %v857_v23 = vld [vmem:[#allocation2 + $0xa8] sm:$0xf]  ;;  %v16023_v35 = vpack.c.bf16 %v345_v3, %v345_v3  ;;  %v12264_v25 = vor.u32 %v14660_v10, %v12261_v12  ;;  %v12295_v38 = vld [vmem:[#allocation3 + $0x360] sm:$0xf] }
 0x119   : > { %v5056_v56 = vpop.f32.mrf.mxu2  ;;  %4920 = vmatmul.bf16.gmra.mxu0 %v12260_v30  ;;  %v1299_v20 = vrot.slane %v1298_v63, 4  ;;  %v666_v26 = vor.u32 %v664_v22, %v16006_v2  ;;  %v347_v37 = vld [vmem:[%s15561_s29 + $0xe8] sm:$0xff]  ;;  %v855_v40 = vsel %vm15648_vm13, %v659_v14, %v854_v8  ;;  %v12272_v47 = vor.u32 %v16011_v15, %v16013_v16 }
 0x11a   : > { %v4967_v39 = vpop.f32.mrf.mxu1  ;;  %v5143_v58 = vpop.f32.mrf.mxu3  ;;  %v1740_v17 = vld [vmem:[#allocation2 + $0x9c] sm:$0xf]  ;;  %v1294_v7 = vsel %vm15616_vm9, %v1289_v13, %v1293_v55  ;;  %v432_v51 = vpack.c.bf16 %v346_v24, %v346_v24  ;;  %856 = vst [vmem:[#allocation2 + $0xa4] sm:$0x1] %v855_v40  ;;  %v669_v13 = vshrl.u32 %v16023_v35, 16 }
 0x11b   : > { %v4968_v61 = vadd.f32 %v4967_v39, %v4879_v48  ;;  %v16008_v6 = vadd.f32 %v5143_v58, %v5055_v34  ;;  %1772 = vst [vmem:[#allocation3 + $0x36c] sm:$0xf] %v1740_v17  ;;  %v1480_v1 = vld [vmem:[#allocation2 + $0x9c] sm:$0xe]  ;;  %v1304_v30 = vsel %vm15616_vm9, %v1299_v20, %v1303_v0  ;;  %v858_v57 = vsel %vm15629_vm11, %v666_v26, %v857_v23  ;;  %v12303_v16 = vld [vmem:[#allocation3 + $0x368] sm:$0xf] }
 0x11c   : > { %1433 = vst [vmem:[#allocation3 + $0x364] sm:$0xf] %v1294_v7  ;;  %v1741_v31 = vld [vmem:[#allocation2 + $0xa0] sm:$0xf]  ;;  %v904_v32 = vld [vmem:[#allocation2 + $0x9c] sm:$0xf]  ;;  %v16036_v0 = vpack.c.bf16 %v347_v37, %v347_v37 }
 0x11d   : > { %v5057_v62 = vadd.f32 %v5056_v56, %v4968_v61  ;;  %1434 = vst [vmem:[#allocation3 + $0x388] sm:$0xf] %v1304_v30  ;;  %v905_v19 = vld [vmem:[#allocation2 + $0xa0] sm:$0xf]  ;;  %v11826_v41 = vrot.slane %v1480_v1, 9  ;;  %v678_v15 = vshrl.u32 %v432_v51, 16 }
 0x11e   : > { %5098 = vmatmul.bf16.gmra.mxu2 %v12268_v59  ;;  %v4883_v28 = vpop.f32.mrf.mxu0  ;;  %v1481_v34 = vld [vmem:[#allocation2 + $0xa0] sm:$0xf]  ;;  %1773 = vst [vmem:[#allocation3 + $0x390] sm:$0xf] %v1741_v31  ;;  %v981_v45 = vld [vmem:[#allocation2 + $0x9c] sm:$0xf] }
 0x11f   : > { %v1633_v43 = vrot.slane %v1481_v34, 5  ;;  %936 = vst [vmem:[#allocation3 + $0x3a8] sm:$0xf] %v904_v32  ;;  %v982_v49 = vld [vmem:[#allocation2 + $0xa0] sm:$0xf]  ;;  %v1306_v50 = vshrl.u32 %v981_v45, 16  ;;  %v4884_v14 = vadd.f32 %v15865_v5, %v4883_v28 }
 0x120   : > { %v1309_v36 = vshll.u32 %v981_v45, 16  ;;  %v14673_v55 = vld [vmem:[#allocation3 + $0x380] sm:$0xf0]  ;;  %937 = vst [vmem:[#allocation3 + $0x3cc] sm:$0xf] %v905_v19  ;;  %v1315_v54 = vshll.u32 %v982_v49, 16 }
 0x121   : > { %v5059_v48 = vpop.f32.mrf.mxu2  ;;  %v1634_v56 = vsel %vm15602_vm3, %v11826_v41, %v1633_v43  ;;  %v1308_v59 = vrot.slane %v1306_v50, 4  ;;  %v1319_v58 = vshrl.u32 %v982_v49, 16  ;;  %v12296_v3 = vor.u32 %v14673_v55, %v12295_v38  ;;  %859 = vst [vmem:[#allocation2 + $0xa8] sm:$0xf] %v858_v57  ;;  %v14674_v20 = vld [vmem:[#allocation3 + $0x388] sm:$0xf0] }
 0x122   : > { %v4970_v46 = vpop.f32.mrf.mxu1  ;;  %v5145_v52 = vpop.f32.mrf.mxu3  ;;  %v1311_v60 = vrot.slane %v1309_v36, 5  ;;  %1710 = vst [vmem:[#allocation3 + $0x3b0] sm:$0xf] %v1634_v56  ;;  %v1317_v63 = vrot.slane %v1315_v54, 5  ;;  %v667_v7 = vrot.slane %v16006_v2, 4  ;;  %v671_v1 = vrot.slane %v669_v13, 7 }
 0x123   : > { %v4971_v53 = vadd.f32 %v4970_v46, %v4882_v11  ;;  %v16034_v39 = vadd.f32 %v5145_v52, %v5057_v62  ;;  %v1321_v12 = vrot.slane %v1319_v58, 4  ;;  %v672_v62 = vshll.u32 %v16023_v35, 16  ;;  %v1482_v2 = vld [vmem:[#allocation2 + $0xa4] sm:$0x1]  ;;  %v861_v40 = vld [vmem:[#allocation2 + $0xb0] sm:$0x1] }
 0x124   : > { %v1312_v10 = vor.u32 %v1311_v60, %v1308_v59  ;;  %v16042_v23 = vrot.slane %v678_v15, 7  ;;  %v681_v24 = vshll.u32 %v432_v51, 16  ;;  %v686_v11 = vshrl.u32 %v16036_v0, 16  ;;  %v14669_v45 = vld [vmem:[#allocation3 + $0x364] sm:$0xf] }
 0x125   : > { %5009 = vmatmul.bf16.gmra.mxu1 %v12264_v25  ;;  %v5060_v61 = vadd.f32 %v5059_v48, %v4971_v53  ;;  %v1322_v22 = vor.u32 %v1321_v12, %v1317_v63  ;;  %v1635_v31 = vrot.slane %v1633_v43, 4  ;;  %v689_v19 = vshll.u32 %v16036_v0, 16  ;;  %v983_v25 = vld [vmem:[#allocation2 + $0xa4] sm:$0x1]  ;;  %v12297_v49 = vld [vmem:[#allocation3 + $0x384] sm:$0xf0] }
 0x126   : > { %v4886_v8 = vpop.f32.mrf.mxu0  ;;  %v1313_v17 = vrot.slane %v1312_v10, 4  ;;  %v12304_v37 = vor.u32 %v14674_v20, %v12303_v16  ;;  %v674_v38 = vor.u32 %v672_v62, %v671_v1  ;;  %v1636_v46 = vrot.slane %v1482_v2, 5  ;;  %v864_v52 = vld [vmem:[#allocation2 + $0xb4] sm:$0xf]  ;;  %v14670_v57 = vld [vmem:[#allocation3 + $0x36c] sm:$0xf] }
 0x127   : > { %5187 = vmatmul.bf16.gmra.mxu3 %v12272_v47  ;;  %v1323_v26 = vrot.slane %v1322_v22, 4  ;;  %v1325_v47 = vshll.u32 %v983_v25, 16  ;;  %v676_v43 = vrot.slane %v671_v1, 4  ;;  %v683_v36 = vor.u32 %v681_v24, %v16042_v23  ;;  %v12305_v59 = vld [vmem:[#allocation3 + $0x38c] sm:$0xf0]  ;;  %v348_v12 = vld [vmem:[%s15561_s29 + $0xf0] sm:$0xff] }
 0x128   : > { %v1318_v32 = vsel %vm15616_vm9, %v1313_v17, %v1317_v63  ;;  %v675_v50 = vsel %vm15639_vm12, %v667_v7, %v674_v38  ;;  %v16053_v51 = vrot.slane %v686_v11, 7  ;;  %v1637_v53 = vsel %vm15602_vm3, %v1635_v31, %v1636_v46  ;;  %v1742_v56 = vld [vmem:[#allocation2 + $0xa8] sm:$0xf]  ;;  %v12331_v17 = vld [vmem:[#allocation3 + $0x3a8] sm:$0xf]  ;;  %v349_v11 = vld [vmem:[%s15561_s29 + $0xf8] sm:$0xff] }
 0x129   : > { %v5061_v28 = vpop.f32.mrf.mxu2  ;;  %4925 = vmatmul.bf16.gmra.mxu0 %v12296_v3  ;;  %1435 = vst [vmem:[#allocation3 + $0x3ac] sm:$0xf] %v1318_v32  ;;  %v1327_v55 = vrot.slane %v1325_v47, 5  ;;  %v4887_v54 = vadd.f32 %v15865_v5, %v4886_v8  ;;  %v906_v58 = vld [vmem:[#allocation2 + $0xa8] sm:$0xf]  ;;  %v862_v0 = vsel %vm15648_vm13, %v676_v43, %v861_v40  ;;  %v684_v10 = vrot.slane %v16042_v23, 4 }
 0x12a   : > { %v4972_v30 = vpop.f32.mrf.mxu1  ;;  %v5148_v34 = vpop.f32.mrf.mxu3  ;;  %860 = vst.msk [vmem:[#allocation2 + $0xac] sm:$0xf] %vm760_vm8, %v675_v50  ;;  %v984_v3 = vld [vmem:[#allocation2 + $0xa8] sm:$0xf]  ;;  %v691_v62 = vor.u32 %v689_v19, %v16053_v51  ;;  %v865_v15 = vsel %vm15629_vm11, %v683_v36, %v864_v52  ;;  %v14682_v22 = vld [vmem:[#allocation3 + $0x3c8] sm:$0xf0]  ;;  %v16077_v19 = vpack.c.bf16 %v348_v12, %v348_v12  ;;  %v16081_v47 = vpack.c.bf16 %v349_v11, %v349_v11 }
 0x12b   : > { %v4973_v35 = vadd.f32 %v4972_v30, %v4884_v14  ;;  %v16048_v41 = vadd.f32 %v5148_v34, %v5060_v61  ;;  %1711 = vst [vmem:[#allocation3 + $0x3d4] sm:$0xf] %v1637_v53  ;;  %v12300_v61 = vor.u32 %v14669_v45, %v12297_v49  ;;  %v1328_v63 = vsel %vm15616_vm9, %v1323_v26, %v1327_v55  ;;  %v1483_v13 = vld [vmem:[#allocation2 + $0xa8] sm:$0xe]  ;;  %v14737_v32 = vld [vmem:[%s18111_s1 + $0x100] sm:$0xff]  ;;  %v14760_v26 = vld [vmem:[%s18111_s1 + $0x1b8] sm:$0xff] }
 0x12c   : > { %1774 = vst [vmem:[#allocation3 + $0x3b4] sm:$0xf] %v1742_v56  ;;  %v1330_v14 = vshrl.u32 %v984_v3, 16  ;;  %v1333_v8 = vshll.u32 %v984_v3, 16  ;;  %v11827_v31 = vrot.slane %v1483_v13, 9  ;;  %v692_v38 = vsel %vm15639_vm12, %v684_v10, %v691_v62  ;;  %5220 = vmatpush.bf16.msrb.mxu0 %v14737_v32  ;;  %5391 = vmatpush.bf16.msrb.mxu2 %v14760_v26  ;;  %v14768_v62 = vld [vmem:[%s18111_s1 + $0x1f8] sm:$0xff] }
 0x12d   : > { %v5062_v48 = vadd.f32 %v5061_v28, %v4973_v35  ;;  %1436 = vst [vmem:[#allocation3 + $0x3d0] sm:$0xf] %v1328_v63  ;;  %v12308_v28 = vor.u32 %v14670_v57, %v12305_v59  ;;  %v12332_v40 = vor.u32 %v14682_v22, %v12331_v17  ;;  %v12339_v45 = vld [vmem:[#allocation3 + $0x3b0] sm:$0xf]  ;;  %v693_v52 = vrot.slane %v16053_v51, 4  ;;  %v14752_v63 = vld [vmem:[%s18111_s1 + $0x178] sm:$0xff]  ;;  %5480 = vmatpush.bf16.msrb.mxu3 %v14768_v62 }
 0x12e   : > { %5103 = vmatmul.bf16.gmra.mxu2 %v12304_v37  ;;  %v4888_v60 = vpop.f32.mrf.mxu0  ;;  %938 = vst [vmem:[#allocation3 + $0x3f0] sm:$0xf] %v906_v58  ;;  %v1332_v23 = vrot.slane %v1330_v14, 4  ;;  %v1335_v24 = vrot.slane %v1333_v8, 5  ;;  %v695_v53 = vshrl.u32 %v16077_v19, 16  ;;  %5302 = vmatpush.bf16.msrb.mxu1 %v14752_v63  ;;  %v14751_v17 = vld [vmem:[%s18111_s1 + $0x170] sm:$0xff] }
 0x12f   : > { %863 = vst [vmem:[#allocation2 + $0xb0] sm:$0x1] %v862_v0  ;;  %v4889_v43 = vadd.f32 %v15865_v5, %v4888_v60  ;;  %v703_v0 = vshrl.u32 %v16081_v47, 16  ;;  %v868_v22 = vld [vmem:[#allocation2 + $0xbc] sm:$0x1]  ;;  %v14767_v32 = vld [vmem:[%s18111_s1 + $0x1f0] sm:$0xff] }
 0x130   : > { %866 = vst [vmem:[#allocation2 + $0xb4] sm:$0xf] %v865_v15  ;;  %v1336_v25 = vor.u32 %v1335_v24, %v1332_v23  ;;  %v14678_v23 = vld [vmem:[#allocation3 + $0x3ac] sm:$0xf] }
 0x131   : > { %v5064_v20 = vpop.f32.mrf.mxu2  ;;  %v1743_v35 = vld [vmem:[#allocation2 + $0xac] sm:$0xf]  ;;  %867 = vst.msk [vmem:[#allocation2 + $0xb8] sm:$0xf] %vm760_vm8, %v692_v38  ;;  %5481 = vmatpush.bf16.msrb.mxu3 %v14767_v32  ;;  %v14765_v62 = vld [vmem:[%s18111_s1 + $0x1e0] sm:$0xff] }
 0x132   : > { %v4975_v16 = vpop.f32.mrf.mxu1  ;;  %v5150_v7 = vpop.f32.mrf.mxu3  ;;  %v907_v37 = vld [vmem:[#allocation2 + $0xac] sm:$0xf]  ;;  %1775 = vst [vmem:[#allocation3 + $0x3d8] sm:$0xf] %v1743_v35  ;;  %v1337_v56 = vrot.slane %v1336_v25, 4  ;;  %v16116_v35 = vrot.slane %v703_v0, 7  ;;  %5303 = vmatpush.bf16.msrb.mxu1 %v14751_v17 }
 0x133   : > { %v4976_v1 = vadd.f32 %v4975_v16, %v4887_v54  ;;  %v16069_v30 = vadd.f32 %v5150_v7, %v5062_v48  ;;  %v1484_v2 = vld [vmem:[#allocation2 + $0xac] sm:$0xf]  ;;  %939 = vst [vmem:[#allocation3 + $0x414] sm:$0xf] %v907_v37  ;;  %v16104_v7 = vrot.slane %v695_v53, 7  ;;  %v706_v37 = vshll.u32 %v16081_v47, 16 }
 0x134   : > { %v1640_v46 = vrot.slane %v1484_v2, 5  ;;  %v14683_v49 = vld [vmem:[#allocation3 + $0x3d0] sm:$0xf0]  ;;  %v12333_v24 = vld [vmem:[#allocation3 + $0x3cc] sm:$0xf0] }
 0x135   : > { %5014 = vmatmul.bf16.gmra.mxu1 %v12300_v61  ;;  %v5065_v34 = vadd.f32 %v5064_v20, %v4976_v1  ;;  %v985_v50 = vld [vmem:[#allocation2 + $0xac] sm:$0xf]  ;;  %v12340_v60 = vor.u32 %v14683_v49, %v12339_v45  ;;  %v14759_v20 = vld [vmem:[%s18111_s1 + $0x1b0] sm:$0xff]  ;;  %v16122_v2 = vld [vmem:[%s18112_s2] ss:$0 sm:$0xff]  ;;  %v698_v49 = vshll.u32 %v16077_v19, 16  ;;  %v12336_v53 = vor.u32 %v14678_v23, %v12333_v24 }
 0x136   : > { %v4891_v48 = vpop.f32.mrf.mxu0  ;;  %v1641_v36 = vsel %vm15602_vm3, %v11827_v31, %v1640_v46  ;;  %v1642_v55 = vrot.slane %v1640_v46, 4  ;;  %v1339_v54 = vshll.u32 %v985_v50, 16  ;;  %v1343_v57 = vshrl.u32 %v985_v50, 16  ;;  %v1485_v58 = vld [vmem:[#allocation2 + $0xb0] sm:$0x1]  ;;  %5392 = vmatpush.bf16.msrb.mxu2 %v14759_v20  ;;  %v14750_v47 = vld [vmem:[%s18111_s1 + $0x168] sm:$0xff] }
 0x137   : > { %5192 = vmatmul.bf16.gmra.mxu3 %v12308_v28  ;;  %1712 = vst [vmem:[#allocation3 + $0x3f8] sm:$0xf] %v1641_v36  ;;  %v986_v61 = vld [vmem:[#allocation2 + $0xb0] sm:$0x1]  ;;  %v1643_v12 = vrot.slane %v1485_v58, 5  ;;  %v4892_v25 = vadd.f32 %v16122_v2, %v4891_v48  ;;  %v701_v36 = vrot.slane %v16104_v7, 4  ;;  %v708_v58 = vor.u32 %v706_v37, %v16116_v35  ;;  %5304 = vmatpush.bf16.msrb.mxu1 %v14750_v47 }
 0x138   : > { %v1341_v13 = vrot.slane %v1339_v54, 5  ;;  %v1345_v14 = vrot.slane %v1343_v57, 4  ;;  %v1744_v8 = vld [vmem:[#allocation2 + $0xb4] sm:$0xf]  ;;  %v1349_v16 = vshll.u32 %v986_v61, 16  ;;  %v14757_v19 = vld [vmem:[%s18111_s1 + $0x1a0] sm:$0xff]  ;;  %v869_v54 = vsel %vm15648_vm13, %v693_v52, %v868_v22 }
 0x139   : > { %v5066_v59 = vpop.f32.mrf.mxu2  ;;  %4930 = vmatmul.bf16.gmra.mxu0 %v12332_v40  ;;  %1776 = vst [vmem:[#allocation3 + $0x3fc] sm:$0xf] %v1744_v8  ;;  %v1644_v11 = vsel %vm15602_vm3, %v1642_v55, %v1643_v12  ;;  %v14679_v38 = vld [vmem:[#allocation3 + $0x3b4] sm:$0xf]  ;;  %v12341_v40 = vld [vmem:[#allocation3 + $0x3d4] sm:$0xf0]  ;;  %v709_v23 = vsel %vm15639_vm12, %v701_v36, %v708_v58 }
 0x13a   : > { %v4977_v5 = vpop.f32.mrf.mxu1  ;;  %v5153_v3 = vpop.f32.mrf.mxu3  ;;  %v1342_v28 = vsel %vm15616_vm9, %v1337_v56, %v1341_v13  ;;  %v1346_v31 = vor.u32 %v1345_v14, %v1341_v13  ;;  %1713 = vst [vmem:[#allocation3 + $0x41c] sm:$0xf] %v1644_v11  ;;  %v1351_v26 = vrot.slane %v1349_v16, 5  ;;  %v908_v50 = vld [vmem:[#allocation2 + $0xb4] sm:$0xf]  ;;  %v14766_v55 = vld [vmem:[%s18111_s1 + $0x1e8] sm:$0xff]  ;;  %v12344_v51 = vor.u32 %v14679_v38, %v12341_v40 }
 0x13b   : > { %v4978_v10 = vadd.f32 %v4977_v5, %v4889_v43  ;;  %v16096_v15 = vadd.f32 %v5153_v3, %v5065_v34  ;;  %v14758_v34 = vld [vmem:[%s18111_s1 + $0x1a8] sm:$0xff]  ;;  %1437 = vst [vmem:[#allocation3 + $0x3f4] sm:$0xf] %v1342_v28  ;;  %v1745_v43 = vld [vmem:[#allocation2 + $0xb8] sm:$0xf]  ;;  %v14749_v52 = vld [vmem:[%s18111_s1 + $0x160] sm:$0xff]  ;;  %5482 = vmatpush.bf16.msrb.mxu3 %v14766_v55 }
 0x13c   : > { %v1347_v46 = vrot.slane %v1346_v31, 4  ;;  %1777 = vst [vmem:[#allocation3 + $0x420] sm:$0xf] %v1745_v43  ;;  %v909_v56 = vld [vmem:[#allocation2 + $0xb8] sm:$0xf]  ;;  %5393 = vmatpush.bf16.msrb.mxu2 %v14758_v34  ;;  %5305 = vmatpush.bf16.msrb.mxu1 %v14749_v52  ;;  %v14747_v58 = vld [vmem:[%s18111_s1 + $0x150] sm:$0xff] }
 0x13d   : > { %v5067_v1 = vadd.f32 %v5066_v59, %v4978_v10  ;;  %940 = vst [vmem:[#allocation3 + $0x438] sm:$0xf] %v908_v50  ;;  %v1486_v59 = vld [vmem:[#allocation2 + $0xb4] sm:$0xe]  ;;  %v12367_v0 = vld [vmem:[#allocation3 + $0x3f0] sm:$0xf]  ;;  %v700_v10 = vor.u32 %v698_v49, %v16104_v7 }
 0x13e   : > { %5108 = vmatmul.bf16.gmra.mxu2 %v12340_v60  ;;  %v4893_v45 = vpop.f32.mrf.mxu0  ;;  %v1352_v48 = vsel %vm15616_vm9, %v1347_v46, %v1351_v26  ;;  %v1487_v60 = vld [vmem:[#allocation2 + $0xb8] sm:$0xf]  ;;  %v14691_v3 = vld [vmem:[#allocation3 + $0x410] sm:$0xf0]  ;;  %941 = vst [vmem:[#allocation3 + $0x45c] sm:$0xf] %v909_v56 }
 0x13f   : > { %1438 = vst [vmem:[#allocation3 + $0x418] sm:$0xf] %v1352_v48  ;;  %v11828_v13 = vrot.slane %v1486_v59, 9  ;;  %v1647_v14 = vrot.slane %v1487_v60, 5  ;;  %v987_v16 = vld [vmem:[#allocation2 + $0xb4] sm:$0xf]  ;;  %v12368_v17 = vor.u32 %v14691_v3, %v12367_v0  ;;  %v4894_v11 = vadd.f32 %v16122_v2, %v4893_v45  ;;  %5483 = vmatpush.bf16.msrb.mxu3 %v14765_v62 }
 0x140   : > { %870 = vst [vmem:[#allocation2 + $0xbc] sm:$0x1] %v869_v54  ;;  %v988_v20 = vld [vmem:[#allocation2 + $0xb8] sm:$0xf]  ;;  %5394 = vmatpush.bf16.msrb.mxu2 %v14757_v19  ;;  %v871_v24 = vld [vmem:[#allocation2 + $0xc0] sm:$0xf] }
 0x141   : > { %v5069_v5 = vpop.f32.mrf.mxu2  ;;  %v1648_v22 = vsel %vm15602_vm3, %v11828_v13, %v1647_v14  ;;  %v14756_v7 = vld [vmem:[%s18111_s1 + $0x198] sm:$0xff]  ;;  %v12375_v31 = vld [vmem:[#allocation3 + $0x3f8] sm:$0xf]  ;;  %v1357_v32 = vshll.u32 %v987_v16, 16  ;;  %v1363_v26 = vshll.u32 %v988_v20, 16  ;;  %v872_v34 = vsel %vm15629_vm11, %v700_v10, %v871_v24 }
 0x142   : > { %v4980_v57 = vpop.f32.mrf.mxu1  ;;  %v5155_v61 = vpop.f32.mrf.mxu3  ;;  %1714 = vst [vmem:[#allocation3 + $0x440] sm:$0xf] %v1648_v22  ;;  %v14692_v37 = vld [vmem:[#allocation3 + $0x418] sm:$0xf0]  ;;  %v1367_v38 = vshrl.u32 %v988_v20, 16  ;;  %v14748_v45 = vld [vmem:[%s18111_s1 + $0x158] sm:$0xff] }
 0x143   : > { %v4981_v63 = vadd.f32 %v4980_v57, %v4892_v25  ;;  %v16144_v12 = vadd.f32 %v5155_v61, %v5067_v1  ;;  %v1354_v1 = vshrl.u32 %v987_v16, 16  ;;  %873 = vst [vmem:[#allocation2 + $0xc0] sm:$0xf] %v872_v34  ;;  %v1359_v33 = vrot.slane %v1357_v32, 5  ;;  %v14764_v47 = vld [vmem:[%s18111_s1 + $0x1d8] sm:$0xff]  ;;  %v14755_v56 = vld [vmem:[%s18111_s1 + $0x190] sm:$0xff]  ;;  %5306 = vmatpush.bf16.msrb.mxu1 %v14748_v45 }
 0x144   : > { %v1365_v40 = vrot.slane %v1363_v26, 5  ;;  %v1649_v49 = vrot.slane %v1647_v14, 4  ;;  %5395 = vmatpush.bf16.msrb.mxu2 %v14756_v7  ;;  %v1369_v29 = vrot.slane %v1367_v38, 4  ;;  %874 = vst.msk [vmem:[#allocation2 + $0xc4] sm:$0xf] %vm760_vm8, %v709_v23  ;;  %5484 = vmatpush.bf16.msrb.mxu3 %v14764_v47  ;;  %v14763_v3 = vld [vmem:[%s18111_s1 + $0x1d0] sm:$0xff] }
 0x145   : > { %5019 = vmatmul.bf16.gmra.mxu1 %v12336_v53  ;;  %v5070_v8 = vadd.f32 %v5069_v5, %v4981_v63  ;;  %v1356_v25 = vrot.slane %v1354_v1, 4  ;;  %v12376_v53 = vor.u32 %v14692_v37, %v12375_v31  ;;  %v16174_v57 = vld [vmem:[#allocation3 + $0x3f4] sm:$0xf]  ;;  %v1781_v62 = vld [vmem:[#allocation2 + $0x10] sm:$0xf]  ;;  %v14753_v38 = vld [vmem:[%s18111_s1 + $0x180] sm:$0xff] }
 0x146   : > { %v4896_v28 = vpop.f32.mrf.mxu0  ;;  %v1370_v59 = vor.u32 %v1369_v29, %v1365_v40  ;;  %v12369_v63 = vld [vmem:[#allocation3 + $0x414] sm:$0xf0]  ;;  %v1780_v10 = vld [vmem:[#allocation2 + $0xc] sm:$0xf]  ;;  %v14688_v20 = vld [vmem:[#allocation3 + $0x3fc] sm:$0xf] }
 0x147   : > { %5197 = vmatmul.bf16.gmra.mxu3 %v12344_v51  ;;  %v1488_v48 = vld [vmem:[#allocation2 + $0xbc] sm:$0x1]  ;;  %v1360_v19 = vor.u32 %v1359_v33, %v1356_v25  ;;  %v14754_v14 = vld [vmem:[%s18111_s1 + $0x188] sm:$0xff]  ;;  %v4897_v16 = vadd.f32 %v16122_v2, %v4896_v28  ;;  %v1782_v24 = vld [vmem:[#allocation2 + $0x14] sm:$0x1]  ;;  %5307 = vmatpush.bf16.msrb.mxu1 %v14747_v58  ;;  %v1829_v32 = vshrl.u32 %v1780_v10, 16  ;;  %v12372_v37 = vor.u32 %v16174_v57, %v12369_v63 }
 0x148   : > { %v989_v55 = vld [vmem:[#allocation2 + $0xbc] sm:$0x1]  ;;  %v1650_v5 = vrot.slane %v1488_v48, 5  ;;  %v1371_v52 = vrot.slane %v1370_v59, 4  ;;  %5396 = vmatpush.bf16.msrb.mxu2 %v14755_v56  ;;  %v14762_v23 = vld [vmem:[%s18111_s1 + $0x1c8] sm:$0xff]  ;;  %v1832_v26 = vshll.u32 %v1780_v10, 16  ;;  %5485 = vmatpush.bf16.msrb.mxu3 %v14763_v3 }
 0x149   : > { %v5071_v43 = vpop.f32.mrf.mxu2  ;;  %4935 = vmatmul.bf16.gmra.mxu0 %v12368_v17  ;;  %v1373_v60 = vshll.u32 %v989_v55, 16  ;;  %v1361_v0 = vrot.slane %v1360_v19, 4  ;;  %v12377_v17 = vld [vmem:[#allocation3 + $0x41c] sm:$0xf0]  ;;  %v16198_v31 = vld [vmem:[#allocation3 + $0x458] sm:$0xf0] }
 0x14a   : > { %v4982_v46 = vpop.f32.mrf.mxu1  ;;  %v5158_v50 = vpop.f32.mrf.mxu3  ;;  %v1651_v51 = vsel %vm15602_vm3, %v1649_v49, %v1650_v5  ;;  %v1746_v1 = vld [vmem:[#allocation2 + $0xc0] sm:$0xf]  ;;  %v2549_v34 = vld [vmem:[#allocation2 + $0x18] sm:$0xf]  ;;  %v1838_v33 = vshll.u32 %v1781_v62, 16  ;;  %v1842_v49 = vshrl.u32 %v1781_v62, 16  ;;  %v12380_v48 = vor.u32 %v14688_v20, %v12377_v17 }
 0x14b   : > { %v4983_v36 = vadd.f32 %v4982_v46, %v4894_v11  ;;  %v16172_v54 = vadd.f32 %v5158_v50, %v5070_v8  ;;  %v1375_v13 = vrot.slane %v1373_v60, 5  ;;  %v14746_v8 = vld [vmem:[%s18111_s1 + $0x148] sm:$0xff]  ;;  %1715 = vst [vmem:[#allocation3 + $0x464] sm:$0xf] %v1651_v51  ;;  %v1366_v7 = vsel %vm15616_vm9, %v1361_v0, %v1365_v40  ;;  %v16196_v11 = vld [vmem:[#allocation3 + $0x438] sm:$0xf] }
 0x14c   : > { %1439 = vst [vmem:[#allocation3 + $0x43c] sm:$0xf] %v1366_v7  ;;  %v1747_v25 = vld [vmem:[#allocation2 + $0xc4] sm:$0xf]  ;;  %5397 = vmatpush.bf16.msrb.mxu2 %v14754_v14  ;;  %v1831_v46 = vrot.slane %v1829_v32, 4  ;;  %v1848_v29 = vshll.u32 %v1782_v24, 16  ;;  %5308 = vmatpush.bf16.msrb.mxu1 %v14746_v8  ;;  %v12404_v59 = vor.u32 %v16198_v31, %v16196_v11 }
 0x14d   : > { %v5072_v61 = vadd.f32 %v5071_v43, %v4983_v36  ;;  %v1376_v28 = vsel %vm15616_vm9, %v1371_v52, %v1375_v13  ;;  %1778 = vst [vmem:[#allocation3 + $0x444] sm:$0xf] %v1746_v1  ;;  %v1834_v43 = vrot.slane %v1832_v26, 5  ;;  %v1840_v36 = vrot.slane %v1838_v33, 5  ;;  %v14745_v55 = vld [vmem:[%s18111_s1 + $0x140] sm:$0xff]  ;;  %5486 = vmatpush.bf16.msrb.mxu3 %v14762_v23  ;;  %v14776_v58 = vld [vmem:[%s18111_s1 + $0x238] sm:$0xff] }
 0x14e   : > { %5113 = vmatmul.bf16.gmra.mxu2 %v12376_v53  ;;  %v4898_v22 = vpop.f32.mrf.mxu0  ;;  %1440 = vst [vmem:[#allocation3 + $0x460] sm:$0xf] %v1376_v28  ;;  %v1844_v56 = vrot.slane %v1842_v49, 4  ;;  %v2550_v57 = vld [vmem:[#allocation2 + $0x1c] sm:$0xf]  ;;  %v14761_v60 = vld [vmem:[%s18111_s1 + $0x1c0] sm:$0xff]  ;;  %5569 = vmatpush.bf16.msra.mxu0 %v14776_v58 }
 0x14f   : > { %1779 = vst [vmem:[#allocation3 + $0x468] sm:$0xf] %v1747_v25  ;;  %v1835_v19 = vor.u32 %v1834_v43, %v1831_v46  ;;  %v1850_v3 = vrot.slane %v1848_v29, 5  ;;  %v2277_v10 = vld [vmem:[#allocation2 + $0x10] sm:$0xf]  ;;  %v4899_v52 = vadd.f32 %v16122_v2, %v4898_v22  ;;  %vm6845_vm8 = vcmask 257024  }
 0x150   : > { %2581 = vst [vmem:[#allocation3 + $0x18] sm:$0xf] %v2549_v34  ;;  %5398 = vmatpush.bf16.msrb.mxu2 %v14753_v38  ;;  %v1845_v0 = vor.u32 %v1844_v56, %v1840_v36  ;;  %v12411_v14 = vld [vmem:[#allocation3 + $0x440] sm:$0xf]  ;;  %v2278_v8 = vld [vmem:[#allocation2 + $0x14] sm:$0x1]  ;;  %5309 = vmatpush.bf16.msrb.mxu1 %v14745_v55  ;;  %vm16819_vm2 = vmand %vm6845_vm8, %vm761_vm7 }
 0x151   : > { %v5074_v45 = vpop.f32.mrf.mxu2  ;;  %2582 = vst [vmem:[#allocation3 + $0x3c] sm:$0xf] %v2550_v57  ;;  %v1836_v63 = vrot.slane %v1835_v19, 4  ;;  %v2374_v62 = vrot.slane %v2277_v10, 5  ;;  %v2377_v7 = vrot.slane %v2278_v8, 5  ;;  %5487 = vmatpush.bf16.msrb.mxu3 %v14761_v60 }
 0x152   : > { %v4985_v40 = vpop.f32.mrf.mxu1  ;;  %v5160_v47 = vpop.f32.mrf.mxu3  ;;  %v1846_v17 = vrot.slane %v1845_v0, 4  ;;  %v2613_v1 = vld [vmem:[#allocation2 + $0x18] sm:$0xf]  ;;  %v2614_v32 = vld [vmem:[#allocation2 + $0x1c] sm:$0xf] }
 0x153   : > { %v4986_v50 = vadd.f32 %v4985_v40, %v4897_v16  ;;  %v16206_v53 = vadd.f32 %v5160_v47, %v5072_v61  ;;  %v2276_v61 = vld [vmem:[#allocation2 + $0xc] sm:$0xe]  ;;  %v14701_v16 = vld [vmem:[#allocation3 + $0x460] sm:$0xf0]  ;;  %v1841_v20 = vsel %vm15616_vm9, %v1836_v63, %v1840_v36  ;;  %v2376_v22 = vrot.slane %v2374_v62, 4 }
 0x154   : > { %v11829_v51 = vrot.slane %v2276_v61, 9  ;;  %2244 = vst [vmem:[#allocation3 + $0x10] sm:$0xf] %v1841_v20  ;;  %v2662_v24 = vshrl.u32 %v2613_v1, 16  ;;  %v1851_v28 = vsel %vm15616_vm9, %v1846_v17, %v1850_v3  ;;  %v14696_v25 = vld [vmem:[#allocation3 + $0x43c] sm:$0xf] }
 0x155   : > { %5024 = vmatmul.bf16.gmra.mxu1 %v12372_v37  ;;  %v5075_v5 = vadd.f32 %v5074_v45, %v4986_v50  ;;  %v12412_v37 = vor.u32 %v14701_v16, %v12411_v14  ;;  %2245 = vst [vmem:[#allocation3 + $0x34] sm:$0xf] %v1851_v28  ;;  %v2378_v38 = vsel %vm15602_vm3, %v2376_v22, %v2377_v7  ;;  %v2615_v33 = vld [vmem:[#allocation2 + $0x20] sm:$0x1]  ;;  %v12405_v45 = vld [vmem:[#allocation3 + $0x45c] sm:$0xf0] }
 0x156   : > { %v4901_v13 = vpop.f32.mrf.mxu0  ;;  %v2375_v23 = vsel %vm15602_vm3, %v11829_v51, %v2374_v62  ;;  %2517 = vst [vmem:[#allocation3 + $0x38] sm:$0xf] %v2378_v38  ;;  %v2664_v46 = vrot.slane %v2662_v24, 4  ;;  %v2665_v43 = vshll.u32 %v2613_v1, 16  ;;  %v2671_v47 = vshll.u32 %v2614_v32, 16 }
 0x157   : > { %5202 = vmatmul.bf16.gmra.mxu3 %v12380_v48  ;;  %2516 = vst [vmem:[#allocation3 + $0x14] sm:$0xf] %v2375_v23  ;;  %v4902_v29 = vadd.f32 %v16122_v2, %v4901_v13  ;;  %v2675_v50 = vshrl.u32 %v2614_v32, 16  ;;  %v1783_v36 = vld [vmem:[#allocation2 + $0x18] sm:$0xf]  ;;  %v2681_v56 = vshll.u32 %v2615_v33, 16  ;;  %v12408_v10 = vor.u32 %v14696_v25, %v12405_v45 }
 0x158   : > { %v1784_v48 = vld [vmem:[#allocation2 + $0x1c] sm:$0xf]  ;;  %v2667_v19 = vrot.slane %v2665_v43, 5  ;;  %v1785_v57 = vld [vmem:[#allocation2 + $0x20] sm:$0x1]  ;;  %v1856_v60 = vshll.u32 %v1783_v36, 16 }
 0x159   : > { %v5076_v31 = vpop.f32.mrf.mxu2  ;;  %4940 = vmatmul.bf16.gmra.mxu0 %v12404_v59  ;;  %v16231_v55 = vld [vmem:[#allocation3 + $0x444] sm:$0xf]  ;;  %v1853_v59 = vshrl.u32 %v1783_v36, 16  ;;  %v2673_v58 = vrot.slane %v2671_v47, 5  ;;  %v2677_v61 = vrot.slane %v2675_v50, 4  ;;  %v1862_v63 = vshll.u32 %v1784_v48, 16 }
 0x15a   : > { %v4987_v11 = vpop.f32.mrf.mxu1  ;;  %v5163_v26 = vpop.f32.mrf.mxu3  ;;  %v1866_v0 = vshrl.u32 %v1784_v48, 16  ;;  %v2551_v3 = vld [vmem:[#allocation2 + $0x24] sm:$0xf]  ;;  %v12413_v51 = vld [vmem:[#allocation3 + $0x464] sm:$0xf0]  ;;  %v2683_v13 = vrot.slane %v2681_v56, 5 }
 0x15b   : > { %v4988_v34 = vadd.f32 %v4987_v11, %v4899_v52  ;;  %v16228_v40 = vadd.f32 %v5163_v26, %v5075_v5  ;;  %v2668_v52 = vor.u32 %v2667_v19, %v2664_v46  ;;  %v1855_v14 = vrot.slane %v1853_v59, 4  ;;  %v2552_v8 = vld [vmem:[#allocation2 + $0x28] sm:$0xf]  ;;  %2583 = vst [vmem:[#allocation3 + $0x60] sm:$0xf] %v2551_v3 }
 0x15c   : > { %v11879_v62 = vld [vmem:[#allocation3 + $0x10] sm:$0xf]  ;;  %v2678_v16 = vor.u32 %v2677_v61, %v2673_v58  ;;  %v1858_v20 = vrot.slane %v1856_v60, 5  ;;  %v1864_v17 = vrot.slane %v1862_v63, 5  ;;  %v1868_v7 = vrot.slane %v1866_v0, 4 }
 0x15d   : > { %v5077_v49 = vadd.f32 %v5076_v31, %v4988_v34  ;;  %v14567_v22 = vld [vmem:[#allocation3 + $0x30] sm:$0xf0]  ;;  %v2669_v24 = vrot.slane %v2668_v52, 4  ;;  %v1872_v11 = vshll.u32 %v1785_v57, 16  ;;  %v12416_v32 = vor.u32 %v16231_v55, %v12413_v51  ;;  %2584 = vst [vmem:[#allocation3 + $0x84] sm:$0xf] %v2552_v8 }
 0x15e   : > { %5118 = vmatmul.bf16.gmra.mxu2 %v12412_v37  ;;  %v4903_v5 = vpop.f32.mrf.mxu0  ;;  %v2679_v26 = vrot.slane %v2678_v16, 4  ;;  %v1859_v34 = vor.u32 %v1858_v20, %v1855_v14  ;;  %v11880_v25 = vor.u32 %v14567_v22, %v11879_v62  ;;  %v1869_v33 = vor.u32 %v1868_v7, %v1864_v17  ;;  %v2279_v45 = vld [vmem:[#allocation2 + $0x18] sm:$0xe]  ;;  %v2280_v46 = vld [vmem:[#allocation2 + $0x1c] sm:$0xf] }
 0x15f   : > { %v2674_v38 = vsel %vm15616_vm9, %v2669_v24, %v2673_v58  ;;  %v2281_v43 = vld [vmem:[#allocation2 + $0x20] sm:$0x1]  ;;  %v1874_v36 = vrot.slane %v1872_v11, 5  ;;  %v2616_v48 = vld [vmem:[#allocation2 + $0x24] sm:$0xf]  ;;  %v11830_v19 = vrot.slane %v2279_v45, 9  ;;  %v4904_v59 = vadd.f32 %v16122_v2, %v4903_v5 }
 0x160   : > { %3077 = vst [vmem:[#allocation3 + $0x1c] sm:$0xf] %v2674_v38  ;;  %v1860_v50 = vrot.slane %v1859_v34, 4  ;;  %v11887_v55 = vld [vmem:[#allocation3 + $0x18] sm:$0xf]  ;;  %v2381_v56 = vrot.slane %v2280_v46, 5 }
 0x161   : > { %v5079_v23 = vpop.f32.mrf.mxu2  ;;  %v2384_v57 = vrot.slane %v2281_v43, 5  ;;  %v14568_v58 = vld [vmem:[#allocation3 + $0x38] sm:$0xf0]  ;;  %v2617_v63 = vld [vmem:[#allocation2 + $0x28] sm:$0xf]  ;;  %v2686_v0 = vshrl.u32 %v2616_v48, 16 }
 0x162   : > { %v4990_v1 = vpop.f32.mrf.mxu1  ;;  %v5165_v31 = vpop.f32.mrf.mxu3  ;;  %v1865_v61 = vsel %vm15616_vm9, %v1860_v50, %v1864_v17  ;;  %v2689_v3 = vshll.u32 %v2616_v48, 16  ;;  %v2382_v51 = vsel %vm15602_vm3, %v11830_v19, %v2381_v56  ;;  %v2383_v52 = vrot.slane %v2381_v56, 4  ;;  %v1786_v7 = vld [vmem:[#allocation2 + $0x24] sm:$0xf]  ;;  %v1788_v34 = vld [vmem:[#allocation2 + $0x2c] sm:$0x1] }
 0x163   : > { %v4991_v28 = vadd.f32 %v4990_v1, %v4902_v29  ;;  %v16234_v37 = vadd.f32 %v5165_v31, %v5077_v49  ;;  %v2684_v29 = vsel %vm15616_vm9, %v2679_v26, %v2683_v13  ;;  %v1870_v49 = vrot.slane %v1869_v33, 4  ;;  %2246 = vst [vmem:[#allocation3 + $0x58] sm:$0xf] %v1865_v61  ;;  %v2618_v13 = vld [vmem:[#allocation2 + $0x2c] sm:$0x1] }
 0x164   : > { %3078 = vst [vmem:[#allocation3 + $0x40] sm:$0xf] %v2684_v29  ;;  %v2688_v5 = vrot.slane %v2686_v0, 4  ;;  %v2691_v14 = vrot.slane %v2689_v3, 5  ;;  %v2385_v16 = vsel %vm15602_vm3, %v2383_v52, %v2384_v57  ;;  %v2695_v20 = vshll.u32 %v2617_v63, 16 }
 0x165   : > { %5029 = vmatmul.bf16.gmra.mxu1 %v12408_v10  ;;  %v5080_v47 = vadd.f32 %v5079_v23, %v4991_v28  ;;  %v1875_v10 = vsel %vm15616_vm9, %v1870_v49, %v1874_v36  ;;  %2518 = vst [vmem:[#allocation3 + $0x5c] sm:$0xf] %v2382_v51  ;;  %v2699_v17 = vshrl.u32 %v2617_v63, 16  ;;  %v11888_v22 = vor.u32 %v14568_v58, %v11887_v55  ;;  %v1787_v31 = vld [vmem:[#allocation2 + $0x28] sm:$0xf] }
 0x166   : > { %v4906_v60 = vpop.f32.mrf.mxu0  ;;  %2247 = vst [vmem:[#allocation3 + $0x7c] sm:$0xf] %v1875_v10  ;;  %v2692_v24 = vor.u32 %v2691_v14, %v2688_v5  ;;  %v2705_v11 = vshll.u32 %v2618_v13, 16  ;;  %v14563_v33 = vld [vmem:[#allocation3 + $0x14] sm:$0xf]  ;;  %v1877_v43 = vshrl.u32 %v1786_v7, 16 }
 0x167   : > { %5207 = vmatmul.bf16.gmra.mxu3 %v12416_v32  ;;  %2519 = vst [vmem:[#allocation3 + $0x80] sm:$0xf] %v2385_v16  ;;  %v2697_v32 = vrot.slane %v2695_v20, 5  ;;  %v2701_v26 = vrot.slane %v2699_v17, 4  ;;  %v4907_v38 = vadd.f32 %v16122_v2, %v4906_v60  ;;  %v11881_v45 = vld [vmem:[#allocation3 + $0x34] sm:$0xf0] }
 0x168   : > { %v2693_v46 = vrot.slane %v2692_v24, 4  ;;  %v16252_v29 = vld [vmem:[#allocation3 + $0x1c] sm:$0xf]  ;;  %v2707_v48 = vrot.slane %v2705_v11, 5  ;;  %v1880_v55 = vshll.u32 %v1786_v7, 16  ;;  %v1886_v49 = vshll.u32 %v1787_v31, 16 }
 0x169   : > { %v5081_v62 = vpop.f32.mrf.mxu2  ;;  %5221 = vmatmul.bf16.vlgmr.msrb.gmra.mxu0 %v11880_v25  ;;  %v2702_v36 = vor.u32 %v2701_v26, %v2697_v32  ;;  %v1879_v56 = vrot.slane %v1877_v43, 4  ;;  %v1890_v57 = vshrl.u32 %v1787_v31, 16  ;;  %v2553_v60 = vld [vmem:[#allocation2 + $0x30] sm:$0xf]  ;;  %v2554_v63 = vld [vmem:[#allocation2 + $0x34] sm:$0xf]  ;;  %v11884_v0 = vor.u32 %v14563_v33, %v11881_v45 }
 0x16a   : > { %v4992_v8 = vpop.f32.mrf.mxu1  ;;  %v5168_v1 = vpop.f32.mrf.mxu3  ;;  %v2698_v19 = vsel %vm15616_vm9, %v2693_v46, %v2697_v32  ;;  %v1882_v61 = vrot.slane %v1880_v55, 5  ;;  %v11915_v3 = vld [vmem:[#allocation3 + $0x58] sm:$0xf]  ;;  %v1888_v51 = vrot.slane %v1886_v49, 5  ;;  %2585 = vst [vmem:[#allocation3 + $0xa8] sm:$0xf] %v2553_v60 }
 0x16b   : > { %v4993_v23 = vadd.f32 %v4992_v8, %v4904_v59  ;;  %v16249_v28 = vadd.f32 %v5168_v1, %v5080_v47  ;;  %v11889_v50 = vld [vmem:[#allocation3 + $0x3c] sm:$0xf0]  ;;  %v1896_v59 = vshll.u32 %v1788_v34, 16  ;;  %v2703_v58 = vrot.slane %v2702_v36, 4  ;;  %3079 = vst [vmem:[#allocation3 + $0x64] sm:$0xf] %v2698_v19 }
 0x16c   : > { %v1892_v52 = vrot.slane %v1890_v57, 4  ;;  %v1883_v8 = vor.u32 %v1882_v61, %v1879_v56  ;;  %v2282_v16 = vld [vmem:[#allocation2 + $0x24] sm:$0xe]  ;;  %v11892_v7 = vor.u32 %v16252_v29, %v11889_v50  ;;  %2586 = vst [vmem:[#allocation3 + $0xcc] sm:$0xf] %v2554_v63  ;;  %v14775_v31 = vld [vmem:[%s18111_s1 + $0x230] sm:$0xff] }
 0x16d   : > { %v5082_v25 = vadd.f32 %v5081_v62, %v4993_v23  ;;  %v14576_v10 = vld [vmem:[#allocation3 + $0x78] sm:$0xf0]  ;;  %v2708_v14 = vsel %vm15616_vm9, %v2703_v58, %v2707_v48  ;;  %v1898_v62 = vrot.slane %v1896_v59, 5  ;;  %v2283_v23 = vld [vmem:[#allocation2 + $0x28] sm:$0xf]  ;;  %v11831_v32 = vrot.slane %v2282_v16, 9  ;;  %5570 = vmatpush.bf16.msra.mxu0 %v14775_v31 }
 0x16e   : > { %5399 = vmatmul.bf16.vlgmr.msrb.gmra.mxu2 %v11888_v22  ;;  %v4908_v47 = vpop.f32.mrf.mxu0  ;;  %3080 = vst [vmem:[#allocation3 + $0x88] sm:$0xf] %v2708_v14  ;;  %v1893_v1 = vor.u32 %v1892_v52, %v1888_v51  ;;  %v2284_v22 = vld [vmem:[#allocation2 + $0x2c] sm:$0x1]  ;;  %v1884_v11 = vrot.slane %v1883_v8, 4  ;;  %v2388_v26 = vrot.slane %v2283_v23, 5  ;;  %v11916_v33 = vor.u32 %v14576_v10, %v11915_v3 }
 0x16f   : > { %v2391_v45 = vrot.slane %v2284_v22, 5  ;;  %v2619_v46 = vld [vmem:[#allocation2 + $0x30] sm:$0xf]  ;;  %v2620_v43 = vld [vmem:[#allocation2 + $0x34] sm:$0xf]  ;;  %v4909_v49 = vadd.f32 %v16122_v2, %v4908_v47 }
 0x170   : > { %v11923_v29 = vld [vmem:[#allocation3 + $0x60] sm:$0xf]  ;;  %v14577_v50 = vld [vmem:[#allocation3 + $0x80] sm:$0xf0]  ;;  %v2389_v36 = vsel %vm15602_vm3, %v11831_v32, %v2388_v26  ;;  %v2390_v48 = vrot.slane %v2388_v26, 4  ;;  %v2710_v55 = vshrl.u32 %v2619_v46, 16 }
 0x171   : > { %v5084_v5 = vpop.f32.mrf.mxu2  ;;  %v2621_v57 = vld [vmem:[#allocation2 + $0x38] sm:$0x1]  ;;  %v2713_v59 = vshll.u32 %v2619_v46, 16  ;;  %v2719_v60 = vshll.u32 %v2620_v43, 16  ;;  %v2723_v63 = vshrl.u32 %v2620_v43, 16  ;;  %v11924_v8 = vor.u32 %v14577_v50, %v11923_v29 }
 0x172   : > { %v4995_v13 = vpop.f32.mrf.mxu1  ;;  %v5170_v20 = vpop.f32.mrf.mxu3  ;;  %v2392_v58 = vsel %vm15602_vm3, %v2390_v48, %v2391_v45  ;;  %v2712_v61 = vrot.slane %v2710_v55, 4  ;;  %2520 = vst [vmem:[#allocation3 + $0xa4] sm:$0xf] %v2389_v36  ;;  %v1790_v16 = vld [vmem:[#allocation2 + $0x34] sm:$0xf] }
 0x173   : > { %v4996_v17 = vadd.f32 %v4995_v13, %v4907_v38  ;;  %v16259_v24 = vadd.f32 %v5170_v20, %v5082_v25  ;;  %v1894_v38 = vrot.slane %v1893_v1, 4  ;;  %v1889_v25 = vsel %vm15616_vm9, %v1884_v11, %v1888_v51  ;;  %2521 = vst [vmem:[#allocation3 + $0xc8] sm:$0xf] %v2392_v58  ;;  %v1791_v20 = vld [vmem:[#allocation2 + $0x38] sm:$0x1] }
 0x174   : > { %2248 = vst [vmem:[#allocation3 + $0xa0] sm:$0xf] %v1889_v25  ;;  %v2715_v3 = vrot.slane %v2713_v59, 5  ;;  %v2721_v10 = vrot.slane %v2719_v60, 5  ;;  %v2725_v52 = vrot.slane %v2723_v63, 4  ;;  %v2729_v13 = vshll.u32 %v2621_v57, 16 }
 0x175   : > { %5310 = vmatmul.bf16.vlgmr.msrb.gmra.mxu1 %v11884_v0  ;;  %v5085_v34 = vadd.f32 %v5084_v5, %v4996_v17  ;;  %v1899_v56 = vsel %vm15616_vm9, %v1894_v38, %v1898_v62  ;;  %v1789_v0 = vld [vmem:[#allocation2 + $0x30] sm:$0xf]  ;;  %v14572_v1 = vld [vmem:[#allocation3 + $0x5c] sm:$0xf]  ;;  %v2555_v11 = vld [vmem:[#allocation2 + $0x3c] sm:$0xf] }
 0x176   : > { %v4911_v19 = vpop.f32.mrf.mxu0  ;;  %2249 = vst [vmem:[#allocation3 + $0xc4] sm:$0xf] %v1899_v56  ;;  %v2716_v62 = vor.u32 %v2715_v3, %v2712_v61  ;;  %v1901_v17 = vshrl.u32 %v1789_v0, 16  ;;  %v2726_v23 = vor.u32 %v2725_v52, %v2721_v10  ;;  %v2731_v22 = vrot.slane %v2729_v13, 5  ;;  %v2556_v31 = vld [vmem:[#allocation2 + $0x40] sm:$0xf] }
 0x177   : > { %5488 = vmatmul.bf16.vlgmr.msrb.gmra.mxu3 %v11892_v7  ;;  %v1904_v38 = vshll.u32 %v1789_v0, 16  ;;  %2587 = vst [vmem:[#allocation3 + $0xf0] sm:$0xf] %v2555_v11  ;;  %v11917_v45 = vld [vmem:[#allocation3 + $0x7c] sm:$0xf0]  ;;  %v1910_v43 = vshll.u32 %v1790_v16, 16  ;;  %v4912_v25 = vadd.f32 %v16122_v2, %v4911_v19 }
 0x178   : > { %v2717_v26 = vrot.slane %v2716_v62, 4  ;;  %v2727_v46 = vrot.slane %v2726_v23, 4  ;;  %v1914_v29 = vshrl.u32 %v1790_v16, 16  ;;  %v1920_v50 = vshll.u32 %v1791_v20, 16  ;;  %2588 = vst [vmem:[#allocation3 + $0x114] sm:$0xf] %v2556_v31 }
 0x179   : > { %v5086_v51 = vpop.f32.mrf.mxu2  ;;  %5226 = vmatmul.bf16.gmra.mxu0 %v11916_v33  ;;  %v1903_v33 = vrot.slane %v1901_v17, 4  ;;  %v1906_v55 = vrot.slane %v1904_v38, 5  ;;  %v1912_v57 = vrot.slane %v1910_v43, 5  ;;  %v11920_v59 = vor.u32 %v14572_v1, %v11917_v45  ;;  %v2285_v3 = vld [vmem:[#allocation2 + $0x30] sm:$0xe] }
 0x17a   : > { %v4997_v47 = vpop.f32.mrf.mxu1  ;;  %v5173_v5 = vpop.f32.mrf.mxu3  ;;  %v2722_v48 = vsel %vm15616_vm9, %v2717_v26, %v2721_v10  ;;  %v2732_v56 = vsel %vm15616_vm9, %v2727_v46, %v2731_v22  ;;  %v1916_v61 = vrot.slane %v1914_v29, 4  ;;  %v1922_v19 = vrot.slane %v1920_v50, 5  ;;  %v2622_v62 = vld [vmem:[#allocation2 + $0x3c] sm:$0xf]  ;;  %v2623_v23 = vld [vmem:[#allocation2 + $0x40] sm:$0xf] }
 0x17b   : > { %v4998_v14 = vadd.f32 %v4997_v47, %v4909_v49  ;;  %v16273_v7 = vadd.f32 %v5173_v5, %v5085_v34  ;;  %v14573_v34 = vld [vmem:[#allocation3 + $0x64] sm:$0xf]  ;;  %v11925_v49 = vld [vmem:[#allocation3 + $0x84] sm:$0xf0]  ;;  %3081 = vst [vmem:[#allocation3 + $0xac] sm:$0xf] %v2722_v48  ;;  %v1907_v58 = vor.u32 %v1906_v55, %v1903_v33 }
 0x17c   : > { %v11951_v60 = vld [vmem:[#allocation3 + $0xa0] sm:$0xf]  ;;  %3082 = vst [vmem:[#allocation3 + $0xd0] sm:$0xf] %v2732_v56  ;;  %v2286_v47 = vld [vmem:[#allocation2 + $0x34] sm:$0xf]  ;;  %v11928_v20 = vor.u32 %v14573_v34, %v11925_v49 }
 0x17d   : > { %v5087_v32 = vadd.f32 %v5086_v51, %v4998_v14  ;;  %v2287_v51 = vld [vmem:[#allocation2 + $0x38] sm:$0x1]  ;;  %v14585_v13 = vld [vmem:[#allocation3 + $0xc0] sm:$0xf0]  ;;  %v1908_v5 = vrot.slane %v1907_v58, 4  ;;  %v1917_v14 = vor.u32 %v1916_v61, %v1912_v57  ;;  %v2395_v17 = vrot.slane %v2286_v47, 5 }
 0x17e   : > { %5404 = vmatmul.bf16.gmra.mxu2 %v11924_v8  ;;  %v4913_v36 = vpop.f32.mrf.mxu0  ;;  %v11832_v8 = vrot.slane %v2285_v3, 9  ;;  %v2398_v1 = vrot.slane %v2287_v51, 5  ;;  %v11959_v11 = vld [vmem:[#allocation3 + $0xa8] sm:$0xf]  ;;  %v14586_v31 = vld [vmem:[#allocation3 + $0xc8] sm:$0xf0]  ;;  %v11952_v45 = vor.u32 %v14585_v13, %v11951_v60 }
 0x17f   : > { %v1913_v26 = vsel %vm15616_vm9, %v1908_v5, %v1912_v57  ;;  %v1918_v33 = vrot.slane %v1917_v14, 4  ;;  %v2734_v38 = vshrl.u32 %v2622_v62, 16  ;;  %v2624_v43 = vld [vmem:[#allocation2 + $0x44] sm:$0x1]  ;;  %v2737_v29 = vshll.u32 %v2622_v62, 16 }
 0x180   : > { %2250 = vst [vmem:[#allocation3 + $0xe8] sm:$0xf] %v1913_v26  ;;  %v2396_v46 = vsel %vm15602_vm3, %v11832_v8, %v2395_v17  ;;  %v4914_v50 = vadd.f32 %v16122_v2, %v4913_v36  ;;  %v2743_v55 = vshll.u32 %v2623_v23, 16  ;;  %v1792_v49 = vld [vmem:[#allocation2 + $0x3c] sm:$0xf]  ;;  %v11960_v58 = vor.u32 %v14586_v31, %v11959_v11 }
 0x181   : > { %v5089_v0 = vpop.f32.mrf.mxu2  ;;  %v1923_v34 = vsel %vm15616_vm9, %v1918_v33, %v1922_v19  ;;  %2522 = vst [vmem:[#allocation3 + $0xec] sm:$0xf] %v2396_v46  ;;  %v2736_v48 = vrot.slane %v2734_v38, 4  ;;  %v2739_v57 = vrot.slane %v2737_v29, 5  ;;  %v1793_v60 = vld [vmem:[#allocation2 + $0x40] sm:$0xf] }
 0x182   : > { %v5000_v63 = vpop.f32.mrf.mxu1  ;;  %v5175_v10 = vpop.f32.mrf.mxu3  ;;  %2251 = vst [vmem:[#allocation3 + $0x10c] sm:$0xf] %v1923_v34  ;;  %v2745_v61 = vrot.slane %v2743_v55, 5  ;;  %v2753_v36 = vshll.u32 %v2624_v43, 16  ;;  %v1794_v47 = vld [vmem:[#allocation2 + $0x44] sm:$0x1] }
 0x183   : > { %v5001_v52 = vadd.f32 %v5000_v63, %v4912_v25  ;;  %v16280_v16 = vadd.f32 %v5175_v10, %v5087_v32  ;;  %v2397_v32 = vrot.slane %v2395_v17, 4  ;;  %v2740_v19 = vor.u32 %v2739_v57, %v2736_v48  ;;  %v2557_v62 = vld [vmem:[#allocation2 + $0x48] sm:$0xf]  ;;  %v14581_v17 = vld [vmem:[#allocation3 + $0xa4] sm:$0xf] }
 0x184   : > { %v1925_v51 = vshrl.u32 %v1792_v49, 16  ;;  %v1928_v10 = vshll.u32 %v1792_v49, 16  ;;  %v2755_v5 = vrot.slane %v2753_v36, 5  ;;  %v1934_v14 = vshll.u32 %v1793_v60, 16  ;;  %v2558_v26 = vld [vmem:[#allocation2 + $0x4c] sm:$0xf] }
 0x185   : > { %5315 = vmatmul.bf16.gmra.mxu1 %v11920_v59  ;;  %v5090_v22 = vadd.f32 %v5089_v0, %v5001_v52  ;;  %v2399_v56 = vsel %vm15602_vm3, %v2397_v32, %v2398_v1  ;;  %v2747_v59 = vshrl.u32 %v2623_v23, 16  ;;  %v1938_v8 = vshrl.u32 %v1793_v60, 16  ;;  %v11953_v1 = vld [vmem:[#allocation3 + $0xc4] sm:$0xf0]  ;;  %2589 = vst [vmem:[#allocation3 + $0x138] sm:$0xf] %v2557_v62 }
 0x186   : > { %v4916_v25 = vpop.f32.mrf.mxu0  ;;  %2523 = vst [vmem:[#allocation3 + $0x110] sm:$0xf] %v2399_v56  ;;  %v2741_v23 = vrot.slane %v2740_v19, 4  ;;  %v1927_v31 = vrot.slane %v1925_v51, 4  ;;  %v16293_v38 = vld [vmem:[#allocation3 + $0xac] sm:$0xf] }
 0x187   : > { %5493 = vmatmul.bf16.gmra.mxu3 %v11928_v20  ;;  %v2749_v3 = vrot.slane %v2747_v59, 4  ;;  %v1936_v46 = vrot.slane %v1934_v14, 5  ;;  %v1940_v32 = vrot.slane %v1938_v8, 4  ;;  %2590 = vst [vmem:[#allocation3 + $0x15c] sm:$0xf] %v2558_v26  ;;  %v4917_v34 = vadd.f32 %v16122_v2, %v4916_v25 }
 0x188   : > { %v2746_v43 = vsel %vm15616_vm9, %v2741_v23, %v2745_v61  ;;  %v11961_v48 = vld [vmem:[#allocation3 + $0xcc] sm:$0xf0]  ;;  %v2289_v57 = vld [vmem:[#allocation2 + $0x40] sm:$0xf]  ;;  %v2290_v36 = vld [vmem:[#allocation2 + $0x44] sm:$0x1] }
 0x189   : > { %v5091_v0 = vpop.f32.mrf.mxu2  ;;  %5231 = vmatmul.bf16.gmra.mxu0 %v11952_v45  ;;  %v2750_v11 = vor.u32 %v2749_v3, %v2745_v61  ;;  %v1930_v45 = vrot.slane %v1928_v10, 5  ;;  %3083 = vst [vmem:[#allocation3 + $0xf4] sm:$0xf] %v2746_v43  ;;  %v1941_v56 = vor.u32 %v1940_v32, %v1936_v46  ;;  %v11987_v61 = vld [vmem:[#allocation3 + $0xe8] sm:$0xf]  ;;  %v11964_v2 = vor.u32 %v16293_v38, %v11961_v48 }
 0x18a   : > { %v5002_v63 = vpop.f32.mrf.mxu1  ;;  %v5178_v52 = vpop.f32.mrf.mxu3  ;;  %v2405_v51 = vrot.slane %v2290_v36, 5  ;;  %v2625_v10 = vld [vmem:[#allocation2 + $0x48] sm:$0xf]  ;;  %v14594_v8 = vld [vmem:[#allocation3 + $0x108] sm:$0xf0] }
 0x18b   : > { %v5003_v13 = vadd.f32 %v5002_v63, %v4914_v50  ;;  %v16291_v20 = vadd.f32 %v5178_v52, %v5090_v22  ;;  %v2751_v29 = vrot.slane %v2750_v11, 4  ;;  %v1944_v50 = vshll.u32 %v1794_v47, 16  ;;  %v2288_v22 = vld [vmem:[#allocation2 + $0x3c] sm:$0xe]  ;;  %v2626_v52 = vld [vmem:[#allocation2 + $0x4c] sm:$0xf] }
 0x18c   : > { %v1931_v49 = vor.u32 %v1930_v45, %v1927_v31  ;;  %v11956_v63 = vor.u32 %v14581_v17, %v11953_v1  ;;  %v1942_v19 = vrot.slane %v1941_v56, 4  ;;  %v11833_v3 = vrot.slane %v2288_v22, 9  ;;  %v2627_v17 = vld [vmem:[#allocation2 + $0x50] sm:$0x1]  ;;  %v14774_v11 = vld [vmem:[%s18111_s1 + $0x228] sm:$0xff] }
 0x18d   : > { %v5092_v33 = vadd.f32 %v5091_v0, %v5003_v13  ;;  %v2756_v59 = vsel %vm15616_vm9, %v2751_v29, %v2755_v5  ;;  %v1946_v60 = vrot.slane %v1944_v50, 5  ;;  %v2758_v1 = vshrl.u32 %v2625_v10, 16  ;;  %v14595_v50 = vld [vmem:[#allocation3 + $0x110] sm:$0xf0]  ;;  %5571 = vmatpush.bf16.msra.mxu0 %v14774_v11  ;;  %v16317_v48 = vld [vmem:[%s18112_s2] ss:$0 sm:$0xff] }
 0x18e   : > { %5409 = vmatmul.bf16.gmra.mxu2 %v11960_v58  ;;  %v4918_v55 = vpop.f32.mrf.mxu0  ;;  %3084 = vst [vmem:[#allocation3 + $0x118] sm:$0xf] %v2756_v59  ;;  %v1932_v0 = vrot.slane %v1931_v49, 4  ;;  %v2402_v58 = vrot.slane %v2289_v57, 5  ;;  %v2761_v38 = vshll.u32 %v2625_v10, 16  ;;  %v2767_v43 = vshll.u32 %v2626_v52, 16 }
 0x18f   : > { %v1947_v62 = vsel %vm15616_vm9, %v1942_v19, %v1946_v60  ;;  %v2760_v32 = vrot.slane %v2758_v1, 4  ;;  %v11988_v29 = vor.u32 %v14594_v8, %v11987_v61  ;;  %v4919_v49 = vadd.f32 %v16317_v48, %v4918_v55  ;;  %v1795_v60 = vld [vmem:[#allocation2 + $0x48] sm:$0xf]  ;;  %v1796_v61 = vld [vmem:[#allocation2 + $0x4c] sm:$0xf] }
 0x190   : > { %v1937_v5 = vsel %vm15616_vm9, %v1932_v0, %v1936_v46  ;;  %v2403_v31 = vsel %vm15602_vm3, %v11833_v3, %v2402_v58  ;;  %v2404_v26 = vrot.slane %v2402_v58, 4  ;;  %v11995_v46 = vld [vmem:[#allocation3 + $0xf0] sm:$0xf]  ;;  %2253 = vst [vmem:[#allocation3 + $0x154] sm:$0xf] %v1947_v62  ;;  %v2763_v22 = vrot.slane %v2761_v38, 5 }
 0x191   : > { %v5094_v25 = vpop.f32.mrf.mxu2  ;;  %2252 = vst [vmem:[#allocation3 + $0x130] sm:$0xf] %v1937_v5  ;;  %v2769_v57 = vrot.slane %v2767_v43, 5  ;;  %v2777_v59 = vshll.u32 %v2627_v17, 16  ;;  %v1949_v0 = vshrl.u32 %v1795_v60, 16  ;;  %v11996_v19 = vor.u32 %v14595_v50, %v11995_v46 }
 0x192   : > { %v5005_v47 = vpop.f32.mrf.mxu1  ;;  %v5180_v13 = vpop.f32.mrf.mxu3  ;;  %2524 = vst [vmem:[#allocation3 + $0x134] sm:$0xf] %v2403_v31  ;;  %v2764_v36 = vor.u32 %v2763_v22, %v2760_v32  ;;  %v1958_v58 = vshll.u32 %v1796_v61, 16  ;;  %v14590_v11 = vld [vmem:[#allocation3 + $0xec] sm:$0xf] }
 0x193   : > { %v5006_v14 = vadd.f32 %v5005_v47, %v4917_v34  ;;  %v16305_v23 = vadd.f32 %v5180_v13, %v5092_v33  ;;  %v2406_v33 = vsel %vm15602_vm3, %v2404_v26, %v2405_v51  ;;  %v2771_v34 = vshrl.u32 %v2626_v52, 16  ;;  %v1797_v47 = vld [vmem:[#allocation2 + $0x50] sm:$0x1]  ;;  %v11989_v31 = vld [vmem:[#allocation3 + $0x10c] sm:$0xf0] }
 0x194   : > { %2525 = vst [vmem:[#allocation3 + $0x158] sm:$0xf] %v2406_v33  ;;  %v2779_v3 = vrot.slane %v2777_v59, 5  ;;  %v2765_v52 = vrot.slane %v2764_v36, 4  ;;  %v1951_v13 = vrot.slane %v1949_v0, 4  ;;  %v1968_v17 = vshll.u32 %v1797_v47, 16 }
 0x195   : > { %5320 = vmatmul.bf16.gmra.mxu1 %v11956_v63  ;;  %v5095_v45 = vadd.f32 %v5094_v25, %v5006_v14  ;;  %v2773_v63 = vrot.slane %v2771_v34, 4  ;;  %v1952_v25 = vshll.u32 %v1795_v60, 16  ;;  %v1962_v14 = vshrl.u32 %v1796_v61, 16  ;;  %v2559_v32 = vld [vmem:[#allocation2 + $0x54] sm:$0xf] }
 0x196   : > { %v4921_v56 = vpop.f32.mrf.mxu0  ;;  %v2770_v26 = vsel %vm15616_vm9, %v2765_v52, %v2769_v57  ;;  %v2291_v43 = vld [vmem:[#allocation2 + $0x48] sm:$0xe]  ;;  %v14591_v50 = vld [vmem:[#allocation3 + $0xf4] sm:$0xf]  ;;  %v11997_v33 = vld [vmem:[#allocation3 + $0x114] sm:$0xf0] }
 0x197   : > { %5498 = vmatmul.bf16.gmra.mxu3 %v11964_v2  ;;  %v2774_v55 = vor.u32 %v2773_v63, %v2769_v57  ;;  %v1954_v62 = vrot.slane %v1952_v25, 5  ;;  %v1960_v2 = vrot.slane %v1958_v58, 5  ;;  %v1964_v46 = vrot.slane %v1962_v14, 4  ;;  %3085 = vst [vmem:[#allocation3 + $0x13c] sm:$0xf] %v2770_v26 }
 0x198   : > { %v2560_v59 = vld [vmem:[#allocation2 + $0x58] sm:$0xf]  ;;  %2591 = vst [vmem:[#allocation3 + $0x180] sm:$0xf] %v2559_v32  ;;  %v4922_v60 = vadd.f32 %v16317_v48, %v4921_v56  ;;  %v2292_v63 = vld [vmem:[#allocation2 + $0x4c] sm:$0xf]  ;;  %v11992_v58 = vor.u32 %v14590_v11, %v11989_v31 }
 0x199   : > { %v5096_v10 = vpop.f32.mrf.mxu2  ;;  %5236 = vmatmul.bf16.gmra.mxu0 %v11988_v29  ;;  %v2775_v38 = vrot.slane %v2774_v55, 4  ;;  %v1955_v22 = vor.u32 %v1954_v62, %v1951_v13  ;;  %v11834_v61 = vrot.slane %v2291_v43, 9  ;;  %2592 = vst [vmem:[#allocation3 + $0x1a4] sm:$0xf] %v2560_v59  ;;  %v2293_v47 = vld [vmem:[#allocation2 + $0x50] sm:$0x1] }
 0x19a   : > { %v5007_v51 = vpop.f32.mrf.mxu1  ;;  %v5183_v8 = vpop.f32.mrf.mxu3  ;;  %v2409_v25 = vrot.slane %v2292_v63, 5  ;;  %v2412_v55 = vrot.slane %v2293_v47, 5  ;;  %v2628_v13 = vld [vmem:[#allocation2 + $0x54] sm:$0xf]  ;;  %v2629_v56 = vld [vmem:[#allocation2 + $0x58] sm:$0xf] }
 0x19b   : > { %v5008_v5 = vadd.f32 %v5007_v51, %v4919_v49  ;;  %v16320_v1 = vadd.f32 %v5183_v8, %v5095_v45  ;;  %v2780_v34 = vsel %vm15616_vm9, %v2775_v38, %v2779_v3  ;;  %v1965_v49 = vor.u32 %v1964_v46, %v1960_v2  ;;  %v14603_v3 = vld [vmem:[#allocation3 + $0x150] sm:$0xf0]  ;;  %v12031_v59 = vld [vmem:[#allocation3 + $0x138] sm:$0xf]  ;;  %v1799_v47 = vld [vmem:[#allocation2 + $0x58] sm:$0xf] }
 0x19c   : > { %v1970_v45 = vrot.slane %v1968_v17, 5  ;;  %3086 = vst [vmem:[#allocation3 + $0x160] sm:$0xf] %v2780_v34  ;;  %v1956_v36 = vrot.slane %v1955_v22, 4  ;;  %v12000_v51 = vor.u32 %v14591_v50, %v11997_v33  ;;  %v2411_v62 = vrot.slane %v2409_v25, 4 }
 0x19d   : > { %v5097_v29 = vadd.f32 %v5096_v10, %v5008_v5  ;;  %v1966_v0 = vrot.slane %v1965_v49, 4  ;;  %v12023_v10 = vld [vmem:[#allocation3 + $0x130] sm:$0xf]  ;;  %v2410_v5 = vsel %vm15602_vm3, %v11834_v61, %v2409_v25  ;;  %v2630_v17 = vld [vmem:[#allocation2 + $0x5c] sm:$0x1]  ;;  %v2782_v11 = vshrl.u32 %v2628_v13, 16 }
 0x19e   : > { %5414 = vmatmul.bf16.gmra.mxu2 %v11996_v19  ;;  %v4923_v57 = vpop.f32.mrf.mxu0  ;;  %v1961_v52 = vsel %vm15616_vm9, %v1956_v36, %v1960_v2  ;;  %v2785_v38 = vshll.u32 %v2628_v13, 16  ;;  %v2791_v2 = vshll.u32 %v2629_v56, 16  ;;  %v2795_v46 = vshrl.u32 %v2629_v56, 16  ;;  %2526 = vst [vmem:[#allocation3 + $0x17c] sm:$0xf] %v2410_v5 }
 0x19f   : > { %v1971_v8 = vsel %vm15616_vm9, %v1966_v0, %v1970_v45  ;;  %2254 = vst [vmem:[#allocation3 + $0x178] sm:$0xf] %v1961_v52  ;;  %v2413_v43 = vsel %vm15602_vm3, %v2411_v62, %v2412_v55  ;;  %v2784_v50 = vrot.slane %v2782_v11, 4  ;;  %v2801_v33 = vshll.u32 %v2630_v17, 16  ;;  %v1798_v36 = vld [vmem:[#allocation2 + $0x54] sm:$0xf] }
 0x1a0   : > { %2255 = vst [vmem:[#allocation3 + $0x19c] sm:$0xf] %v1971_v8  ;;  %v2787_v34 = vrot.slane %v2785_v38, 5  ;;  %v2793_v49 = vrot.slane %v2791_v2, 5  ;;  %v12024_v45 = vor.u32 %v14603_v3, %v12023_v10  ;;  %v4924_v63 = vadd.f32 %v16317_v48, %v4923_v57  ;;  %v1800_v25 = vld [vmem:[#allocation2 + $0x5c] sm:$0x1] }
 0x1a1   : > { %v5099_v14 = vpop.f32.mrf.mxu2  ;;  %2527 = vst [vmem:[#allocation3 + $0x1a0] sm:$0xf] %v2413_v43  ;;  %v2803_v55 = vrot.slane %v2801_v33, 5  ;;  %v1973_v13 = vshrl.u32 %v1798_v36, 16  ;;  %v1986_v8 = vshrl.u32 %v1799_v47, 16  ;;  %v1992_v17 = vshll.u32 %v1800_v25, 16 }
 0x1a2   : > { %v5010_v19 = vpop.f32.mrf.mxu1  ;;  %v5185_v31 = vpop.f32.mrf.mxu3  ;;  %v2788_v0 = vor.u32 %v2787_v34, %v2784_v50  ;;  %v12025_v38 = vld [vmem:[#allocation3 + $0x154] sm:$0xf0]  ;;  %v2296_v25 = vld [vmem:[#allocation2 + $0x5c] sm:$0x1] }
 0x1a3   : > { %v5011_v26 = vadd.f32 %v5010_v19, %v4922_v60  ;;  %v16333_v32 = vadd.f32 %v5185_v31, %v5097_v29  ;;  %v2797_v60 = vrot.slane %v2795_v46, 4  ;;  %v14604_v29 = vld [vmem:[#allocation3 + $0x158] sm:$0xf0]  ;;  %v1976_v19 = vshll.u32 %v1798_v36, 16  ;;  %v2561_v46 = vld [vmem:[#allocation2 + $0x60] sm:$0xf] }
 0x1a4   : > { %v2789_v56 = vrot.slane %v2788_v0, 4  ;;  %v12032_v5 = vor.u32 %v14604_v29, %v12031_v59  ;;  %v1975_v57 = vrot.slane %v1973_v13, 4  ;;  %v2631_v59 = vld [vmem:[#allocation2 + $0x60] sm:$0xf]  ;;  %v2562_v29 = vld [vmem:[#allocation2 + $0x64] sm:$0xf] }
 0x1a5   : > { %5325 = vmatmul.bf16.gmra.mxu1 %v11992_v58  ;;  %v5100_v22 = vadd.f32 %v5099_v14, %v5011_v26  ;;  %v2798_v52 = vor.u32 %v2797_v60, %v2793_v49  ;;  %v2295_v58 = vld [vmem:[#allocation2 + $0x58] sm:$0xf]  ;;  %v1982_v14 = vshll.u32 %v1799_v47, 16  ;;  %v14599_v26 = vld [vmem:[#allocation3 + $0x134] sm:$0xf]  ;;  %v1978_v2 = vrot.slane %v1976_v19, 5 }
 0x1a6   : > { %v4926_v61 = vpop.f32.mrf.mxu0  ;;  %v2416_v43 = vrot.slane %v2295_v58, 5  ;;  %2593 = vst [vmem:[#allocation3 + $0x1c8] sm:$0xf] %v2561_v46  ;;  %v2294_v47 = vld [vmem:[#allocation2 + $0x54] sm:$0xe]  ;;  %v12028_v19 = vor.u32 %v14599_v26, %v12025_v38 }
 0x1a7   : > { %5503 = vmatmul.bf16.gmra.mxu3 %v12000_v51  ;;  %v2799_v62 = vrot.slane %v2798_v52, 4  ;;  %v2794_v51 = vsel %vm15616_vm9, %v2789_v56, %v2793_v49  ;;  %v1984_v34 = vrot.slane %v1982_v14, 5  ;;  %v1979_v36 = vor.u32 %v1978_v2, %v1975_v57  ;;  %2594 = vst [vmem:[#allocation3 + $0x1ec] sm:$0xf] %v2562_v29  ;;  %v12059_v57 = vld [vmem:[#allocation3 + $0x178] sm:$0xf] }
 0x1a8   : > { %3087 = vst [vmem:[#allocation3 + $0x184] sm:$0xf] %v2794_v51  ;;  %v4927_v0 = vadd.f32 %v16317_v48, %v4926_v61  ;;  %v2418_v58 = vrot.slane %v2416_v43, 4  ;;  %v2419_v56 = vrot.slane %v2296_v25, 5 }
 0x1a9   : > { %v5101_v3 = vpop.f32.mrf.mxu2  ;;  %5241 = vmatmul.bf16.gmra.mxu0 %v12024_v45  ;;  %v2804_v33 = vsel %vm15616_vm9, %v2799_v62, %v2803_v55  ;;  %v1988_v45 = vrot.slane %v1986_v8, 4  ;;  %v1980_v13 = vrot.slane %v1979_v36, 4  ;;  %v11835_v55 = vrot.slane %v2294_v47, 9  ;;  %v2632_v8 = vld [vmem:[#allocation2 + $0x64] sm:$0xf] }
 0x1aa   : > { %v5012_v10 = vpop.f32.mrf.mxu1  ;;  %v5188_v11 = vpop.f32.mrf.mxu3  ;;  %3088 = vst [vmem:[#allocation3 + $0x1a8] sm:$0xf] %v2804_v33  ;;  %v12033_v62 = vld [vmem:[#allocation3 + $0x15c] sm:$0xf0]  ;;  %v2815_v2 = vshll.u32 %v2632_v8, 16  ;;  %v2819_v46 = vshrl.u32 %v2632_v8, 16 }
 0x1ab   : > { %v5013_v31 = vadd.f32 %v5012_v10, %v4924_v63  ;;  %v16340_v50 = vadd.f32 %v5188_v11, %v5100_v22  ;;  %v1994_v63 = vrot.slane %v1992_v17, 5  ;;  %v1989_v49 = vor.u32 %v1988_v45, %v1984_v34  ;;  %v14600_v22 = vld [vmem:[#allocation3 + $0x13c] sm:$0xf]  ;;  %v2633_v10 = vld [vmem:[#allocation2 + $0x68] sm:$0x1] }
 0x1ac   : > { %v1985_v61 = vsel %vm15616_vm9, %v1980_v13, %v1984_v34  ;;  %v2420_v17 = vsel %vm15602_vm3, %v2418_v58, %v2419_v56  ;;  %v2809_v11 = vshll.u32 %v2631_v59, 16  ;;  %v14612_v36 = vld [vmem:[#allocation3 + $0x198] sm:$0xf0]  ;;  %v2825_v29 = vshll.u32 %v2633_v10, 16  ;;  %v1801_v56 = vld [vmem:[#allocation2 + $0x60] sm:$0xf] }
 0x1ad   : > { %v5102_v60 = vadd.f32 %v5101_v3, %v5013_v31  ;;  %v1990_v14 = vrot.slane %v1989_v49, 4  ;;  %v2806_v3 = vshrl.u32 %v2631_v59, 16  ;;  %2256 = vst [vmem:[#allocation3 + $0x1c0] sm:$0xf] %v1985_v61  ;;  %v12036_v49 = vor.u32 %v14600_v22, %v12033_v62  ;;  %v14773_v59 = vld [vmem:[%s18111_s1 + $0x220] sm:$0xff] }
 0x1ae   : > { %5419 = vmatmul.bf16.gmra.mxu2 %v12032_v5  ;;  %v4928_v52 = vpop.f32.mrf.mxu0  ;;  %v2417_v5 = vsel %vm15602_vm3, %v11835_v55, %v2416_v43  ;;  %v2811_v34 = vrot.slane %v2809_v11, 5  ;;  %v2817_v47 = vrot.slane %v2815_v2, 5  ;;  %2529 = vst [vmem:[#allocation3 + $0x1e8] sm:$0xf] %v2420_v17  ;;  %v2821_v13 = vrot.slane %v2819_v46, 4  ;;  %5572 = vmatpush.bf16.msra.mxu0 %v14773_v59 }
 0x1af   : > { %v1995_v26 = vsel %vm15616_vm9, %v1990_v14, %v1994_v63  ;;  %v2808_v38 = vrot.slane %v2806_v3, 4  ;;  %2528 = vst [vmem:[#allocation3 + $0x1c4] sm:$0xf] %v2417_v5  ;;  %v12060_v55 = vor.u32 %v14612_v36, %v12059_v57  ;;  %v2827_v58 = vrot.slane %v2825_v29, 5  ;;  %v1802_v10 = vld [vmem:[#allocation2 + $0x64] sm:$0xf] }
 0x1b0   : > { %2257 = vst [vmem:[#allocation3 + $0x1e4] sm:$0xf] %v1995_v26  ;;  %v2822_v8 = vor.u32 %v2821_v13, %v2817_v47  ;;  %v1803_v3 = vld [vmem:[#allocation2 + $0x68] sm:$0x1]  ;;  %v1997_v62 = vshrl.u32 %v1801_v56, 16  ;;  %v2006_v5 = vshll.u32 %v1802_v10, 16 }
 0x1b1   : > { %v5104_v51 = vpop.f32.mrf.mxu2  ;;  %v2812_v25 = vor.u32 %v2811_v34, %v2808_v38  ;;  %v14613_v61 = vld [vmem:[#allocation3 + $0x1a0] sm:$0xf0]  ;;  %v2010_v17 = vshrl.u32 %v1802_v10, 16  ;;  %v2298_v26 = vld [vmem:[#allocation2 + $0x64] sm:$0xf] }
 0x1b2   : > { %v5015_v31 = vpop.f32.mrf.mxu1  ;;  %v5190_v33 = vpop.f32.mrf.mxu3  ;;  %v2823_v11 = vrot.slane %v2822_v8, 4  ;;  %v2008_v46 = vrot.slane %v2006_v5, 5  ;;  %v14608_v34 = vld [vmem:[#allocation3 + $0x17c] sm:$0xf]  ;;  %v2563_v59 = vld [vmem:[#allocation2 + $0x6c] sm:$0xf] }
 0x1b3   : > { %v5016_v45 = vadd.f32 %v5015_v31, %v4927_v0  ;;  %v16353_v43 = vadd.f32 %v5190_v33, %v5102_v60  ;;  %v12067_v0 = vld [vmem:[#allocation3 + $0x180] sm:$0xf]  ;;  %v4929_v60 = vadd.f32 %v16317_v48, %v4928_v52  ;;  %v2813_v22 = vrot.slane %v2812_v25, 4  ;;  %v2564_v10 = vld [vmem:[#allocation2 + $0x70] sm:$0xf] }
 0x1b4   : > { %v1999_v31 = vrot.slane %v1997_v62, 4  ;;  %v12068_v36 = vor.u32 %v14613_v61, %v12067_v0  ;;  %v2828_v29 = vsel %vm15616_vm9, %v2823_v11, %v2827_v58  ;;  %v12061_v25 = vld [vmem:[#allocation3 + $0x19c] sm:$0xf0]  ;;  %2595 = vst [vmem:[#allocation3 + $0x210] sm:$0xf] %v2563_v59 }
 0x1b5   : > { %5330 = vmatmul.bf16.gmra.mxu1 %v12028_v19  ;;  %v5105_v63 = vadd.f32 %v5104_v51, %v5016_v45  ;;  %v2000_v19 = vshll.u32 %v1801_v56, 16  ;;  %v2818_v57 = vsel %vm15616_vm9, %v2813_v22, %v2817_v47  ;;  %v2016_v51 = vshll.u32 %v1803_v3, 16  ;;  %3090 = vst [vmem:[#allocation3 + $0x1f0] sm:$0xf] %v2828_v29  ;;  %v2297_v3 = vld [vmem:[#allocation2 + $0x60] sm:$0xe] }
 0x1b6   : > { %v4931_v14 = vpop.f32.mrf.mxu0  ;;  %3089 = vst [vmem:[#allocation3 + $0x1cc] sm:$0xf] %v2818_v57  ;;  %v2423_v22 = vrot.slane %v2298_v26, 5  ;;  %v2299_v0 = vld [vmem:[#allocation2 + $0x68] sm:$0x1]  ;;  %v11836_v62 = vrot.slane %v2297_v3, 9 }
 0x1b7   : > { %5508 = vmatmul.bf16.gmra.mxu3 %v12036_v49  ;;  %v2002_v2 = vrot.slane %v2000_v19, 5  ;;  %v2012_v49 = vrot.slane %v2010_v17, 4  ;;  %v2018_v56 = vrot.slane %v2016_v51, 5  ;;  %2596 = vst [vmem:[#allocation3 + $0x234] sm:$0xf] %v2564_v10  ;;  %v4932_v58 = vadd.f32 %v16317_v48, %v4931_v14 }
 0x1b8   : > { %v14609_v61 = vld [vmem:[#allocation3 + $0x184] sm:$0xf]  ;;  %v2425_v17 = vrot.slane %v2423_v22, 4  ;;  %v2426_v57 = vrot.slane %v2299_v0, 5  ;;  %v2634_v11 = vld [vmem:[#allocation2 + $0x6c] sm:$0xf] }
 0x1b9   : > { %v5106_v52 = vpop.f32.mrf.mxu2  ;;  %5246 = vmatmul.bf16.gmra.mxu0 %v12060_v55  ;;  %v2003_v13 = vor.u32 %v2002_v2, %v1999_v31  ;;  %v2013_v8 = vor.u32 %v2012_v49, %v2008_v46  ;;  %v12064_v31 = vor.u32 %v14608_v34, %v12061_v25  ;;  %v12095_v51 = vld [vmem:[#allocation3 + $0x1c0] sm:$0xf]  ;;  %v2636_v2 = vld [vmem:[#allocation2 + $0x74] sm:$0x1]  ;;  %v14621_v14 = vld [vmem:[#allocation3 + $0x1e0] sm:$0xf0] }
 0x1ba   : > { %v5017_v38 = vpop.f32.mrf.mxu1  ;;  %v5193_v33 = vpop.f32.mrf.mxu3  ;;  %v2833_v29 = vshll.u32 %v2634_v11, 16 }
 0x1bb   : > { %v5018_v45 = vadd.f32 %v5017_v38, %v4929_v60  ;;  %v16363_v47 = vadd.f32 %v5193_v33, %v5105_v63  ;;  %v2004_v60 = vrot.slane %v2003_v13, 4  ;;  %v12069_v63 = vld [vmem:[#allocation3 + $0x1a4] sm:$0xf0]  ;;  %v2014_v5 = vrot.slane %v2013_v8, 4 }
 0x1bc   : > { %v2424_v38 = vsel %vm15602_vm3, %v11836_v62, %v2423_v22  ;;  %v2830_v33 = vshrl.u32 %v2634_v11, 16  ;;  %v2849_v13 = vshll.u32 %v2636_v2, 16  ;;  %v2835_v10 = vrot.slane %v2833_v29, 5  ;;  %v1804_v11 = vld [vmem:[#allocation2 + $0x6c] sm:$0xf] }
 0x1bd   : > { %v5107_v55 = vadd.f32 %v5106_v52, %v5018_v45  ;;  %v2009_v26 = vsel %vm15616_vm9, %v2004_v60, %v2008_v46  ;;  %v2635_v52 = vld [vmem:[#allocation2 + $0x70] sm:$0xf]  ;;  %v2019_v45 = vsel %vm15616_vm9, %v2014_v5, %v2018_v56  ;;  %2530 = vst [vmem:[#allocation3 + $0x20c] sm:$0xf] %v2424_v38  ;;  %v12072_v56 = vor.u32 %v14609_v61, %v12069_v63  ;;  %v12103_v29 = vld [vmem:[#allocation3 + $0x1c8] sm:$0xf] }
 0x1be   : > { %5424 = vmatmul.bf16.gmra.mxu2 %v12068_v36  ;;  %v4933_v19 = vpop.f32.mrf.mxu0  ;;  %2258 = vst [vmem:[#allocation3 + $0x208] sm:$0xf] %v2009_v26  ;;  %v2427_v36 = vsel %vm15602_vm3, %v2425_v17, %v2426_v57  ;;  %v2839_v34 = vshll.u32 %v2635_v52, 16  ;;  %v2832_v46 = vrot.slane %v2830_v33, 4  ;;  %v2843_v25 = vshrl.u32 %v2635_v52, 16 }
 0x1bf   : > { %2259 = vst [vmem:[#allocation3 + $0x22c] sm:$0xf] %v2019_v45  ;;  %v4934_v5 = vadd.f32 %v16317_v48, %v4933_v19  ;;  %v12096_v17 = vor.u32 %v14621_v14, %v12095_v51  ;;  %v1805_v26 = vld [vmem:[#allocation2 + $0x70] sm:$0xf]  ;;  %v2851_v2 = vrot.slane %v2849_v13, 5  ;;  %v2024_v38 = vshll.u32 %v1804_v11, 16 }
 0x1c0   : > { %v2841_v3 = vrot.slane %v2839_v34, 5  ;;  %2531 = vst [vmem:[#allocation3 + $0x230] sm:$0xf] %v2427_v36  ;;  %v2845_v0 = vrot.slane %v2843_v25, 4  ;;  %v2836_v57 = vor.u32 %v2835_v10, %v2832_v46  ;;  %v1806_v33 = vld [vmem:[#allocation2 + $0x74] sm:$0x1] }
 0x1c1   : > { %v5109_v59 = vpop.f32.mrf.mxu2  ;;  %v2030_v34 = vshll.u32 %v1805_v26, 16  ;;  %v2034_v61 = vshrl.u32 %v1805_v26, 16  ;;  %v2040_v63 = vshll.u32 %v1806_v33, 16  ;;  %v2026_v19 = vrot.slane %v2024_v38, 5  ;;  %v2637_v46 = vld [vmem:[#allocation2 + $0x78] sm:$0xf] }
 0x1c2   : > { %v5020_v49 = vpop.f32.mrf.mxu1  ;;  %v5195_v22 = vpop.f32.mrf.mxu3  ;;  %v2846_v52 = vor.u32 %v2845_v0, %v2841_v3  ;;  %v2300_v10 = vld [vmem:[#allocation2 + $0x6c] sm:$0xe]  ;;  %v12097_v38 = vld [vmem:[#allocation3 + $0x1e4] sm:$0xf0] }
 0x1c3   : > { %v5021_v8 = vadd.f32 %v5020_v49, %v4932_v58  ;;  %v16374_v60 = vadd.f32 %v5195_v22, %v5107_v55  ;;  %v2021_v58 = vshrl.u32 %v1804_v11, 16  ;;  %v2837_v55 = vrot.slane %v2836_v57, 4 }
 0x1c4   : > { %v2847_v36 = vrot.slane %v2846_v52, 4  ;;  %v2032_v14 = vrot.slane %v2030_v34, 5  ;;  %v2042_v52 = vrot.slane %v2040_v63, 5  ;;  %v11837_v34 = vrot.slane %v2300_v10, 9  ;;  %v2302_v63 = vld [vmem:[#allocation2 + $0x74] sm:$0x1] }
 0x1c5   : > { %5335 = vmatmul.bf16.gmra.mxu1 %v12064_v31  ;;  %v5110_v62 = vadd.f32 %v5109_v59, %v5021_v8  ;;  %v14622_v31 = vld [vmem:[#allocation3 + $0x1e8] sm:$0xf0]  ;;  %v2023_v49 = vrot.slane %v2021_v58, 4  ;;  %v2842_v51 = vsel %vm15616_vm9, %v2837_v55, %v2841_v3  ;;  %v2036_v59 = vrot.slane %v2034_v61, 4  ;;  %v2565_v3 = vld [vmem:[#allocation2 + $0x78] sm:$0xf] }
 0x1c6   : > { %v4936_v45 = vpop.f32.mrf.mxu0  ;;  %v2852_v22 = vsel %vm15616_vm9, %v2847_v36, %v2851_v2  ;;  %3091 = vst [vmem:[#allocation3 + $0x214] sm:$0xf] %v2842_v51  ;;  %v12104_v11 = vor.u32 %v14622_v31, %v12103_v29  ;;  %v14617_v58 = vld [vmem:[#allocation3 + $0x1c4] sm:$0xf]  ;;  %v2301_v36 = vld [vmem:[#allocation2 + $0x70] sm:$0xf] }
 0x1c7   : > { %5513 = vmatmul.bf16.gmra.mxu3 %v12072_v56  ;;  %v2027_v8 = vor.u32 %v2026_v19, %v2023_v49  ;;  %v2638_v56 = vld [vmem:[#allocation2 + $0x7c] sm:$0xf]  ;;  %3092 = vst [vmem:[#allocation3 + $0x238] sm:$0xf] %v2852_v22  ;;  %v2037_v26 = vor.u32 %v2036_v59, %v2032_v14  ;;  %v2854_v49 = vshrl.u32 %v2637_v46, 16  ;;  %v2430_v31 = vrot.slane %v2301_v36, 5 }
 0x1c8   : > { %2597 = vst [vmem:[#allocation3 + $0x258] sm:$0xf] %v2565_v3  ;;  %v2857_v19 = vshll.u32 %v2637_v46, 16  ;;  %v2863_v22 = vshll.u32 %v2638_v56, 16  ;;  %v1807_v36 = vld [vmem:[#allocation2 + $0x78] sm:$0xf] }
 0x1c9   : > { %v5111_v13 = vpop.f32.mrf.mxu2  ;;  %5251 = vmatmul.bf16.gmra.mxu0 %v12096_v17  ;;  %v2028_v55 = vrot.slane %v2027_v8, 4  ;;  %v2566_v17 = vld [vmem:[#allocation2 + $0x7c] sm:$0xf]  ;;  %v2038_v61 = vrot.slane %v2037_v26, 4  ;;  %v14618_v8 = vld [vmem:[#allocation3 + $0x1cc] sm:$0xf] }
 0x1ca   : > { %v5022_v25 = vpop.f32.mrf.mxu1  ;;  %v5198_v0 = vpop.f32.mrf.mxu3  ;;  %2598 = vst [vmem:[#allocation3 + $0x27c] sm:$0xf] %v2566_v17  ;;  %v2432_v10 = vrot.slane %v2430_v31, 4  ;;  %v2865_v46 = vrot.slane %v2863_v22, 5  ;;  %v1808_v22 = vld [vmem:[#allocation2 + $0x7c] sm:$0xf] }
 0x1cb   : > { %v5023_v57 = vadd.f32 %v5022_v25, %v4934_v5  ;;  %v16381_v33 = vadd.f32 %v5198_v0, %v5110_v62  ;;  %v4937_v5 = vadd.f32 %v16317_v48, %v4936_v45  ;;  %v2033_v29 = vsel %vm15616_vm9, %v2028_v55, %v2032_v14  ;;  %v2639_v62 = vld [vmem:[#allocation2 + $0x80] sm:$0x1] }
 0x1cc   : > { %v2043_v59 = vsel %vm15616_vm9, %v2038_v61, %v2042_v52  ;;  %2260 = vst [vmem:[#allocation3 + $0x250] sm:$0xf] %v2033_v29  ;;  %v2433_v25 = vrot.slane %v2302_v63, 5  ;;  %v2431_v45 = vsel %vm15602_vm3, %v11837_v34, %v2430_v31  ;;  %v2859_v14 = vrot.slane %v2857_v19, 5  ;;  %v12131_v55 = vld [vmem:[#allocation3 + $0x208] sm:$0xf] }
 0x1cd   : > { %18132 = vst [vmem:[#allocation16_spill] sm:$0xff] %v16381_v33  ;;  %v5112_v2 = vadd.f32 %v5111_v13, %v5023_v57  ;;  %v2856_v13 = vrot.slane %v2854_v49, 4  ;;  %v12100_v0 = vor.u32 %v14617_v58, %v12097_v38  ;;  %v12105_v57 = vld [vmem:[#allocation3 + $0x1ec] sm:$0xf0]  ;;  %v2873_v61 = vshll.u32 %v2639_v62, 16 }
 0x1ce   : > { %5429 = vmatmul.bf16.gmra.mxu2 %v12104_v11  ;;  %v4938_v51 = vpop.f32.mrf.mxu0  ;;  %2261 = vst [vmem:[#allocation3 + $0x274] sm:$0xf] %v2043_v59  ;;  %v2867_v11 = vshrl.u32 %v2638_v56, 16  ;;  %v2434_v52 = vsel %vm15602_vm3, %v2432_v10, %v2433_v25  ;;  %v14630_v63 = vld [vmem:[#allocation3 + $0x228] sm:$0xf0]  ;;  %v2045_v31 = vshrl.u32 %v1807_v36, 16  ;;  %v12108_v38 = vor.u32 %v14618_v8, %v12105_v57 }
 0x1cf   : > { %2532 = vst [vmem:[#allocation3 + $0x254] sm:$0xf] %v2431_v45  ;;  %v2860_v17 = vor.u32 %v2859_v14, %v2856_v13  ;;  %v14772_v56 = vld [vmem:[%s18111_s1 + $0x218] sm:$0xff]  ;;  %v2048_v59 = vshll.u32 %v1807_v36, 16  ;;  %v2875_v62 = vrot.slane %v2873_v61, 5  ;;  %v2054_v57 = vshll.u32 %v1808_v22, 16 }
 0x1d0   : > { %2533 = vst [vmem:[#allocation3 + $0x278] sm:$0xf] %v2434_v52  ;;  %v2869_v34 = vrot.slane %v2867_v11, 4  ;;  %v2047_v45 = vrot.slane %v2045_v31, 4  ;;  %v12139_v10 = vld [vmem:[#allocation3 + $0x210] sm:$0xf]  ;;  %5573 = vmatpush.bf16.msra.mxu0 %v14772_v56  ;;  %v4939_v11 = vadd.f32 %v16317_v48, %v4938_v51 }
 0x1d1   : > { %v5114_v3 = vpop.f32.mrf.mxu2  ;;  %v2861_v19 = vrot.slane %v2860_v17, 4  ;;  %v1809_v14 = vld [vmem:[#allocation2 + $0x80] sm:$0x1]  ;;  %v2050_v8 = vrot.slane %v2048_v59, 5  ;;  %v14631_v17 = vld [vmem:[#allocation3 + $0x230] sm:$0xf0] }
 0x1d2   : > { %v5025_v26 = vpop.f32.mrf.mxu1  ;;  %v5200_v49 = vpop.f32.mrf.mxu3  ;;  %v2870_v13 = vor.u32 %v2869_v34, %v2865_v46  ;;  %v2056_v36 = vrot.slane %v2054_v57, 5  ;;  %v2641_v56 = vld [vmem:[#allocation2 + $0x88] sm:$0xf] }
 0x1d3   : > { %v5026_v29 = vadd.f32 %v5025_v26, %v4937_v5  ;;  %v16392_v58 = vadd.f32 %v5200_v49, %v5112_v2  ;;  %v12132_v5 = vor.u32 %v14630_v63, %v12131_v55  ;;  %v2866_v2 = vsel %vm15616_vm9, %v2861_v19, %v2865_v46  ;;  %v2304_v55 = vld [vmem:[#allocation2 + $0x7c] sm:$0xf] }
 0x1d4   : > { %v2871_v52 = vrot.slane %v2870_v13, 4  ;;  %3093 = vst [vmem:[#allocation3 + $0x25c] sm:$0xf] %v2866_v2  ;;  %v2051_v61 = vor.u32 %v2050_v8, %v2047_v45  ;;  %v2064_v46 = vshll.u32 %v1809_v14, 16  ;;  %v2437_v63 = vrot.slane %v2304_v55, 5 }
 0x1d5   : > { %18133 = vst [vmem:[#allocation17_spill] sm:$0xff] %v16392_v58  ;;  %5340 = vmatmul.bf16.gmra.mxu1 %v12100_v0  ;;  %v5115_v25 = vadd.f32 %v5114_v3, %v5026_v29  ;;  %v2058_v0 = vshrl.u32 %v1808_v22, 16  ;;  %v2640_v3 = vld [vmem:[#allocation2 + $0x84] sm:$0xf]  ;;  %v2568_v8 = vld [vmem:[#allocation2 + $0x88] sm:$0xf] }
 0x1d6   : > { %v4941_v26 = vpop.f32.mrf.mxu0  ;;  %v2876_v49 = vsel %vm15616_vm9, %v2871_v52, %v2875_v62  ;;  %v2052_v51 = vrot.slane %v2051_v61, 4  ;;  %v2878_v19 = vshrl.u32 %v2640_v3, 16  ;;  %v2066_v45 = vrot.slane %v2064_v46, 5  ;;  %v2567_v2 = vld [vmem:[#allocation2 + $0x84] sm:$0xf] }
 0x1d7   : > { %5518 = vmatmul.bf16.gmra.mxu3 %v12108_v38  ;;  %v2060_v29 = vrot.slane %v2058_v0, 4  ;;  %3094 = vst [vmem:[#allocation3 + $0x280] sm:$0xf] %v2876_v49  ;;  %v12140_v38 = vor.u32 %v14631_v17, %v12139_v10  ;;  %v14626_v62 = vld [vmem:[#allocation3 + $0x20c] sm:$0xf]  ;;  %v2439_v17 = vrot.slane %v2437_v63, 4 }
 0x1d8   : > { %v12133_v52 = vld [vmem:[#allocation3 + $0x22c] sm:$0xf0]  ;;  %v2057_v14 = vsel %vm15616_vm9, %v2052_v51, %v2056_v36  ;;  %2599 = vst [vmem:[#allocation3 + $0x2a0] sm:$0xf] %v2567_v2  ;;  %v2305_v0 = vld [vmem:[#allocation2 + $0x80] sm:$0x1] }
 0x1d9   : > { %v5116_v31 = vpop.f32.mrf.mxu2  ;;  %5256 = vmatmul.bf16.gmra.mxu0 %v12132_v5  ;;  %v2061_v22 = vor.u32 %v2060_v29, %v2056_v36  ;;  %v2303_v5 = vld [vmem:[#allocation2 + $0x78] sm:$0xe]  ;;  %v16406_v55 = vld [vmem:[#allocation3 + $0x214] sm:$0xf]  ;;  %v12141_v49 = vld [vmem:[#allocation3 + $0x234] sm:$0xf0]  ;;  %v4942_v29 = vadd.f32 %v16317_v48, %v4941_v26 }
 0x1da   : > { %v5027_v34 = vpop.f32.mrf.mxu1  ;;  %v5203_v59 = vpop.f32.mrf.mxu3  ;;  %2262 = vst [vmem:[#allocation3 + $0x298] sm:$0xf] %v2057_v14  ;;  %v11838_v10 = vrot.slane %v2303_v5, 9  ;;  %v2440_v46 = vrot.slane %v2305_v0, 5  ;;  %v14639_v51 = vld [vmem:[#allocation3 + $0x270] sm:$0xf0]  ;;  %v12136_v5 = vor.u32 %v14626_v62, %v12133_v52 }
 0x1db   : > { %v5028_v13 = vadd.f32 %v5027_v34, %v4939_v11  ;;  %v16402_v57 = vadd.f32 %v5203_v59, %v5115_v25  ;;  %v2062_v11 = vrot.slane %v2061_v22, 4  ;;  %v16409_v25 = vld [vmem:[#allocation3 + $0x250] sm:$0xf]  ;;  %2600 = vst [vmem:[#allocation3 + $0x2c4] sm:$0xf] %v2568_v8  ;;  %v2880_v34 = vrot.slane %v2878_v19, 4 }
 0x1dc   : > { %v2438_v59 = vsel %vm15602_vm3, %v11838_v10, %v2437_v63  ;;  %v2881_v22 = vshll.u32 %v2640_v3, 16  ;;  %v2887_v2 = vshll.u32 %v2641_v56, 16  ;;  %v2441_v26 = vsel %vm15602_vm3, %v2439_v17, %v2440_v46  ;;  %v1810_v10 = vld [vmem:[#allocation2 + $0x84] sm:$0xf]  ;;  %v1811_v17 = vld [vmem:[#allocation2 + $0x88] sm:$0xf] }
 0x1dd   : > { %18134 = vst [vmem:[#allocation18_spill] sm:$0xff] %v16402_v57  ;;  %v5117_v61 = vadd.f32 %v5116_v31, %v5028_v13  ;;  %v2067_v31 = vsel %vm15616_vm9, %v2062_v11, %v2066_v45  ;;  %v2642_v13 = vld [vmem:[#allocation2 + $0x8c] sm:$0x1]  ;;  %v2891_v14 = vshrl.u32 %v2641_v56, 16  ;;  %v12144_v57 = vor.u32 %v16406_v55, %v12141_v49 }
 0x1de   : > { %5434 = vmatmul.bf16.gmra.mxu2 %v12140_v38  ;;  %v4943_v36 = vpop.f32.mrf.mxu0  ;;  %2263 = vst [vmem:[#allocation3 + $0x2bc] sm:$0xf] %v2067_v31  ;;  %v2897_v8 = vshll.u32 %v2642_v13, 16  ;;  %v2883_v19 = vrot.slane %v2881_v22, 5  ;;  %v2889_v38 = vrot.slane %v2887_v2, 5  ;;  %v12168_v11 = vor.u32 %v14639_v51, %v16409_v25 }
 0x1df   : > { %2534 = vst [vmem:[#allocation3 + $0x29c] sm:$0xf] %v2438_v59  ;;  %v2893_v63 = vrot.slane %v2891_v14, 4  ;;  %v2069_v56 = vshrl.u32 %v1810_v10, 16  ;;  %v2072_v46 = vshll.u32 %v1810_v10, 16  ;;  %v2078_v59 = vshll.u32 %v1811_v17, 16 }
 0x1e0   : > { %2535 = vst [vmem:[#allocation3 + $0x2c0] sm:$0xf] %v2441_v26  ;;  %v2899_v3 = vrot.slane %v2897_v8, 5  ;;  %v2884_v33 = vor.u32 %v2883_v19, %v2880_v34  ;;  %v2082_v13 = vshrl.u32 %v1811_v17, 16  ;;  %v16421_v22 = vld [vmem:[#allocation2 + $0x90] sm:$0xf]  ;;  %v4944_v2 = vadd.f32 %v16317_v48, %v4943_v36 }
 0x1e1   : > { %v5119_v45 = vpop.f32.mrf.mxu2  ;;  %v2894_v52 = vor.u32 %v2893_v63, %v2889_v38  ;;  %v2071_v25 = vrot.slane %v2069_v56, 4  ;;  %v2074_v51 = vrot.slane %v2072_v46, 5  ;;  %v2080_v34 = vrot.slane %v2078_v59, 5  ;;  %v12175_v19 = vld [vmem:[#allocation3 + $0x258] sm:$0xf] }
 0x1e2   : > { %v5030_v0 = vpop.f32.mrf.mxu1  ;;  %v5205_v31 = vpop.f32.mrf.mxu3  ;;  %v2885_v49 = vrot.slane %v2884_v33, 4  ;;  %v2084_v14 = vrot.slane %v2082_v13, 4  ;;  %v2644_v17 = vld [vmem:[#allocation2 + $0x94] sm:$0xf]  ;;  %v2308_v59 = vld [vmem:[#allocation2 + $0x8c] sm:$0x1] }
 0x1e3   : > { %v5031_v58 = vadd.f32 %v5030_v0, %v4942_v29  ;;  %v16419_v62 = vadd.f32 %v5205_v31, %v5117_v61  ;;  %v2895_v26 = vrot.slane %v2894_v52, 4  ;;  %v1812_v29 = vld [vmem:[#allocation2 + $0x8c] sm:$0x1]  ;;  %v14640_v61 = vld [vmem:[#allocation3 + $0x278] sm:$0xf0]  ;;  %v2075_v63 = vor.u32 %v2074_v51, %v2071_v25 }
 0x1e4   : > { %v2890_v0 = vsel %vm15616_vm9, %v2885_v49, %v2889_v38  ;;  %v2088_v10 = vshll.u32 %v1812_v29, 16  ;;  %v12176_v46 = vor.u32 %v14640_v61, %v12175_v19  ;;  %v2306_v52 = vld [vmem:[#allocation2 + $0x84] sm:$0xe]  ;;  %v2569_v51 = vld [vmem:[#allocation2 + $0x90] sm:$0xf]  ;;  %v2447_v19 = vrot.slane %v2308_v59, 5 }
 0x1e5   : > { %5345 = vmatmul.bf16.gmra.mxu1 %v12136_v5  ;;  %v5120_v55 = vadd.f32 %v5119_v45, %v5031_v58  ;;  %v2902_v5 = vshrl.u32 %v16421_v22, 16  ;;  %v2900_v48 = vsel %vm15616_vm9, %v2895_v26, %v2899_v3  ;;  %3095 = vst [vmem:[#allocation3 + $0x2a4] sm:$0xf] %v2890_v0  ;;  %v2307_v58 = vld [vmem:[#allocation2 + $0x88] sm:$0xf]  ;;  %v2076_v36 = vrot.slane %v2075_v63, 4 }
 0x1e6   : > { %v5222_v8 = vpop.f32.mrf.mxu0  ;;  %3096 = vst [vmem:[#allocation3 + $0x2c8] sm:$0xf] %v2900_v48  ;;  %v2085_v45 = vor.u32 %v2084_v14, %v2080_v34  ;;  %v2090_v31 = vrot.slane %v2088_v10, 5  ;;  %v2570_v26 = vld [vmem:[#allocation2 + $0x94] sm:$0xf]  ;;  %v11839_v29 = vrot.slane %v2306_v52, 9 }
 0x1e7   : > { %5523 = vmatmul.bf16.gmra.mxu3 %v12144_v57  ;;  %v16428_v33 = vadd.f32 %v5222_v8, %v15930_v21  ;;  %v2444_v57 = vrot.slane %v2307_v58, 5  ;;  %v2904_v13 = vrot.slane %v2902_v5, 4  ;;  %v2081_v3 = vsel %vm15616_vm9, %v2076_v36, %v2080_v34  ;;  %v14635_v8 = vld [vmem:[#allocation3 + $0x254] sm:$0xf]  ;;  %v12169_v0 = vld [vmem:[#allocation3 + $0x274] sm:$0xf0] }
 0x1e8   : > { %v2086_v25 = vrot.slane %v2085_v45, 4  ;;  %2264 = vst [vmem:[#allocation3 + $0x2e0] sm:$0xf] %v2081_v3  ;;  %v2645_v61 = vld [vmem:[#allocation2 + $0x98] sm:$0x1]  ;;  %v2905_v5 = vshll.u32 %v16421_v22, 16 }
 0x1e9   : > { %v5121_v38 = vpop.f32.mrf.mxu2  ;;  %5261 = vmatmul.bf16.gmra.mxu0 %v12168_v11  ;;  %v2446_v11 = vrot.slane %v2444_v57, 4  ;;  %v14636_v10 = vld [vmem:[#allocation3 + $0x25c] sm:$0xf]  ;;  %2601 = vst [vmem:[#allocation3 + $0x2e8] sm:$0xf] %v2569_v51  ;;  %v2445_v34 = vsel %vm15602_vm3, %v11839_v29, %v2444_v57  ;;  %v2911_v48 = vshll.u32 %v2644_v17, 16  ;;  %v12172_v57 = vor.u32 %v14635_v8, %v12169_v0 }
 0x1ea   : > { %v5032_v56 = vpop.f32.mrf.mxu1  ;;  %v5208_v21 = vpop.f32.mrf.mxu3  ;;  %v2915_v58 = vshrl.u32 %v2644_v17, 16  ;;  %v2921_v36 = vshll.u32 %v2645_v61, 16  ;;  %v12177_v45 = vld [vmem:[#allocation3 + $0x27c] sm:$0xf0]  ;;  %2602 = vst [vmem:[#allocation3 + $0x30c] sm:$0xf] %v2570_v26 }
 0x1eb   : > { %v5033_v49 = vadd.f32 %v5032_v56, %v4944_v2  ;;  %v16434_v14 = vadd.f32 %v5208_v21, %v5120_v55  ;;  %v2091_v2 = vsel %vm15616_vm9, %v2086_v25, %v2090_v31  ;;  %v2448_v55 = vsel %vm15602_vm3, %v2446_v11, %v2447_v19  ;;  %2536 = vst [vmem:[#allocation3 + $0x2e4] sm:$0xf] %v2445_v34  ;;  %v12203_v22 = vld [vmem:[#allocation3 + $0x298] sm:$0xf]  ;;  %v1814_v29 = vld [vmem:[#allocation2 + $0x94] sm:$0xf] }
 0x1ec   : > { %2265 = vst [vmem:[#allocation3 + $0x304] sm:$0xf] %v2091_v2  ;;  %v2913_v52 = vrot.slane %v2911_v48, 5  ;;  %v2917_v59 = vrot.slane %v2915_v58, 4  ;;  %v12180_v3 = vor.u32 %v14636_v10, %v12177_v45  ;;  %v2923_v51 = vrot.slane %v2921_v36, 5 }
 0x1ed   : > { %v5122_v63 = vadd.f32 %v5121_v38, %v5033_v49  ;;  %v2907_v38 = vrot.slane %v2905_v5, 5  ;;  %2537 = vst [vmem:[#allocation3 + $0x308] sm:$0xf] %v2448_v55  ;;  %v14648_v19 = vld [vmem:[#allocation3 + $0x2b8] sm:$0xf0]  ;;  %v2102_v0 = vshll.u32 %v1814_v29, 16 }
 0x1ee   : > { %5439 = vmatmul.bf16.gmra.mxu2 %v12176_v46  ;;  %v5224_v56 = vpop.f32.mrf.mxu0  ;;  %v2918_v17 = vor.u32 %v2917_v59, %v2913_v52  ;;  %v1813_v46 = vld [vmem:[#allocation2 + $0x90] sm:$0xf]  ;;  %v2106_v10 = vshrl.u32 %v1814_v29, 16  ;;  %v2646_v58 = vld [vmem:[#allocation2 + $0x9c] sm:$0xf]  ;;  %v12204_v36 = vor.u32 %v14648_v19, %v12203_v22 }
 0x1ef   : > { %v16444_v31 = vadd.f32 %v5224_v56, %v15948_v42  ;;  %v2908_v21 = vor.u32 %v2907_v38, %v2904_v13  ;;  %v2093_v61 = vshrl.u32 %v1813_v46, 16  ;;  %v2096_v2 = vshll.u32 %v1813_v46, 16  ;;  %v14771_v13 = vld [vmem:[%s18111_s1 + $0x210] sm:$0xff]  ;;  %v12211_v45 = vld [vmem:[#allocation3 + $0x2a0] sm:$0xf] }
 0x1f0   : > { %v2919_v8 = vrot.slane %v2918_v17, 4  ;;  %5574 = vmatpush.bf16.msra.mxu0 %v14771_v13  ;;  %v1815_v56 = vld [vmem:[#allocation2 + $0x98] sm:$0x1]  ;;  %v14649_v59 = vld [vmem:[#allocation3 + $0x2c0] sm:$0xf0]  ;;  %v2926_v22 = vshrl.u32 %v2646_v58, 16 }
 0x1f1   : > { %v5400_v25 = vpop.f32.mrf.mxu2  ;;  %v2909_v42 = vrot.slane %v2908_v21, 4  ;;  %v2095_v48 = vrot.slane %v2093_v61, 4  ;;  %v2310_v17 = vld [vmem:[#allocation2 + $0x94] sm:$0xf]  ;;  %v2311_v13 = vld [vmem:[#allocation2 + $0x98] sm:$0x1] }
 0x1f2   : > { %v5311_v49 = vpop.f32.mrf.mxu1  ;;  %v5210_v11 = vpop.f32.mrf.mxu3 }
 0x1f3   : > { %v5312_v26 = vadd.f32 %v5311_v49, %v16428_v33  ;;  %v16447_v34 = vadd.f32 %v5210_v11, %v5122_v63  ;;  %v2914_v55 = vsel %vm15616_vm9, %v2909_v42, %v2913_v52  ;;  %v2098_v33 = vrot.slane %v2096_v2, 5  ;;  %v2309_v2 = vld [vmem:[#allocation2 + $0x90] sm:$0xe] }
 0x1f4   : > { %v2924_v63 = vsel %vm15616_vm9, %v2919_v8, %v2923_v51  ;;  %3097 = vst [vmem:[#allocation3 + $0x2ec] sm:$0xf] %v2914_v55  ;;  %v2108_v49 = vrot.slane %v2106_v10, 4  ;;  %v2451_v11 = vrot.slane %v2310_v17, 5  ;;  %v12212_v42 = vor.u32 %v14649_v59, %v12211_v45  ;;  %v2648_v8 = vld [vmem:[#allocation2 + $0xa4] sm:$0x1] }
 0x1f5   : > { %5350 = vmatmul.bf16.gmra.mxu1 %v12172_v57  ;;  %v5401_v5 = vadd.f32 %v5400_v25, %v5312_v26  ;;  %3098 = vst [vmem:[#allocation3 + $0x310] sm:$0xf] %v2924_v63  ;;  %v2099_v21 = vor.u32 %v2098_v33, %v2095_v48  ;;  %v2104_v57 = vrot.slane %v2102_v0, 5  ;;  %v2112_v25 = vshll.u32 %v1815_v56, 16  ;;  %v2647_v26 = vld [vmem:[#allocation2 + $0xa0] sm:$0xf] }
 0x1f6   : > { %v5227_v38 = vpop.f32.mrf.mxu0  ;;  %v2928_v0 = vrot.slane %v2926_v22, 4  ;;  %v2571_v48 = vld [vmem:[#allocation2 + $0x9c] sm:$0xf]  ;;  %v2572_v33 = vld [vmem:[#allocation2 + $0xa0] sm:$0xf]  ;;  %v11840_v63 = vrot.slane %v2309_v2, 9 }
 0x1f7   : > { %5528 = vmatmul.bf16.gmra.mxu3 %v12180_v3  ;;  %v16457_v52 = vadd.f32 %v5227_v38, %v15966_v44  ;;  %v2100_v46 = vrot.slane %v2099_v21, 4  ;;  %v2109_v29 = vor.u32 %v2108_v49, %v2104_v57  ;;  %v2114_v61 = vrot.slane %v2112_v25, 5  ;;  %v14644_v38 = vld [vmem:[#allocation3 + $0x29c] sm:$0xf]  ;;  %v12205_v49 = vld [vmem:[#allocation3 + $0x2bc] sm:$0xf0] }
 0x1f8   : > { %v2454_v45 = vrot.slane %v2311_v13, 5  ;;  %v2929_v59 = vshll.u32 %v2646_v58, 16  ;;  %2603 = vst [vmem:[#allocation3 + $0x330] sm:$0xf] %v2571_v48  ;;  %v14645_v17 = vld [vmem:[#allocation3 + $0x2a4] sm:$0xf] }
 0x1f9   : > { %v5402_v19 = vpop.f32.mrf.mxu2  ;;  %5266 = vmatmul.bf16.gmra.mxu0 %v12204_v36  ;;  %v2105_v10 = vsel %vm15616_vm9, %v2100_v46, %v2104_v57  ;;  %v2110_v55 = vrot.slane %v2109_v29, 4  ;;  %v2453_v36 = vrot.slane %v2451_v11, 4  ;;  %v2935_v57 = vshll.u32 %v2647_v26, 16  ;;  %v12213_v29 = vld [vmem:[#allocation3 + $0x2c4] sm:$0xf0] }
 0x1fa   : > { %v5313_v51 = vpop.f32.mrf.mxu1  ;;  %v5489_v3 = vpop.f32.mrf.mxu3  ;;  %2266 = vst [vmem:[#allocation3 + $0x328] sm:$0xf] %v2105_v10  ;;  %v2931_v22 = vrot.slane %v2929_v59, 5  ;;  %v2939_v46 = vshrl.u32 %v2647_v26, 16  ;;  %v12216_v10 = vor.u32 %v14645_v17, %v12213_v29  ;;  %v12247_v29 = vld [vmem:[#allocation3 + $0x2e8] sm:$0xf] }
 0x1fb   : > { %v5314_v44 = vadd.f32 %v5313_v51, %v16444_v31  ;;  %v16462_v56 = vadd.f32 %v5489_v3, %v5401_v5  ;;  %v2115_v25 = vsel %vm15616_vm9, %v2110_v55, %v2114_v61  ;;  %v2452_v31 = vsel %vm15602_vm3, %v11840_v63, %v2451_v11  ;;  %2604 = vst [vmem:[#allocation3 + $0x354] sm:$0xf] %v2572_v33  ;;  %v12239_v3 = vld [vmem:[#allocation3 + $0x2e0] sm:$0xf] }
 0x1fc   : > { %2267 = vst [vmem:[#allocation3 + $0x34c] sm:$0xf] %v2115_v25  ;;  %v2455_v5 = vsel %vm15602_vm3, %v2453_v36, %v2454_v45  ;;  %v2937_v51 = vrot.slane %v2935_v57, 5  ;;  %v2932_v2 = vor.u32 %v2931_v22, %v2928_v0  ;;  %v2941_v13 = vrot.slane %v2939_v46, 4  ;;  %v1817_v36 = vld [vmem:[#allocation2 + $0xa0] sm:$0xf] }
 0x1fd   : > { %v5403_v21 = vadd.f32 %v5402_v19, %v5314_v44  ;;  %v2945_v19 = vshll.u32 %v2648_v8, 16  ;;  %2538 = vst [vmem:[#allocation3 + $0x32c] sm:$0xf] %v2452_v31  ;;  %v12208_v11 = vor.u32 %v14644_v38, %v12205_v49  ;;  %v14657_v8 = vld [vmem:[#allocation3 + $0x300] sm:$0xf0]  ;;  %v2126_v25 = vshll.u32 %v1817_v36, 16 }
 0x1fe   : > { %5444 = vmatmul.bf16.gmra.mxu2 %v12212_v42  ;;  %v5229_v58 = vpop.f32.mrf.mxu0  ;;  %2539 = vst [vmem:[#allocation3 + $0x350] sm:$0xf] %v2455_v5  ;;  %v2933_v48 = vrot.slane %v2932_v2, 4  ;;  %v2942_v63 = vor.u32 %v2941_v13, %v2937_v51  ;;  %v1816_v42 = vld [vmem:[#allocation2 + $0x9c] sm:$0xf]  ;;  %v2130_v31 = vshrl.u32 %v1817_v36, 16  ;;  %v12240_v46 = vor.u32 %v14657_v8, %v12239_v3 }
 0x1ff   : > { %v5230_v61 = vadd.f32 %v5229_v58, %v15989_v27  ;;  %v2947_v26 = vrot.slane %v2945_v19, 5  ;;  %v2117_v59 = vshrl.u32 %v1816_v42, 16  ;;  %v2120_v27 = vshll.u32 %v1816_v42, 16  ;;  %v2649_v57 = vld [vmem:[#allocation2 + $0xa8] sm:$0xf] }
 0x200   : > { %v2938_v38 = vsel %vm15616_vm9, %v2933_v48, %v2937_v51  ;;  %v2943_v49 = vrot.slane %v2942_v63, 4  ;;  %v1818_v58 = vld [vmem:[#allocation2 + $0xa4] sm:$0x1]  ;;  %v2128_v19 = vrot.slane %v2126_v25, 5  ;;  %v2950_v48 = vshrl.u32 %v2649_v57, 16 }
 0x201   : > { %v5405_v55 = vpop.f32.mrf.mxu2  ;;  %3099 = vst [vmem:[#allocation3 + $0x334] sm:$0xf] %v2938_v38  ;;  %v2119_v5 = vrot.slane %v2117_v59, 4  ;;  %v2122_v22 = vrot.slane %v2120_v27, 5  ;;  %v14658_v13 = vld [vmem:[#allocation3 + $0x308] sm:$0xf0] }
 0x202   : > { %v5316_v44 = vpop.f32.mrf.mxu1  ;;  %v5491_v45 = vpop.f32.mrf.mxu3  ;;  %v2313_v63 = vld [vmem:[#allocation2 + $0xa0] sm:$0xf]  ;;  %v12248_v8 = vor.u32 %v14658_v13, %v12247_v29  ;;  %v2312_v27 = vld [vmem:[#allocation2 + $0x9c] sm:$0xe]  ;;  %v2314_v25 = vld [vmem:[#allocation2 + $0xa4] sm:$0x1] }
 0x203   : > { %v5317_v33 = vadd.f32 %v5316_v44, %v16457_v52  ;;  %v16472_v0 = vadd.f32 %v5491_v45, %v5403_v21  ;;  %v2948_v52 = vsel %vm15616_vm9, %v2943_v49, %v2947_v26  ;;  %v2132_v21 = vrot.slane %v2130_v31, 4  ;;  %v2650_v45 = vld [vmem:[#allocation2 + $0xac] sm:$0xf] }
 0x204   : > { %3100 = vst [vmem:[#allocation3 + $0x358] sm:$0xf] %v2948_v52  ;;  %v2123_v51 = vor.u32 %v2122_v22, %v2119_v5  ;;  %v2136_v44 = vshll.u32 %v1818_v58, 16  ;;  %v2458_v36 = vrot.slane %v2313_v63, 5  ;;  %v2952_v38 = vrot.slane %v2950_v48, 4 }
 0x205   : > { %5355 = vmatmul.bf16.gmra.mxu1 %v12208_v11  ;;  %v5406_v17 = vadd.f32 %v5405_v55, %v5317_v33  ;;  %v2133_v55 = vor.u32 %v2132_v21, %v2128_v19  ;;  %v11841_v5 = vrot.slane %v2312_v27, 9  ;;  %v2651_v52 = vld [vmem:[#allocation2 + $0xb0] sm:$0x1]  ;;  %v14653_v21 = vld [vmem:[#allocation3 + $0x2e4] sm:$0xf]  ;;  %v2953_v13 = vshll.u32 %v2649_v57, 16 }
 0x206   : > { %v5232_v2 = vpop.f32.mrf.mxu0  ;;  %v2124_v42 = vrot.slane %v2123_v51, 4  ;;  %v2138_v3 = vrot.slane %v2136_v44, 5  ;;  %v2460_v22 = vrot.slane %v2458_v36, 4  ;;  %v2574_v29 = vld [vmem:[#allocation2 + $0xac] sm:$0xf]  ;;  %v2963_v48 = vshrl.u32 %v2650_v45, 16 }
 0x207   : > { %5533 = vmatmul.bf16.gmra.mxu3 %v12216_v10  ;;  %v5233_v11 = vadd.f32 %v5232_v2, %v16008_v6  ;;  %v2134_v59 = vrot.slane %v2133_v55, 4  ;;  %v2573_v6 = vld [vmem:[#allocation2 + $0xa8] sm:$0xf]  ;;  %v2461_v2 = vrot.slane %v2314_v25, 5  ;;  %v12241_v44 = vld [vmem:[#allocation3 + $0x304] sm:$0xf0] }
 0x208   : > { %v2129_v10 = vsel %vm15616_vm9, %v2124_v42, %v2128_v19  ;;  %v2959_v19 = vshll.u32 %v2650_v45, 16  ;;  %v14654_v55 = vld [vmem:[#allocation3 + $0x2ec] sm:$0xf]  ;;  %2605 = vst [vmem:[#allocation3 + $0x378] sm:$0xf] %v2573_v6  ;;  %v2955_v63 = vrot.slane %v2953_v13, 5 }
 0x209   : > { %v5407_v26 = vpop.f32.mrf.mxu2  ;;  %5271 = vmatmul.bf16.gmra.mxu0 %v12240_v46  ;;  %v2139_v46 = vsel %vm15616_vm9, %v2134_v59, %v2138_v3  ;;  %2268 = vst [vmem:[#allocation3 + $0x370] sm:$0xf] %v2129_v10  ;;  %v2969_v42 = vshll.u32 %v2651_v52, 16  ;;  %v12249_v3 = vld [vmem:[#allocation3 + $0x30c] sm:$0xf0] }
 0x20a   : > { %v5318_v33 = vpop.f32.mrf.mxu1  ;;  %v5494_v49 = vpop.f32.mrf.mxu3  ;;  %2269 = vst [vmem:[#allocation3 + $0x394] sm:$0xf] %v2139_v46  ;;  %v2961_v57 = vrot.slane %v2959_v19, 5  ;;  %v2956_v27 = vor.u32 %v2955_v63, %v2952_v38  ;;  %v12275_v25 = vld [vmem:[#allocation3 + $0x328] sm:$0xf]  ;;  %v12252_v10 = vor.u32 %v14654_v55, %v12249_v3  ;;  %v14770_v38 = vld [vmem:[%s18111_s1 + $0x208] sm:$0xff] }
 0x20b   : > { %v5319_v31 = vadd.f32 %v5318_v33, %v5230_v61  ;;  %v16481_v58 = vadd.f32 %v5494_v49, %v5406_v17  ;;  %v2459_v61 = vsel %vm15602_vm3, %v11841_v5, %v2458_v36  ;;  %v2462_v17 = vsel %vm15602_vm3, %v2460_v22, %v2461_v2  ;;  %2606 = vst [vmem:[#allocation3 + $0x39c] sm:$0xf] %v2574_v29  ;;  %v1819_v22 = vld [vmem:[#allocation2 + $0xa8] sm:$0xf]  ;;  %v14666_v29 = vld [vmem:[#allocation3 + $0x348] sm:$0xf0] }
 0x20c   : > { %2540 = vst [vmem:[#allocation3 + $0x374] sm:$0xf] %v2459_v61  ;;  %v12244_v36 = vor.u32 %v14653_v21, %v12241_v44  ;;  %v2971_v49 = vrot.slane %v2969_v42, 5  ;;  %v2957_v5 = vrot.slane %v2956_v27, 4  ;;  %v2141_v13 = vshrl.u32 %v1819_v22, 16  ;;  %5575 = vmatpush.bf16.msra.mxu0 %v14770_v38 }
 0x20d   : > { %v5408_v51 = vadd.f32 %v5407_v26, %v5319_v31  ;;  %v2965_v26 = vrot.slane %v2963_v48, 4  ;;  %2541 = vst [vmem:[#allocation3 + $0x398] sm:$0xf] %v2462_v17  ;;  %v2144_v19 = vshll.u32 %v1819_v22, 16  ;;  %v12276_v17 = vor.u32 %v14666_v29, %v12275_v25  ;;  %v12283_v42 = vld [vmem:[#allocation3 + $0x330] sm:$0xf] }
 0x20e   : > { %5449 = vmatmul.bf16.gmra.mxu2 %v12248_v8  ;;  %v5234_v33 = vpop.f32.mrf.mxu0  ;;  %v1820_v8 = vld [vmem:[#allocation2 + $0xac] sm:$0xf]  ;;  %v2962_v21 = vsel %vm15616_vm9, %v2957_v5, %v2961_v57  ;;  %v2143_v55 = vrot.slane %v2141_v13, 4  ;;  %v2652_v5 = vld [vmem:[#allocation2 + $0xb4] sm:$0xf] }
 0x20f   : > { %v5235_v59 = vadd.f32 %v5234_v33, %v16034_v39  ;;  %v2966_v45 = vor.u32 %v2965_v26, %v2961_v57  ;;  %v2150_v44 = vshll.u32 %v1820_v8, 16  ;;  %v2154_v61 = vshrl.u32 %v1820_v8, 16  ;;  %3101 = vst [vmem:[#allocation3 + $0x37c] sm:$0xf] %v2962_v21  ;;  %v14667_v27 = vld [vmem:[#allocation3 + $0x350] sm:$0xf0] }
 0x210   : > { %v2146_v3 = vrot.slane %v2144_v19, 5  ;;  %v2317_v29 = vld [vmem:[#allocation2 + $0xb0] sm:$0x1]  ;;  %v14662_v19 = vld [vmem:[#allocation3 + $0x32c] sm:$0xf] }
 0x211   : > { %v5410_v6 = vpop.f32.mrf.mxu2  ;;  %v2967_v2 = vrot.slane %v2966_v45, 4  ;;  %v2152_v33 = vrot.slane %v2150_v44, 5  ;;  %v2156_v26 = vrot.slane %v2154_v61, 4  ;;  %v2316_v45 = vld [vmem:[#allocation2 + $0xac] sm:$0xf] }
 0x212   : > { %v5321_v31 = vpop.f32.mrf.mxu1  ;;  %v5496_v52 = vpop.f32.mrf.mxu3  ;;  %v2465_v25 = vrot.slane %v2316_v45, 5  ;;  %v12277_v38 = vld [vmem:[#allocation3 + $0x34c] sm:$0xf0]  ;;  %v2575_v61 = vld [vmem:[#allocation2 + $0xb4] sm:$0xf] }
 0x213   : > { %v5322_v46 = vadd.f32 %v5321_v31, %v5233_v11  ;;  %v16490_v39 = vadd.f32 %v5496_v52, %v5408_v51  ;;  %v2972_v11 = vsel %vm15616_vm9, %v2967_v2, %v2971_v49  ;;  %v1821_v51 = vld [vmem:[#allocation2 + $0xb0] sm:$0x1]  ;;  %v710_v49 = vrot.slane %v16116_v35, 4  ;;  %v2576_v35 = vld [vmem:[#allocation2 + $0xb8] sm:$0xf] }
 0x214   : > { %3102 = vst [vmem:[#allocation3 + $0x3a0] sm:$0xf] %v2972_v11  ;;  %v2147_v31 = vor.u32 %v2146_v3, %v2143_v55  ;;  %v2974_v2 = vshrl.u32 %v2652_v5, 16  ;;  %v14663_v3 = vld [vmem:[#allocation3 + $0x334] sm:$0xf] }
 0x215   : > { %5360 = vmatmul.bf16.gmra.mxu1 %v12244_v36  ;;  %v5411_v48 = vadd.f32 %v5410_v6, %v5322_v46  ;;  %v2160_v36 = vshll.u32 %v1821_v51, 16  ;;  %v2157_v6 = vor.u32 %v2156_v26, %v2152_v33  ;;  %v2315_v46 = vld [vmem:[#allocation2 + $0xa8] sm:$0xe]  ;;  %2607 = vst [vmem:[#allocation3 + $0x3c0] sm:$0xf] %v2575_v61  ;;  %v2467_v51 = vrot.slane %v2465_v25, 4 }
 0x216   : > { %v5237_v63 = vpop.f32.mrf.mxu0  ;;  %v2148_v21 = vrot.slane %v2147_v31, 4  ;;  %v11842_v55 = vrot.slane %v2315_v46, 9  ;;  %v12285_v26 = vld [vmem:[#allocation3 + $0x354] sm:$0xf0]  ;;  %2608 = vst [vmem:[#allocation3 + $0x3e4] sm:$0xf] %v2576_v35 }
 0x217   : > { %5538 = vmatmul.bf16.gmra.mxu3 %v12252_v10  ;;  %v16500_v57 = vadd.f32 %v5237_v63, %v16048_v41  ;;  %v2162_v52 = vrot.slane %v2160_v36, 5  ;;  %v12284_v41 = vor.u32 %v14667_v27, %v12283_v42  ;;  %v2158_v44 = vrot.slane %v2157_v6, 4  ;;  %v2653_v63 = vld [vmem:[#allocation2 + $0xb8] sm:$0xf]  ;;  %v2654_v27 = vld [vmem:[#allocation2 + $0xbc] sm:$0x1] }
 0x218   : > { %v2153_v36 = vsel %vm15616_vm9, %v2148_v21, %v2152_v33  ;;  %v2468_v42 = vrot.slane %v2317_v29, 5  ;;  %v2976_v45 = vrot.slane %v2974_v2, 4  ;;  %v2977_v31 = vshll.u32 %v2652_v5, 16 }
 0x219   : > { %v5412_v8 = vpop.f32.mrf.mxu2  ;;  %5276 = vmatmul.bf16.gmra.mxu0 %v12276_v17  ;;  %2270 = vst [vmem:[#allocation3 + $0x3b8] sm:$0xf] %v2153_v36  ;;  %v2987_v33 = vshrl.u32 %v2653_v63, 16  ;;  %v2993_v46 = vshll.u32 %v2654_v27, 16 }
 0x21a   : > { %v5323_v22 = vpop.f32.mrf.mxu1  ;;  %v5499_v10 = vpop.f32.mrf.mxu3  ;;  %v2979_v29 = vrot.slane %v2977_v31, 5 }
 0x21b   : > { %v5324_v13 = vadd.f32 %v5323_v22, %v5235_v59  ;;  %v16503_v11 = vadd.f32 %v5499_v10, %v5411_v48  ;;  %v2163_v59 = vsel %vm15616_vm9, %v2158_v44, %v2162_v52  ;;  %v2466_v48 = vsel %vm15602_vm3, %v11842_v55, %v2465_v25  ;;  %v1822_v55 = vld [vmem:[#allocation2 + $0xb4] sm:$0xf] }
 0x21c   : > { %2271 = vst [vmem:[#allocation3 + $0x3dc] sm:$0xf] %v2163_v59  ;;  %v2469_v22 = vsel %vm15602_vm3, %v2467_v51, %v2468_v42  ;;  %v12280_v10 = vor.u32 %v14662_v19, %v12277_v38  ;;  %v2989_v21 = vrot.slane %v2987_v33, 4  ;;  %v2995_v2 = vrot.slane %v2993_v46, 5  ;;  %v1823_v51 = vld [vmem:[#allocation2 + $0xb8] sm:$0xf] }
 0x21d   : > { %v5413_v17 = vadd.f32 %v5412_v8, %v5324_v13  ;;  %v2983_v8 = vshll.u32 %v2653_v63, 16  ;;  %2542 = vst [vmem:[#allocation3 + $0x3bc] sm:$0xf] %v2466_v48  ;;  %v875_v13 = vld [vmem:[#allocation2 + $0xc8] sm:$0x1]  ;;  %v12288_v44 = vor.u32 %v14663_v3, %v12285_v26  ;;  %v2980_v35 = vor.u32 %v2979_v29, %v2976_v45 }
 0x21e   : > { %5454 = vmatmul.bf16.gmra.mxu2 %v12284_v41  ;;  %v5239_v6 = vpop.f32.mrf.mxu0  ;;  %2543 = vst [vmem:[#allocation3 + $0x3e0] sm:$0xf] %v2469_v22  ;;  %v876_v5 = vsel %vm15648_vm13, %v710_v49, %v875_v13  ;;  %v12311_v38 = vld [vmem:[#allocation3 + $0x370] sm:$0xf]  ;;  %v14675_v63 = vld [vmem:[#allocation3 + $0x390] sm:$0xf0] }
 0x21f   : > { %v5240_v52 = vadd.f32 %v5239_v6, %v16069_v30  ;;  %v2985_v25 = vrot.slane %v2983_v8, 5  ;;  %877 = vst [vmem:[#allocation2 + $0xc8] sm:$0x1] %v876_v5  ;;  %v2165_v59 = vshrl.u32 %v1822_v55, 16  ;;  %v2168_v42 = vshll.u32 %v1822_v55, 16 }
 0x220   : > { %v2981_v27 = vrot.slane %v2980_v35, 4  ;;  %v2174_v4 = vshll.u32 %v1823_v51, 16  ;;  %v2178_v49 = vshrl.u32 %v1823_v51, 16  ;;  %v12312_v31 = vor.u32 %v14675_v63, %v12311_v38  ;;  %v12319_v6 = vld [vmem:[#allocation3 + $0x378] sm:$0xf] }
 0x221   : > { %v5415_v61 = vpop.f32.mrf.mxu2  ;;  %v2990_v36 = vor.u32 %v2989_v21, %v2985_v25  ;;  %v2167_v45 = vrot.slane %v2165_v59, 4  ;;  %v2170_v8 = vrot.slane %v2168_v42, 5  ;;  %v2655_v21 = vld [vmem:[#allocation2 + $0xc0] sm:$0xf]  ;;  %v14676_v5 = vld [vmem:[#allocation3 + $0x398] sm:$0xf0] }
 0x222   : > { %v5326_v41 = vpop.f32.mrf.mxu1  ;;  %v5501_v19 = vpop.f32.mrf.mxu3  ;;  %v2986_v22 = vsel %vm15616_vm9, %v2981_v27, %v2985_v25  ;;  %v2176_v33 = vrot.slane %v2174_v4, 5  ;;  %v2180_v29 = vrot.slane %v2178_v49, 4  ;;  %v2656_v51 = vld [vmem:[#allocation2 + $0xc4] sm:$0xf]  ;;  %v2318_v38 = vld [vmem:[#allocation2 + $0xb4] sm:$0xe]  ;;  %v12320_v42 = vor.u32 %v14676_v5, %v12319_v6 }
 0x223   : > { %v5327_v30 = vadd.f32 %v5326_v41, %v16500_v57  ;;  %v16517_v48 = vadd.f32 %v5501_v19, %v5413_v17  ;;  %v2991_v26 = vrot.slane %v2990_v36, 4  ;;  %v1824_v57 = vld [vmem:[#allocation2 + $0xbc] sm:$0x1]  ;;  %3103 = vst [vmem:[#allocation3 + $0x3c4] sm:$0xf] %v2986_v22  ;;  %v2171_v41 = vor.u32 %v2170_v8, %v2167_v45 }
 0x224   : > { %v2184_v13 = vshll.u32 %v1824_v57, 16  ;;  %v2181_v25 = vor.u32 %v2180_v29, %v2176_v33  ;;  %v2320_v63 = vld [vmem:[#allocation2 + $0xbc] sm:$0x1]  ;;  %v2998_v36 = vshrl.u32 %v2655_v21, 16  ;;  %v2577_v27 = vld [vmem:[#allocation2 + $0xc0] sm:$0xf] }
 0x225   : > { %5365 = vmatmul.bf16.gmra.mxu1 %v12280_v10  ;;  %v5416_v3 = vadd.f32 %v5415_v61, %v5327_v30  ;;  %v2996_v17 = vsel %vm15616_vm9, %v2991_v26, %v2995_v2  ;;  %v2319_v61 = vld [vmem:[#allocation2 + $0xb8] sm:$0xf]  ;;  %v2172_v2 = vrot.slane %v2171_v41, 4  ;;  %v11843_v4 = vrot.slane %v2318_v38, 9  ;;  %v14671_v45 = vld [vmem:[#allocation3 + $0x374] sm:$0xf] }
 0x226   : > { %v5242_v46 = vpop.f32.mrf.mxu0  ;;  %3104 = vst [vmem:[#allocation3 + $0x3e8] sm:$0xf] %v2996_v17  ;;  %v2186_v35 = vrot.slane %v2184_v13, 5  ;;  %v2472_v55 = vrot.slane %v2319_v61, 5  ;;  %v2657_v49 = vld [vmem:[#allocation2 + $0xc8] sm:$0x1] }
 0x227   : > { %5543 = vmatmul.bf16.gmra.mxu3 %v12288_v44  ;;  %v16524_v10 = vadd.f32 %v5242_v46, %v16096_v15  ;;  %v2182_v15 = vrot.slane %v2181_v25, 4  ;;  %v2177_v22 = vsel %vm15616_vm9, %v2172_v2, %v2176_v33  ;;  %v2578_v57 = vld [vmem:[#allocation2 + $0xc4] sm:$0xf]  ;;  %2609 = vst [vmem:[#allocation3 + $0x408] sm:$0xf] %v2577_v27  ;;  %v2475_v8 = vrot.slane %v2320_v63, 5 }
 0x228   : > { %v12313_v17 = vld [vmem:[#allocation3 + $0x394] sm:$0xf0]  ;;  %v14672_v29 = vld [vmem:[#allocation3 + $0x37c] sm:$0xf]  ;;  %2272 = vst [vmem:[#allocation3 + $0x400] sm:$0xf] %v2177_v22  ;;  %v2473_v6 = vsel %vm15602_vm3, %v11843_v4, %v2472_v55 }
 0x229   : > { %v5417_v30 = vpop.f32.mrf.mxu2  ;;  %5281 = vmatmul.bf16.gmra.mxu0 %v12312_v31  ;;  %v2474_v31 = vrot.slane %v2472_v55, 4  ;;  %v3000_v13 = vrot.slane %v2998_v36, 4  ;;  %v3001_v33 = vshll.u32 %v2655_v21, 16  ;;  %v3007_v5 = vshll.u32 %v2656_v51, 16  ;;  %v12321_v41 = vld [vmem:[#allocation3 + $0x39c] sm:$0xf0] }
 0x22a   : > { %v5328_v19 = vpop.f32.mrf.mxu1  ;;  %v5504_v59 = vpop.f32.mrf.mxu3  ;;  %2610 = vst [vmem:[#allocation3 + $0x42c] sm:$0xf] %v2578_v57  ;;  %v3011_v25 = vshrl.u32 %v2656_v51, 16  ;;  %v12316_v55 = vor.u32 %v14671_v45, %v12313_v17  ;;  %v12324_v63 = vor.u32 %v14672_v29, %v12321_v41  ;;  %v1825_v21 = vld [vmem:[#allocation2 + $0xc0] sm:$0xf] }
 0x22b   : > { %v5329_v44 = vadd.f32 %v5328_v19, %v5240_v52  ;;  %v16526_v26 = vadd.f32 %v5504_v59, %v5416_v3  ;;  %v2187_v52 = vsel %vm15616_vm9, %v2182_v15, %v2186_v35  ;;  %v2476_v3 = vsel %vm15602_vm3, %v2474_v31, %v2475_v8  ;;  %2544 = vst [vmem:[#allocation3 + $0x404] sm:$0xf] %v2473_v6  ;;  %v12347_v59 = vld [vmem:[#allocation3 + $0x3b8] sm:$0xf]  ;;  %v14684_v15 = vld [vmem:[#allocation3 + $0x3d8] sm:$0xf0] }
 0x22c   : > { %2273 = vst [vmem:[#allocation3 + $0x424] sm:$0xf] %v2187_v52  ;;  %v3017_v19 = vshll.u32 %v2657_v49, 16  ;;  %v3003_v35 = vrot.slane %v3001_v33, 5  ;;  %v3009_v2 = vrot.slane %v3007_v5, 5  ;;  %v3013_v38 = vrot.slane %v3011_v25, 4 }
 0x22d   : > { %v5418_v46 = vadd.f32 %v5417_v30, %v5329_v44  ;;  %2545 = vst [vmem:[#allocation3 + $0x428] sm:$0xf] %v2476_v3  ;;  %v1826_v44 = vld [vmem:[#allocation2 + $0xc4] sm:$0xf]  ;;  %v2189_v51 = vshrl.u32 %v1825_v21, 16  ;;  %v2192_v49 = vshll.u32 %v1825_v21, 16  ;;  %v12348_v52 = vor.u32 %v14684_v15, %v12347_v59 }
 0x22e   : > { %5459 = vmatmul.bf16.gmra.mxu2 %v12320_v42  ;;  %v5244_v61 = vpop.f32.mrf.mxu0  ;;  %v3004_v36 = vor.u32 %v3003_v35, %v3000_v13  ;;  %v3014_v27 = vor.u32 %v3013_v38, %v3009_v2  ;;  %v3019_v4 = vrot.slane %v3017_v19, 5  ;;  %v2198_v57 = vshll.u32 %v1826_v44, 16  ;;  %v1827_v3 = vld [vmem:[#allocation2 + $0xc8] sm:$0x1]  ;;  %v12355_v5 = vld [vmem:[#allocation3 + $0x3c0] sm:$0xf] }
 0x22f   : > { %v16537_v30 = vadd.f32 %v5244_v61, %v16144_v12  ;;  %v14769_v12 = vld [vmem:[%s18111_s1 + $0x200] sm:$0xff]  ;;  %v2202_v31 = vshrl.u32 %v1826_v44, 16  ;;  %v2191_v17 = vrot.slane %v2189_v51, 4  ;;  %v2194_v29 = vrot.slane %v2192_v49, 5  ;;  %v14685_v35 = vld [vmem:[#allocation3 + $0x3e0] sm:$0xf0] }
 0x230   : > { %v3005_v45 = vrot.slane %v3004_v36, 4  ;;  %v3015_v8 = vrot.slane %v3014_v27, 4  ;;  %5576 = vmatpush.bf16.msra.mxu0 %v14769_v12  ;;  %v2200_v13 = vrot.slane %v2198_v57, 5  ;;  %v2208_v25 = vshll.u32 %v1827_v3, 16  ;;  %v2322_v38 = vld [vmem:[#allocation2 + $0xc4] sm:$0xf] }
 0x231   : > { %v2195_v61 = vor.u32 %v2194_v29, %v2191_v17  ;;  %v2479_v36 = vrot.slane %v2322_v38, 5  ;;  %v2658_v21 = vld [vmem:[#allocation2 + $0xcc] sm:$0xf]  ;;  %v2323_v15 = vld [vmem:[#allocation2 + $0xc8] sm:$0x1] }
 0x232   : > { %v5506_v42 = vpop.f32.mrf.mxu3  ;;  %v3010_v6 = vsel %vm15616_vm9, %v3005_v45, %v3009_v2  ;;  %v3020_v41 = vsel %vm15616_vm9, %v3015_v8, %v3019_v4  ;;  %v2210_v59 = vrot.slane %v2208_v25, 5  ;;  %v3022_v27 = vshrl.u32 %v2658_v21, 16  ;;  %v2579_v51 = vld [vmem:[#allocation2 + $0xcc] sm:$0xf]  ;;  %v14680_v45 = vld [vmem:[#allocation3 + $0x3bc] sm:$0xf] }
 0x233   : > { %v16539_v22 = vadd.f32 %v5506_v42, %v5418_v46  ;;  %v2204_v46 = vrot.slane %v2202_v31, 4  ;;  %3105 = vst [vmem:[#allocation3 + $0x40c] sm:$0xf] %v3010_v6  ;;  %v2196_v2 = vrot.slane %v2195_v61, 4  ;;  %v2321_v42 = vld [vmem:[#allocation2 + $0xc0] sm:$0xe]  ;;  %v12356_v4 = vor.u32 %v14685_v35, %v12355_v5 }
 0x234   : > { %3106 = vst [vmem:[#allocation3 + $0x430] sm:$0xf] %v3020_v41  ;;  %v11844_v49 = vrot.slane %v2321_v42, 9  ;;  %v2481_v12 = vrot.slane %v2479_v36, 4  ;;  %v2482_v31 = vrot.slane %v2323_v15, 5  ;;  %v3024_v17 = vrot.slane %v3022_v27, 4 }
 0x235   : > { %5370 = vmatmul.bf16.gmra.mxu1 %v12316_v55  ;;  %v2205_v55 = vor.u32 %v2204_v46, %v2200_v13  ;;  %v2659_v8 = vld [vmem:[#allocation2 + $0xd0] sm:$0xf]  ;;  %v3025_v6 = vshll.u32 %v2658_v21, 16  ;;  %2611 = vst [vmem:[#allocation3 + $0x450] sm:$0xf] %v2579_v51 }
 0x236   : > { %v5247_v33 = vpop.f32.mrf.mxu0  ;;  %v2480_v29 = vsel %vm15602_vm3, %v11844_v49, %v2479_v36  ;;  %v3031_v3 = vshll.u32 %v2659_v8, 16  ;;  %v2483_v46 = vsel %vm15602_vm3, %v2481_v12, %v2482_v31  ;;  %v12383_v42 = vld [vmem:[#allocation3 + $0x400] sm:$0xf]  ;;  %v14693_v15 = vld [vmem:[#allocation3 + $0x420] sm:$0xf0] }
 0x237   : > { %5548 = vmatmul.bf16.gmra.mxu3 %v12324_v63  ;;  %v16549_v19 = vadd.f32 %v5247_v33, %v16172_v54  ;;  %v2206_v44 = vrot.slane %v2205_v55, 4  ;;  %v2201_v63 = vsel %vm15616_vm9, %v2196_v2, %v2200_v13  ;;  %v2580_v54 = vld [vmem:[#allocation2 + $0xd0] sm:$0xf]  ;;  %v12349_v13 = vld [vmem:[#allocation3 + $0x3dc] sm:$0xf0]  ;;  %v3035_v33 = vshrl.u32 %v2659_v8, 16 }
 0x238   : > { %2274 = vst [vmem:[#allocation3 + $0x448] sm:$0xf] %v2201_v63  ;;  %v3027_v61 = vrot.slane %v3025_v6, 5  ;;  %v3033_v25 = vrot.slane %v3031_v3, 5  ;;  %v12352_v38 = vor.u32 %v14680_v45, %v12349_v13  ;;  %v14681_v2 = vld [vmem:[#allocation3 + $0x3c4] sm:$0xf] }
 0x239   : > { %5286 = vmatmul.bf16.gmra.mxu0 %v12348_v52  ;;  %v2211_v57 = vsel %vm15616_vm9, %v2206_v44, %v2210_v59  ;;  %v2660_v52 = vld [vmem:[#allocation2 + $0xd4] sm:$0x1]  ;;  %2612 = vst [vmem:[#allocation3 + $0x474] sm:$0xf] %v2580_v54  ;;  %v3037_v55 = vrot.slane %v3035_v33, 4 }
 0x23a   : > { %2275 = vst [vmem:[#allocation3 + $0x46c] sm:$0xf] %v2211_v57  ;;  %v3041_v5 = vshll.u32 %v2660_v52, 16  ;;  %v12357_v59 = vld [vmem:[#allocation3 + $0x3e4] sm:$0xf0]  ;;  %v3028_v36 = vor.u32 %v3027_v61, %v3024_v17 }
 0x23b   : > { %2546 = vst [vmem:[#allocation3 + $0x44c] sm:$0xf] %v2480_v29  ;;  %v3038_v21 = vor.u32 %v3037_v55, %v3033_v25  ;;  %v3110_v49 = vld [vmem:[#allocation2 + $0x1c] sm:$0xf]  ;;  %v12391_v45 = vld [vmem:[#allocation3 + $0x408] sm:$0xf] }
 0x23c   : > { %2547 = vst [vmem:[#allocation3 + $0x470] sm:$0xf] %v2483_v46  ;;  %v3043_v44 = vrot.slane %v3041_v5, 5  ;;  %v3029_v27 = vrot.slane %v3028_v36, 4  ;;  %v3207_v57 = vrot.slane %v3110_v49, 5 }
 0x23d   : > { %v3039_v63 = vrot.slane %v3038_v21, 4  ;;  %v14694_v8 = vld [vmem:[#allocation3 + $0x428] sm:$0xf0]  ;;  %v3109_v17 = vld [vmem:[#allocation2 + $0x18] sm:$0xe] }
 0x23e   : > { %5464 = vmatmul.bf16.gmra.mxu2 %v12356_v4  ;;  %v5249_v41 = vpop.f32.mrf.mxu0  ;;  %v12360_v4 = vor.u32 %v14681_v2, %v12357_v59  ;;  %v3034_v51 = vsel %vm15616_vm9, %v3029_v27, %v3033_v25  ;;  %v3111_v29 = vld [vmem:[#allocation2 + $0x20] sm:$0x1]  ;;  %v11845_v52 = vrot.slane %v3109_v17, 9  ;;  %v3209_v6 = vrot.slane %v3207_v57, 4  ;;  %v14689_v5 = vld [vmem:[#allocation3 + $0x404] sm:$0xf] }
 0x23f   : > { %v16560_v35 = vadd.f32 %v5249_v41, %v16206_v53  ;;  %v12384_v53 = vor.u32 %v14693_v15, %v12383_v42  ;;  %v3044_v54 = vsel %vm15616_vm9, %v3039_v63, %v3043_v44  ;;  %3107 = vst [vmem:[#allocation3 + $0x454] sm:$0xf] %v3034_v51  ;;  %v3210_v3 = vrot.slane %v3111_v29, 5  ;;  %v12385_v41 = vld [vmem:[#allocation3 + $0x424] sm:$0xf0] }
 0x240   : > { %3108 = vst [vmem:[#allocation3 + $0x478] sm:$0xf] %v3044_v54  ;;  %v12392_v13 = vor.u32 %v14694_v8, %v12391_v45  ;;  %v3208_v46 = vsel %vm15602_vm3, %v11845_v52, %v3207_v57  ;;  %v12388_v25 = vor.u32 %v14689_v5, %v12385_v41  ;;  %v14690_v55 = vld [vmem:[#allocation3 + $0x40c] sm:$0xf]  ;;  %v12419_v2 = vld [vmem:[#allocation3 + $0x448] sm:$0xf] }
 0x241   : > { %v3211_v33 = vsel %vm15602_vm3, %v3209_v6, %v3210_v3  ;;  %3349 = vst [vmem:[#allocation3 + $0x20] sm:$0xf] %v3208_v46  ;;  %v14702_v59 = vld [vmem:[#allocation3 + $0x468] sm:$0xf0]  ;;  %v3113_v44 = vld [vmem:[#allocation2 + $0x28] sm:$0xf] }
 0x242   : > { %3350 = vst [vmem:[#allocation3 + $0x44] sm:$0xf] %v3211_v33  ;;  %v12420_v21 = vor.u32 %v14702_v59, %v12419_v2  ;;  %v12427_v15 = vld [vmem:[#allocation3 + $0x450] sm:$0xf]  ;;  %v3214_v27 = vrot.slane %v3113_v44, 5 }
 0x243   : > { %v14703_v63 = vld [vmem:[#allocation3 + $0x470] sm:$0xf0]  ;;  %v3112_v51 = vld [vmem:[#allocation2 + $0x24] sm:$0xe]  ;;  %v12421_v17 = vld [vmem:[#allocation3 + $0x46c] sm:$0xf0] }
 0x244   : > { %v3216_v54 = vrot.slane %v3214_v27, 4  ;;  %v14698_v8 = vld [vmem:[#allocation3 + $0x44c] sm:$0xf]  ;;  %v3116_v41 = vld [vmem:[#allocation2 + $0x34] sm:$0xf] }
 0x245   : > { %5375 = vmatmul.bf16.gmra.mxu1 %v12352_v38  ;;  %v12393_v38 = vld [vmem:[#allocation3 + $0x42c] sm:$0xf0]  ;;  %v12424_v52 = vor.u32 %v14698_v8, %v12421_v17  ;;  %v3117_v2 = vld [vmem:[#allocation2 + $0x38] sm:$0x1] }
 0x246   : > { %v5252_v12 = vpop.f32.mrf.mxu0  ;;  %v12396_v36 = vor.u32 %v14690_v55, %v12393_v38  ;;  %v14699_v6 = vld [vmem:[#allocation3 + $0x454] sm:$0xf]  ;;  %v3115_v38 = vld [vmem:[#allocation2 + $0x30] sm:$0xe] }
 0x247   : > { %5553 = vmatmul.bf16.gmra.mxu3 %v12360_v4  ;;  %v16567_v31 = vadd.f32 %v5252_v12, %v16228_v40  ;;  %v12428_v12 = vor.u32 %v14703_v63, %v12427_v15  ;;  %v12429_v3 = vld [vmem:[#allocation3 + $0x474] sm:$0xf0]  ;;  %v11847_v59 = vrot.slane %v3115_v38, 9 }
 0x248   : > { %v12432_v33 = vor.u32 %v14699_v6, %v12429_v3 }
 0x249   : > { %5291 = vmatmul.bf16.gmra.mxu0 %v12384_v53  ;;  %v11846_v53 = vrot.slane %v3112_v51, 9  ;;  %v14569_v46 = vld [vmem:[#allocation3 + $0x40] sm:$0xf0]  ;;  %v3119_v51 = vld [vmem:[#allocation2 + $0x40] sm:$0xf] }
 0x24b   : > { %v3215_v45 = vsel %vm15602_vm3, %v11846_v53, %v3214_v27  ;;  %v3228_v53 = vrot.slane %v3119_v51, 5  ;;  %v3124_v51 = vld [vmem:[#allocation2 + $0x54] sm:$0xe] }
 0x24c   : > { %3351 = vst [vmem:[#allocation3 + $0x68] sm:$0xf] %v3215_v45 }
 0x24e   : > { %5469 = vmatmul.bf16.gmra.mxu2 %v12392_v13  ;;  %v5254_v40 = vpop.f32.mrf.mxu0  ;;  %v11895_v13 = vld [vmem:[#allocation3 + $0x20] sm:$0xf] }
 0x24f   : > { %v16574_v61 = vadd.f32 %v5254_v40, %v16234_v37  ;;  %v3114_v37 = vld [vmem:[#allocation2 + $0x2c] sm:$0x1]  ;;  %v11896_v5 = vor.u32 %v14569_v46, %v11895_v13 }
 0x250   : > { %v3217_v49 = vrot.slane %v3114_v37, 5  ;;  %v3122_v13 = vld [vmem:[#allocation2 + $0x4c] sm:$0xf] }
 0x252   : > { %v3218_v57 = vsel %vm15602_vm3, %v3216_v54, %v3217_v49  ;;  %v3118_v49 = vld [vmem:[#allocation2 + $0x3c] sm:$0xe] }
 0x253   : > { %3352 = vst [vmem:[#allocation3 + $0x8c] sm:$0xf] %v3218_v57  ;;  %v11848_v45 = vrot.slane %v3118_v49, 9  ;;  %v3230_v57 = vrot.slane %v3228_v53, 4 }
 0x255   : > { %5380 = vmatmul.bf16.gmra.mxu1 %v12388_v25  ;;  %v3221_v25 = vrot.slane %v3116_v41, 5  ;;  %v3229_v17 = vsel %vm15602_vm3, %v11848_v45, %v3228_v53  ;;  %v3121_v41 = vld [vmem:[#allocation2 + $0x48] sm:$0xe]  ;;  %v11850_v53 = vrot.slane %v3124_v51, 9 }
 0x256   : > { %v5257_v42 = vpop.f32.mrf.mxu0  ;;  %3355 = vst [vmem:[#allocation3 + $0xf8] sm:$0xf] %v3229_v17 }
 0x257   : > { %5558 = vmatmul.bf16.gmra.mxu3 %v12396_v36  ;;  %v16577_v4 = vadd.f32 %v5257_v42, %v16249_v28  ;;  %v3224_v36 = vrot.slane %v3117_v2, 5 }
 0x259   : > { %5296 = vmatmul.bf16.gmra.mxu0 %v12420_v21  ;;  %v3222_v21 = vsel %vm15602_vm3, %v11847_v59, %v3221_v25 }
 0x25a   : > { %3353 = vst [vmem:[#allocation3 + $0xb0] sm:$0xf] %v3222_v21  ;;  %v14578_v27 = vld [vmem:[#allocation3 + $0x88] sm:$0xf0] }
 0x25e   : > { %5474 = vmatmul.bf16.gmra.mxu2 %v12428_v12  ;;  %v5259_v28 = vpop.f32.mrf.mxu0  ;;  %v3120_v12 = vld [vmem:[#allocation2 + $0x44] sm:$0x1] }
 0x25f   : > { %v16584_v29 = vadd.f32 %v5259_v28, %v16259_v24  ;;  %v3223_v24 = vrot.slane %v3221_v25, 4  ;;  %v3231_v8 = vrot.slane %v3120_v12, 5  ;;  %v11849_v25 = vrot.slane %v3121_v41, 9 }
 0x261   : > { %v3225_v44 = vsel %vm15602_vm3, %v3223_v24, %v3224_v36 }
 0x262   : > { %3354 = vst [vmem:[#allocation3 + $0xd4] sm:$0xf] %v3225_v44 }
 0x265   : > { %5385 = vmatmul.bf16.gmra.mxu1 %v12424_v52 }
 0x266   : > { %v5262_v40 = vpop.f32.mrf.mxu0 }
 0x267   : > { %5563 = vmatmul.bf16.gmra.mxu3 %v12432_v33  ;;  %v16587_v55 = vadd.f32 %v5262_v40, %v16273_v7  ;;  %v11931_v7 = vld [vmem:[#allocation3 + $0x68] sm:$0xf]  ;;  %v3235_v33 = vrot.slane %v3122_v13, 5  ;;  %v3123_v40 = vld [vmem:[#allocation2 + $0x50] sm:$0x1] }
 0x268   : > { %v11932_v63 = vor.u32 %v14578_v27, %v11931_v7  ;;  %v3238_v2 = vrot.slane %v3123_v40, 5  ;;  %v3127_v13 = vld [vmem:[#allocation2 + $0x60] sm:$0xe] }
 0x269   : > { %5577 = vmatmul.bf16.vlgmr.msra.gmra.mxu0 %v11896_v5  ;;  %v14587_v6 = vld [vmem:[#allocation3 + $0xd0] sm:$0xf0]  ;;  %v3237_v38 = vrot.slane %v3235_v33, 4  ;;  %v3236_v59 = vsel %vm15602_vm3, %v11849_v25, %v3235_v33  ;;  %v11851_v33 = vrot.slane %v3127_v13, 9 }
 0x26a   : > { %3357 = vst [vmem:[#allocation3 + $0x140] sm:$0xf] %v3236_v59 }
 0x26e   : > { %v5264_v42 = vpop.f32.mrf.mxu0 }
 0x26f   : > { %v16594_v15 = vadd.f32 %v5264_v42, %v16280_v16  ;;  %v3232_v16 = vsel %vm15602_vm3, %v3230_v57, %v3231_v8  ;;  %v3125_v42 = vld [vmem:[#allocation2 + $0x58] sm:$0xf] }
 0x270   : > { %3356 = vst [vmem:[#allocation3 + $0x11c] sm:$0xf] %v3232_v16  ;;  %v3242_v27 = vrot.slane %v3125_v42, 5 }
 0x272   : > { %v3244_v49 = vrot.slane %v3242_v27, 4  ;;  %v3243_v45 = vsel %vm15602_vm3, %v11850_v53, %v3242_v27  ;;  %v18135_v27 = vld [vmem:[#allocation16_spill] sm:$0xff]  ;;  %v3132_v53 = vld [vmem:[#allocation2 + $0x74] sm:$0x1] }
 0x273   : > { %3359 = vst [vmem:[#allocation3 + $0x188] sm:$0xf] %v3243_v45  ;;  %v3259_v45 = vrot.slane %v3132_v53, 5  ;;  %v5420_v53 = vpop.f32.mrf.mxu2 }
 0x276   : > { %v5267_v37 = vpop.f32.mrf.mxu0 }
 0x277   : > { %v16597_v54 = vadd.f32 %v5267_v37, %v16291_v20  ;;  %v11967_v20 = vld [vmem:[#allocation3 + $0xb0] sm:$0xf]  ;;  %v14596_v21 = vld [vmem:[#allocation3 + $0x118] sm:$0xf0]  ;;  %v3126_v37 = vld [vmem:[#allocation2 + $0x5c] sm:$0x1] }
 0x278   : > { %v11968_v3 = vor.u32 %v14587_v6, %v11967_v20  ;;  %v3245_v12 = vrot.slane %v3126_v37, 5  ;;  %v3130_v37 = vld [vmem:[#allocation2 + $0x6c] sm:$0xe] }
 0x279   : > { %5582 = vmatmul.bf16.gmra.mxu0 %v11932_v63 }
 0x27e   : > { %v5269_v28 = vpop.f32.mrf.mxu0 }
 0x27f   : > { %v16604_v52 = vadd.f32 %v5269_v28, %v16305_v23  ;;  %v3239_v23 = vsel %vm15602_vm3, %v3237_v38, %v3238_v2  ;;  %v3128_v28 = vld [vmem:[#allocation2 + $0x64] sm:$0xf]  ;;  %v14828_v38 = vld [vmem:[%s18113_s3 + $0x78] sm:$0xff] }
 0x280   : > { %3358 = vst [vmem:[#allocation3 + $0x164] sm:$0xf] %v3239_v23  ;;  %v3249_v6 = vrot.slane %v3128_v28, 5  ;;  %v14820_v2 = vld [vmem:[%s18113_s3 + $0x38] sm:$0xff]  ;;  %8451 = vmatpush.bf16.msra.mxu2 %v14828_v38 }
 0x281   : > { %8422 = vmatpush.bf16.msra.mxu1 %v14820_v2 }
 0x282   : > { %v3251_v41 = vrot.slane %v3249_v6, 4  ;;  %v3250_v25 = vsel %vm15602_vm3, %v11851_v33, %v3249_v6  ;;  %v3134_v6 = vld [vmem:[#allocation2 + $0x7c] sm:$0xf] }
 0x283   : > { %3361 = vst [vmem:[#allocation3 + $0x1d0] sm:$0xf] %v3250_v25  ;;  %v18139_v33 = vld [vmem:[#allocation18_spill] sm:$0xff] }
 0x284   : > { %v3135_v25 = vld [vmem:[#allocation2 + $0x80] sm:$0x1] }
 0x286   : > { %v5272_v46 = vpop.f32.mrf.mxu0 }
 0x287   : > { %v16607_v5 = vadd.f32 %v5272_v46, %v16320_v1  ;;  %v12003_v1 = vld [vmem:[#allocation3 + $0xf8] sm:$0xf]  ;;  %v14605_v17 = vld [vmem:[#allocation3 + $0x160] sm:$0xf0]  ;;  %v3129_v46 = vld [vmem:[#allocation2 + $0x68] sm:$0x1] }
 0x288   : > { %v12004_v44 = vor.u32 %v14596_v21, %v12003_v1  ;;  %v3252_v40 = vrot.slane %v3129_v46, 5  ;;  %v3263_v46 = vrot.slane %v3134_v6, 5 }
 0x289   : > { %5587 = vmatmul.bf16.gmra.mxu0 %v11968_v3 }
 0x28a   : > { %v3265_v38 = vrot.slane %v3263_v46, 4 }
 0x28e   : > { %v5274_v24 = vpop.f32.mrf.mxu0 }
 0x28f   : > { %v16614_v36 = vadd.f32 %v5274_v24, %v16333_v32  ;;  %v3246_v32 = vsel %vm15602_vm3, %v3244_v49, %v3245_v12  ;;  %v12075_v24 = vld [vmem:[#allocation3 + $0x188] sm:$0xf]  ;;  %v11852_v49 = vrot.slane %v3130_v37, 9 }
 0x290   : > { %3360 = vst [vmem:[#allocation3 + $0x1ac] sm:$0xf] %v3246_v32 }
 0x296   : > { %v5277_v7 = vpop.f32.mrf.mxu0 }
 0x297   : > { %v16617_v63 = vadd.f32 %v5277_v7, %v16340_v50  ;;  %v12039_v50 = vld [vmem:[#allocation3 + $0x140] sm:$0xf]  ;;  %v14614_v1 = vld [vmem:[#allocation3 + $0x1a8] sm:$0xf0] }
 0x298   : > { %v12040_v16 = vor.u32 %v14605_v17, %v12039_v50  ;;  %v12076_v21 = vor.u32 %v14614_v1, %v12075_v24  ;;  %v18137_v50 = vld [vmem:[#allocation17_spill] sm:$0xff] }
 0x299   : > { %5592 = vmatmul.bf16.gmra.mxu0 %v12004_v44  ;;  %v3131_v44 = vld [vmem:[#allocation2 + $0x70] sm:$0xf] }
 0x29a   : > { %v3256_v7 = vrot.slane %v3131_v44, 5  ;;  %v14827_v24 = vld [vmem:[%s18113_s3 + $0x70] sm:$0xff]  ;;  %v5331_v44 = vpop.f32.mrf.mxu1 }
 0x29b   : > { %v14835_v1 = vld [vmem:[%s18113_s3 + $0xb0] sm:$0xff]  ;;  %8452 = vmatpush.bf16.msra.mxu2 %v14827_v24 }
 0x29c   : > { %v3258_v12 = vrot.slane %v3256_v7, 4  ;;  %v3257_v32 = vsel %vm15602_vm3, %v11852_v49, %v3256_v7 }
 0x29d   : > { %3363 = vst [vmem:[#allocation3 + $0x218] sm:$0xf] %v3257_v32 }
 0x29e   : > { %v5279_v57 = vpop.f32.mrf.mxu0 }
 0x29f   : > { %v16624_v8 = vadd.f32 %v5279_v57, %v16353_v43  ;;  %v3253_v43 = vsel %vm15602_vm3, %v3251_v41, %v3252_v40  ;;  %v3133_v40 = vld [vmem:[#allocation2 + $0x78] sm:$0xe] }
 0x2a0   : > { %3362 = vst [vmem:[#allocation3 + $0x1f4] sm:$0xf] %v3253_v43  ;;  %v11853_v43 = vrot.slane %v3133_v40, 9 }
 0x2a2   : > { %v3264_v2 = vsel %vm15602_vm3, %v11853_v43, %v3263_v46 }
 0x2a3   : > { %3365 = vst [vmem:[#allocation3 + $0x260] sm:$0xf] %v3264_v2 }
 0x2a6   : > { %v5282_v20 = vpop.f32.mrf.mxu0 }
 0x2a7   : > { %v16627_v3 = vadd.f32 %v5282_v20, %v16363_v47  ;;  %v14836_v47 = vld [vmem:[%s18113_s3 + $0xb8] sm:$0xff]  ;;  %v14623_v28 = vld [vmem:[#allocation3 + $0x1f0] sm:$0xf0] }
 0x2a8   : > { %8480 = vmatpush.bf16.msra.mxu3 %v14836_v47  ;;  %v3266_v47 = vrot.slane %v3135_v25, 5 }
 0x2a9   : > { %5597 = vmatmul.bf16.gmra.mxu0 %v12040_v16  ;;  %v12111_v16 = vld [vmem:[#allocation3 + $0x1d0] sm:$0xf] }
 0x2aa   : > { %v12112_v20 = vor.u32 %v14623_v28, %v12111_v16  ;;  %v3136_v16 = vld [vmem:[#allocation2 + $0x84] sm:$0xe]  ;;  %v3138_v28 = vld [vmem:[#allocation2 + $0x8c] sm:$0x1] }
 0x2ac   : > { %8481 = vmatpush.bf16.msra.mxu3 %v14835_v1 }
 0x2ae   : > { %v5284_v59 = vpop.f32.mrf.mxu0 }
 0x2af   : > { %v16643_v23 = vadd.f32 %v5284_v59, %v16374_v60  ;;  %v3260_v60 = vsel %vm15602_vm3, %v3258_v12, %v3259_v45  ;;  %v3267_v59 = vsel %vm15602_vm3, %v3265_v38, %v3266_v47  ;;  %v3137_v12 = vld [vmem:[#allocation2 + $0x88] sm:$0xf]  ;;  %v12183_v38 = vld [vmem:[#allocation3 + $0x260] sm:$0xf] }
 0x2b0   : > { %3364 = vst [vmem:[#allocation3 + $0x23c] sm:$0xf] %v3260_v60  ;;  %v3270_v32 = vrot.slane %v3137_v12, 5  ;;  %v16674_v60 = vpop.f32.mrf.mxu3 }
 0x2b1   : > { %3366 = vst [vmem:[#allocation3 + $0x284] sm:$0xf] %v3267_v59  ;;  %v3140_v59 = vld [vmem:[#allocation2 + $0x94] sm:$0xf] }
 0x2b2   : > { %v3272_v6 = vrot.slane %v3270_v32, 4  ;;  %v3277_v1 = vrot.slane %v3140_v59, 5 }
 0x2b6   : > { %v5287_v42 = vpop.f32.mrf.mxu0 }
 0x2b7   : > { %v16646_v51 = vadd.f32 %v5287_v42, %v18135_v27  ;;  %v12147_v27 = vld [vmem:[#allocation3 + $0x218] sm:$0xf]  ;;  %v14632_v37 = vld [vmem:[#allocation3 + $0x238] sm:$0xf0] }
 0x2b8   : > { %v12148_v49 = vor.u32 %v14632_v37, %v12147_v27  ;;  %v14641_v47 = vld [vmem:[#allocation3 + $0x280] sm:$0xf0]  ;;  %v3141_v27 = vld [vmem:[#allocation2 + $0x98] sm:$0x1] }
 0x2b9   : > { %18136 = vst [vmem:[#allocation16_spill] sm:$0xff] %v16646_v51  ;;  %5602 = vmatmul.bf16.gmra.mxu0 %v12076_v21  ;;  %v14819_v21 = vld [vmem:[%s18113_s3 + $0x30] sm:$0xff]  ;;  %v12184_v2 = vor.u32 %v14641_v47, %v12183_v38  ;;  %v3280_v12 = vrot.slane %v3141_v27, 5 }
 0x2ba   : > { %8423 = vmatpush.bf16.msra.mxu1 %v14819_v21 }
 0x2be   : > { %v5289_v57 = vpop.f32.mrf.mxu0 }
 0x2bf   : > { %v16653_v17 = vadd.f32 %v5289_v57, %v18137_v50  ;;  %v5333_v57 = vpop.f32.mrf.mxu1 }
 0x2c1   : > { %18138 = vst [vmem:[#allocation17_spill] sm:$0xff] %v16653_v17 }
 0x2c6   : > { %v5292_v13 = vpop.f32.mrf.mxu0 }
 0x2c7   : > { %v16656_v41 = vadd.f32 %v5292_v13, %v18139_v33  ;;  %v3273_v13 = vrot.slane %v3138_v28, 5  ;;  %v5422_v33 = vpop.f32.mrf.mxu2  ;;  %v5336_v43 = vpop.f32.mrf.mxu1 }
 0x2c9   : > { %18140 = vst [vmem:[#allocation18_spill] sm:$0xff] %v16656_v41  ;;  %5607 = vmatmul.bf16.gmra.mxu0 %v12112_v20  ;;  %v11854_v20 = vrot.slane %v3136_v16, 9  ;;  %v3274_v46 = vsel %vm15602_vm3, %v3272_v6, %v3273_v13  ;;  %v5332_v13 = vadd.f32 %v5331_v44, %v16524_v10 }
 0x2ca   : > { %3368 = vst [vmem:[#allocation3 + $0x2cc] sm:$0xf] %v3274_v46 }
 0x2ce   : > { %v5294_v42 = vpop.f32.mrf.mxu0 }
 0x2cf   : > { %v16672_v7 = vadd.f32 %v5294_v42, %v16419_v62  ;;  %v3271_v62 = vsel %vm15602_vm3, %v11854_v20, %v3270_v32  ;;  %v5425_v21 = vpop.f32.mrf.mxu2  ;;  %v3139_v42 = vld [vmem:[#allocation2 + $0x90] sm:$0xe]  ;;  %v5338_v28 = vpop.f32.mrf.mxu1 }
 0x2d0   : > { %3367 = vst [vmem:[#allocation3 + $0x2a8] sm:$0xf] %v3271_v62  ;;  %v11855_v37 = vrot.slane %v3139_v42, 9  ;;  %v5334_v62 = vadd.f32 %v5333_v57, %v16537_v30 }
 0x2d1   : > { %18141 = vst [vmem:[#allocation19_spill] sm:$0xff] %v16672_v7  ;;  %v14650_v59 = vld [vmem:[#allocation3 + $0x2c8] sm:$0xf0] }
 0x2d6   : > { %v5297_v45 = vpop.f32.mrf.mxu0 }
 0x2d7   : > { %v16677_v50 = vadd.f32 %v5297_v45, %v16434_v14  ;;  %v5511_v14 = vpop.f32.mrf.mxu3  ;;  %v5427_v46 = vpop.f32.mrf.mxu2 }
 0x2d8   : > { %v5341_v44 = vpop.f32.mrf.mxu1 }
 0x2d9   : > { %18142 = vst [vmem:[#allocation20_spill] sm:$0xff] %v16677_v50  ;;  %5612 = vmatmul.bf16.gmra.mxu0 %v12148_v49  ;;  %v3279_v49 = vrot.slane %v3277_v1, 4 }
 0x2db   : > { %v3281_v32 = vsel %vm15602_vm3, %v3279_v49, %v3280_v12 }
 0x2dc   : > { %3370 = vst [vmem:[#allocation3 + $0x314] sm:$0xf] %v3281_v32  ;;  %v14834_v32 = vld [vmem:[%s18113_s3 + $0xa8] sm:$0xff] }
 0x2dd   : > { %8482 = vmatpush.bf16.msra.mxu3 %v14834_v32 }
 0x2de   : > { %v5299_v40 = vpop.f32.mrf.mxu0 }
 0x2df   : > { %v16684_v25 = vadd.f32 %v5299_v40, %v16447_v34  ;;  %v3278_v34 = vsel %vm15602_vm3, %v11855_v37, %v3277_v1  ;;  %v5514_v16 = vpop.f32.mrf.mxu3  ;;  %v5339_v40 = vadd.f32 %v5338_v28, %v16560_v35  ;;  %v5423_v1 = vadd.f32 %v5422_v33, %v5334_v62  ;;  %v3144_v62 = vld [vmem:[#allocation2 + $0xa4] sm:$0x1] }
 0x2e0   : > { %3369 = vst [vmem:[#allocation3 + $0x2f0] sm:$0xf] %v3278_v34  ;;  %v14826_v34 = vld [vmem:[%s18113_s3 + $0x68] sm:$0xff] }
 0x2e1   : > { %18143 = vst [vmem:[#allocation21_spill] sm:$0xff] %v16684_v25  ;;  %v5428_v37 = vadd.f32 %v5427_v46, %v5339_v40  ;;  %v16707_v33 = vadd.f32 %v5511_v14, %v5423_v1  ;;  %8453 = vmatpush.bf16.msra.mxu2 %v14826_v34 }
 0x2e6   : > { %v5578_v24 = vpop.f32.mrf.mxu0 }
 0x2e7   : > { %v5579_v45 = vadd.f32 %v5578_v24, %v16462_v56  ;;  %v5337_v56 = vadd.f32 %v5336_v43, %v16549_v19  ;;  %v5421_v24 = vadd.f32 %v5420_v53, %v5332_v13  ;;  %v5516_v30 = vpop.f32.mrf.mxu3  ;;  %v3143_v19 = vld [vmem:[#allocation2 + $0xa0] sm:$0xf]  ;;  %v3142_v13 = vld [vmem:[#allocation2 + $0x9c] sm:$0xe] }
 0x2e8   : > { %v3284_v12 = vrot.slane %v3143_v19, 5  ;;  %v16733_v19 = vld [vmem:[#allocation3 + $0x2f0] sm:$0xf] }
 0x2e9   : > { %5617 = vmatmul.bf16.gmra.mxu0 %v12184_v2  ;;  %v16691_v20 = vmax.f32 %v5579_v45, 0.0  ;;  %v12219_v2 = vld [vmem:[#allocation3 + $0x2a8] sm:$0xf]  ;;  %v5426_v27 = vadd.f32 %v5425_v21, %v5337_v56  ;;  %v16705_v53 = vadd.f32 %v16674_v60, %v5421_v24  ;;  %v16721_v60 = vadd.f32 %v5341_v44, %v16567_v31 }
 0x2ea   : > { %v12220_v57 = vor.u32 %v14650_v59, %v12219_v2  ;;  %v11856_v56 = vrot.slane %v3142_v13, 9  ;;  %v3286_v40 = vrot.slane %v3284_v12, 4  ;;  %v14817_v24 = vld [vmem:[%s18113_s3 + $0x20] sm:$0xff] }
 0x2eb   : > { %v5722_v38 = vrot.slane %v16691_v20, 2  ;;  %v5723_v42 = vrot.slane %v16691_v20, 4  ;;  %v5724_v10 = vrot.slane %v16691_v20, 6  ;;  %v12725_v35 = vrot.slane %v16691_v20, 9 }
 0x2ec   : > { %v16716_v28 = vadd.f32 %v5514_v16, %v5426_v27 }
 0x2ed   : > { %v12726_v43 = vrot.slane %v5722_v38, 9  ;;  %v12727_v21 = vrot.slane %v5723_v42, 9  ;;  %v12728_v14 = vrot.slane %v5724_v10, 9  ;;  %v6298_v16 = vmax.f32 %v16691_v20, %v12725_v35  ;;  %v16735_v20 = vld [vmem:[#allocation3 + $0x310] sm:$0xf0] }
 0x2ee   : > { %v5580_v6 = vpop.f32.mrf.mxu0 }
 0x2ef   : > { %v5581_v47 = vadd.f32 %v5580_v6, %v16472_v0  ;;  %v16718_v6 = vadd.f32 %v5516_v30, %v5428_v37  ;;  %v6299_v2 = vmax.f32 %v5722_v38, %v12726_v43  ;;  %v6300_v44 = vmax.f32 %v5723_v42, %v12727_v21  ;;  %v16741_v43 = vpop.f32.mrf.mxu2 }
 0x2f0   : > { %v3285_v38 = vsel %vm15602_vm3, %v11856_v56, %v3284_v12  ;;  %v6301_v42 = vmax.f32 %v5724_v10, %v12728_v14  ;;  %v16744_v12 = vpop.f32.mrf.mxu1  ;;  %v12256_v10 = vor.u32 %v16735_v20, %v16733_v19 }
 0x2f1   : > { %v16702_v49 = vmax.f32 %v5581_v47, 0.0  ;;  %v3287_v47 = vrot.slane %v3144_v62, 5  ;;  %3371 = vst [vmem:[#allocation3 + $0x338] sm:$0xf] %v3285_v38 }
 0x2f3   : > { %v5725_v59 = vrot.slane %v16702_v49, 2  ;;  %v5726_v31 = vrot.slane %v16702_v49, 4  ;;  %v3288_v35 = vsel %vm15602_vm3, %v3286_v40, %v3287_v47  ;;  %v12729_v21 = vrot.slane %v16702_v49, 9 }
 0x2f4   : > { %3372 = vst [vmem:[#allocation3 + $0x35c] sm:$0xf] %v3288_v35 }
 0x2f5   : > { %v12731_v13 = vrot.slane %v5726_v31, 9 }
 0x2f6   : > { %v5583_v0 = vpop.f32.mrf.mxu0 }
 0x2f7   : > { %v5584_v45 = vadd.f32 %v5583_v0, %v16481_v58  ;;  %v14818_v58 = vld [vmem:[%s18113_s3 + $0x28] sm:$0xff]  ;;  %v6304_v41 = vmax.f32 %v5726_v31, %v12731_v13  ;;  %v5432_v13 = vpop.f32.mrf.mxu2 }
 0x2f8   : > { %8424 = vmatpush.bf16.msra.mxu1 %v14818_v58  ;;  %v12730_v58 = vrot.slane %v5725_v59, 9 }
 0x2f9   : > { %v5660_v46 = vmax.f32 %v5584_v45, 0.0  ;;  %5622 = vmatmul.bf16.gmra.mxu0 %v12220_v57  ;;  %v5727_v57 = vrot.slane %v16702_v49, 6 }
 0x2fa   : > { %v6303_v35 = vmax.f32 %v5725_v59, %v12730_v58 }
 0x2fb   : > { %v5728_v1 = vrot.slane %v5660_v46, 2  ;;  %v5729_v27 = vrot.slane %v5660_v46, 4  ;;  %v5730_v37 = vrot.slane %v5660_v46, 6  ;;  %v12733_v30 = vrot.slane %v5660_v46, 9 }
 0x2fc   : > { %8425 = vmatpush.bf16.msra.mxu1 %v14817_v24  ;;  %v12732_v50 = vrot.slane %v5727_v57, 9  ;;  %v6302_v24 = vmax.f32 %v16702_v49, %v12729_v21 }
 0x2fd   : > { %v12734_v0 = vrot.slane %v5728_v1, 9  ;;  %v12735_v45 = vrot.slane %v5729_v27, 9  ;;  %v12736_v34 = vrot.slane %v5730_v37, 9  ;;  %v6306_v32 = vmax.f32 %v5660_v46, %v12733_v30 }
 0x2fe   : > { %v5585_v62 = vpop.f32.mrf.mxu0  ;;  %v6305_v49 = vmax.f32 %v5727_v57, %v12732_v50  ;;  %v14815_v50 = vld [vmem:[%s18113_s3 + $0x10] sm:$0xff] }
 0x2ff   : > { %v6307_v56 = vmax.f32 %v5728_v1, %v12734_v0  ;;  %v6308_v40 = vmax.f32 %v5729_v27, %v12735_v45  ;;  %v6309_v47 = vmax.f32 %v5730_v37, %v12736_v34  ;;  %v6426_v25 = vmax.f32 %v6298_v16, %v6306_v32  ;;  %v14833_v16 = vld [vmem:[%s18113_s3 + $0xa0] sm:$0xff] }
 0x300   : > { %v5586_v46 = vadd.f32 %v5585_v62, %v16490_v39  ;;  %8483 = vmatpush.bf16.msra.mxu3 %v14833_v16 }
 0x301   : > { %v6427_v14 = vmax.f32 %v6299_v2, %v6307_v56  ;;  %v6428_v30 = vmax.f32 %v6300_v44, %v6308_v40  ;;  %v6429_v38 = vmax.f32 %v6301_v42, %v6309_v47  ;;  %v6510_v7 = vpack.c.bf16 %v6426_v25, %v6426_v25  ;;  %v14816_v2 = vld [vmem:[%s18113_s3 + $0x18] sm:$0xff] }
 0x302   : > { %v5661_v1 = vmax.f32 %v5586_v46, 0.0  ;;  %8426 = vmatpush.bf16.msra.mxu1 %v14816_v2 }
 0x303   : > { %v6511_v27 = vpack.c.bf16 %v6427_v14, %v6427_v14  ;;  %v6512_v37 = vpack.c.bf16 %v6428_v30, %v6428_v30  ;;  %v6513_v0 = vpack.c.bf16 %v6429_v38, %v6429_v38  ;;  %v6638_v39 = vunpack.c.l.b16 %v6510_v7  ;;  %v14832_v7 = vld [vmem:[%s18113_s3 + $0x98] sm:$0xff]  ;;  %v14825_v38 = vld [vmem:[%s18113_s3 + $0x60] sm:$0xff] }
 0x304   : > { %v5731_v44 = vrot.slane %v5661_v1, 2  ;;  %v5732_v19 = vrot.slane %v5661_v1, 4  ;;  %v5733_v25 = vrot.slane %v5661_v1, 6  ;;  %v12737_v20 = vrot.slane %v5661_v1, 9  ;;  %8484 = vmatpush.bf16.msra.mxu3 %v14832_v7  ;;  %8454 = vmatpush.bf16.msra.mxu2 %v14825_v38 }
 0x305   : > { %v6639_v59 = vunpack.c.l.b16 %v6511_v27  ;;  %v6640_v31 = vunpack.c.l.b16 %v6512_v37  ;;  %v6641_v45 = vunpack.c.l.b16 %v6513_v0  ;;  %v6702_v62 = vrot.slane %v6638_v39, 7  ;;  %v16769_v37 = vpop.f32.mrf.mxu3 }
 0x306   : > { %v12738_v34 = vrot.slane %v5731_v44, 9  ;;  %v12739_v32 = vrot.slane %v5732_v19, 9  ;;  %v12740_v42 = vrot.slane %v5733_v25, 9  ;;  %v6310_v21 = vmax.f32 %v5661_v1, %v12737_v20  ;;  %v5588_v58 = vpop.f32.mrf.mxu0  ;;  %v16766_v1 = vpop.f32.mrf.mxu1  ;;  %8427 = vmatpush.bf16.msra.mxu1 %v14815_v50 }
 0x307   : > { %v6703_v56 = vrot.slane %v6639_v59, 6  ;;  %v6706_v40 = vrot.slane %v6640_v31, 5  ;;  %v5589_v47 = vadd.f32 %v5588_v58, %v16503_v11  ;;  %v6709_v27 = vrot.slane %v6641_v45, 4  ;;  %v6897_v11 = vld [vmem:[#allocation4] sm:$0xf] }
 0x308   : > { %v6311_v57 = vmax.f32 %v5731_v44, %v12738_v34  ;;  %v6312_v46 = vmax.f32 %v5732_v19, %v12739_v32  ;;  %v6313_v14 = vmax.f32 %v5733_v25, %v12740_v42  ;;  %v6430_v30 = vmax.f32 %v6302_v24, %v6310_v21  ;;  %v14831_v44 = vld [vmem:[%s18113_s3 + $0x90] sm:$0xff]  ;;  %6905 = vst [vmem:[#allocation5] sm:$0xf] %v6897_v11  ;;  %v6852_v34 = vld [vmem:[#allocation4 + $0xc] sm:$0x1] }
 0x309   : > { %v6705_v16 = vsel %vm6704_vm14, %v6703_v56, %v6702_v62  ;;  %5627 = vmatmul.bf16.gmra.mxu0 %v12256_v10  ;;  %v16777_v19 = vadd.f32 %v16741_v43, %v16721_v60  ;;  %v16780_v20 = vmax.f32 %v5589_v47, 0.0  ;;  %8485 = vmatpush.bf16.msra.mxu3 %v14831_v44  ;;  %v14824_v60 = vld [vmem:[%s18113_s3 + $0x58] sm:$0xff]  ;;  %v5344_v43 = vadd.f32 %v16744_v12, %v16574_v61  ;;  %v3146_v32 = vld [vmem:[#allocation2 + $0xac] sm:$0xf]  ;;  %v3147_v56 = vld [vmem:[#allocation2 + $0xb0] sm:$0x1] }
 0x30a   : > { %v6708_v0 = vsel %vm6707_vm15, %v6706_v40, %v6705_v16  ;;  %v6431_v24 = vmax.f32 %v6303_v35, %v6311_v57  ;;  %v6432_v39 = vmax.f32 %v6304_v41, %v6312_v46  ;;  %v6433_v2 = vmax.f32 %v6305_v49, %v6313_v14  ;;  %v14814_v35 = vld [vmem:[%s18113_s3 + $0x8] sm:$0xff]  ;;  %8455 = vmatpush.bf16.msra.mxu2 %v14824_v60  ;;  %v7057_v47 = vld [vmem:[#allocation4] sm:$0xe]  ;;  %v14813_v14 = vld [vmem:[%s18113_s3] sm:$0xff] }
 0x30b   : > { %v6711_v10 = vsel %vm6710_vm0, %v6709_v27, %v6708_v0  ;;  %v6514_v25 = vpack.c.bf16 %v6430_v30, %v6430_v30  ;;  %v3145_v41 = vld [vmem:[#allocation2 + $0xa8] sm:$0xe]  ;;  %8428 = vmatpush.bf16.msra.mxu1 %v14814_v35  ;;  %v5433_v50 = vadd.f32 %v5432_v13, %v5344_v43  ;;  %v5734_v57 = vrot.slane %v16780_v20, 2  ;;  %v7058_v30 = vld [vmem:[#allocation4 + $0x4] sm:$0x1]  ;;  %v14823_v11 = vld [vmem:[%s18113_s3 + $0x50] sm:$0xff]  ;;  %v5435_v0 = vpop.f32.mrf.mxu2 }
 0x30c   : > { %v6515_v49 = vpack.c.bf16 %v6431_v24, %v6431_v24  ;;  %v6516_v59 = vpack.c.bf16 %v6432_v39, %v6432_v39  ;;  %v6517_v31 = vpack.c.bf16 %v6433_v2, %v6433_v2  ;;  %v14830_v62 = vld [vmem:[%s18113_s3 + $0x88] sm:$0xff]  ;;  %v11857_v40 = vrot.slane %v3145_v41, 9  ;;  %v12291_v2 = vld [vmem:[#allocation3 + $0x338] sm:$0xf]  ;;  %v6913_v35 = vld [vmem:[#allocation4] sm:$0xf] }
 0x30d   : > { %v6642_v45 = vunpack.c.l.b16 %v6514_v25  ;;  %v5735_v46 = vrot.slane %v16780_v20, 4  ;;  %v5736_v13 = vrot.slane %v16780_v20, 6  ;;  %8486 = vmatpush.bf16.msra.mxu3 %v14830_v62  ;;  %v3291_v44 = vrot.slane %v3146_v32, 5  ;;  %v6847_v32 = vld [vmem:[#allocation4 + $0x8] sm:$0xf]  ;;  %v14822_v62 = vld [vmem:[%s18113_s3 + $0x48] sm:$0xff] }
 0x30e   : > { %v6643_v42 = vunpack.c.l.b16 %v6515_v49  ;;  %v6644_v21 = vunpack.c.l.b16 %v6516_v59  ;;  %v6645_v58 = vunpack.c.l.b16 %v6517_v31  ;;  %v5590_v7 = vpop.f32.mrf.mxu0  ;;  %v3294_v25 = vrot.slane %v3147_v56, 5  ;;  %v14668_v59 = vld [vmem:[#allocation3 + $0x358] sm:$0xf0]  ;;  %8456 = vmatpush.bf16.msra.mxu2 %v14823_v11  ;;  %v14829_v31 = vld [vmem:[%s18113_s3 + $0x80] sm:$0xff]  ;;  %v5348_v43 = vpop.f32.mrf.mxu1 }
 0x30f   : > { %v6712_v61 = vrot.slane %v6642_v45, 3  ;;  %v5591_v39 = vadd.f32 %v5590_v7, %v16517_v48  ;;  %8429 = vmatpush.bf16.msra.mxu1 %v14813_v14  ;;  %v12853_v60 = vrot.slane %v7057_v47, 9  ;;  %v6930_v47 = vshrl.u32 %v6913_v35, 16  ;;  %v14874_v45 = vld [vmem:[%s18113_s3 + $0x1e8] sm:$0xff] }
 0x310   : > { %v6715_v38 = vrot.slane %v6643_v42, 2  ;;  %v6718_v16 = vrot.slane %v6644_v21, 1  ;;  %v6813_v27 = vpack.c.b16 %v6645_v58, %v6645_v58  ;;  %v3292_v42 = vsel %vm15602_vm3, %v11857_v40, %v3291_v44  ;;  %v5521_v58 = vpop.f32.mrf.mxu3 }
 0x311   : > { %v6714_v24 = vsel %vm6713_vm1, %v6712_v61, %v6711_v10  ;;  %v7091_v10 = vrot.slane %v7058_v30, 5  ;;  %v3293_v21 = vrot.slane %v3291_v44, 4  ;;  %8487 = vmatpush.bf16.msra.mxu3 %v14829_v31  ;;  %3373 = vst [vmem:[#allocation3 + $0x380] sm:$0xf] %v3292_v42  ;;  %v6933_v61 = vshll.u32 %v6913_v35, 16 }
 0x312   : > { %v6717_v41 = vsel %vm6716_vm4, %v6715_v38, %v6714_v24  ;;  %v6853_v49 = vsel %vm16795_vm10, %v6813_v27, %v6852_v34  ;;  %v16823_v34 = vmax.f32 %v5591_v39, 0.0  ;;  %v5347_v14 = vadd.f32 %v16766_v1, %v16577_v4  ;;  %8457 = vmatpush.bf16.msra.mxu2 %v14822_v62 }
 0x313   : > { %v6720_v48 = vsel %vm6719_vm6, %v6718_v16, %v6717_v41  ;;  %6854 = vst [vmem:[#allocation4 + $0xc] sm:$0x1] %v6853_v49  ;;  %v7092_v56 = vsel %vm15602_vm3, %v12853_v60, %v7091_v10  ;;  %v12741_v30 = vrot.slane %v16780_v20, 9  ;;  %v12742_v40 = vrot.slane %v5734_v57, 9  ;;  %v6914_v16 = vld [vmem:[#allocation4 + $0x4] sm:$0x1] }
 0x314   : > { %v6812_v7 = vpack.c.b16 %v6720_v48, %v6720_v48  ;;  %v12292_v38 = vor.u32 %v14668_v59, %v12291_v2  ;;  %7129 = vst [vmem:[#allocation5 + $0x8] sm:$0xf] %v7092_v56  ;;  %v3295_v24 = vsel %vm15602_vm3, %v3293_v21, %v3294_v25  ;;  %v6932_v39 = vrot.slane %v6930_v47, 4  ;;  %v14821_v25 = vld [vmem:[%s18113_s3 + $0x40] sm:$0xff] }
 0x315   : > { %v6935_v44 = vrot.slane %v6933_v61, 5  ;;  %v16843_v4 = vadd.f32 %v16769_v37, %v16777_v19  ;;  %v16845_v1 = vadd.f32 %v5521_v58, %v5433_v50  ;;  %v5737_v2 = vrot.slane %v16823_v34, 2  ;;  %3374 = vst [vmem:[#allocation3 + $0x3a4] sm:$0xf] %v3295_v24 }
 0x316   : > { %v6848_v27 = vsel %vm16819_vm2, %v6812_v7, %v6847_v32  ;;  %v5593_v11 = vpop.f32.mrf.mxu0  ;;  %v5738_v35 = vrot.slane %v16823_v34, 4  ;;  %v16849_v41 = vadd.f32 %v5435_v0, %v5347_v14  ;;  %v6939_v31 = vshll.u32 %v6914_v16, 16  ;;  %8458 = vmatpush.bf16.msra.mxu2 %v14821_v25  ;;  %v16866_v32 = vpop.f32.mrf.mxu2 }
 0x317   : > { %6849 = vst [vmem:[#allocation4 + $0x8] sm:$0xf] %v6848_v27  ;;  %v5594_v49 = vadd.f32 %v5593_v11, %v16526_v26  ;;  %v6936_v59 = vor.u32 %v6935_v44, %v6932_v39  ;;  %v16856_v37 = vadd.f32 %v5348_v43, %v16584_v29  ;;  %v12743_v19 = vrot.slane %v5735_v46, 9  ;;  %v16869_v47 = vpop.f32.mrf.mxu1 }
 0x318   : > { %v12744_v50 = vrot.slane %v5736_v13, 9  ;;  %v5739_v0 = vrot.slane %v16823_v34, 6  ;;  %v6314_v26 = vmax.f32 %v16780_v20, %v12741_v30  ;;  %v6315_v60 = vmax.f32 %v5734_v57, %v12742_v40  ;;  %v16875_v30 = vld [vmem:[#allocation3 + $0x380] sm:$0xf] }
 0x319   : > { %5632 = vmatmul.bf16.gmra.mxu0 %v12292_v38  ;;  %v5664_v10 = vmax.f32 %v5594_v49, 0.0  ;;  %v6937_v48 = vrot.slane %v6936_v59, 4  ;;  %v12745_v29 = vrot.slane %v16823_v34, 9  ;;  %v12746_v43 = vrot.slane %v5737_v2, 9 }
 0x31a   : > { %v12747_v42 = vrot.slane %v5738_v35, 9  ;;  %v6941_v21 = vrot.slane %v6939_v31, 5  ;;  %v6316_v61 = vmax.f32 %v5735_v46, %v12743_v19  ;;  %v6317_v57 = vmax.f32 %v5736_v13, %v12744_v50  ;;  %v16877_v40 = vld [vmem:[#allocation4 + $0xc] sm:$0x1] }
 0x31b   : > { %v5740_v58 = vrot.slane %v5664_v10, 2  ;;  %v5741_v7 = vrot.slane %v5664_v10, 4  ;;  %v5742_v62 = vrot.slane %v5664_v10, 6  ;;  %v12749_v56 = vrot.slane %v5664_v10, 9 }
 0x31c   : > { %v12748_v14 = vrot.slane %v5739_v0, 9  ;;  %v6942_v38 = vsel %vm15616_vm9, %v6937_v48, %v6941_v21  ;;  %v6318_v49 = vmax.f32 %v16823_v34, %v12745_v29  ;;  %v6319_v46 = vmax.f32 %v5737_v2, %v12746_v43  ;;  %v14677_v13 = vld [vmem:[#allocation3 + $0x3a0] sm:$0xf0] }
 0x31d   : > { %v12750_v16 = vrot.slane %v5740_v58, 9  ;;  %v12751_v27 = vrot.slane %v5741_v7, 9  ;;  %v12752_v11 = vrot.slane %v5742_v62, 9  ;;  %v6322_v24 = vmax.f32 %v5664_v10, %v12749_v56  ;;  %7049 = vst [vmem:[#allocation5 + $0x4] sm:$0xf] %v6942_v38 }
 0x31e   : > { %v5595_v39 = vpop.f32.mrf.mxu0  ;;  %v6898_v44 = vld [vmem:[#allocation4 + $0x8] sm:$0xf]  ;;  %v6320_v25 = vmax.f32 %v5738_v35, %v12747_v42  ;;  %v6321_v48 = vmax.f32 %v5739_v0, %v12748_v14  ;;  %v12328_v17 = vor.u32 %v14677_v13, %v16875_v30  ;;  %v7095_v10 = vrot.slane %v16877_v40, 5  ;;  %v5440_v14 = vpop.f32.mrf.mxu2 }
 0x31f   : > { %v5596_v20 = vadd.f32 %v5595_v39, %v16539_v22  ;;  %6906 = vst [vmem:[#allocation5 + $0x24] sm:$0xf] %v6898_v44  ;;  %v6323_v59 = vmax.f32 %v5740_v58, %v12750_v16  ;;  %v6324_v31 = vmax.f32 %v5741_v7, %v12751_v27  ;;  %v6325_v19 = vmax.f32 %v5742_v62, %v12752_v11  ;;  %v7059_v35 = vld [vmem:[#allocation4 + $0x8] sm:$0xe] }
 0x320   : > { %v6434_v50 = vmax.f32 %v6314_v26, %v6322_v24  ;;  %v7137_v29 = vld [vmem:[#allocation4 + $0x8] sm:$0xf]  ;;  %v12854_v11 = vrot.slane %v7059_v35, 9  ;;  %v5353_v24 = vpop.f32.mrf.mxu1 }
 0x321   : > { %v5665_v21 = vmax.f32 %v5596_v20, 0.0  ;;  %v6435_v56 = vmax.f32 %v6315_v60, %v6323_v59  ;;  %v6436_v51 = vmax.f32 %v6316_v61, %v6324_v31  ;;  %v6437_v34 = vmax.f32 %v6317_v57, %v6325_v19  ;;  %7145 = vst [vmem:[#allocation5 + $0xc] sm:$0xf] %v7137_v29  ;;  %v12879_v59 = vld [vmem:[#allocation5] sm:$0xf] }
 0x322   : > { %v6518_v2 = vpack.c.bf16 %v6434_v50, %v6434_v50 }
 0x323   : > { %v5743_v22 = vrot.slane %v5665_v21, 2  ;;  %v5744_v43 = vrot.slane %v5665_v21, 4  ;;  %v5745_v42 = vrot.slane %v5665_v21, 6  ;;  %v12753_v58 = vrot.slane %v5665_v21, 9 }
 0x324   : > { %v6519_v7 = vpack.c.bf16 %v6435_v56, %v6435_v56  ;;  %v6520_v26 = vpack.c.bf16 %v6436_v51, %v6436_v51  ;;  %v6521_v62 = vpack.c.bf16 %v6437_v34, %v6437_v34  ;;  %v6646_v0 = vunpack.c.l.b16 %v6518_v2 }
 0x325   : > { %v12754_v38 = vrot.slane %v5743_v22, 9  ;;  %v12755_v30 = vrot.slane %v5744_v43, 9  ;;  %v12756_v16 = vrot.slane %v5745_v42, 9  ;;  %v6326_v40 = vmax.f32 %v5665_v21, %v12753_v58 }
 0x326   : > { %v6647_v60 = vunpack.c.l.b16 %v6519_v7  ;;  %v6648_v61 = vunpack.c.l.b16 %v6520_v26  ;;  %v6649_v57 = vunpack.c.l.b16 %v6521_v62  ;;  %v5598_v27 = vpop.f32.mrf.mxu0  ;;  %v14781_v31 = vld [vmem:[#allocation5 + $0x20] sm:$0xf0]  ;;  %v6721_v51 = vrot.slane %v6646_v0, 7  ;;  %v6915_v62 = vld [vmem:[#allocation4 + $0x8] sm:$0xf] }
 0x327   : > { %v6327_v39 = vmax.f32 %v5743_v22, %v12754_v38  ;;  %v6328_v44 = vmax.f32 %v5744_v43, %v12755_v30  ;;  %v6329_v20 = vmax.f32 %v5745_v42, %v12756_v16  ;;  %v6438_v13 = vmax.f32 %v6318_v49, %v6326_v40  ;;  %v6916_v0 = vld [vmem:[#allocation4 + $0xc] sm:$0x1] }
 0x328   : > { %v6722_v19 = vrot.slane %v6647_v60, 6  ;;  %v6724_v50 = vrot.slane %v6648_v61, 5  ;;  %v5599_v56 = vadd.f32 %v5598_v27, %v16705_v53  ;;  %v6726_v35 = vrot.slane %v6649_v57, 4  ;;  %v16890_v53 = vpop.f32.mrf.mxu3  ;;  %v5442_v27 = vpop.f32.mrf.mxu2 }
 0x329   : > { %v6439_v34 = vmax.f32 %v6319_v46, %v6327_v39  ;;  %v6440_v2 = vmax.f32 %v6320_v25, %v6328_v44  ;;  %v6441_v21 = vmax.f32 %v6321_v48, %v6329_v20  ;;  %v6522_v29 = vpack.c.bf16 %v6438_v13, %v6438_v13  ;;  %5637 = vmatmul.bf16.gmra.mxu0 %v12328_v17  ;;  %v12887_v20 = vld [vmem:[#allocation5 + $0x8] sm:$0xf] }
 0x32a   : > { %v6723_v58 = vsel %vm6704_vm14, %v6722_v19, %v6721_v51  ;;  %v12880_v7 = vor.u32 %v14781_v31, %v12879_v59  ;;  %v7096_v22 = vsel %vm15602_vm3, %v12854_v11, %v7095_v10  ;;  %v5352_v46 = vadd.f32 %v16869_v47, %v16587_v55  ;;  %v6858_v55 = vld [vmem:[#allocation4 + $0x14] sm:$0x1] }
 0x32b   : > { %v6725_v49 = vsel %vm6707_vm15, %v6724_v50, %v6723_v58  ;;  %v6523_v43 = vpack.c.bf16 %v6439_v34, %v6439_v34  ;;  %v6524_v42 = vpack.c.bf16 %v6440_v2, %v6440_v2  ;;  %v6525_v26 = vpack.c.bf16 %v6441_v21, %v6441_v21  ;;  %7130 = vst [vmem:[#allocation5 + $0x2c] sm:$0xf] %v7096_v22  ;;  %v3149_v34 = vld [vmem:[#allocation2 + $0xb8] sm:$0xf]  ;;  %v3150_v2 = vld [vmem:[#allocation2 + $0xbc] sm:$0x1] }
 0x32c   : > { %v6727_v17 = vsel %vm6710_vm0, %v6726_v35, %v6725_v49  ;;  %v6650_v25 = vunpack.c.l.b16 %v6522_v29  ;;  %v16895_v48 = vmax.f32 %v5599_v56, 0.0  ;;  %8430 = vmatmul.bf16.vlgmr.msra.gmra.mxu1 %v12880_v7  ;;  %v16899_v10 = vadd.f32 %v16866_v32, %v16856_v37  ;;  %v6855_v32 = vld [vmem:[#allocation4 + $0x10] sm:$0xf] }
 0x32d   : > { %v6651_v38 = vunpack.c.l.b16 %v6523_v43  ;;  %v6652_v30 = vunpack.c.l.b16 %v6524_v42  ;;  %v6653_v16 = vunpack.c.l.b16 %v6525_v26  ;;  %v16901_v40 = vadd.f32 %v5440_v14, %v5352_v46  ;;  %v3151_v26 = vld [vmem:[#allocation2 + $0xc0] sm:$0xe] }
 0x32e   : > { %v5354_v60 = vadd.f32 %v5353_v24, %v16594_v15  ;;  %v6728_v61 = vrot.slane %v6650_v25, 3  ;;  %v5600_v47 = vpop.f32.mrf.mxu0  ;;  %v6944_v57 = vshrl.u32 %v6915_v62, 16  ;;  %v6953_v13 = vshll.u32 %v6916_v0, 16  ;;  %v3148_v15 = vld [vmem:[#allocation2 + $0xb4] sm:$0xe]  ;;  %v16908_v24 = vpop.f32.mrf.mxu1 }
 0x32f   : > { %v6730_v11 = vrot.slane %v6651_v38, 2  ;;  %v6732_v39 = vrot.slane %v6652_v30, 1  ;;  %v6815_v44 = vpack.c.b16 %v6653_v16, %v6653_v16  ;;  %v5746_v59 = vrot.slane %v16895_v48, 2  ;;  %v3152_v16 = vld [vmem:[#allocation2 + $0xc4] sm:$0xf] }
 0x330   : > { %v6729_v37 = vsel %vm6713_vm1, %v6728_v61, %v6727_v17  ;;  %v5747_v14 = vrot.slane %v16895_v48, 4  ;;  %v5748_v31 = vrot.slane %v16895_v48, 6  ;;  %v12757_v50 = vrot.slane %v16895_v48, 9 }
 0x331   : > { %v6731_v51 = vsel %vm6716_vm4, %v6730_v11, %v6729_v37  ;;  %v6859_v19 = vsel %vm16795_vm10, %v6815_v44, %v6858_v55  ;;  %v5601_v56 = vadd.f32 %v5600_v47, %v16707_v33  ;;  %v16915_v21 = vadd.f32 %v5442_v27, %v5354_v60  ;;  %v16926_v60 = vpop.f32.mrf.mxu3 }
 0x332   : > { %v6733_v29 = vsel %vm6719_vm6, %v6732_v39, %v6731_v51  ;;  %6860 = vst [vmem:[#allocation4 + $0x14] sm:$0x1] %v6859_v19  ;;  %v14782_v58 = vld [vmem:[#allocation5 + $0x28] sm:$0xf0]  ;;  %v6946_v35 = vrot.slane %v6944_v57, 4  ;;  %v6947_v7 = vshll.u32 %v6915_v62, 16  ;;  %v6330_v44 = vmax.f32 %v16895_v48, %v12757_v50 }
 0x333   : > { %v6814_v22 = vpack.c.b16 %v6733_v29, %v6733_v29  ;;  %v12888_v49 = vor.u32 %v14782_v58, %v12887_v20  ;;  %v16918_v43 = vmax.f32 %v5601_v56, 0.0  ;;  %v11858_v42 = vrot.slane %v3148_v15, 9 }
 0x334   : > { %v6949_v46 = vrot.slane %v6947_v7, 5  ;;  %v6955_v17 = vrot.slane %v6953_v13, 5  ;;  %v3298_v25 = vrot.slane %v3149_v34, 5  ;;  %v3301_v33 = vrot.slane %v3150_v2, 5  ;;  %v3153_v13 = vld [vmem:[#allocation2 + $0xc8] sm:$0x1] }
 0x335   : > { %v6856_v0 = vsel %vm16819_vm2, %v6814_v22, %v6855_v32  ;;  %v12758_v38 = vrot.slane %v5746_v59, 9  ;;  %8488 = vmatmul.bf16.vlgmr.msra.gmra.mxu3 %v12888_v49  ;;  %v5749_v30 = vrot.slane %v16918_v43, 2  ;;  %v5750_v62 = vrot.slane %v16918_v43, 4 }
 0x336   : > { %6857 = vst [vmem:[#allocation4 + $0x10] sm:$0xf] %v6856_v0  ;;  %v6950_v61 = vor.u32 %v6949_v46, %v6946_v35  ;;  %v5603_v55 = vpop.f32.mrf.mxu0  ;;  %v3299_v47 = vsel %vm15602_vm3, %v11858_v42, %v3298_v25  ;;  %v3300_v57 = vrot.slane %v3298_v25, 4  ;;  %v11859_v27 = vrot.slane %v3151_v26, 9  ;;  %v16944_v35 = vpop.f32.mrf.mxu1 }
 0x337   : > { %v12759_v11 = vrot.slane %v5747_v14, 9  ;;  %v12760_v39 = vrot.slane %v5748_v31, 9  ;;  %v5604_v20 = vadd.f32 %v5603_v55, %v16716_v28  ;;  %3375 = vst [vmem:[#allocation3 + $0x3c8] sm:$0xf] %v3299_v47  ;;  %v5751_v37 = vrot.slane %v16918_v43, 6  ;;  %v16954_v55 = vpop.f32.mrf.mxu2 }
 0x338   : > { %v6951_v32 = vrot.slane %v6950_v61, 4  ;;  %v3302_v15 = vsel %vm15602_vm3, %v3300_v57, %v3301_v33  ;;  %v3305_v51 = vrot.slane %v3152_v16, 5  ;;  %v12761_v19 = vrot.slane %v16918_v43, 9  ;;  %v14777_v57 = vld [vmem:[#allocation5 + $0x4] sm:$0xf] }
 0x339   : > { %v12762_v56 = vrot.slane %v5749_v30, 9  ;;  %v12763_v34 = vrot.slane %v5750_v62, 9  ;;  %v5668_v2 = vmax.f32 %v5604_v20, 0.0  ;;  %3376 = vst [vmem:[#allocation3 + $0x3ec] sm:$0xf] %v3302_v15  ;;  %v3308_v58 = vrot.slane %v3153_v13, 5  ;;  %v16965_v48 = vpop.f32.mrf.mxu3 }
 0x33a   : > { %v6956_v50 = vsel %vm15616_vm9, %v6951_v32, %v6955_v17  ;;  %v3306_v28 = vsel %vm15602_vm3, %v11859_v27, %v3305_v51  ;;  %v3307_v29 = vrot.slane %v3305_v51, 4  ;;  %v6331_v26 = vmax.f32 %v5746_v59, %v12758_v38  ;;  %v3155_v20 = vld [vmem:[#allocation2 + $0xd0] sm:$0xf] }
 0x33b   : > { %7050 = vst [vmem:[#allocation5 + $0x28] sm:$0xf] %v6956_v50  ;;  %v5752_v7 = vrot.slane %v5668_v2, 2  ;;  %v5753_v22 = vrot.slane %v5668_v2, 4  ;;  %v5754_v49 = vrot.slane %v5668_v2, 6  ;;  %v12765_v42 = vrot.slane %v5668_v2, 9 }
 0x33c   : > { %v6332_v46 = vmax.f32 %v5747_v14, %v12759_v11  ;;  %v12764_v17 = vrot.slane %v5751_v37, 9  ;;  %v3309_v25 = vsel %vm15602_vm3, %v3307_v29, %v3308_v58  ;;  %3377 = vst [vmem:[#allocation3 + $0x410] sm:$0xf] %v3306_v28  ;;  %v6333_v59 = vmax.f32 %v5748_v31, %v12760_v39  ;;  %v3154_v50 = vld [vmem:[#allocation2 + $0xcc] sm:$0xe] }
 0x33d   : > { %v12766_v33 = vrot.slane %v5752_v7, 9  ;;  %v12767_v0 = vrot.slane %v5753_v22, 9  ;;  %v12768_v16 = vrot.slane %v5754_v49, 9  ;;  %v6338_v61 = vmax.f32 %v5668_v2, %v12765_v42  ;;  %3378 = vst [vmem:[#allocation3 + $0x434] sm:$0xf] %v3309_v25 }
 0x33e   : > { %v16959_v38 = vmax.f32 %v16918_v43, %v12761_v19  ;;  %v16961_v14 = vmax.f32 %v5749_v30, %v12762_v56  ;;  %v16963_v47 = vmax.f32 %v5750_v62, %v12763_v34  ;;  %v12363_v27 = vld [vmem:[#allocation3 + $0x3c8] sm:$0xf]  ;;  %v5605_v11 = vpop.f32.mrf.mxu0  ;;  %v6899_v13 = vld [vmem:[#allocation4 + $0x10] sm:$0xf]  ;;  %v3156_v28 = vld [vmem:[#allocation2 + $0xd4] sm:$0x1] }
 0x33f   : > { %v6339_v32 = vmax.f32 %v5752_v7, %v12766_v33  ;;  %v6340_v15 = vmax.f32 %v5753_v22, %v12767_v0  ;;  %v6341_v51 = vmax.f32 %v5754_v49, %v12768_v16  ;;  %v6442_v2 = vmax.f32 %v6330_v44, %v6338_v61  ;;  %6907 = vst [vmem:[#allocation5 + $0x48] sm:$0xf] %v6899_v13  ;;  %v7138_v42 = vld [vmem:[#allocation4 + $0x10] sm:$0xf] }
 0x340   : > { %v14686_v31 = vld [vmem:[#allocation3 + $0x3e8] sm:$0xf0]  ;;  %v5606_v30 = vadd.f32 %v5605_v11, %v16718_v6  ;;  %v11860_v39 = vrot.slane %v3154_v50, 9  ;;  %v3312_v62 = vrot.slane %v3155_v20, 5  ;;  %v3315_v19 = vrot.slane %v3156_v28, 5  ;;  %v16970_v11 = vpop.f32.mrf.mxu1 }
 0x341   : > { %v6443_v56 = vmax.f32 %v6331_v26, %v6339_v32  ;;  %v6444_v34 = vmax.f32 %v6332_v46, %v6340_v15  ;;  %v6445_v29 = vmax.f32 %v6333_v59, %v6341_v51  ;;  %v6526_v58 = vpack.c.bf16 %v6442_v2, %v6442_v2  ;;  %7146 = vst [vmem:[#allocation5 + $0x30] sm:$0xf] %v7138_v42 }
 0x342   : > { %v12881_v7 = vld [vmem:[#allocation5 + $0x24] sm:$0xf0]  ;;  %v12364_v22 = vor.u32 %v14686_v31, %v12363_v27  ;;  %v5669_v49 = vmax.f32 %v5606_v30, 0.0  ;;  %v3313_v44 = vsel %vm15602_vm3, %v11860_v39, %v3312_v62  ;;  %v3314_v25 = vrot.slane %v3312_v62, 4  ;;  %v16974_v62 = vpop.f32.mrf.mxu2 }
 0x343   : > { %v12884_v33 = vor.u32 %v14777_v57, %v12881_v7  ;;  %v6527_v0 = vpack.c.bf16 %v6443_v56, %v6443_v56  ;;  %v6528_v16 = vpack.c.bf16 %v6444_v34, %v6444_v34  ;;  %v6529_v6 = vpack.c.bf16 %v6445_v29, %v6445_v29  ;;  %3379 = vst [vmem:[#allocation3 + $0x458] sm:$0xf] %v3313_v44 }
 0x344   : > { %v6654_v61 = vunpack.c.l.b16 %v6526_v58  ;;  %5642 = vmatmul.bf16.gmra.mxu0 %v12364_v22  ;;  %v5755_v26 = vrot.slane %v5669_v49, 2  ;;  %v5756_v46 = vrot.slane %v5669_v49, 4  ;;  %v5757_v59 = vrot.slane %v5669_v49, 6 }
 0x345   : > { %8459 = vmatmul.bf16.vlgmr.msra.gmra.mxu2 %v12884_v33  ;;  %v6655_v27 = vunpack.c.l.b16 %v6527_v0  ;;  %v6656_v20 = vunpack.c.l.b16 %v6528_v16  ;;  %v6657_v13 = vunpack.c.l.b16 %v6529_v6  ;;  %v12769_v32 = vrot.slane %v5669_v49, 9  ;;  %v12399_v6 = vld [vmem:[#allocation3 + $0x410] sm:$0xf] }
 0x346   : > { %v6337_v15 = vmax.f32 %v5751_v37, %v12764_v17  ;;  %v12770_v57 = vrot.slane %v5755_v26, 9  ;;  %v12771_v51 = vrot.slane %v5756_v46, 9  ;;  %v12772_v2 = vrot.slane %v5757_v59, 9  ;;  %v5608_v50 = vpop.f32.mrf.mxu0  ;;  %v5531_v17 = vpop.f32.mrf.mxu3 }
 0x347   : > { %v6734_v28 = vrot.slane %v6654_v61, 7  ;;  %v6735_v31 = vrot.slane %v6655_v27, 6  ;;  %v6737_v30 = vrot.slane %v6656_v20, 5  ;;  %v6342_v39 = vmax.f32 %v5669_v49, %v12769_v32 }
 0x348   : > { %v6343_v56 = vmax.f32 %v5755_v26, %v12770_v57  ;;  %v6344_v34 = vmax.f32 %v5756_v46, %v12771_v51  ;;  %v6345_v29 = vmax.f32 %v5757_v59, %v12772_v2  ;;  %v5609_v58 = vadd.f32 %v5608_v50, %v16843_v4  ;;  %v7061_v26 = vld [vmem:[#allocation4 + $0x10] sm:$0xe]  ;;  %v7297_v57 = vld [vmem:[#allocation4 + $0x8] sm:$0xe]  ;;  %v17004_v51 = vpop.f32.mrf.mxu1  ;;  %v6864_v50 = vld [vmem:[#allocation4 + $0x1c] sm:$0x1] }
 0x349   : > { %v6736_v42 = vsel %vm6704_vm14, %v6735_v31, %v6734_v28  ;;  %v6739_v7 = vrot.slane %v6657_v13, 4  ;;  %v6446_v43 = vmax.f32 %v16959_v38, %v6342_v39  ;;  %v3316_v37 = vsel %vm15602_vm3, %v3314_v25, %v3315_v19  ;;  %v14695_v19 = vld [vmem:[#allocation3 + $0x430] sm:$0xf0]  ;;  %v6917_v46 = vld [vmem:[#allocation4 + $0x10] sm:$0xf] }
 0x34a   : > { %v6738_v22 = vsel %vm6707_vm15, %v6737_v30, %v6736_v42  ;;  %v6447_v49 = vmax.f32 %v16961_v14, %v6343_v56  ;;  %v6448_v44 = vmax.f32 %v16963_v47, %v6344_v34  ;;  %v6449_v33 = vmax.f32 %v6337_v15, %v6345_v29  ;;  %3380 = vst [vmem:[#allocation3 + $0x47c] sm:$0xf] %v3316_v37  ;;  %v7062_v15 = vld [vmem:[#allocation4 + $0x14] sm:$0x1]  ;;  %v17010_v29 = vpop.f32.mrf.mxu2 }
 0x34b   : > { %v16986_v4 = vadd.f32 %v16890_v53, %v16849_v41  ;;  %v6740_v0 = vsel %vm6710_vm0, %v6739_v7, %v6738_v22  ;;  %v6530_v16 = vpack.c.bf16 %v6446_v43, %v6446_v43  ;;  %v16989_v38 = vmax.f32 %v5609_v58, 0.0  ;;  %v6918_v37 = vld [vmem:[#allocation4 + $0x14] sm:$0x1] }
 0x34c   : > { %v16993_v25 = vadd.f32 %v16926_v60, %v16899_v10  ;;  %v6531_v14 = vpack.c.bf16 %v6447_v49, %v6447_v49  ;;  %v6532_v61 = vpack.c.bf16 %v6448_v44, %v6448_v44  ;;  %v6533_v47 = vpack.c.bf16 %v6449_v33, %v6449_v33  ;;  %v6861_v49 = vld [vmem:[#allocation4 + $0x18] sm:$0xf] }
 0x34d   : > { %v16997_v41 = vadd.f32 %v16965_v48, %v16901_v40  ;;  %v17000_v53 = vadd.f32 %v5531_v17, %v16915_v21  ;;  %v5357_v59 = vadd.f32 %v16908_v24, %v16597_v54  ;;  %v6658_v27 = vunpack.c.l.b16 %v6530_v16  ;;  %v7298_v17 = vld [vmem:[#allocation4 + $0xc] sm:$0x1] }
 0x34e   : > { %v6659_v20 = vunpack.c.l.b16 %v6531_v14  ;;  %v6660_v13 = vunpack.c.l.b16 %v6532_v61  ;;  %v6661_v10 = vunpack.c.l.b16 %v6533_v47  ;;  %v12400_v60 = vor.u32 %v14695_v19, %v12399_v6  ;;  %v5610_v32 = vpop.f32.mrf.mxu0 }
 0x34f   : > { %v6741_v2 = vrot.slane %v6658_v27, 3  ;;  %v5758_v40 = vrot.slane %v16989_v38, 2  ;;  %v12855_v48 = vrot.slane %v7061_v26, 9  ;;  %v6958_v21 = vshrl.u32 %v6917_v46, 16 }
 0x350   : > { %v6743_v28 = vrot.slane %v6659_v20, 2  ;;  %v6745_v31 = vrot.slane %v6660_v13, 1  ;;  %v6817_v30 = vpack.c.b16 %v6661_v10, %v6661_v10  ;;  %v5759_v54 = vrot.slane %v16989_v38, 4 }
 0x351   : > { %v6742_v24 = vsel %vm6713_vm1, %v6741_v2, %v6740_v0  ;;  %v5760_v39 = vrot.slane %v16989_v38, 6  ;;  %v7099_v56 = vrot.slane %v7062_v15, 5  ;;  %v12861_v34 = vrot.slane %v7297_v57, 9  ;;  %v7300_v57 = vld [vmem:[#allocation4 + $0x14] sm:$0x1] }
 0x352   : > { %v6744_v58 = vsel %vm6716_vm4, %v6743_v28, %v6742_v24  ;;  %v6865_v42 = vsel %vm16795_vm10, %v6817_v30, %v6864_v50  ;;  %v12773_v7 = vrot.slane %v16989_v38, 9  ;;  %v5611_v43 = vadd.f32 %v5610_v32, %v16845_v1  ;;  %v17033_v32 = vpop.f32.mrf.mxu3 }
 0x353   : > { %v6746_v22 = vsel %vm6719_vm6, %v6745_v31, %v6744_v58  ;;  %6866 = vst [vmem:[#allocation4 + $0x1c] sm:$0x1] %v6865_v42  ;;  %v7100_v44 = vsel %vm15602_vm3, %v12855_v48, %v7099_v56  ;;  %v6960_v33 = vrot.slane %v6958_v21, 4  ;;  %v6961_v0 = vshll.u32 %v6917_v46, 16  ;;  %v17040_v21 = vpop.f32.mrf.mxu1  ;;  %v12435_v42 = vld [vmem:[#allocation3 + $0x458] sm:$0xf] }
 0x354   : > { %v6816_v16 = vpack.c.b16 %v6746_v22, %v6746_v22  ;;  %v12774_v6 = vrot.slane %v5758_v40, 9  ;;  %v12775_v19 = vrot.slane %v5759_v54, 9  ;;  %5647 = vmatmul.bf16.gmra.mxu0 %v12400_v60  ;;  %v17020_v14 = vmax.f32 %v5611_v43, 0.0  ;;  %7131 = vst [vmem:[#allocation5 + $0x50] sm:$0xf] %v7100_v44 }
 0x355   : > { %v17023_v1 = vadd.f32 %v16954_v55, %v5357_v59  ;;  %v6963_v61 = vrot.slane %v6961_v0, 5  ;;  %v6967_v47 = vshll.u32 %v6918_v37, 16  ;;  %v7331_v26 = vrot.slane %v7298_v17, 5  ;;  %v7299_v60 = vld [vmem:[#allocation4 + $0x10] sm:$0xe] }
 0x356   : > { %v17027_v27 = vadd.f32 %v16944_v35, %v16604_v52  ;;  %v6862_v46 = vsel %vm16819_vm2, %v6816_v16, %v6861_v49  ;;  %v5761_v20 = vrot.slane %v17020_v14, 2  ;;  %v5762_v13 = vrot.slane %v17020_v14, 4  ;;  %v5613_v10 = vpop.f32.mrf.mxu0 }
 0x357   : > { %6863 = vst [vmem:[#allocation4 + $0x18] sm:$0xf] %v6862_v46  ;;  %v12776_v55 = vrot.slane %v5760_v39, 9  ;;  %v5614_v59 = vadd.f32 %v5613_v10, %v16986_v4  ;;  %v6964_v15 = vor.u32 %v6963_v61, %v6960_v33  ;;  %v7332_v52 = vsel %vm15602_vm3, %v12861_v34, %v7331_v26 }
 0x358   : > { %v6346_v35 = vmax.f32 %v16989_v38, %v12773_v7  ;;  %v6347_v2 = vmax.f32 %v5758_v40, %v12774_v6  ;;  %v6348_v50 = vmax.f32 %v5759_v54, %v12775_v19  ;;  %v5763_v48 = vrot.slane %v17020_v14, 6  ;;  %7369 = vst [vmem:[#allocation5 + $0x14] sm:$0xf] %v7332_v52  ;;  %v14704_v54 = vld [vmem:[#allocation3 + $0x478] sm:$0xf0]  ;;  %v17043_v7 = vpop.f32.mrf.mxu2 }
 0x359   : > { %v5672_v28 = vmax.f32 %v5614_v59, 0.0  ;;  %v6965_v31 = vrot.slane %v6964_v15, 4  ;;  %v6969_v30 = vrot.slane %v6967_v47, 5  ;;  %v12862_v24 = vrot.slane %v7299_v60, 9 }
 0x35a   : > { %v12777_v4 = vrot.slane %v17020_v14, 9  ;;  %v12778_v56 = vrot.slane %v5761_v20, 9  ;;  %v12779_v58 = vrot.slane %v5762_v13, 9  ;;  %v7335_v43 = vrot.slane %v7300_v57, 5  ;;  %v7064_v49 = vld [vmem:[#allocation4 + $0x1c] sm:$0x1] }
 0x35b   : > { %v5764_v34 = vrot.slane %v5672_v28, 2  ;;  %v5765_v37 = vrot.slane %v5672_v28, 4  ;;  %v5766_v38 = vrot.slane %v5672_v28, 6  ;;  %v12781_v40 = vrot.slane %v5672_v28, 9 }
 0x35c   : > { %v6349_v17 = vmax.f32 %v5760_v39, %v12776_v55  ;;  %v12780_v22 = vrot.slane %v5763_v48, 9  ;;  %v6970_v44 = vsel %vm15616_vm9, %v6965_v31, %v6969_v30  ;;  %v7336_v33 = vsel %vm15602_vm3, %v12862_v24, %v7335_v43 }
 0x35d   : > { %v12782_v0 = vrot.slane %v5764_v34, 9  ;;  %v12783_v16 = vrot.slane %v5765_v37, 9  ;;  %v12784_v6 = vrot.slane %v5766_v38, 9  ;;  %v6354_v19 = vmax.f32 %v5672_v28, %v12781_v40  ;;  %7051 = vst [vmem:[#allocation5 + $0x4c] sm:$0xf] %v6970_v44 }
 0x35e   : > { %v6350_v61 = vmax.f32 %v17020_v14, %v12777_v4  ;;  %v17050_v47 = vmax.f32 %v5761_v20, %v12778_v56  ;;  %v17052_v26 = vmax.f32 %v5762_v13, %v12779_v58  ;;  %v12436_v39 = vor.u32 %v14704_v54, %v12435_v42  ;;  %v5615_v46 = vpop.f32.mrf.mxu0  ;;  %v6900_v10 = vld [vmem:[#allocation4 + $0x18] sm:$0xf]  ;;  %7370 = vst [vmem:[#allocation5 + $0x38] sm:$0xf] %v7336_v33  ;;  %v17055_v14 = vpop.f32.mrf.mxu3 }
 0x35f   : > { %v7063_v60 = vld [vmem:[#allocation4 + $0x18] sm:$0xe]  ;;  %v6355_v59 = vmax.f32 %v5764_v34, %v12782_v0  ;;  %v6356_v15 = vmax.f32 %v5765_v37, %v12783_v16  ;;  %v6357_v57 = vmax.f32 %v5766_v38, %v12784_v6  ;;  %v6450_v52 = vmax.f32 %v6346_v35, %v6354_v19  ;;  %6908 = vst [vmem:[#allocation5 + $0x6c] sm:$0xf] %v6900_v10  ;;  %v17059_v35 = vpop.f32.mrf.mxu1 }
 0x360   : > { %v6919_v55 = vld [vmem:[#allocation4 + $0x18] sm:$0xf]  ;;  %v5616_v31 = vadd.f32 %v5615_v46, %v16993_v25  ;;  %v12856_v28 = vrot.slane %v7063_v60, 9  ;;  %v7103_v30 = vrot.slane %v7064_v49, 5  ;;  %v6353_v58 = vmax.f32 %v5763_v48, %v12780_v22  ;;  %v17061_v33 = vpop.f32.mrf.mxu2 }
 0x361   : > { %v6972_v24 = vshrl.u32 %v6919_v55, 16  ;;  %v6451_v20 = vmax.f32 %v6347_v2, %v6355_v59  ;;  %v6452_v13 = vmax.f32 %v6348_v50, %v6356_v15  ;;  %v6453_v4 = vmax.f32 %v6349_v17, %v6357_v57 }
 0x362   : > { %v6534_v56 = vpack.c.bf16 %v6450_v52, %v6450_v52  ;;  %v5673_v42 = vmax.f32 %v5616_v31, 0.0  ;;  %v7104_v43 = vsel %vm15602_vm3, %v12856_v28, %v7103_v30  ;;  %v6975_v34 = vshll.u32 %v6919_v55, 16  ;;  %v12915_v28 = vld [vmem:[#allocation5 + $0x48] sm:$0xf]  ;;  %v7153_v30 = vld [vmem:[#allocation4 + $0x8] sm:$0xf] }
 0x363   : > { %v6535_v37 = vpack.c.bf16 %v6451_v20, %v6451_v20  ;;  %v6536_v25 = vpack.c.bf16 %v6452_v13, %v6452_v13  ;;  %v6537_v38 = vpack.c.bf16 %v6453_v4, %v6453_v4  ;;  %7132 = vst [vmem:[#allocation5 + $0x74] sm:$0xf] %v7104_v43  ;;  %v6974_v22 = vrot.slane %v6972_v24, 4 }
 0x364   : > { %v6662_v40 = vunpack.c.l.b16 %v6534_v56  ;;  %5652 = vmatmul.bf16.gmra.mxu0 %v12436_v39  ;;  %v5767_v54 = vrot.slane %v5673_v42, 2  ;;  %v5768_v49 = vrot.slane %v5673_v42, 4  ;;  %v5769_v2 = vrot.slane %v5673_v42, 6 }
 0x365   : > { %v12785_v50 = vrot.slane %v5673_v42, 9  ;;  %v6663_v17 = vunpack.c.l.b16 %v6535_v37  ;;  %v6664_v44 = vunpack.c.l.b16 %v6536_v25  ;;  %v6665_v48 = vunpack.c.l.b16 %v6537_v38 }
 0x366   : > { %v12786_v0 = vrot.slane %v5767_v54, 9  ;;  %v12787_v16 = vrot.slane %v5768_v49, 9  ;;  %v12788_v6 = vrot.slane %v5769_v2, 9  ;;  %v5618_v46 = vpop.f32.mrf.mxu0  ;;  %v14790_v10 = vld [vmem:[#allocation5 + $0x68] sm:$0xf0]  ;;  %v6747_v60 = vrot.slane %v6662_v40, 7  ;;  %v17068_v25 = vpop.f32.mrf.mxu3 }
 0x367   : > { %v6358_v19 = vmax.f32 %v5673_v42, %v12785_v50  ;;  %v6748_v55 = vrot.slane %v6663_v17, 6  ;;  %v6750_v59 = vrot.slane %v6664_v44, 5  ;;  %v5619_v39 = vadd.f32 %v5618_v46, %v16997_v41  ;;  %v6920_v40 = vld [vmem:[#allocation4 + $0x1c] sm:$0x1]  ;;  %v17081_v50 = vpop.f32.mrf.mxu1  ;;  %v6870_v46 = vld [vmem:[#allocation4 + $0x24] sm:$0x1] }
 0x368   : > { %v6359_v15 = vmax.f32 %v5767_v54, %v12786_v0  ;;  %v6360_v57 = vmax.f32 %v5768_v49, %v12787_v16  ;;  %v6361_v52 = vmax.f32 %v5769_v2, %v12788_v6  ;;  %v6752_v20 = vrot.slane %v6665_v48, 4 }
 0x369   : > { %v6454_v31 = vmax.f32 %v6350_v61, %v6358_v19  ;;  %v6749_v24 = vsel %vm6704_vm14, %v6748_v55, %v6747_v60  ;;  %v12916_v13 = vor.u32 %v14790_v10, %v12915_v28  ;;  %v6977_v4 = vrot.slane %v6975_v34, 5 }
 0x36a   : > { %v6751_v56 = vsel %vm6707_vm15, %v6750_v59, %v6749_v24  ;;  %v6455_v42 = vmax.f32 %v17050_v47, %v6359_v15  ;;  %v6456_v43 = vmax.f32 %v17052_v26, %v6360_v57  ;;  %v6457_v37 = vmax.f32 %v6353_v58, %v6361_v52  ;;  %v14791_v6 = vld [vmem:[#allocation5 + $0x70] sm:$0xf0] }
 0x36b   : > { %v6753_v41 = vsel %vm6710_vm0, %v6752_v20, %v6751_v56  ;;  %v6538_v38 = vpack.c.bf16 %v6454_v31, %v6454_v31  ;;  %v17071_v61 = vmax.f32 %v5619_v39, 0.0  ;;  %8435 = vmatmul.bf16.gmra.mxu1 %v12916_v13  ;;  %v7170_v54 = vshrl.u32 %v7153_v30, 16  ;;  %v7154_v31 = vld [vmem:[#allocation4 + $0xc] sm:$0x1]  ;;  %v6867_v56 = vld [vmem:[#allocation4 + $0x20] sm:$0xf] }
 0x36c   : > { %v17075_v34 = vadd.f32 %v17033_v32, %v17023_v1  ;;  %v6539_v49 = vpack.c.bf16 %v6455_v42, %v6455_v42  ;;  %v6540_v2 = vpack.c.bf16 %v6456_v43, %v6456_v43  ;;  %v6541_v47 = vpack.c.bf16 %v6457_v37, %v6457_v37 }
 0x36d   : > { %v5448_v26 = vadd.f32 %v16974_v62, %v17027_v27  ;;  %v5362_v58 = vadd.f32 %v16970_v11, %v16607_v5  ;;  %v6666_v17 = vunpack.c.l.b16 %v6538_v38  ;;  %v6978_v44 = vor.u32 %v6977_v4, %v6974_v22  ;;  %v17084_v62 = vpop.f32.mrf.mxu2  ;;  %v12923_v22 = vld [vmem:[#allocation5 + $0x50] sm:$0xf] }
 0x36e   : > { %v6667_v48 = vunpack.c.l.b16 %v6539_v49  ;;  %v6668_v0 = vunpack.c.l.b16 %v6540_v2  ;;  %v6669_v16 = vunpack.c.l.b16 %v6541_v47  ;;  %v5620_v19 = vpop.f32.mrf.mxu0  ;;  %v6981_v1 = vshll.u32 %v6920_v40, 16 }
 0x36f   : > { %v6754_v32 = vrot.slane %v6666_v17, 3  ;;  %v5770_v10 = vrot.slane %v17071_v61, 2  ;;  %v7172_v60 = vrot.slane %v7170_v54, 4  ;;  %v7173_v55 = vshll.u32 %v7153_v30, 16 }
 0x370   : > { %v6756_v27 = vrot.slane %v6667_v48, 2  ;;  %v6758_v5 = vrot.slane %v6668_v0, 1  ;;  %v6819_v11 = vpack.c.b16 %v6669_v16, %v6669_v16  ;;  %v5771_v59 = vrot.slane %v17071_v61, 4 }
 0x371   : > { %v6755_v39 = vsel %vm6713_vm1, %v6754_v32, %v6753_v41  ;;  %v12924_v15 = vor.u32 %v14791_v6, %v12923_v22  ;;  %v5621_v57 = vadd.f32 %v5620_v19, %v17000_v53  ;;  %v6979_v52 = vrot.slane %v6978_v44, 4  ;;  %v7539_v32 = vld [vmem:[#allocation4 + $0x14] sm:$0x1] }
 0x372   : > { %v6757_v28 = vsel %vm6716_vm4, %v6756_v27, %v6755_v39  ;;  %v6871_v30 = vsel %vm16795_vm10, %v6819_v11, %v6870_v46  ;;  %v5772_v24 = vrot.slane %v17071_v61, 6  ;;  %v6983_v20 = vrot.slane %v6981_v1, 5  ;;  %v7538_v27 = vld [vmem:[#allocation4 + $0x10] sm:$0xe] }
 0x373   : > { %v5451_v13 = vadd.f32 %v17010_v29, %v5362_v58  ;;  %v6759_v4 = vsel %vm6719_vm6, %v6758_v5, %v6757_v28  ;;  %6872 = vst [vmem:[#allocation4 + $0x24] sm:$0x1] %v6871_v30  ;;  %8493 = vmatmul.bf16.gmra.mxu3 %v12924_v15  ;;  %v17095_v42 = vmax.f32 %v5621_v57, 0.0  ;;  %v7175_v53 = vrot.slane %v7173_v55, 5  ;;  %v17104_v29 = vpop.f32.mrf.mxu3  ;;  %v17129_v39 = vld [vmem:[#allocation4 + $0x10] sm:$0xf] }
 0x374   : > { %v17098_v43 = vadd.f32 %v17055_v14, %v5448_v26  ;;  %v6818_v37 = vpack.c.b16 %v6759_v4, %v6759_v4  ;;  %v6984_v41 = vsel %vm15616_vm9, %v6979_v52, %v6983_v20  ;;  %v7179_v38 = vshll.u32 %v7154_v31, 16 }
 0x375   : > { %v5364_v40 = vadd.f32 %v17004_v51, %v16614_v36  ;;  %v12789_v54 = vrot.slane %v17071_v61, 9  ;;  %v12790_v49 = vrot.slane %v5770_v10, 9  ;;  %v12791_v2 = vrot.slane %v5771_v59, 9  ;;  %7052 = vst [vmem:[#allocation5 + $0x70] sm:$0xf] %v6984_v41  ;;  %v17116_v51 = vpop.f32.mrf.mxu1  ;;  %v17127_v5 = vpop.f32.mrf.mxu2 }
 0x376   : > { %v6868_v47 = vsel %vm16819_vm2, %v6818_v37, %v6867_v56  ;;  %v12792_v14 = vrot.slane %v5772_v24, 9  ;;  %v5773_v26 = vrot.slane %v17095_v42, 2  ;;  %v5623_v58 = vpop.f32.mrf.mxu0  ;;  %v7176_v17 = vor.u32 %v7175_v53, %v7172_v60 }
 0x377   : > { %v17111_v44 = vadd.f32 %v17068_v25, %v5451_v13  ;;  %v17114_v36 = vadd.f32 %v17043_v7, %v5364_v40  ;;  %6869 = vst [vmem:[#allocation4 + $0x20] sm:$0xf] %v6868_v47  ;;  %v5774_v48 = vrot.slane %v17095_v42, 4  ;;  %v5775_v0 = vrot.slane %v17095_v42, 6  ;;  %v7378_v25 = vld [vmem:[#allocation4 + $0x10] sm:$0xf] }
 0x378   : > { %v17122_v16 = vadd.f32 %v17040_v21, %v16617_v63  ;;  %v5624_v6 = vadd.f32 %v5623_v58, %v17075_v34  ;;  %v7177_v19 = vrot.slane %v7176_v17, 4  ;;  %v7181_v1 = vrot.slane %v7179_v38, 5  ;;  %7386 = vst [vmem:[#allocation5 + $0x18] sm:$0xf] %v7378_v25  ;;  %v14786_v63 = vld [vmem:[#allocation5 + $0x4c] sm:$0xf] }
 0x379   : > { %v6362_v7 = vmax.f32 %v17071_v61, %v12789_v54  ;;  %v6363_v46 = vmax.f32 %v5770_v10, %v12790_v49  ;;  %v6364_v60 = vmax.f32 %v5771_v59, %v12791_v2  ;;  %v12793_v55 = vrot.slane %v17095_v42, 9 }
 0x37a   : > { %v6365_v11 = vmax.f32 %v5772_v24, %v12792_v14  ;;  %v12794_v22 = vrot.slane %v5773_v26, 9  ;;  %v5676_v21 = vmax.f32 %v5624_v6, 0.0  ;;  %v7182_v34 = vsel %vm15616_vm9, %v7177_v19, %v7181_v1  ;;  %v17134_v13 = vld [vmem:[#allocation4 + $0x24] sm:$0x1] }
 0x37b   : > { %v12795_v15 = vrot.slane %v5774_v48, 9  ;;  %v12796_v57 = vrot.slane %v5775_v0, 9  ;;  %7289 = vst [vmem:[#allocation5 + $0x10] sm:$0xf] %v7182_v34  ;;  %v12869_v61 = vrot.slane %v7538_v27, 9  ;;  %v7572_v10 = vrot.slane %v7539_v32, 5  ;;  %v17139_v49 = vpop.f32.mrf.mxu3 }
 0x37c   : > { %v12917_v59 = vld [vmem:[#allocation5 + $0x6c] sm:$0xf0]  ;;  %v5776_v52 = vrot.slane %v5676_v21, 2  ;;  %v5777_v31 = vrot.slane %v5676_v21, 4  ;;  %v5778_v28 = vrot.slane %v5676_v21, 6  ;;  %v12797_v30 = vrot.slane %v5676_v21, 9 }
 0x37d   : > { %v6366_v24 = vmax.f32 %v17095_v42, %v12793_v55  ;;  %v12920_v20 = vor.u32 %v14786_v63, %v12917_v59  ;;  %v7184_v4 = vshrl.u32 %v17129_v39, 16  ;;  %v7573_v56 = vsel %vm15602_vm3, %v12869_v61, %v7572_v10  ;;  %v17143_v1 = vpop.f32.mrf.mxu1  ;;  %v17148_v61 = vpop.f32.mrf.mxu2 }
 0x37e   : > { %v12798_v53 = vrot.slane %v5776_v52, 9  ;;  %v12799_v37 = vrot.slane %v5777_v31, 9  ;;  %v12800_v41 = vrot.slane %v5778_v28, 9  ;;  %v6370_v38 = vmax.f32 %v5676_v21, %v12797_v30  ;;  %v5625_v40 = vpop.f32.mrf.mxu0  ;;  %v6901_v54 = vld [vmem:[#allocation4 + $0x20] sm:$0xf] }
 0x37f   : > { %v6367_v2 = vmax.f32 %v5773_v26, %v12794_v22  ;;  %v6368_v47 = vmax.f32 %v5774_v48, %v12795_v15  ;;  %8464 = vmatmul.bf16.gmra.mxu2 %v12920_v20  ;;  %v5626_v42 = vadd.f32 %v5625_v40, %v17098_v43  ;;  %6909 = vst [vmem:[#allocation5 + $0x90] sm:$0xf] %v6901_v54  ;;  %v7187_v14 = vshll.u32 %v17129_v39, 16  ;;  %v7065_v15 = vld [vmem:[#allocation4 + $0x20] sm:$0xe] }
 0x380   : > { %v6371_v58 = vmax.f32 %v5776_v52, %v12798_v53  ;;  %v6372_v17 = vmax.f32 %v5777_v31, %v12799_v37  ;;  %v6373_v6 = vmax.f32 %v5778_v28, %v12800_v41  ;;  %v6458_v19 = vmax.f32 %v6362_v7, %v6370_v38  ;;  %7610 = vst [vmem:[#allocation5 + $0x20] sm:$0xf] %v7573_v56 }
 0x381   : > { %v6369_v25 = vmax.f32 %v5775_v0, %v12796_v57  ;;  %v5677_v32 = vmax.f32 %v5626_v42, 0.0  ;;  %v7107_v55 = vrot.slane %v17134_v13, 5  ;;  %v17146_v27 = vrot.slane %v7184_v4, 4 }
 0x382   : > { %v6459_v26 = vmax.f32 %v6363_v46, %v6371_v58  ;;  %v6460_v48 = vmax.f32 %v6364_v60, %v6372_v17  ;;  %v6461_v22 = vmax.f32 %v6365_v11, %v6373_v6  ;;  %v6542_v43 = vpack.c.bf16 %v6458_v19, %v6458_v19  ;;  %v6921_v19 = vld [vmem:[#allocation4 + $0x20] sm:$0xf] }
 0x383   : > { %v5779_v63 = vrot.slane %v5677_v32, 2  ;;  %v5780_v21 = vrot.slane %v5677_v32, 4  ;;  %v5781_v39 = vrot.slane %v5677_v32, 6  ;;  %v12801_v34 = vrot.slane %v5677_v32, 9  ;;  %v17150_v54 = vpop.f32.mrf.mxu3 }
 0x384   : > { %v6543_v7 = vpack.c.bf16 %v6459_v26, %v6459_v26  ;;  %v6544_v10 = vpack.c.bf16 %v6460_v48, %v6460_v48  ;;  %v6545_v59 = vpack.c.bf16 %v6461_v22, %v6461_v22  ;;  %v6670_v0 = vunpack.c.l.b16 %v6542_v43 }
 0x385   : > { %v12802_v57 = vrot.slane %v5779_v63, 9  ;;  %v12803_v52 = vrot.slane %v5780_v21, 9  ;;  %v12804_v31 = vrot.slane %v5781_v39, 9  ;;  %v6374_v28 = vmax.f32 %v5677_v32, %v12801_v34  ;;  %v17156_v43 = vpop.f32.mrf.mxu1 }
 0x386   : > { %v6671_v30 = vunpack.c.l.b16 %v6543_v7  ;;  %v6672_v46 = vunpack.c.l.b16 %v6544_v10  ;;  %v6673_v60 = vunpack.c.l.b16 %v6545_v59  ;;  %v5628_v11 = vpop.f32.mrf.mxu0  ;;  %v12857_v20 = vrot.slane %v7065_v15, 9  ;;  %v17164_v59 = vpop.f32.mrf.mxu2 }
 0x387   : > { %v6375_v13 = vmax.f32 %v5779_v63, %v12802_v57  ;;  %v6376_v4 = vmax.f32 %v5780_v21, %v12803_v52  ;;  %v6377_v56 = vmax.f32 %v5781_v39, %v12804_v31  ;;  %v6462_v53 = vmax.f32 %v6366_v24, %v6374_v28  ;;  %v7156_v24 = vld [vmem:[#allocation4 + $0x14] sm:$0x1]  ;;  %v6876_v57 = vld [vmem:[#allocation4 + $0x2c] sm:$0x1]  ;;  %v6922_v31 = vld [vmem:[#allocation4 + $0x24] sm:$0x1] }
 0x388   : > { %v6760_v37 = vrot.slane %v6670_v0, 7  ;;  %v6761_v41 = vrot.slane %v6671_v30, 6  ;;  %v6763_v38 = vrot.slane %v6672_v46, 5  ;;  %v7189_v40 = vrot.slane %v7187_v14, 5 }
 0x389   : > { %v6463_v42 = vmax.f32 %v6367_v2, %v6375_v13  ;;  %v6464_v58 = vmax.f32 %v6368_v47, %v6376_v4  ;;  %v6465_v17 = vmax.f32 %v6369_v25, %v6377_v56  ;;  %v6546_v6 = vpack.c.bf16 %v6462_v53, %v6462_v53  ;;  %v6873_v4 = vld [vmem:[#allocation4 + $0x28] sm:$0xf] }
 0x38a   : > { %v6762_v32 = vsel %vm6704_vm14, %v6761_v41, %v6760_v37  ;;  %v6765_v26 = vrot.slane %v6673_v60, 4  ;;  %v5629_v48 = vadd.f32 %v5628_v11, %v17111_v44  ;;  %v7108_v22 = vsel %vm15602_vm3, %v12857_v20, %v7107_v55 }
 0x38b   : > { %v6764_v14 = vsel %vm6707_vm15, %v6763_v38, %v6762_v32  ;;  %v6547_v63 = vpack.c.bf16 %v6463_v42, %v6463_v42  ;;  %v6548_v21 = vpack.c.bf16 %v6464_v58, %v6464_v58  ;;  %v6549_v2 = vpack.c.bf16 %v6465_v17, %v6465_v17  ;;  %7133 = vst [vmem:[#allocation5 + $0x98] sm:$0xf] %v7108_v22 }
 0x38c   : > { %v5456_v47 = vadd.f32 %v17061_v33, %v17122_v16  ;;  %v6766_v25 = vsel %vm6710_vm0, %v6765_v26, %v6764_v14  ;;  %v6674_v39 = vunpack.c.l.b16 %v6546_v6  ;;  %v6986_v34 = vshrl.u32 %v6921_v19, 16 }
 0x38d   : > { %v6675_v44 = vunpack.c.l.b16 %v6547_v63  ;;  %v6676_v15 = vunpack.c.l.b16 %v6548_v21  ;;  %v6677_v7 = vunpack.c.l.b16 %v6549_v2  ;;  %v7193_v55 = vshll.u32 %v7156_v24, 16  ;;  %v17188_v26 = vpop.f32.mrf.mxu1  ;;  %v7302_v63 = vld [vmem:[#allocation4 + $0x1c] sm:$0x1] }
 0x38e   : > { %v5542_v10 = vadd.f32 %v17104_v29, %v17114_v36  ;;  %v6767_v0 = vrot.slane %v6674_v39, 3  ;;  %v5630_v52 = vpop.f32.mrf.mxu0  ;;  %v6989_v28 = vshll.u32 %v6921_v19, 16  ;;  %v7190_v33 = vor.u32 %v7189_v40, %v17146_v27 }
 0x38f   : > { %v6769_v16 = vrot.slane %v6675_v44, 2  ;;  %v6771_v30 = vrot.slane %v6676_v15, 1  ;;  %v6821_v46 = vpack.c.b16 %v6677_v7, %v6677_v7  ;;  %v17167_v60 = vmax.f32 %v5629_v48, 0.0 }
 0x390   : > { %v5545_v11 = vadd.f32 %v17139_v49, %v5456_v47  ;;  %v5369_v20 = vadd.f32 %v17059_v35, %v16624_v8  ;;  %v6768_v29 = vsel %vm6713_vm1, %v6767_v0, %v6766_v25  ;;  %v6988_v36 = vrot.slane %v6986_v34, 4  ;;  %v17178_v8 = vpop.f32.mrf.mxu3  ;;  %v17203_v34 = vpop.f32.mrf.mxu2 }
 0x391   : > { %v6770_v13 = vsel %vm6716_vm4, %v6769_v16, %v6768_v29  ;;  %v6877_v56 = vsel %vm16795_vm10, %v6821_v46, %v6876_v57  ;;  %v5631_v27 = vadd.f32 %v5630_v52, %v5542_v10  ;;  %v6995_v53 = vshll.u32 %v6922_v31, 16  ;;  %v7301_v10 = vld [vmem:[#allocation4 + $0x18] sm:$0xe] }
 0x392   : > { %v6772_v37 = vsel %vm6719_vm6, %v6771_v30, %v6770_v13  ;;  %6878 = vst [vmem:[#allocation4 + $0x2c] sm:$0x1] %v6877_v56  ;;  %v6991_v41 = vrot.slane %v6989_v28, 5  ;;  %v7191_v38 = vrot.slane %v7190_v33, 4  ;;  %v7195_v49 = vrot.slane %v7193_v55, 5 }
 0x393   : > { %v5458_v40 = vadd.f32 %v17084_v62, %v5369_v20  ;;  %v6820_v35 = vpack.c.b16 %v6772_v37, %v6772_v37  ;;  %v5782_v42 = vrot.slane %v17167_v60, 2  ;;  %v17181_v58 = vmax.f32 %v5631_v27, 0.0  ;;  %v7139_v55 = vld [vmem:[#allocation4 + $0x18] sm:$0xf] }
 0x394   : > { %v5372_v17 = vadd.f32 %v17081_v50, %v16627_v3  ;;  %v5783_v6 = vrot.slane %v17167_v60, 4  ;;  %v6992_v19 = vor.u32 %v6991_v41, %v6988_v36  ;;  %v7196_v32 = vsel %vm15616_vm9, %v7191_v38, %v7195_v49  ;;  %7147 = vst [vmem:[#allocation5 + $0x54] sm:$0xf] %v7139_v55 }
 0x395   : > { %v6874_v62 = vsel %vm16819_vm2, %v6820_v35, %v6873_v4  ;;  %v5784_v48 = vrot.slane %v17167_v60, 6  ;;  %v12805_v22 = vrot.slane %v17167_v60, 9  ;;  %v6997_v24 = vrot.slane %v6995_v53, 5  ;;  %7290 = vst [vmem:[#allocation5 + $0x34] sm:$0xf] %v7196_v32 }
 0x396   : > { %6875 = vst [vmem:[#allocation4 + $0x28] sm:$0xf] %v6874_v62  ;;  %v5785_v3 = vrot.slane %v17181_v58, 2  ;;  %v5633_v50 = vpop.f32.mrf.mxu0  ;;  %v6993_v14 = vrot.slane %v6992_v19, 4  ;;  %v5547_v21 = vadd.f32 %v17150_v54, %v5458_v40  ;;  %v17197_v2 = vadd.f32 %v17127_v5, %v5372_v17 }
 0x397   : > { %v12806_v47 = vrot.slane %v5782_v42, 9  ;;  %v5634_v25 = vadd.f32 %v5633_v50, %v5545_v11  ;;  %v17201_v39 = vadd.f32 %v17116_v51, %v16643_v23  ;;  %v12807_v44 = vrot.slane %v5783_v6, 9 }
 0x398   : > { %v5786_v15 = vrot.slane %v17181_v58, 4  ;;  %v6998_v7 = vsel %vm15616_vm9, %v6993_v14, %v6997_v24  ;;  %v12808_v54 = vrot.slane %v5784_v48, 9  ;;  %v6378_v5 = vmax.f32 %v17167_v60, %v12805_v22  ;;  %v17213_v36 = vpop.f32.mrf.mxu3  ;;  %v7379_v22 = vld [vmem:[#allocation4 + $0x18] sm:$0xf] }
 0x399   : > { %v5680_v0 = vmax.f32 %v5634_v25, 0.0  ;;  %v7339_v57 = vrot.slane %v7302_v63, 5  ;;  %v5787_v52 = vrot.slane %v17181_v58, 6  ;;  %v12809_v23 = vrot.slane %v17181_v58, 9  ;;  %7053 = vst [vmem:[#allocation5 + $0x94] sm:$0xf] %v6998_v7  ;;  %v17218_v25 = vpop.f32.mrf.mxu2 }
 0x39a   : > { %v12810_v51 = vrot.slane %v5785_v3, 9  ;;  %v12863_v31 = vrot.slane %v7301_v10, 9  ;;  %v6379_v46 = vmax.f32 %v5782_v42, %v12806_v47  ;;  %v6380_v11 = vmax.f32 %v5783_v6, %v12807_v44  ;;  %v7068_v29 = vld [vmem:[#allocation4 + $0x2c] sm:$0x1]  ;;  %v17216_v42 = vpop.f32.mrf.mxu1  ;;  %7387 = vst [vmem:[#allocation5 + $0x3c] sm:$0xf] %v7379_v22 }
 0x39b   : > { %v5788_v28 = vrot.slane %v5680_v0, 2  ;;  %v5789_v33 = vrot.slane %v5680_v0, 4  ;;  %v5790_v16 = vrot.slane %v5680_v0, 6  ;;  %v12813_v30 = vrot.slane %v5680_v0, 9 }
 0x39c   : > { %v12811_v20 = vrot.slane %v5786_v15, 9  ;;  %v7340_v60 = vsel %vm15602_vm3, %v12863_v31, %v7339_v57  ;;  %v6381_v37 = vmax.f32 %v5784_v48, %v12808_v54  ;;  %v12812_v41 = vrot.slane %v5787_v52, 9 }
 0x39d   : > { %v12814_v13 = vrot.slane %v5788_v28, 9  ;;  %v12815_v4 = vrot.slane %v5789_v33, 9  ;;  %v12816_v56 = vrot.slane %v5790_v16, 9  ;;  %v6386_v27 = vmax.f32 %v5680_v0, %v12813_v30  ;;  %v6902_v53 = vld [vmem:[#allocation4 + $0x28] sm:$0xf] }
 0x39e   : > { %v6382_v38 = vmax.f32 %v17181_v58, %v12809_v23  ;;  %v6383_v49 = vmax.f32 %v5785_v3, %v12810_v51  ;;  %v5635_v40 = vpop.f32.mrf.mxu0  ;;  %6910 = vst [vmem:[#allocation5 + $0xb4] sm:$0xf] %v6902_v53  ;;  %v7067_v35 = vld [vmem:[#allocation4 + $0x28] sm:$0xe]  ;;  %v6384_v24 = vmax.f32 %v5786_v15, %v12811_v20  ;;  %v7111_v48 = vrot.slane %v7068_v29, 5 }
 0x39f   : > { %v6387_v17 = vmax.f32 %v5788_v28, %v12814_v13  ;;  %v6388_v6 = vmax.f32 %v5789_v33, %v12815_v4  ;;  %v6389_v19 = vmax.f32 %v5790_v16, %v12816_v56  ;;  %v6466_v32 = vmax.f32 %v6378_v5, %v6386_v27  ;;  %v6923_v62 = vld [vmem:[#allocation4 + $0x28] sm:$0xf]  ;;  %7371 = vst [vmem:[#allocation5 + $0x5c] sm:$0xf] %v7340_v60 }
 0x3a0   : > { %v5636_v50 = vadd.f32 %v5635_v40, %v5547_v21  ;;  %v12858_v14 = vrot.slane %v7067_v35, 9  ;;  %v6385_v44 = vmax.f32 %v5787_v52, %v12812_v41  ;;  %v7000_v10 = vshrl.u32 %v6923_v62, 16  ;;  %v17222_v29 = vpop.f32.mrf.mxu3  ;;  %v12951_v40 = vld [vmem:[#allocation5 + $0x90] sm:$0xf] }
 0x3a1   : > { %v6467_v63 = vmax.f32 %v6379_v46, %v6387_v17  ;;  %v6468_v58 = vmax.f32 %v6380_v11, %v6388_v6  ;;  %v6469_v3 = vmax.f32 %v6381_v37, %v6389_v19  ;;  %v6550_v47 = vpack.c.bf16 %v6466_v32, %v6466_v32 }
 0x3a2   : > { %v5681_v7 = vmax.f32 %v5636_v50, 0.0  ;;  %v7112_v55 = vsel %vm15602_vm3, %v12858_v14, %v7111_v48  ;;  %v7003_v16 = vshll.u32 %v6923_v62, 16  ;;  %v7002_v56 = vrot.slane %v7000_v10, 4  ;;  %v17224_v35 = vpop.f32.mrf.mxu1 }
 0x3a3   : > { %v6551_v54 = vpack.c.bf16 %v6467_v63, %v6467_v63  ;;  %v6552_v5 = vpack.c.bf16 %v6468_v58, %v6468_v58  ;;  %v6553_v0 = vpack.c.bf16 %v6469_v3, %v6469_v3  ;;  %v6678_v15 = vunpack.c.l.b16 %v6550_v47  ;;  %7134 = vst [vmem:[#allocation5 + $0xbc] sm:$0xf] %v7112_v55  ;;  %v6924_v63 = vld [vmem:[#allocation4 + $0x2c] sm:$0x1] }
 0x3a4   : > { %v5791_v21 = vrot.slane %v5681_v7, 2  ;;  %v5792_v57 = vrot.slane %v5681_v7, 4  ;;  %v5793_v23 = vrot.slane %v5681_v7, 6  ;;  %v12817_v51 = vrot.slane %v5681_v7, 9 }
 0x3a5   : > { %v6679_v31 = vunpack.c.l.b16 %v6551_v54  ;;  %v6680_v28 = vunpack.c.l.b16 %v6552_v5  ;;  %v6681_v33 = vunpack.c.l.b16 %v6553_v0  ;;  %v14799_v20 = vld [vmem:[#allocation5 + $0xb0] sm:$0xf0]  ;;  %v6773_v60 = vrot.slane %v6678_v15, 7  ;;  %v17235_v5 = vld [vmem:[#allocation4 + $0x10] sm:$0xf] }
 0x3a6   : > { %v12818_v30 = vrot.slane %v5791_v21, 9  ;;  %v12819_v52 = vrot.slane %v5792_v57, 9  ;;  %v12820_v46 = vrot.slane %v5793_v23, 9  ;;  %v6390_v11 = vmax.f32 %v5681_v7, %v12817_v51  ;;  %v5638_v48 = vpop.f32.mrf.mxu0  ;;  %v17233_v7 = vpop.f32.mrf.mxu2  ;;  %v18149_v51 = vld [vmem:[#allocation17_spill] sm:$0xff] }
 0x3a7   : > { %v6774_v13 = vrot.slane %v6679_v31, 6  ;;  %v6776_v4 = vrot.slane %v6680_v28, 5  ;;  %v6778_v6 = vrot.slane %v6681_v33, 4  ;;  %v12952_v19 = vor.u32 %v14799_v20, %v12951_v40  ;;  %v6882_v33 = vld [vmem:[#allocation4 + $0x34] sm:$0x1] }
 0x3a8   : > { %v6391_v27 = vmax.f32 %v5791_v21, %v12818_v30  ;;  %v6392_v53 = vmax.f32 %v5792_v57, %v12819_v52  ;;  %v6393_v37 = vmax.f32 %v5793_v23, %v12820_v46  ;;  %v6470_v41 = vmax.f32 %v6382_v38, %v6390_v11  ;;  %v18148_v57 = vld [vmem:[#allocation16_spill] sm:$0xff] }
 0x3a9   : > { %v6775_v17 = vsel %vm6704_vm14, %v6774_v13, %v6773_v60  ;;  %v7005_v32 = vrot.slane %v7003_v16, 5  ;;  %v5550_v58 = vadd.f32 %v17178_v8, %v17197_v2  ;;  %v5463_v38 = vadd.f32 %v17148_v61, %v17201_v39  ;;  %8440 = vmatmul.bf16.gmra.mxu1 %v12952_v19  ;;  %v7158_v61 = vld [vmem:[#allocation4 + $0x1c] sm:$0x1]  ;;  %v12959_v16 = vld [vmem:[#allocation5 + $0x98] sm:$0xf]  ;;  %v5556_v60 = vpop.f32.mrf.mxu3 }
 0x3aa   : > { %v6777_v62 = vsel %vm6707_vm15, %v6776_v4, %v6775_v17  ;;  %v6471_v22 = vmax.f32 %v6383_v49, %v6391_v27  ;;  %v6472_v50 = vmax.f32 %v6384_v24, %v6392_v53  ;;  %v6473_v14 = vmax.f32 %v6385_v44, %v6393_v37  ;;  %v14800_v2 = vld [vmem:[#allocation5 + $0xb8] sm:$0xf0]  ;;  %v7157_v11 = vld [vmem:[#allocation4 + $0x18] sm:$0xf]  ;;  %v17249_v37 = vld [vmem:[#allocation4 + $0x1c] sm:$0x1]  ;;  %v17253_v17 = vpop.f32.mrf.mxu1 }
 0x3ab   : > { %v6779_v3 = vsel %vm6710_vm0, %v6778_v6, %v6777_v62  ;;  %v6554_v47 = vpack.c.bf16 %v6470_v41, %v6470_v41  ;;  %v5639_v24 = vadd.f32 %v5638_v48, %v5550_v58  ;;  %v7009_v44 = vshll.u32 %v6924_v63, 16  ;;  %v6879_v19 = vld [vmem:[#allocation4 + $0x30] sm:$0xf]  ;;  %v18150_v62 = vld [vmem:[#allocation18_spill] sm:$0xff] }
 0x3ac   : > { %v6555_v55 = vpack.c.bf16 %v6471_v22, %v6471_v22  ;;  %v6556_v10 = vpack.c.bf16 %v6472_v50, %v6472_v50  ;;  %v6557_v54 = vpack.c.bf16 %v6473_v14, %v6473_v14  ;;  %v7006_v21 = vor.u32 %v7005_v32, %v7002_v56 }
 0x3ad   : > { %v6682_v49 = vunpack.c.l.b16 %v6554_v47  ;;  %v5552_v39 = vadd.f32 %v17213_v36, %v5463_v38  ;;  %v5377_v23 = vadd.f32 %v17143_v1, %v18148_v57  ;;  %v5379_v31 = vadd.f32 %v17156_v43, %v18149_v51  ;;  %v7159_v57 = vld [vmem:[#allocation4 + $0x20] sm:$0xf]  ;;  %v7540_v51 = vld [vmem:[#allocation4 + $0x18] sm:$0xe] }
 0x3ae   : > { %v6683_v0 = vunpack.c.l.b16 %v6555_v55  ;;  %v6684_v15 = vunpack.c.l.b16 %v6556_v10  ;;  %v6685_v8 = vunpack.c.l.b16 %v6557_v54  ;;  %v7411_v20 = vshrl.u32 %v17235_v5, 16  ;;  %v5640_v14 = vpop.f32.mrf.mxu0  ;;  %v7304_v55 = vld [vmem:[#allocation4 + $0x24] sm:$0x1] }
 0x3af   : > { %v6780_v28 = vrot.slane %v6682_v49, 3  ;;  %v17244_v4 = vmax.f32 %v5639_v24, 0.0  ;;  %v12960_v36 = vor.u32 %v14800_v2, %v12959_v16  ;;  %v7207_v56 = vshll.u32 %v7158_v61, 16  ;;  %v17278_v2 = vld [vmem:[%s18114_s4] ss:$0 sm:$0xff] }
 0x3b0   : > { %v6782_v30 = vrot.slane %v6683_v0, 2  ;;  %v6784_v52 = vrot.slane %v6684_v15, 1  ;;  %v6823_v46 = vpack.c.b16 %v6685_v8, %v6685_v8  ;;  %v7007_v27 = vrot.slane %v7006_v21, 4  ;;  %v7140_v21 = vld [vmem:[#allocation4 + $0x20] sm:$0xf] }
 0x3b1   : > { %v6781_v13 = vsel %vm6713_vm1, %v6780_v28, %v6779_v3  ;;  %v7011_v53 = vrot.slane %v7009_v44, 5  ;;  %v5466_v41 = vadd.f32 %v17164_v59, %v5377_v23  ;;  %v5468_v40 = vadd.f32 %v17203_v34, %v5379_v31  ;;  %8498 = vmatmul.bf16.gmra.mxu3 %v12960_v36  ;;  %v5475_v3 = vpop.f32.mrf.mxu2  ;;  %v7303_v61 = vld [vmem:[#allocation4 + $0x20] sm:$0xe]  ;;  %7148 = vst [vmem:[#allocation5 + $0x78] sm:$0xf] %v7140_v21 }
 0x3b2   : > { %v6783_v1 = vsel %vm6716_vm4, %v6782_v30, %v6781_v13  ;;  %v6883_v43 = vsel %vm16795_vm10, %v6823_v46, %v6882_v33  ;;  %v7198_v32 = vshrl.u32 %v7157_v11, 16  ;;  %v5382_v22 = vadd.f32 %v17188_v26, %v18150_v62  ;;  %v7160_v33 = vld [vmem:[#allocation4 + $0x24] sm:$0x1] }
 0x3b3   : > { %v6785_v6 = vsel %vm6719_vm6, %v6784_v52, %v6783_v1  ;;  %6884 = vst [vmem:[#allocation4 + $0x34] sm:$0x1] %v6883_v43  ;;  %v7012_v48 = vsel %vm15616_vm9, %v7007_v27, %v7011_v53  ;;  %v7201_v63 = vshll.u32 %v7157_v11, 16  ;;  %v5794_v59 = vrot.slane %v17244_v4, 2  ;;  %v18152_v1 = vld [vmem:[#allocation20_spill] sm:$0xff] }
 0x3b4   : > { %v6822_v50 = vpack.c.b16 %v6785_v6, %v6785_v6  ;;  %7054 = vst [vmem:[#allocation5 + $0xb8] sm:$0xf] %v7012_v48  ;;  %v7209_v34 = vrot.slane %v7207_v56, 5  ;;  %v7576_v58 = vrot.slane %v17249_v37, 5  ;;  %v17262_v38 = vrot.slane %v7411_v20, 4  ;;  %v5559_v20 = vpop.f32.mrf.mxu3 }
 0x3b5   : > { %v5795_v26 = vrot.slane %v17244_v4, 4  ;;  %v7200_v10 = vrot.slane %v7198_v32, 4  ;;  %v7203_v54 = vrot.slane %v7201_v63, 5  ;;  %v5796_v49 = vrot.slane %v17244_v4, 6 }
 0x3b6   : > { %v6880_v47 = vsel %vm16819_vm2, %v6822_v50, %v6879_v19  ;;  %v12821_v24 = vrot.slane %v17244_v4, 9  ;;  %v5641_v44 = vadd.f32 %v5640_v14, %v5552_v39  ;;  %v7414_v0 = vshll.u32 %v17235_v5, 16  ;;  %v18151_v39 = vld [vmem:[#allocation19_spill] sm:$0xff] }
 0x3b7   : > { %6881 = vst [vmem:[#allocation4 + $0x30] sm:$0xf] %v6880_v47  ;;  %v17271_v15 = vadd.f32 %v17222_v29, %v5466_v41  ;;  %v17273_v8 = vadd.f32 %v5556_v60, %v5468_v40  ;;  %v7204_v23 = vor.u32 %v7203_v54, %v7200_v10  ;;  %v5471_v31 = vadd.f32 %v17218_v25, %v5382_v22  ;;  %v8431_v60 = vpop.f32.mrf.mxu1 }
 0x3b8   : > { %v5384_v5 = vadd.f32 %v17216_v42, %v18151_v39  ;;  %v12864_v29 = vrot.slane %v7303_v61, 9  ;;  %v7343_v28 = vrot.slane %v7304_v55, 5  ;;  %v12822_v16 = vrot.slane %v5794_v59, 9  ;;  %v14795_v42 = vld [vmem:[#allocation5 + $0x94] sm:$0xf] }
 0x3b9   : > { %v12823_v30 = vrot.slane %v5795_v26, 9  ;;  %v7205_v46 = vrot.slane %v7204_v23, 4  ;;  %v7212_v11 = vshrl.u32 %v7159_v57, 16  ;;  %v12824_v25 = vrot.slane %v5796_v49, 9 }
 0x3ba   : > { %v7070_v52 = vld [vmem:[#allocation4 + $0x34] sm:$0x1]  ;;  %v17289_v13 = vmax.f32 %v5641_v44, 0.0  ;;  %v7344_v36 = vsel %vm15602_vm3, %v12864_v29, %v7343_v28  ;;  %v7215_v56 = vshll.u32 %v7159_v57, 16  ;;  %v5387_v43 = vadd.f32 %v17224_v35, %v18152_v1  ;;  %v17311_v44 = vpop.f32.mrf.mxu2 }
 0x3bb   : > { %v12953_v27 = vld [vmem:[#allocation5 + $0xb4] sm:$0xf0]  ;;  %7372 = vst [vmem:[#allocation5 + $0x80] sm:$0xf] %v7344_v36  ;;  %v7210_v53 = vsel %vm15616_vm9, %v7205_v46, %v7209_v34  ;;  %v7214_v41 = vrot.slane %v7212_v11, 4  ;;  %v7221_v40 = vshll.u32 %v7160_v33, 16  ;;  %v17297_v22 = vadd.f32 %v5559_v20, %v5471_v31 }
 0x3bc   : > { %v12956_v6 = vor.u32 %v14795_v42, %v12953_v27  ;;  %v7115_v19 = vrot.slane %v7070_v52, 5  ;;  %v7217_v32 = vrot.slane %v7215_v56, 5  ;;  %7291 = vst [vmem:[#allocation5 + $0x58] sm:$0xf] %v7210_v53  ;;  %v12870_v62 = vrot.slane %v7540_v51, 9  ;;  %v14844_v33 = vld [vmem:[%s18113_s3 + $0xf8] sm:$0xff] }
 0x3bd   : > { %v17300_v50 = vadd.f32 %v17233_v7, %v5384_v5  ;;  %v17302_v14 = vadd.f32 %v5475_v3, %v5387_v43  ;;  %v17305_v35 = vadd.f32 %v17278_v2, %v8431_v60  ;;  %v7395_v7 = vld [vmem:[#allocation4 + $0x14] sm:$0x1]  ;;  %v17314_v3 = vmax.f32 %v17244_v4, %v12821_v24  ;;  %v14859_v36 = vld [vmem:[%s18113_s3 + $0x170] sm:$0xff]  ;;  %8509 = vmatpush.bf16.msrb.mxu1 %v14844_v33 }
 0x3be   : > { %v6903_v48 = vld [vmem:[#allocation4 + $0x30] sm:$0xf]  ;;  %8469 = vmatmul.bf16.gmra.mxu2 %v12956_v6  ;;  %v7218_v10 = vor.u32 %v7217_v32, %v7214_v41  ;;  %v7577_v54 = vsel %vm15602_vm3, %v12870_v62, %v7576_v58  ;;  %v17318_v21 = vmax.f32 %v5794_v59, %v12822_v16  ;;  %v6926_v61 = vld [vmem:[#allocation4 + $0x34] sm:$0x1]  ;;  %v7416_v23 = vrot.slane %v7414_v0, 5  ;;  %v14852_v59 = vld [vmem:[%s18113_s3 + $0x138] sm:$0xff] }
 0x3bf   : > { %v7069_v63 = vld [vmem:[#allocation4 + $0x30] sm:$0xe]  ;;  %6911 = vst [vmem:[#allocation5 + $0xd8] sm:$0xf] %v6903_v48  ;;  %v7223_v39 = vrot.slane %v7221_v40, 5  ;;  %v5797_v5 = vrot.slane %v17289_v13, 2  ;;  %v6396_v11 = vmax.f32 %v5795_v26, %v12823_v30  ;;  %v6397_v20 = vmax.f32 %v5796_v49, %v12824_v25  ;;  %8538 = vmatpush.bf16.msrb.mxu2 %v14852_v59 }
 0x3c0   : > { %v6925_v34 = vld [vmem:[#allocation4 + $0x30] sm:$0xf]  ;;  %v12859_v47 = vrot.slane %v7069_v63, 9  ;;  %7611 = vst [vmem:[#allocation5 + $0x44] sm:$0xf] %v7577_v54  ;;  %v7219_v58 = vrot.slane %v7218_v10, 4  ;;  %v7417_v28 = vor.u32 %v7416_v23, %v17262_v38 }
 0x3c1   : > { %v7014_v55 = vshrl.u32 %v6925_v34, 16  ;;  %v7017_v57 = vshll.u32 %v6925_v34, 16  ;;  %v5643_v51 = vpop.f32.mrf.mxu0  ;;  %v5798_v24 = vrot.slane %v17289_v13, 4  ;;  %v14860_v0 = vld [vmem:[%s18113_s3 + $0x178] sm:$0xff]  ;;  %v7023_v52 = vshll.u32 %v6926_v61, 16  ;;  %v14851_v38 = vld [vmem:[%s18113_s3 + $0x130] sm:$0xff] }
 0x3c2   : > { %v7116_v37 = vsel %vm15602_vm3, %v12859_v47, %v7115_v19  ;;  %v5644_v29 = vadd.f32 %v5643_v51, %v17271_v15  ;;  %v7224_v15 = vsel %vm15616_vm9, %v7219_v58, %v7223_v39  ;;  %v7420_v46 = vshll.u32 %v7395_v7, 16  ;;  %8567 = vmatpush.bf16.msrb.mxu3 %v14860_v0  ;;  %v14843_v4 = vld [vmem:[%s18113_s3 + $0xf0] sm:$0xff]  ;;  %v8433_v19 = vpop.f32.mrf.mxu1  ;;  %v14850_v47 = vld [vmem:[%s18113_s3 + $0x128] sm:$0xff]  ;;  %v17371_v39 = vpop.f32.mrf.mxu3 }
 0x3c3   : > { %v7016_v31 = vrot.slane %v7014_v55, 4  ;;  %7135 = vst [vmem:[#allocation5 + $0xe0] sm:$0xf] %v7116_v37  ;;  %v7019_v16 = vrot.slane %v7017_v57, 5  ;;  %v5799_v60 = vrot.slane %v17289_v13, 6  ;;  %v12825_v56 = vrot.slane %v17289_v13, 9  ;;  %8539 = vmatpush.bf16.msrb.mxu2 %v14851_v38  ;;  %8510 = vmatpush.bf16.msrb.mxu1 %v14843_v4 }
 0x3c4   : > { %v5684_v42 = vmax.f32 %v5644_v29, 0.0  ;;  %7292 = vst [vmem:[#allocation5 + $0x7c] sm:$0xf] %v7224_v15  ;;  %v7418_v49 = vrot.slane %v7417_v28, 4  ;;  %v7422_v30 = vrot.slane %v7420_v46, 5  ;;  %v12826_v53 = vrot.slane %v5797_v5, 9 }
 0x3c5   : > { %v7020_v26 = vor.u32 %v7019_v16, %v7016_v31  ;;  %v7025_v40 = vrot.slane %v7023_v52, 5  ;;  %v12827_v55 = vrot.slane %v5798_v24, 9  ;;  %v12828_v10 = vrot.slane %v5799_v60, 9  ;;  %v14858_v61 = vld [vmem:[%s18113_s3 + $0x168] sm:$0xff] }
 0x3c6   : > { %v5800_v25 = vrot.slane %v5684_v42, 2  ;;  %v5801_v1 = vrot.slane %v5684_v42, 4  ;;  %v5802_v43 = vrot.slane %v5684_v42, 6  ;;  %v12829_v27 = vrot.slane %v5684_v42, 9  ;;  %8568 = vmatpush.bf16.msrb.mxu3 %v14859_v36  ;;  %v14842_v57 = vld [vmem:[%s18113_s3 + $0xe8] sm:$0xff] }
 0x3c7   : > { %v7021_v41 = vrot.slane %v7020_v26, 4  ;;  %v7423_v6 = vsel %vm15616_vm9, %v7418_v49, %v7422_v30  ;;  %v8434_v29 = vadd.f32 %v17278_v2, %v8433_v19  ;;  %v6398_v59 = vmax.f32 %v17289_v13, %v12825_v56  ;;  %8540 = vmatpush.bf16.msrb.mxu2 %v14850_v47  ;;  %8511 = vmatpush.bf16.msrb.mxu1 %v14842_v57 }
 0x3c8   : > { %v8460_v32 = vpop.f32.mrf.mxu2  ;;  %v12830_v62 = vrot.slane %v5800_v25, 9  ;;  %v12831_v48 = vrot.slane %v5801_v1, 9  ;;  %v12832_v63 = vrot.slane %v5802_v43, 9  ;;  %v6402_v34 = vmax.f32 %v5684_v42, %v12829_v27  ;;  %7530 = vst [vmem:[#allocation5 + $0x1c] sm:$0xf] %v7423_v6 }
 0x3c9   : > { %v17360_v54 = vadd.f32 %v8460_v32, %v17305_v35  ;;  %v5645_v7 = vpop.f32.mrf.mxu0  ;;  %v7026_v23 = vsel %vm15616_vm9, %v7021_v41, %v7025_v40  ;;  %v7396_v35 = vld [vmem:[#allocation4 + $0x18] sm:$0xf]  ;;  %v6399_v0 = vmax.f32 %v5797_v5, %v12826_v53  ;;  %v6401_v46 = vmax.f32 %v5799_v60, %v12828_v10 }
 0x3ca   : > { %v6403_v51 = vmax.f32 %v5800_v25, %v12830_v62  ;;  %v6404_v37 = vmax.f32 %v5801_v1, %v12831_v48  ;;  %v6405_v31 = vmax.f32 %v5802_v43, %v12832_v63  ;;  %v6474_v58 = vmax.f32 %v17314_v3, %v6402_v34  ;;  %7055 = vst [vmem:[#allocation5 + $0xdc] sm:$0xf] %v7026_v23  ;;  %v7397_v1 = vld [vmem:[#allocation4 + $0x1c] sm:$0x1] }
 0x3cb   : > { %v5646_v28 = vadd.f32 %v5645_v7, %v17273_v8  ;;  %v6400_v3 = vmax.f32 %v5798_v24, %v12827_v55  ;;  %8569 = vmatpush.bf16.msrb.mxu3 %v14858_v61  ;;  %v7425_v38 = vshrl.u32 %v7396_v35, 16  ;;  %v7428_v13 = vshll.u32 %v7396_v35, 16  ;;  %v5564_v7 = vpop.f32.mrf.mxu3  ;;  %v14857_v35 = vld [vmem:[%s18113_s3 + $0x160] sm:$0xff] }
 0x3cc   : > { %v6475_v33 = vmax.f32 %v17318_v21, %v6403_v51  ;;  %v6476_v16 = vmax.f32 %v6396_v11, %v6404_v37  ;;  %v6477_v52 = vmax.f32 %v6397_v20, %v6405_v31  ;;  %v6558_v15 = vpack.c.bf16 %v6474_v58, %v6474_v58  ;;  %v14849_v58 = vld [vmem:[%s18113_s3 + $0x120] sm:$0xff] }
 0x3cd   : > { %v5685_v42 = vmax.f32 %v5646_v28, 0.0  ;;  %v7434_v63 = vshll.u32 %v7397_v1, 16  ;;  %8541 = vmatpush.bf16.msrb.mxu2 %v14849_v58  ;;  %v7161_v1 = vld [vmem:[#allocation4 + $0x28] sm:$0xf] }
 0x3ce   : > { %v6559_v36 = vpack.c.bf16 %v6475_v33, %v6475_v33  ;;  %v6560_v4 = vpack.c.bf16 %v6476_v16, %v6476_v16  ;;  %v6561_v56 = vpack.c.bf16 %v6477_v52, %v6477_v52  ;;  %v6686_v5 = vunpack.c.l.b16 %v6558_v15  ;;  %v7141_v15 = vld [vmem:[#allocation4 + $0x28] sm:$0xf] }
 0x3cf   : > { %v5803_v26 = vrot.slane %v5685_v42, 2  ;;  %v5804_v8 = vrot.slane %v5685_v42, 4  ;;  %v5805_v49 = vrot.slane %v5685_v42, 6  ;;  %v12833_v21 = vrot.slane %v5685_v42, 9  ;;  %8570 = vmatpush.bf16.msrb.mxu3 %v14857_v35  ;;  %7149 = vst [vmem:[#allocation5 + $0x9c] sm:$0xf] %v7141_v15 }
 0x3d0   : > { %v6687_v11 = vunpack.c.l.b16 %v6559_v36  ;;  %v6688_v20 = vunpack.c.l.b16 %v6560_v4  ;;  %v6689_v30 = vunpack.c.l.b16 %v6561_v56  ;;  %v8462_v25 = vpop.f32.mrf.mxu2  ;;  %v6786_v41 = vrot.slane %v6686_v5, 7  ;;  %v14856_v15 = vld [vmem:[%s18113_s3 + $0x158] sm:$0xff] }
 0x3d1   : > { %v17379_v24 = vadd.f32 %v8462_v25, %v8434_v29  ;;  %v12834_v60 = vrot.slane %v5803_v26, 9  ;;  %v12835_v43 = vrot.slane %v5804_v8, 9  ;;  %v12836_v27 = vrot.slane %v5805_v49, 9  ;;  %v5648_v53 = vpop.f32.mrf.mxu0 }
 0x3d2   : > { %v6787_v40 = vrot.slane %v6687_v11, 6  ;;  %v6789_v6 = vrot.slane %v6688_v20, 5  ;;  %v6406_v19 = vmax.f32 %v5685_v42, %v12833_v21  ;;  %v6791_v47 = vrot.slane %v6689_v30, 4  ;;  %v7305_v11 = vld [vmem:[#allocation4 + $0x28] sm:$0xe] }
 0x3d3   : > { %v6407_v32 = vmax.f32 %v5803_v26, %v12834_v60  ;;  %v6408_v62 = vmax.f32 %v5804_v8, %v12835_v43  ;;  %v6409_v48 = vmax.f32 %v5805_v49, %v12836_v27  ;;  %v5649_v10 = vadd.f32 %v5648_v53, %v17297_v22  ;;  %v14841_v22 = vld [vmem:[%s18113_s3 + $0xe0] sm:$0xff]  ;;  %v6888_v8 = vld [vmem:[#allocation4 + $0x3c] sm:$0x1]  ;;  %8571 = vmatpush.bf16.msrb.mxu3 %v14856_v15 }
 0x3d4   : > { %v6788_v34 = vsel %vm6704_vm14, %v6787_v40, %v6786_v41  ;;  %v6478_v55 = vmax.f32 %v6398_v59, %v6406_v19  ;;  %v7427_v29 = vrot.slane %v7425_v38, 4  ;;  %v7430_v59 = vrot.slane %v7428_v13, 5  ;;  %v7162_v38 = vld [vmem:[#allocation4 + $0x2c] sm:$0x1]  ;;  %8512 = vmatpush.bf16.msrb.mxu1 %v14841_v22  ;;  %v6885_v41 = vld [vmem:[#allocation4 + $0x38] sm:$0xf] }
 0x3d5   : > { %v6790_v61 = vsel %vm6707_vm15, %v6789_v6, %v6788_v34  ;;  %v6479_v57 = vmax.f32 %v6399_v0, %v6407_v32  ;;  %v6480_v23 = vmax.f32 %v6400_v3, %v6408_v62  ;;  %v6481_v51 = vmax.f32 %v6401_v46, %v6409_v48  ;;  %v18153_v0 = vld [vmem:[#allocation21_spill] sm:$0xff]  ;;  %v7306_v3 = vld [vmem:[#allocation4 + $0x2c] sm:$0x1] }
 0x3d6   : > { %v6792_v37 = vsel %vm6710_vm0, %v6791_v47, %v6790_v61  ;;  %v6562_v31 = vpack.c.bf16 %v6478_v55, %v6478_v55  ;;  %v5389_v28 = vadd.f32 %v17253_v17, %v18153_v0  ;;  %v5562_v46 = vadd.f32 %v17371_v39, %v17300_v50  ;;  %v5566_v61 = vpop.f32.mrf.mxu3  ;;  %v14848_v0 = vld [vmem:[%s18113_s3 + $0x118] sm:$0xff]  ;;  %v14853_v15 = vld [vmem:[%s18113_s3 + $0x140] sm:$0xff] }
 0x3d7   : > { %v6563_v33 = vpack.c.bf16 %v6479_v57, %v6479_v57  ;;  %v6564_v16 = vpack.c.bf16 %v6480_v23, %v6480_v23  ;;  %v6565_v52 = vpack.c.bf16 %v6481_v51, %v6481_v51  ;;  %v5565_v42 = vadd.f32 %v5564_v7, %v17302_v14  ;;  %8542 = vmatpush.bf16.msrb.mxu2 %v14848_v0  ;;  %v14845_v0 = vld [vmem:[%s18113_s3 + $0x100] sm:$0xff] }
 0x3d8   : > { %v6690_v36 = vunpack.c.l.b16 %v6562_v31  ;;  %v17399_v4 = vmax.f32 %v5649_v10, 0.0  ;;  %v5478_v56 = vadd.f32 %v17311_v44, %v5389_v28  ;;  %v7347_v50 = vrot.slane %v7306_v3, 5  ;;  %v14840_v10 = vld [vmem:[%s18113_s3 + $0xd8] sm:$0xff] }
 0x3d9   : > { %v6691_v17 = vunpack.c.l.b16 %v6563_v33  ;;  %v6692_v5 = vunpack.c.l.b16 %v6564_v16  ;;  %v6693_v26 = vunpack.c.l.b16 %v6565_v52  ;;  %v5650_v49 = vpop.f32.mrf.mxu0  ;;  %v7431_v39 = vor.u32 %v7430_v59, %v7427_v29  ;;  %8513 = vmatpush.bf16.msrb.mxu1 %v14840_v10 }
 0x3da   : > { %v6793_v21 = vrot.slane %v6690_v36, 3  ;;  %v7436_v14 = vrot.slane %v7434_v63, 5  ;;  %v7235_v13 = vshll.u32 %v7162_v38, 16  ;;  %v5806_v44 = vrot.slane %v17399_v4, 2 }
 0x3db   : > { %v6795_v20 = vrot.slane %v6691_v17, 2  ;;  %v6797_v30 = vrot.slane %v6692_v5, 1  ;;  %v6825_v25 = vpack.c.b16 %v6693_v26, %v6693_v26  ;;  %v5807_v43 = vrot.slane %v17399_v4, 4 }
 0x3dc   : > { %v6794_v60 = vsel %vm6713_vm1, %v6793_v21, %v6792_v37  ;;  %v5808_v27 = vrot.slane %v17399_v4, 6  ;;  %v5651_v6 = vadd.f32 %v5650_v49, %v5562_v46  ;;  %v12865_v19 = vrot.slane %v7305_v11, 9 }
 0x3dd   : > { %v6796_v53 = vsel %vm6716_vm4, %v6795_v20, %v6794_v60  ;;  %v6889_v40 = vsel %vm16795_vm10, %v6825_v25, %v6888_v8  ;;  %v7226_v62 = vshrl.u32 %v7161_v1, 16  ;;  %v7229_v48 = vshll.u32 %v7161_v1, 16  ;;  %v14838_v1 = vld [vmem:[%s18113_s3 + $0xc8] sm:$0xff] }
 0x3de   : > { %v6798_v32 = vsel %vm6719_vm6, %v6797_v30, %v6796_v53  ;;  %6890 = vst [vmem:[#allocation4 + $0x3c] sm:$0x1] %v6889_v40  ;;  %v7432_v63 = vrot.slane %v7431_v39, 4  ;;  %v12837_v47 = vrot.slane %v17399_v4, 9  ;;  %v5687_v55 = vmax.f32 %v5651_v6, 0.0 }
 0x3df   : > { %v6824_v34 = vpack.c.b16 %v6798_v32, %v6798_v32  ;;  %v7348_v7 = vsel %vm15602_vm3, %v12865_v19, %v7347_v50  ;;  %v12838_v57 = vrot.slane %v5806_v44, 9  ;;  %v7228_v23 = vrot.slane %v7226_v62, 4 }
 0x3e0   : > { %7373 = vst [vmem:[#allocation5 + $0xa4] sm:$0xf] %v7348_v7  ;;  %v7231_v51 = vrot.slane %v7229_v48, 5  ;;  %v7437_v37 = vsel %vm15616_vm9, %v7432_v63, %v7436_v14  ;;  %v5809_v58 = vrot.slane %v5687_v55, 2  ;;  %v5810_v35 = vrot.slane %v5687_v55, 4 }
 0x3e1   : > { %v6886_v31 = vsel %vm16819_vm2, %v6824_v34, %v6885_v41  ;;  %v5811_v22 = vrot.slane %v5687_v55, 6  ;;  %v5653_v29 = vpop.f32.mrf.mxu0  ;;  %7531 = vst [vmem:[#allocation5 + $0x40] sm:$0xf] %v7437_v37  ;;  %v5567_v33 = vadd.f32 %v5566_v61, %v5478_v56  ;;  %v12839_v16 = vrot.slane %v5807_v43, 9  ;;  %v14839_v56 = vld [vmem:[%s18113_s3 + $0xd0] sm:$0xff] }
 0x3e2   : > { %6887 = vst [vmem:[#allocation4 + $0x38] sm:$0xf] %v6886_v31  ;;  %v5654_v59 = vadd.f32 %v5653_v29, %v5565_v42  ;;  %v7232_v28 = vor.u32 %v7231_v51, %v7228_v23  ;;  %v12840_v52 = vrot.slane %v5808_v27, 9  ;;  %v7237_v3 = vrot.slane %v7235_v13, 5  ;;  %v14847_v42 = vld [vmem:[%s18113_s3 + $0x110] sm:$0xff]  ;;  %8514 = vmatpush.bf16.msrb.mxu1 %v14839_v56  ;;  %v14846_v13 = vld [vmem:[%s18113_s3 + $0x108] sm:$0xff] }
 0x3e3   : > { %v6410_v46 = vmax.f32 %v17399_v4, %v12837_v47  ;;  %v12841_v36 = vrot.slane %v5687_v55, 9  ;;  %v6411_v5 = vmax.f32 %v5806_v44, %v12838_v57  ;;  %v12842_v26 = vrot.slane %v5809_v58, 9  ;;  %v14855_v4 = vld [vmem:[%s18113_s3 + $0x150] sm:$0xff]  ;;  %8543 = vmatpush.bf16.msrb.mxu2 %v14847_v42  ;;  %v7380_v23 = vld [vmem:[#allocation4 + $0x20] sm:$0xf] }
 0x3e4   : > { %v5688_v38 = vmax.f32 %v5654_v59, 0.0  ;;  %v7233_v17 = vrot.slane %v7232_v28, 4  ;;  %v12843_v8 = vrot.slane %v5810_v35, 9  ;;  %v12844_v49 = vrot.slane %v5811_v22, 9  ;;  %8572 = vmatpush.bf16.msrb.mxu3 %v14855_v4  ;;  %7388 = vst [vmem:[#allocation5 + $0x60] sm:$0xf] %v7380_v23 }
 0x3e5   : > { %v7072_v21 = vld [vmem:[#allocation4 + $0x3c] sm:$0x1]  ;;  %v6412_v20 = vmax.f32 %v5807_v43, %v12839_v16  ;;  %v6413_v30 = vmax.f32 %v5808_v27, %v12840_v52  ;;  %v14854_v43 = vld [vmem:[%s18113_s3 + $0x148] sm:$0xff]  ;;  %v17447_v27 = vmax.f32 %v5687_v55, %v12841_v36  ;;  %v17449_v6 = vmax.f32 %v5809_v58, %v12842_v26  ;;  %v14837_v58 = vld [vmem:[%s18113_s3 + $0xc0] sm:$0xff] }
 0x3e6   : > { %v5812_v11 = vrot.slane %v5688_v38, 2  ;;  %v5813_v50 = vrot.slane %v5688_v38, 4  ;;  %v5814_v39 = vrot.slane %v5688_v38, 6  ;;  %v12845_v14 = vrot.slane %v5688_v38, 9  ;;  %v6928_v57 = vld [vmem:[#allocation4 + $0x3c] sm:$0x1]  ;;  %8515 = vmatpush.bf16.msrb.mxu1 %v14838_v1 }
 0x3e7   : > { %v7119_v25 = vrot.slane %v7072_v21, 5  ;;  %v7238_v60 = vsel %vm15616_vm9, %v7233_v17, %v7237_v3  ;;  %v17451_v19 = vmax.f32 %v5810_v35, %v12843_v8  ;;  %v17453_v32 = vmax.f32 %v5811_v22, %v12844_v49  ;;  %8544 = vmatpush.bf16.msrb.mxu2 %v14846_v13  ;;  %v12987_v21 = vld [vmem:[#allocation5 + $0xd8] sm:$0xf] }
 0x3e8   : > { %v12846_v44 = vrot.slane %v5812_v11, 9  ;;  %v12847_v53 = vrot.slane %v5813_v50, 9  ;;  %v12848_v41 = vrot.slane %v5814_v39, 9  ;;  %v6418_v40 = vmax.f32 %v5688_v38, %v12845_v14  ;;  %7293 = vst [vmem:[#allocation5 + $0xa0] sm:$0xf] %v7238_v60  ;;  %8573 = vmatpush.bf16.msrb.mxu3 %v14854_v43  ;;  %v14884_v43 = vld [vmem:[%s18113_s3 + $0x238] sm:$0xff] }
 0x3e9   : > { %v5655_v62 = vpop.f32.mrf.mxu0  ;;  %v6904_v48 = vld [vmem:[#allocation4 + $0x38] sm:$0xf]  ;;  %v7037_v52 = vshll.u32 %v6928_v57, 16 }
 0x3ea   : > { %v7071_v63 = vld [vmem:[#allocation4 + $0x38] sm:$0xe]  ;;  %v6419_v47 = vmax.f32 %v5812_v11, %v12846_v44  ;;  %v6420_v10 = vmax.f32 %v5813_v50, %v12847_v53  ;;  %v6421_v7 = vmax.f32 %v5814_v39, %v12848_v41  ;;  %v6482_v61 = vmax.f32 %v6410_v46, %v6418_v40  ;;  %6912 = vst [vmem:[#allocation5 + $0xfc] sm:$0xf] %v6904_v48  ;;  %v14876_v40 = vld [vmem:[%s18113_s3 + $0x1f8] sm:$0xff] }
 0x3eb   : > { %v6927_v34 = vld [vmem:[#allocation4 + $0x38] sm:$0xf]  ;;  %v5656_v55 = vadd.f32 %v5655_v62, %v5567_v33  ;;  %v12860_v51 = vrot.slane %v7071_v63, 9  ;;  %8516 = vmatpush.bf16.msrb.mxu1 %v14837_v58  ;;  %8545 = vmatpush.bf16.msrb.mxu2 %v14845_v0  ;;  %v14868_v62 = vld [vmem:[%s18113_s3 + $0x1b8] sm:$0xff] }
 0x3ec   : > { %v7028_v37 = vshrl.u32 %v6927_v34, 16  ;;  %v7031_v31 = vshll.u32 %v6927_v34, 16  ;;  %v6483_v35 = vmax.f32 %v6411_v5, %v6419_v47  ;;  %v6484_v22 = vmax.f32 %v6412_v20, %v6420_v10  ;;  %8574 = vmatpush.bf16.msrb.mxu3 %v14853_v15  ;;  %v12995_v34 = vld [vmem:[#allocation5 + $0xe0] sm:$0xf]  ;;  %v7542_v0 = vld [vmem:[#allocation4 + $0x20] sm:$0xe] }
 0x3ed   : > { %v6485_v29 = vmax.f32 %v6413_v30, %v6421_v7  ;;  %v6566_v59 = vpack.c.bf16 %v6482_v61, %v6482_v61  ;;  %v5689_v28 = vmax.f32 %v5656_v55, 0.0  ;;  %v7120_v33 = vsel %vm15602_vm3, %v12860_v51, %v7119_v25  ;;  %v14875_v55 = vld [vmem:[%s18113_s3 + $0x1f0] sm:$0xff]  ;;  %v7308_v51 = vld [vmem:[#allocation4 + $0x34] sm:$0x1] }
 0x3ee   : > { %v7030_v16 = vrot.slane %v7028_v37, 4  ;;  %v6567_v3 = vpack.c.bf16 %v6483_v35, %v6483_v35  ;;  %v6568_v46 = vpack.c.bf16 %v6484_v22, %v6484_v22  ;;  %7136 = vst [vmem:[#allocation5 + $0x104] sm:$0xf] %v7120_v33  ;;  %v7033_v4 = vrot.slane %v7031_v31, 5  ;;  %v7164_v22 = vld [vmem:[#allocation4 + $0x34] sm:$0x1] }
 0x3ef   : > { %v6569_v36 = vpack.c.bf16 %v6485_v29, %v6485_v29  ;;  %v6694_v38 = vunpack.c.l.b16 %v6566_v59  ;;  %v5815_v42 = vrot.slane %v5689_v28, 2  ;;  %v5816_v56 = vrot.slane %v5689_v28, 4  ;;  %8625 = vmatpush.bf16.msra.mxu2 %v14876_v40  ;;  %8596 = vmatpush.bf16.msra.mxu1 %v14868_v62  ;;  %v7142_v59 = vld [vmem:[#allocation4 + $0x30] sm:$0xf]  ;;  %v6894_v33 = vld [vmem:[#allocation4 + $0x44] sm:$0x1] }
 0x3f0   : > { %v5817_v17 = vrot.slane %v5689_v28, 6  ;;  %v12849_v5 = vrot.slane %v5689_v28, 9  ;;  %v6695_v26 = vunpack.c.l.b16 %v6567_v3  ;;  %v6696_v8 = vunpack.c.l.b16 %v6568_v46  ;;  %8654 = vmatpush.bf16.msra.mxu3 %v14884_v43  ;;  %v14867_v15 = vld [vmem:[%s18113_s3 + $0x1b0] sm:$0xff]  ;;  %7150 = vst [vmem:[#allocation5 + $0xc0] sm:$0xf] %v7142_v59  ;;  %v14882_v59 = vld [vmem:[%s18113_s3 + $0x228] sm:$0xff] }
 0x3f1   : > { %v6697_v49 = vunpack.c.l.b16 %v6569_v36  ;;  %v12850_v11 = vrot.slane %v5815_v42, 9  ;;  %v12851_v50 = vrot.slane %v5816_v56, 9  ;;  %v14808_v20 = vld [vmem:[#allocation5 + $0xf8] sm:$0xf0]  ;;  %v6799_v30 = vrot.slane %v6694_v38, 7 }
 0x3f2   : > { %v12852_v39 = vrot.slane %v5817_v17, 9  ;;  %v6422_v14 = vmax.f32 %v5689_v28, %v12849_v5  ;;  %v6800_v25 = vrot.slane %v6695_v26, 6  ;;  %v6802_v1 = vrot.slane %v6696_v8, 5  ;;  %v7543_v36 = vld [vmem:[#allocation4 + $0x24] sm:$0x1] }
 0x3f3   : > { %v12988_v13 = vor.u32 %v14808_v20, %v12987_v21  ;;  %v6423_v60 = vmax.f32 %v5815_v42, %v12850_v11  ;;  %v6424_v44 = vmax.f32 %v5816_v56, %v12851_v50  ;;  %v6804_v63 = vrot.slane %v6697_v49, 4  ;;  %8626 = vmatpush.bf16.msra.mxu2 %v14875_v55  ;;  %8597 = vmatpush.bf16.msra.mxu1 %v14867_v15  ;;  %v8436_v20 = vpop.f32.mrf.mxu1  ;;  %v6891_v43 = vld [vmem:[#allocation4 + $0x40] sm:$0xf] }
 0x3f4   : > { %v6425_v53 = vmax.f32 %v5817_v17, %v12852_v39  ;;  %v6486_v41 = vmax.f32 %v17447_v27, %v6422_v14  ;;  %v6801_v48 = vsel %vm6704_vm14, %v6800_v25, %v6799_v30  ;;  %v7034_v47 = vor.u32 %v7033_v4, %v7030_v16  ;;  %v7163_v17 = vld [vmem:[#allocation4 + $0x30] sm:$0xf]  ;;  %v7398_v4 = vld [vmem:[#allocation4 + $0x20] sm:$0xf] }
 0x3f5   : > { %8445 = vmatmul.bf16.gmra.mxu1 %v12988_v13  ;;  %v7039_v10 = vrot.slane %v7037_v52, 5  ;;  %v6803_v27 = vsel %vm6707_vm15, %v6802_v1, %v6801_v48  ;;  %v6487_v7 = vmax.f32 %v17449_v6, %v6423_v60  ;;  %v6488_v61 = vmax.f32 %v17451_v19, %v6424_v44  ;;  %v14809_v23 = vld [vmem:[#allocation5 + $0x100] sm:$0xf0]  ;;  %v14883_v52 = vld [vmem:[%s18113_s3 + $0x230] sm:$0xff]  ;;  %v7399_v13 = vld [vmem:[#allocation4 + $0x24] sm:$0x1] }
 0x3f6   : > { %v6489_v57 = vmax.f32 %v17453_v32, %v6425_v53  ;;  %v6805_v37 = vsel %vm6710_vm0, %v6804_v63, %v6803_v27  ;;  %v6570_v31 = vpack.c.bf16 %v6486_v41, %v6486_v41  ;;  %v12996_v58 = vor.u32 %v14809_v23, %v12995_v34  ;;  %v7307_v32 = vld [vmem:[#allocation4 + $0x30] sm:$0xe]  ;;  %8655 = vmatpush.bf16.msra.mxu3 %v14883_v52  ;;  %v7545_v52 = vld [vmem:[#allocation4 + $0x2c] sm:$0x1] }
 0x3f7   : > { %v7035_v35 = vrot.slane %v7034_v47, 4  ;;  %v6571_v6 = vpack.c.bf16 %v6487_v7, %v6487_v7  ;;  %v6572_v29 = vpack.c.bf16 %v6488_v61, %v6488_v61  ;;  %v12866_v3 = vrot.slane %v7307_v32, 9  ;;  %v14804_v47 = vld [vmem:[#allocation5 + $0xdc] sm:$0xf]  ;;  %v14866_v32 = vld [vmem:[%s18113_s3 + $0x1a8] sm:$0xff]  ;;  %8627 = vmatpush.bf16.msra.mxu2 %v14874_v45 }
 0x3f8   : > { %v6573_v19 = vpack.c.bf16 %v6489_v57, %v6489_v57  ;;  %v6698_v28 = vunpack.c.l.b16 %v6570_v31  ;;  %8503 = vmatmul.bf16.gmra.mxu3 %v12996_v58  ;;  %v7351_v46 = vrot.slane %v7308_v51, 5  ;;  %v7249_v5 = vshll.u32 %v7164_v22, 16  ;;  %v14778_v31 = vld [vmem:[#allocation5 + $0xc] sm:$0xf]  ;;  %v12897_v22 = vld [vmem:[#allocation5 + $0x34] sm:$0xf0]  ;;  %8598 = vmatpush.bf16.msra.mxu1 %v14866_v32 }
 0x3f9   : > { %v7040_v16 = vsel %vm15616_vm9, %v7035_v35, %v7039_v10  ;;  %v6699_v38 = vunpack.c.l.b16 %v6571_v6  ;;  %v6700_v42 = vunpack.c.l.b16 %v6572_v29  ;;  %v7240_v49 = vshrl.u32 %v7163_v17, 16  ;;  %v12889_v10 = vld [vmem:[#allocation5 + $0x2c] sm:$0xf0] }
 0x3fa   : > { %v6701_v56 = vunpack.c.l.b16 %v6573_v19  ;;  %7056 = vst [vmem:[#allocation5 + $0x100] sm:$0xf] %v7040_v16  ;;  %v6806_v26 = vrot.slane %v6698_v28, 3  ;;  %v7352_v8 = vsel %vm15602_vm3, %v12866_v3, %v7351_v46  ;;  %v7243_v21 = vshll.u32 %v7163_v17, 16  ;;  %8656 = vmatpush.bf16.msra.mxu3 %v14882_v59  ;;  %v14873_v16 = vld [vmem:[%s18113_s3 + $0x1e0] sm:$0xff] }
 0x3fb   : > { %v6808_v11 = vrot.slane %v6699_v38, 2  ;;  %v6810_v50 = vrot.slane %v6700_v42, 1  ;;  %7374 = vst [vmem:[#allocation5 + $0xc8] sm:$0xf] %v7352_v8  ;;  %v7242_v30 = vrot.slane %v7240_v49, 4  ;;  %v12871_v1 = vrot.slane %v7542_v0, 9  ;;  %v8438_v15 = vpop.f32.mrf.mxu1  ;;  %8628 = vmatpush.bf16.msra.mxu2 %v14873_v16 }
 0x3fc   : > { %v6827_v39 = vpack.c.b16 %v6701_v56, %v6701_v56  ;;  %v6807_v14 = vsel %vm6713_vm1, %v6806_v26, %v6805_v37  ;;  %v7245_v25 = vrot.slane %v7243_v21, 5  ;;  %v7580_v53 = vrot.slane %v7543_v36, 5  ;;  %v7381_v36 = vld [vmem:[#allocation4 + $0x28] sm:$0xf]  ;;  %v7401_v49 = vld [vmem:[#allocation4 + $0x2c] sm:$0x1] }
 0x3fd   : > { %v6809_v60 = vsel %vm6716_vm4, %v6808_v11, %v6807_v14  ;;  %v7439_v41 = vshrl.u32 %v7398_v4, 16  ;;  %v7251_v48 = vrot.slane %v7249_v5, 5  ;;  %v7442_v63 = vshll.u32 %v7398_v4, 16  ;;  %v7544_v38 = vld [vmem:[#allocation4 + $0x28] sm:$0xe] }
 0x3fe   : > { %v6895_v44 = vsel %vm16795_vm10, %v6827_v39, %v6894_v33  ;;  %v6811_v40 = vsel %vm6719_vm6, %v6810_v50, %v6809_v60  ;;  %v7246_v62 = vor.u32 %v7245_v25, %v7242_v30  ;;  %v7581_v27 = vsel %vm15602_vm3, %v12871_v1, %v7580_v53  ;;  %v14779_v33 = vld [vmem:[#allocation5 + $0x14] sm:$0xf]  ;;  %v14881_v42 = vld [vmem:[%s18113_s3 + $0x220] sm:$0xff]  ;;  %7389 = vst [vmem:[#allocation5 + $0x84] sm:$0xf] %v7381_v36 }
 0x3ff   : > { %6896 = vst [vmem:[#allocation4 + $0x44] sm:$0x1] %v6895_v44  ;;  %v6826_v34 = vpack.c.b16 %v6811_v40, %v6811_v40  ;;  %v7441_v7 = vrot.slane %v7439_v41, 4  ;;  %v7448_v61 = vshll.u32 %v7399_v13, 16  ;;  %v7444_v23 = vrot.slane %v7442_v63, 5  ;;  %v14865_v56 = vld [vmem:[%s18113_s3 + $0x1a0] sm:$0xff]  ;;  %8657 = vmatpush.bf16.msra.mxu3 %v14881_v42 }
 0x400   : > { %v7247_v12 = vrot.slane %v7246_v62, 4  ;;  %7612 = vst [vmem:[#allocation5 + $0x68] sm:$0xf] %v7581_v27  ;;  %v8437_v51 = vadd.f32 %v17278_v2, %v8436_v20  ;;  %v12892_v35 = vor.u32 %v14778_v31, %v12889_v10  ;;  %v12900_v3 = vor.u32 %v14779_v33, %v12897_v22  ;;  %v7400_v8 = vld [vmem:[#allocation4 + $0x28] sm:$0xf]  ;;  %8599 = vmatpush.bf16.msra.mxu1 %v14865_v56  ;;  %v14872_v63 = vld [vmem:[%s18113_s3 + $0x1d8] sm:$0xff] }
 0x401   : > { %v12989_v57 = vld [vmem:[#allocation5 + $0xfc] sm:$0xf0]  ;;  %v6892_v55 = vsel %vm16819_vm2, %v6826_v34, %v6891_v43  ;;  %v7445_v29 = vor.u32 %v7444_v23, %v7441_v7  ;;  %v7450_v28 = vrot.slane %v7448_v61, 5  ;;  %v12872_v17 = vrot.slane %v7544_v38, 9  ;;  %v14783_v25 = vld [vmem:[#allocation5 + $0x30] sm:$0xf0]  ;;  %8629 = vmatpush.bf16.msra.mxu2 %v14872_v63 }
 0x402   : > { %v12992_v37 = vor.u32 %v14804_v47, %v12989_v57  ;;  %6893 = vst [vmem:[#allocation4 + $0x40] sm:$0xf] %v6892_v55  ;;  %v8465_v58 = vpop.f32.mrf.mxu2  ;;  %v7252_v6 = vsel %vm15616_vm9, %v7247_v12, %v7251_v48  ;;  %v7584_v5 = vrot.slane %v7545_v52, 5  ;;  %v8439_v26 = vadd.f32 %v17278_v2, %v8438_v15  ;;  %v12925_v1 = vld [vmem:[#allocation5 + $0x74] sm:$0xf0]  ;;  %v14880_v34 = vld [vmem:[%s18113_s3 + $0x218] sm:$0xff] }
 0x403   : > { %v17507_v19 = vadd.f32 %v8465_v58, %v8437_v51  ;;  %7294 = vst [vmem:[#allocation5 + $0xc4] sm:$0xf] %v7252_v6  ;;  %v7446_v0 = vrot.slane %v7445_v29, 4  ;;  %v7453_v11 = vshrl.u32 %v7400_v8, 16  ;;  %v7456_v50 = vshll.u32 %v7400_v8, 16  ;;  %v14864_v47 = vld [vmem:[%s18113_s3 + $0x198] sm:$0xff]  ;;  %8658 = vmatpush.bf16.msra.mxu3 %v14880_v34 }
 0x404   : > { %8474 = vmatmul.bf16.gmra.mxu2 %v12992_v37  ;;  %v7585_v4 = vsel %vm15602_vm3, %v12872_v17, %v7584_v5  ;;  %v7462_v30 = vshll.u32 %v7401_v49, 16  ;;  %v12895_v13 = vld [vmem:[#allocation5 + $0x10] sm:$0xf]  ;;  %v14787_v41 = vld [vmem:[#allocation5 + $0x54] sm:$0xf]  ;;  %v14871_v7 = vld [vmem:[%s18113_s3 + $0x1d0] sm:$0xff]  ;;  %8600 = vmatpush.bf16.msra.mxu1 %v14864_v47  ;;  %v17558_v17 = vpop.f32.mrf.mxu3 }
 0x405   : > { %8517 = vmatmul.bf16.vlgmr.msrb.gmra.mxu1 %v12892_v35  ;;  %v7451_v46 = vsel %vm15616_vm9, %v7446_v0, %v7450_v28  ;;  %7613 = vst [vmem:[#allocation5 + $0x8c] sm:$0xf] %v7585_v4  ;;  %v7455_v14 = vrot.slane %v7453_v11, 4  ;;  %v7458_v20 = vrot.slane %v7456_v50, 5  ;;  %v12896_v53 = vor.u32 %v14783_v25, %v12895_v13  ;;  %v12933_v43 = vld [vmem:[#allocation5 + $0x7c] sm:$0xf0]  ;;  %8630 = vmatpush.bf16.msra.mxu2 %v14871_v7 }
 0x406   : > { %7532 = vst [vmem:[#allocation5 + $0x64] sm:$0xf] %v7451_v46  ;;  %v7464_v44 = vrot.slane %v7462_v30, 5  ;;  %v12928_v40 = vor.u32 %v14787_v41, %v12925_v1  ;;  %v14788_v48 = vld [vmem:[#allocation5 + $0x5c] sm:$0xf]  ;;  %v14879_v22 = vld [vmem:[%s18113_s3 + $0x210] sm:$0xff] }
 0x407   : > { %v7459_v2 = vor.u32 %v7458_v20, %v7455_v14  ;;  %v7143_v10 = vld [vmem:[#allocation4 + $0x38] sm:$0xf]  ;;  %v7310_v57 = vld [vmem:[#allocation4 + $0x3c] sm:$0x1]  ;;  %v12936_v12 = vor.u32 %v14788_v48, %v12933_v43  ;;  %v7312_v55 = vld [vmem:[#allocation4 + $0x44] sm:$0x1]  ;;  %8659 = vmatpush.bf16.msra.mxu3 %v14879_v22 }
 0x408   : > { %8575 = vmatmul.bf16.vlgmr.msrb.gmra.mxu3 %v12900_v3  ;;  %7151 = vst [vmem:[#allocation5 + $0xe4] sm:$0xf] %v7143_v10  ;;  %v7309_v61 = vld [vmem:[#allocation4 + $0x38] sm:$0xe]  ;;  %v7355_v37 = vrot.slane %v7310_v57, 5  ;;  %v7359_v58 = vrot.slane %v7312_v55, 5 }
 0x409   : > { %v7460_v60 = vrot.slane %v7459_v2, 4  ;;  %v7144_v27 = vld [vmem:[#allocation4 + $0x40] sm:$0xf]  ;;  %v12867_v51 = vrot.slane %v7309_v61, 9  ;;  %v7165_v35 = vld [vmem:[#allocation4 + $0x38] sm:$0xf] }
 0x40a   : > { %v8467_v21 = vpop.f32.mrf.mxu2  ;;  %7152 = vst [vmem:[#allocation5 + $0x108] sm:$0xf] %v7144_v27  ;;  %v7311_v23 = vld [vmem:[#allocation4 + $0x40] sm:$0xe]  ;;  %v14863_v6 = vld [vmem:[%s18113_s3 + $0x190] sm:$0xff]  ;;  %v7254_v45 = vshrl.u32 %v7165_v35, 16 }
 0x40b   : > { %v17532_v39 = vadd.f32 %v8467_v21, %v8439_v26  ;;  %v7465_v62 = vsel %vm15616_vm9, %v7460_v60, %v7464_v44  ;;  %v12868_v31 = vrot.slane %v7311_v23, 9  ;;  %v7166_v29 = vld [vmem:[#allocation4 + $0x3c] sm:$0x1]  ;;  %v7257_v59 = vshll.u32 %v7165_v35, 16  ;;  %v7167_v28 = vld [vmem:[#allocation4 + $0x40] sm:$0xf]  ;;  %8601 = vmatpush.bf16.msra.mxu1 %v14863_v6 }
 0x40c   : > { %7533 = vst [vmem:[#allocation5 + $0x88] sm:$0xf] %v7465_v62  ;;  %v7356_v32 = vsel %vm15602_vm3, %v12867_v51, %v7355_v37  ;;  %v7168_v33 = vld [vmem:[#allocation4 + $0x44] sm:$0x1]  ;;  %v7263_v16 = vshll.u32 %v7166_v29, 16  ;;  %v7256_v52 = vrot.slane %v7254_v45, 4  ;;  %v8491_v27 = vpop.f32.mrf.mxu3 }
 0x40d   : > { %v7360_v0 = vsel %vm15602_vm3, %v12868_v31, %v7359_v58  ;;  %7375 = vst [vmem:[#allocation5 + $0xec] sm:$0xf] %v7356_v32  ;;  %v7259_v15 = vrot.slane %v7257_v59, 5  ;;  %v7268_v3 = vshrl.u32 %v7167_v28, 16  ;;  %v7271_v46 = vshll.u32 %v7167_v28, 16  ;;  %v14862_v13 = vld [vmem:[%s18113_s3 + $0x188] sm:$0xff] }
 0x40e   : > { %7376 = vst [vmem:[#allocation5 + $0x110] sm:$0xf] %v7360_v0  ;;  %v7277_v56 = vshll.u32 %v7168_v33, 16  ;;  %v14792_v5 = vld [vmem:[#allocation5 + $0x78] sm:$0xf0]  ;;  %v7265_v8 = vrot.slane %v7263_v16, 5  ;;  %v17583_v23 = vadd.f32 %v8491_v27, %v17379_v24 }
 0x40f   : > { %v7260_v36 = vor.u32 %v7259_v15, %v7256_v52  ;;  %v7270_v38 = vrot.slane %v7268_v3, 4  ;;  %v7273_v42 = vrot.slane %v7271_v46, 5  ;;  %v12961_v21 = vld [vmem:[#allocation5 + $0xbc] sm:$0xf0]  ;;  %v12931_v4 = vld [vmem:[#allocation5 + $0x58] sm:$0xf]  ;;  %8602 = vmatpush.bf16.msra.mxu1 %v14862_v13 }
 0x410   : > { %v7279_v14 = vrot.slane %v7277_v56, 5  ;;  %v12932_v20 = vor.u32 %v14792_v5, %v12931_v4  ;;  %v14796_v30 = vld [vmem:[#allocation5 + $0x9c] sm:$0xf]  ;;  %v12969_v2 = vld [vmem:[#allocation5 + $0xc4] sm:$0xf0]  ;;  %v14870_v60 = vld [vmem:[%s18113_s3 + $0x1c8] sm:$0xff] }
 0x411   : > { %v7261_v26 = vrot.slane %v7260_v36, 4  ;;  %v7274_v49 = vor.u32 %v7273_v42, %v7270_v38  ;;  %v12964_v25 = vor.u32 %v14796_v30, %v12961_v21  ;;  %v14878_v44 = vld [vmem:[%s18113_s3 + $0x208] sm:$0xff]  ;;  %8631 = vmatpush.bf16.msra.mxu2 %v14870_v60  ;;  %v14861_v41 = vld [vmem:[%s18113_s3 + $0x180] sm:$0xff]  ;;  %v12997_v22 = vld [vmem:[#allocation5 + $0x104] sm:$0xf0] }
 0x412   : > { %v7547_v43 = vld [vmem:[#allocation4 + $0x34] sm:$0x1]  ;;  %8660 = vmatpush.bf16.msra.mxu3 %v14878_v44  ;;  %v14877_v48 = vld [vmem:[%s18113_s3 + $0x200] sm:$0xff]  ;;  %v7382_v34 = vld [vmem:[#allocation4 + $0x30] sm:$0xf] }
 0x413   : > { %v7266_v11 = vsel %vm15616_vm9, %v7261_v26, %v7265_v8  ;;  %v7275_v50 = vrot.slane %v7274_v49, 4  ;;  %v7403_v63 = vld [vmem:[#allocation4 + $0x34] sm:$0x1]  ;;  %v7546_v47 = vld [vmem:[#allocation4 + $0x30] sm:$0xe]  ;;  %v7588_v61 = vrot.slane %v7547_v43, 5  ;;  %8603 = vmatpush.bf16.msra.mxu1 %v14861_v41 }
 0x414   : > { %8546 = vmatmul.bf16.vlgmr.msrb.gmra.mxu2 %v12896_v53  ;;  %7295 = vst [vmem:[#allocation5 + $0xe8] sm:$0xf] %v7266_v11  ;;  %v14797_v53 = vld [vmem:[#allocation5 + $0xa4] sm:$0xf]  ;;  %v7402_v10 = vld [vmem:[#allocation4 + $0x30] sm:$0xf] }
 0x415   : > { %8522 = vmatmul.bf16.gmra.mxu1 %v12928_v40  ;;  %v7280_v1 = vsel %vm15616_vm9, %v7275_v50, %v7279_v14  ;;  %v14869_v40 = vld [vmem:[%s18113_s3 + $0x1c0] sm:$0xff]  ;;  %v12972_v62 = vor.u32 %v14797_v53, %v12969_v2  ;;  %7390 = vst [vmem:[#allocation5 + $0xa8] sm:$0xf] %v7382_v34  ;;  %v12873_v7 = vrot.slane %v7546_v47, 9  ;;  %v7467_v57 = vshrl.u32 %v7402_v10, 16 }
 0x416   : > { %7296 = vst [vmem:[#allocation5 + $0x10c] sm:$0xf] %v7280_v1  ;;  %8632 = vmatpush.bf16.msra.mxu2 %v14869_v40  ;;  %8661 = vmatpush.bf16.msra.mxu3 %v14877_v48  ;;  %v7476_v31 = vshll.u32 %v7403_v63, 16  ;;  %v14801_v35 = vld [vmem:[#allocation5 + $0xc0] sm:$0xf0] }
 0x417   : > { %v7589_v55 = vsel %vm15602_vm3, %v12873_v7, %v7588_v61  ;;  %v7469_v51 = vrot.slane %v7467_v57, 4  ;;  %v12967_v45 = vld [vmem:[#allocation5 + $0xa0] sm:$0xf]  ;;  %v14805_v32 = vld [vmem:[#allocation5 + $0xe4] sm:$0xf] }
 0x418   : > { %8580 = vmatmul.bf16.gmra.mxu3 %v12936_v12  ;;  %v7470_v12 = vshll.u32 %v7402_v10, 16  ;;  %7614 = vst [vmem:[#allocation5 + $0xb0] sm:$0xf] %v7589_v55  ;;  %v7478_v29 = vrot.slane %v7476_v31, 5  ;;  %v12968_v59 = vor.u32 %v14801_v35, %v12967_v45  ;;  %v13000_v0 = vor.u32 %v14805_v32, %v12997_v22  ;;  %v13005_v28 = vld [vmem:[#allocation5 + $0x10c] sm:$0xf0] }
 0x419   : > { %v14806_v33 = vld [vmem:[#allocation5 + $0xec] sm:$0xf]  ;;  %v14784_v3 = vld [vmem:[#allocation5 + $0x38] sm:$0xf0]  ;;  %v17592_v36 = vld [vmem:[%s18114_s4] ss:$0 sm:$0xff] }
 0x41a   : > { %v7472_v37 = vrot.slane %v7470_v12, 5  ;;  %v13008_v16 = vor.u32 %v14806_v33, %v13005_v28  ;;  %v12903_v56 = vld [vmem:[#allocation5 + $0x18] sm:$0xf]  ;;  %v14785_v49 = vld [vmem:[#allocation5 + $0x40] sm:$0xf0]  ;;  %v17604_v28 = vpop.f32.mrf.mxu3 }
 0x41b   : > { %v13003_v46 = vld [vmem:[#allocation5 + $0xe8] sm:$0xf]  ;;  %v12904_v26 = vor.u32 %v14784_v3, %v12903_v56  ;;  %v7549_v4 = vld [vmem:[#allocation4 + $0x3c] sm:$0x1]  ;;  %v12911_v50 = vld [vmem:[#allocation5 + $0x20] sm:$0xf] }
 0x41c   : > { %v7473_v58 = vor.u32 %v7472_v37, %v7469_v51  ;;  %v7383_v21 = vld [vmem:[#allocation4 + $0x38] sm:$0xf]  ;;  %v7405_v13 = vld [vmem:[#allocation4 + $0x3c] sm:$0x1]  ;;  %v12905_v34 = vld [vmem:[#allocation5 + $0x3c] sm:$0xf0] }
 0x41d   : > { %v14810_v15 = vld [vmem:[#allocation5 + $0x108] sm:$0xf0]  ;;  %7391 = vst [vmem:[#allocation5 + $0xcc] sm:$0xf] %v7383_v21  ;;  %v7548_v11 = vld [vmem:[#allocation4 + $0x38] sm:$0xe] }
 0x41e   : > { %v7474_v6 = vrot.slane %v7473_v58, 4  ;;  %v13004_v42 = vor.u32 %v14810_v15, %v13003_v46  ;;  %v12874_v14 = vrot.slane %v7548_v11, 9  ;;  %v7404_v1 = vld [vmem:[#allocation4 + $0x38] sm:$0xf]  ;;  %v14793_v27 = vld [vmem:[#allocation5 + $0x80] sm:$0xf0] }
 0x41f   : > { %v7481_v60 = vshrl.u32 %v7404_v1, 16  ;;  %v7484_v44 = vshll.u32 %v7404_v1, 16  ;;  %v14780_v7 = vld [vmem:[#allocation5 + $0x1c] sm:$0xf]  ;;  %v12939_v12 = vld [vmem:[#allocation5 + $0x60] sm:$0xf] }
 0x420   : > { %v7479_v24 = vsel %vm15616_vm9, %v7474_v6, %v7478_v29  ;;  %v12908_v57 = vor.u32 %v14780_v7, %v12905_v34  ;;  %v12940_v55 = vor.u32 %v14793_v27, %v12939_v12  ;;  %v14794_v51 = vld [vmem:[#allocation5 + $0x88] sm:$0xf0]  ;;  %v12947_v37 = vld [vmem:[#allocation5 + $0x68] sm:$0xf]  ;;  %v7384_v31 = vld [vmem:[#allocation4 + $0x40] sm:$0xf] }
 0x421   : > { %7534 = vst [vmem:[#allocation5 + $0xac] sm:$0xf] %v7479_v24  ;;  %v7483_v40 = vrot.slane %v7481_v60, 4  ;;  %v7486_v43 = vrot.slane %v7484_v44, 5  ;;  %v7385_v58 = vld [vmem:[#allocation4 + $0x48] sm:$0xf]  ;;  %v12948_v6 = vor.u32 %v14794_v51, %v12947_v37 }
 0x422   : > { %7392 = vst [vmem:[#allocation5 + $0xf0] sm:$0xf] %v7384_v31  ;;  %v7550_v35 = vld [vmem:[#allocation4 + $0x40] sm:$0xe]  ;;  %v7551_v22 = vld [vmem:[#allocation4 + $0x44] sm:$0x1] }
 0x423   : > { %v7487_v63 = vor.u32 %v7486_v43, %v7483_v40  ;;  %7393 = vst [vmem:[#allocation5 + $0x114] sm:$0xf] %v7385_v58  ;;  %v7552_v29 = vld [vmem:[#allocation4 + $0x48] sm:$0xe]  ;;  %v7553_v45 = vld [vmem:[#allocation4 + $0x4c] sm:$0x1] }
 0x424   : > { %8551 = vmatmul.bf16.gmra.mxu2 %v12932_v20  ;;  %v7592_v20 = vrot.slane %v7549_v4, 5  ;;  %v7596_v32 = vrot.slane %v7551_v22, 5  ;;  %v12876_v24 = vrot.slane %v7552_v29, 9  ;;  %v7407_v15 = vld [vmem:[#allocation4 + $0x44] sm:$0x1] }
 0x425   : > { %8527 = vmatmul.bf16.gmra.mxu1 %v12964_v25  ;;  %v12912_v25 = vor.u32 %v14785_v49, %v12911_v50  ;;  %v7488_v47 = vrot.slane %v7487_v63, 4  ;;  %v7408_v3 = vld [vmem:[#allocation4 + $0x48] sm:$0xf]  ;;  %v7409_v46 = vld [vmem:[#allocation4 + $0x4c] sm:$0x1]  ;;  %v7504_v50 = vshll.u32 %v7407_v15, 16 }
 0x426   : > { %v8441_v52 = vpop.f32.mrf.mxu1  ;;  %v7593_v2 = vsel %vm15602_vm3, %v12874_v14, %v7592_v20  ;;  %v12941_v56 = vld [vmem:[#allocation5 + $0x84] sm:$0xf0]  ;;  %v7518_v49 = vshll.u32 %v7409_v46, 16  ;;  %v14802_v21 = vld [vmem:[#allocation5 + $0xc8] sm:$0xf0] }
 0x427   : > { %v8442_v38 = vadd.f32 %v17592_v36, %v8441_v52  ;;  %7615 = vst [vmem:[#allocation5 + $0xd4] sm:$0xf] %v7593_v2  ;;  %v7406_v52 = vld [vmem:[#allocation4 + $0x40] sm:$0xf]  ;;  %v14789_v14 = vld [vmem:[#allocation5 + $0x64] sm:$0xf] }
 0x428   : > { %8585 = vmatmul.bf16.gmra.mxu3 %v12972_v62  ;;  %v7490_v62 = vshll.u32 %v7405_v13, 16  ;;  %v12975_v2 = vld [vmem:[#allocation5 + $0xa8] sm:$0xf]  ;;  %v7520_v44 = vrot.slane %v7518_v49, 5  ;;  %v7506_v40 = vrot.slane %v7504_v50, 5 }
 0x429   : > { %v12976_v13 = vor.u32 %v14802_v21, %v12975_v2  ;;  %v14798_v12 = vld [vmem:[#allocation5 + $0xac] sm:$0xf] }
 0x42a   : > { %v7492_v10 = vrot.slane %v7490_v62, 5  ;;  %v12983_v62 = vld [vmem:[#allocation5 + $0xb0] sm:$0xf] }
 0x42c   : > { %v7493_v61 = vsel %vm15616_vm9, %v7488_v47, %v7492_v10 }
 0x42d   : > { %7535 = vst [vmem:[#allocation5 + $0xd0] sm:$0xf] %v7493_v61  ;;  %v13011_v61 = vld [vmem:[#allocation5 + $0xf0] sm:$0xf] }
 0x42e   : > { %v8443_v30 = vpop.f32.mrf.mxu1 }
 0x42f   : > { %v8444_v53 = vadd.f32 %v17592_v36, %v8443_v30  ;;  %v8496_v30 = vpop.f32.mrf.mxu3 }
 0x430   : > { %v8497_v27 = vadd.f32 %v8496_v30, %v17532_v39  ;;  %v8490_v39 = vadd.f32 %v17558_v17, %v17360_v54  ;;  %v8495_v17 = vadd.f32 %v17604_v28, %v17507_v19 }
 0x434   : > { %8556 = vmatmul.bf16.gmra.mxu2 %v12968_v59  ;;  %v12875_v59 = vrot.slane %v7550_v35, 9  ;;  %v12977_v7 = vld [vmem:[#allocation5 + $0xcc] sm:$0xf0] }
 0x435   : > { %8532 = vmatmul.bf16.gmra.mxu1 %v13000_v0  ;;  %v7600_v0 = vrot.slane %v7553_v45, 5 }
 0x436   : > { %v7597_v33 = vsel %vm15602_vm3, %v12875_v59, %v7596_v32 }
 0x437   : > { %7616 = vst [vmem:[#allocation5 + $0xf8] sm:$0xf] %v7597_v33  ;;  %v8499_v10 = vpop.f32.mrf.mxu3 }
 0x438   : > { %8590 = vmatmul.bf16.gmra.mxu3 %v13008_v16  ;;  %v7601_v16 = vsel %vm15602_vm3, %v12876_v24, %v7600_v0 }
 0x439   : > { %7617 = vst [vmem:[#allocation5 + $0x11c] sm:$0xf] %v7601_v16 }
 0x43e   : > { %v13019_v58 = vld [vmem:[#allocation5 + $0xf8] sm:$0xf] }
 0x43f   : > { %v8501_v31 = vpop.f32.mrf.mxu3 }
 0x440   : > { %v14812_v35 = vld [vmem:[#allocation5 + $0x118] sm:$0xf0] }
 0x441   : > { %v8470_v5 = vpop.f32.mrf.mxu2  ;;  %v13020_v18 = vor.u32 %v14812_v35, %v13019_v58 }
 0x442   : > { %v17595_v8 = vadd.f32 %v8470_v5, %v8442_v38  ;;  %v7495_v38 = vshrl.u32 %v7406_v52, 16  ;;  %v7509_v5 = vshrl.u32 %v7408_v3, 16 }
 0x444   : > { %8561 = vmatmul.bf16.gmra.mxu2 %v13004_v42  ;;  %v7498_v42 = vshll.u32 %v7406_v52, 16  ;;  %v7497_v4 = vrot.slane %v7495_v38, 4  ;;  %v7511_v20 = vrot.slane %v7509_v5, 4  ;;  %v8500_v19 = vadd.f32 %v8499_v10, %v17595_v8 }
 0x445   : > { %8604 = vmatmul.bf16.vlgmr.msra.gmra.mxu1 %v12904_v26  ;;  %v7512_v26 = vshll.u32 %v7408_v3, 16 }
 0x446   : > { %v7500_v11 = vrot.slane %v7498_v42, 5 }
 0x447   : > { %v7514_v9 = vrot.slane %v7512_v26, 5 }
 0x448   : > { %8662 = vmatmul.bf16.vlgmr.msra.gmra.mxu3 %v12912_v25  ;;  %v12944_v25 = vor.u32 %v14789_v14, %v12941_v56  ;;  %v7501_v1 = vor.u32 %v7500_v11, %v7497_v4 }
 0x449   : > { %v8472_v41 = vpop.f32.mrf.mxu2  ;;  %v7515_v60 = vor.u32 %v7514_v9, %v7511_v20 }
 0x44a   : > { %v17600_v48 = vadd.f32 %v8472_v41, %v8444_v53  ;;  %v14803_v53 = vld [vmem:[#allocation5 + $0xd0] sm:$0xf0]  ;;  %v7502_v41 = vrot.slane %v7501_v1, 4 }
 0x44b   : > { %v7516_v43 = vrot.slane %v7515_v60, 4  ;;  %v12984_v34 = vor.u32 %v14803_v53, %v12983_v62 }
 0x44c   : > { %v7507_v63 = vsel %vm15616_vm9, %v7502_v41, %v7506_v40  ;;  %v8502_v54 = vadd.f32 %v8501_v31, %v17600_v48 }
 0x44d   : > { %v7521_v47 = vsel %vm15616_vm9, %v7516_v43, %v7520_v44  ;;  %7536 = vst [vmem:[#allocation5 + $0xf4] sm:$0xf] %v7507_v63 }
 0x44e   : > { %7537 = vst [vmem:[#allocation5 + $0x118] sm:$0xf] %v7521_v47 }
 0x454   : > { %8633 = vmatmul.bf16.vlgmr.msra.gmra.mxu2 %v12908_v57  ;;  %v14811_v57 = vld [vmem:[#allocation5 + $0x110] sm:$0xf0] }
 0x455   : > { %8609 = vmatmul.bf16.gmra.mxu1 %v12940_v55  ;;  %v12980_v55 = vor.u32 %v14798_v12, %v12977_v7  ;;  %v13012_v37 = vor.u32 %v14811_v57, %v13011_v61  ;;  %v14807_v29 = vld [vmem:[#allocation5 + $0xf4] sm:$0xf]  ;;  %v13013_v45 = vld [vmem:[#allocation5 + $0x114] sm:$0xf0] }
 0x456   : > { %v13016_v59 = vor.u32 %v14807_v29, %v13013_v45 }
 0x458   : > { %8667 = vmatmul.bf16.gmra.mxu3 %v12948_v6 }
 0x464   : > { %8638 = vmatmul.bf16.gmra.mxu2 %v12944_v25 }
 0x465   : > { %8614 = vmatmul.bf16.gmra.mxu1 %v12976_v13 }
 0x468   : > { %8672 = vmatmul.bf16.gmra.mxu3 %v12984_v34 }
 0x472   : > { %v8446_v51 = vpop.f32.mrf.mxu1 }
 0x473   : > { %v8447_v33 = vadd.f32 %v17592_v36, %v8446_v51 }
 0x474   : > { %8643 = vmatmul.bf16.gmra.mxu2 %v12980_v55 }
 0x475   : > { %8619 = vmatmul.bf16.gmra.mxu1 %v13012_v37 }
 0x478   : > { %8677 = vmatmul.bf16.gmra.mxu3 %v13020_v18 }
 0x47a   : > { %v8448_v22 = vpop.f32.mrf.mxu1 }
 0x47b   : > { %v8504_v6 = vpop.f32.mrf.mxu3  ;;  %v8449_v38 = vadd.f32 %v17592_v36, %v8448_v22 }
 0x482   : > { %v8518_v32 = vpop.f32.mrf.mxu1 }
 0x483   : > { %v8519_v24 = vadd.f32 %v8518_v32, %v8490_v39  ;;  %v8506_v0 = vpop.f32.mrf.mxu3 }
 0x484   : > { %8648 = vmatmul.bf16.gmra.mxu2 %v13016_v59 }
 0x487   : > { %v8475_v16 = vpop.f32.mrf.mxu2 }
 0x488   : > { %v8476_v52 = vadd.f32 %v8475_v16, %v8447_v33 }
 0x48a   : > { %v8520_v15 = vpop.f32.mrf.mxu1  ;;  %v8505_v11 = vadd.f32 %v8504_v6, %v8476_v52 }
 0x48b   : > { %v8521_v3 = vadd.f32 %v8520_v15, %v17583_v23  ;;  %v8576_v46 = vpop.f32.mrf.mxu3 }
 0x48f   : > { %v8477_v42 = vpop.f32.mrf.mxu2 }
 0x490   : > { %v8478_v56 = vadd.f32 %v8477_v42, %v8449_v38 }
 0x492   : > { %v8523_v5 = vpop.f32.mrf.mxu1  ;;  %v17627_v20 = vadd.f32 %v8506_v0, %v8478_v56 }
 0x493   : > { %v8524_v26 = vadd.f32 %v8523_v5, %v8495_v17  ;;  %v8578_v49 = vpop.f32.mrf.mxu3 }
 0x497   : > { %v8547_v21 = vpop.f32.mrf.mxu2 }
 0x498   : > { %v8548_v4 = vadd.f32 %v8547_v21, %v8519_v24 }
 0x49a   : > { %v8525_v50 = vpop.f32.mrf.mxu1  ;;  %v8577_v1 = vadd.f32 %v8576_v46, %v8548_v4 }
 0x49b   : > { %v8526_v14 = vadd.f32 %v8525_v50, %v8497_v27  ;;  %v8581_v23 = vpop.f32.mrf.mxu3 }
 0x49f   : > { %v8549_v36 = vpop.f32.mrf.mxu2 }
 0x4a0   : > { %v8550_v48 = vadd.f32 %v8549_v36, %v8521_v3 }
 0x4a2   : > { %v8528_v28 = vpop.f32.mrf.mxu1  ;;  %v8579_v40 = vadd.f32 %v8578_v49, %v8550_v48 }
 0x4a3   : > { %v8529_v9 = vadd.f32 %v8528_v28, %v8500_v19  ;;  %v8583_v30 = vpop.f32.mrf.mxu3 }
 0x4a7   : > { %v8552_v25 = vpop.f32.mrf.mxu2 }
 0x4a8   : > { %v8553_v2 = vadd.f32 %v8552_v25, %v8524_v26 }
 0x4aa   : > { %v8530_v13 = vpop.f32.mrf.mxu1  ;;  %v8582_v61 = vadd.f32 %v8581_v23, %v8553_v2 }
 0x4ab   : > { %v8531_v60 = vadd.f32 %v8530_v13, %v8502_v54  ;;  %v8586_v44 = vpop.f32.mrf.mxu3 }
 0x4af   : > { %v8554_v53 = vpop.f32.mrf.mxu2 }
 0x4b0   : > { %v8555_v41 = vadd.f32 %v8554_v53, %v8526_v14 }
 0x4b2   : > { %v8533_v43 = vpop.f32.mrf.mxu1  ;;  %v8584_v31 = vadd.f32 %v8583_v30, %v8555_v41 }
 0x4b3   : > { %v8534_v62 = vadd.f32 %v8533_v43, %v8505_v11  ;;  %v8588_v63 = vpop.f32.mrf.mxu3 }
 0x4b7   : > { %v8557_v34 = vpop.f32.mrf.mxu2 }
 0x4b8   : > { %v8558_v47 = vadd.f32 %v8557_v34, %v8529_v9 }
 0x4ba   : > { %v17630_v8 = vpop.f32.mrf.mxu1  ;;  %v17636_v18 = vadd.f32 %v8586_v44, %v8558_v47 }
 0x4bb   : > { %v8591_v10 = vpop.f32.mrf.mxu3 }
 0x4bf   : > { %v8559_v27 = vpop.f32.mrf.mxu2 }
 0x4c0   : > { %v8560_v7 = vadd.f32 %v8559_v27, %v8531_v60 }
 0x4c2   : > { %v8605_v12 = vpop.f32.mrf.mxu1  ;;  %v17638_v32 = vadd.f32 %v8588_v63, %v8560_v7 }
 0x4c3   : > { %v17632_v57 = vpop.f32.mrf.mxu3  ;;  %v8606_v22 = vadd.f32 %v8605_v12, %v8577_v1 }
 0x4c7   : > { %v8562_v55 = vpop.f32.mrf.mxu2 }
 0x4c8   : > { %v8563_v51 = vadd.f32 %v8562_v55, %v8534_v62 }
 0x4ca   : > { %v8607_v35 = vpop.f32.mrf.mxu1  ;;  %v17640_v38 = vadd.f32 %v8591_v10, %v8563_v51 }
 0x4cb   : > { %v8663_v37 = vpop.f32.mrf.mxu3  ;;  %v8608_v0 = vadd.f32 %v8607_v35, %v8579_v40 }
 0x4cf   : > { %v17634_v58 = vpop.f32.mrf.mxu2 }
 0x4d2   : > { %v8610_v59 = vpop.f32.mrf.mxu1 }
 0x4d3   : > { %v8665_v6 = vpop.f32.mrf.mxu3  ;;  %v8611_v21 = vadd.f32 %v8610_v59, %v8582_v61 }
 0x4d7   : > { %v8634_v29 = vpop.f32.mrf.mxu2 }
 0x4d8   : > { %v8635_v45 = vadd.f32 %v8634_v29, %v8606_v22 }
 0x4da   : > { %v8664_v39 = vadd.f32 %v8663_v37, %v8635_v45  ;;  %v8612_v54 = vpop.f32.mrf.mxu1 }
 0x4db   : > { %v8668_v16 = vpop.f32.mrf.mxu3  ;;  %v8613_v10 = vadd.f32 %v8612_v54, %v8584_v31 }
 0x4dc   : > { %v8683_v24 = vmax.f32 %v8664_v39, 0.0 }
 0x4de   : > { %v8699_v15 = vrot.slane %v8683_v24, 2  ;;  %v8700_v3 = vrot.slane %v8683_v24, 4  ;;  %v8701_v46 = vrot.slane %v8683_v24, 6  ;;  %v13309_v56 = vrot.slane %v8683_v24, 9 }
 0x4df   : > { %v8636_v33 = vpop.f32.mrf.mxu2 }
 0x4e0   : > { %v8637_v52 = vadd.f32 %v8636_v33, %v8608_v0  ;;  %v13310_v5 = vrot.slane %v8699_v15, 9  ;;  %v13311_v26 = vrot.slane %v8700_v3, 9  ;;  %v13312_v49 = vrot.slane %v8701_v46, 9 }
 0x4e1   : > { %v8843_v36 = vmax.f32 %v8683_v24, %v13309_v56 }
 0x4e2   : > { %v8666_v42 = vadd.f32 %v8665_v6, %v8637_v52  ;;  %v8844_v25 = vmax.f32 %v8699_v15, %v13310_v5  ;;  %v8845_v2 = vmax.f32 %v8700_v3, %v13311_v26  ;;  %v8846_v1 = vmax.f32 %v8701_v46, %v13312_v49  ;;  %v8615_v47 = vpop.f32.mrf.mxu1 }
 0x4e3   : > { %v8670_v60 = vpop.f32.mrf.mxu3  ;;  %v8616_v39 = vadd.f32 %v8615_v47, %v17636_v18 }
 0x4e4   : > { %v8684_v17 = vmax.f32 %v8666_v42, 0.0 }
 0x4e6   : > { %v8702_v4 = vrot.slane %v8684_v17, 2  ;;  %v8703_v11 = vrot.slane %v8684_v17, 4  ;;  %v8704_v50 = vrot.slane %v8684_v17, 6  ;;  %v13313_v14 = vrot.slane %v8684_v17, 9 }
 0x4e7   : > { %v8639_v23 = vpop.f32.mrf.mxu2 }
 0x4e8   : > { %v8640_v48 = vadd.f32 %v8639_v23, %v8611_v21  ;;  %v13314_v19 = vrot.slane %v8702_v4, 9  ;;  %v13315_v28 = vrot.slane %v8703_v11, 9  ;;  %v13316_v9 = vrot.slane %v8704_v50, 9 }
 0x4e9   : > { %v8847_v30 = vmax.f32 %v8684_v17, %v13313_v14 }
 0x4ea   : > { %v8669_v13 = vadd.f32 %v8668_v16, %v8640_v48  ;;  %v8848_v44 = vmax.f32 %v8702_v4, %v13314_v19  ;;  %v8849_v53 = vmax.f32 %v8703_v11, %v13315_v28  ;;  %v8850_v41 = vmax.f32 %v8704_v50, %v13316_v9  ;;  %v8617_v52 = vpop.f32.mrf.mxu1 }
 0x4eb   : > { %v17642_v40 = vmax.f32 %v8843_v36, %v8847_v30  ;;  %v8673_v35 = vpop.f32.mrf.mxu3  ;;  %v8618_v48 = vadd.f32 %v8617_v52, %v17638_v32 }
 0x4ec   : > { %v17644_v43 = vmax.f32 %v8844_v25, %v8848_v44  ;;  %v17646_v62 = vmax.f32 %v8845_v2, %v8849_v53  ;;  %v17648_v63 = vmax.f32 %v8846_v1, %v8850_v41  ;;  %v8685_v34 = vmax.f32 %v8669_v13, 0.0 }
 0x4ee   : > { %v8705_v61 = vrot.slane %v8685_v34, 2  ;;  %v8706_v12 = vrot.slane %v8685_v34, 4  ;;  %v8707_v55 = vrot.slane %v8685_v34, 6  ;;  %v13317_v37 = vrot.slane %v8685_v34, 9 }
 0x4ef   : > { %v8641_v27 = vpop.f32.mrf.mxu2 }
 0x4f0   : > { %v8642_v7 = vadd.f32 %v8641_v27, %v8613_v10  ;;  %v13318_v6 = vrot.slane %v8705_v61, 9  ;;  %v13319_v29 = vrot.slane %v8706_v12, 9  ;;  %v13320_v45 = vrot.slane %v8707_v55, 9 }
 0x4f1   : > { %v8851_v31 = vmax.f32 %v8685_v34, %v13317_v37 }
 0x4f2   : > { %v8671_v51 = vadd.f32 %v8670_v60, %v8642_v7  ;;  %v8852_v54 = vmax.f32 %v8705_v61, %v13318_v6  ;;  %v8853_v17 = vmax.f32 %v8706_v12, %v13319_v29  ;;  %v8854_v5 = vmax.f32 %v8707_v55, %v13320_v45  ;;  %v8620_v2 = vpop.f32.mrf.mxu1 }
 0x4f3   : > { %v8675_v36 = vpop.f32.mrf.mxu3  ;;  %v8536_v60 = vadd.f32 %v17630_v8, %v17627_v20  ;;  %v8621_v47 = vadd.f32 %v8620_v2, %v17640_v38 }
 0x4f4   : > { %v8686_v22 = vmax.f32 %v8671_v51, 0.0 }
 0x4f5   : > { %v8565_v12 = vadd.f32 %v17634_v58, %v8536_v60 }
 0x4f6   : > { %v8708_v59 = vrot.slane %v8686_v22, 2  ;;  %v8709_v24 = vrot.slane %v8686_v22, 4  ;;  %v8710_v0 = vrot.slane %v8686_v22, 6  ;;  %v13321_v33 = vrot.slane %v8686_v22, 9 }
 0x4f7   : > { %v8644_v16 = vpop.f32.mrf.mxu2  ;;  %v8594_v52 = vadd.f32 %v17632_v57, %v8565_v12 }
 0x4f8   : > { %v8645_v15 = vadd.f32 %v8644_v16, %v8616_v39  ;;  %v13322_v3 = vrot.slane %v8708_v59, 9  ;;  %v13323_v46 = vrot.slane %v8709_v24, 9  ;;  %v13324_v42 = vrot.slane %v8710_v0, 9 }
 0x4f9   : > { %v8855_v56 = vmax.f32 %v8686_v22, %v13321_v33 }
 0x4fa   : > { %v8674_v26 = vadd.f32 %v8673_v35, %v8645_v15  ;;  %v8856_v49 = vmax.f32 %v8708_v59, %v13322_v3  ;;  %v8857_v21 = vmax.f32 %v8709_v24, %v13323_v46  ;;  %v8858_v4 = vmax.f32 %v8710_v0, %v13324_v42  ;;  %v8622_v33 = vpop.f32.mrf.mxu1 }
 0x4fb   : > { %v17651_v18 = vmax.f32 %v8851_v31, %v8855_v56  ;;  %v8678_v51 = vpop.f32.mrf.mxu3  ;;  %v8623_v3 = vadd.f32 %v8622_v33, %v8594_v52 }
 0x4fc   : > { %v17653_v11 = vmax.f32 %v8852_v54, %v8856_v49  ;;  %v17655_v50 = vmax.f32 %v8853_v17, %v8857_v21  ;;  %v17657_v14 = vmax.f32 %v8854_v5, %v8858_v4  ;;  %v8687_v23 = vmax.f32 %v8674_v26, 0.0 }
 0x4fe   : > { %v8711_v9 = vrot.slane %v8687_v23, 2  ;;  %v8712_v30 = vrot.slane %v8687_v23, 4  ;;  %v8713_v25 = vrot.slane %v8687_v23, 6  ;;  %v13325_v13 = vrot.slane %v8687_v23, 9 }
 0x4ff   : > { %v8646_v19 = vpop.f32.mrf.mxu2 }
 0x500   : > { %v8647_v28 = vadd.f32 %v8646_v19, %v8618_v48  ;;  %v13326_v53 = vrot.slane %v8711_v9, 9  ;;  %v13327_v41 = vrot.slane %v8712_v30, 9  ;;  %v13328_v34 = vrot.slane %v8713_v25, 9 }
 0x501   : > { %v8859_v55 = vmax.f32 %v8687_v23, %v13325_v13 }
 0x502   : > { %v8676_v1 = vadd.f32 %v8675_v36, %v8647_v28  ;;  %v8860_v8 = vmax.f32 %v8711_v9, %v13326_v53  ;;  %v8861_v29 = vmax.f32 %v8712_v30, %v13327_v41  ;;  %v8862_v45 = vmax.f32 %v8713_v25, %v13328_v34 }
 0x503   : > { %v8680_v5 = vpop.f32.mrf.mxu3 }
 0x504   : > { %v8688_v44 = vmax.f32 %v8676_v1, 0.0 }
 0x506   : > { %v8714_v10 = vrot.slane %v8688_v44, 2  ;;  %v8715_v27 = vrot.slane %v8688_v44, 4  ;;  %v8716_v32 = vrot.slane %v8688_v44, 6  ;;  %v13329_v7 = vrot.slane %v8688_v44, 9 }
 0x507   : > { %v8649_v61 = vpop.f32.mrf.mxu2 }
 0x508   : > { %v8650_v37 = vadd.f32 %v8649_v61, %v8621_v47  ;;  %v13330_v35 = vrot.slane %v8714_v10, 9  ;;  %v13331_v22 = vrot.slane %v8715_v27, 9  ;;  %v13332_v6 = vrot.slane %v8716_v32, 9 }
 0x509   : > { %v8863_v20 = vmax.f32 %v8688_v44, %v13329_v7 }
 0x50a   : > { %v8679_v39 = vadd.f32 %v8678_v51, %v8650_v37  ;;  %v8864_v59 = vmax.f32 %v8714_v10, %v13330_v35  ;;  %v8865_v38 = vmax.f32 %v8715_v27, %v13331_v22  ;;  %v8866_v24 = vmax.f32 %v8716_v32, %v13332_v6 }
 0x50b   : > { %v17664_v0 = vmax.f32 %v8859_v55, %v8863_v20 }
 0x50c   : > { %v17666_v16 = vmax.f32 %v8860_v8, %v8864_v59  ;;  %v17668_v58 = vmax.f32 %v8861_v29, %v8865_v38  ;;  %v17670_v31 = vmax.f32 %v8862_v45, %v8866_v24  ;;  %v8689_v15 = vmax.f32 %v8679_v39, 0.0 }
 0x50e   : > { %v8717_v56 = vrot.slane %v8689_v15, 2  ;;  %v8718_v54 = vrot.slane %v8689_v15, 4  ;;  %v8719_v17 = vrot.slane %v8689_v15, 6  ;;  %v13333_v49 = vrot.slane %v8689_v15, 9 }
 0x50f   : > { %v8651_v46 = vpop.f32.mrf.mxu2 }
 0x510   : > { %v8652_v42 = vadd.f32 %v8651_v46, %v8623_v3  ;;  %v13334_v4 = vrot.slane %v8717_v56, 9  ;;  %v13335_v23 = vrot.slane %v8718_v54, 9  ;;  %v13336_v36 = vrot.slane %v8719_v17, 9 }
 0x511   : > { %v8867_v57 = vmax.f32 %v8689_v15, %v13333_v49 }
 0x512   : > { %v8681_v26 = vadd.f32 %v8680_v5, %v8652_v42  ;;  %v8868_v13 = vmax.f32 %v8717_v56, %v13334_v4  ;;  %v8869_v60 = vmax.f32 %v8718_v54, %v13335_v23  ;;  %v8870_v44 = vmax.f32 %v8719_v17, %v13336_v36 }
 0x514   : > { %v8690_v21 = vmax.f32 %v8681_v26, 0.0 }
 0x516   : > { %v8720_v48 = vrot.slane %v8690_v21, 2  ;;  %v8721_v19 = vrot.slane %v8690_v21, 4  ;;  %v8722_v28 = vrot.slane %v8690_v21, 6  ;;  %v13337_v9 = vrot.slane %v8690_v21, 9 }
 0x518   : > { %v13338_v30 = vrot.slane %v8720_v48, 9  ;;  %v13339_v25 = vrot.slane %v8721_v19, 9  ;;  %v13340_v2 = vrot.slane %v8722_v28, 9  ;;  %v8871_v1 = vmax.f32 %v8690_v21, %v13337_v9 }
 0x51a   : > { %v8872_v53 = vmax.f32 %v8720_v48, %v13338_v30  ;;  %v8873_v41 = vmax.f32 %v8721_v19, %v13339_v25  ;;  %v8874_v34 = vmax.f32 %v8722_v28, %v13340_v2  ;;  %v17673_v47 = vmax.f32 %v8867_v57, %v8871_v1 }
 0x51c   : > { %v17675_v10 = vmax.f32 %v8868_v13, %v8872_v53  ;;  %v17677_v27 = vmax.f32 %v8869_v60, %v8873_v41  ;;  %v17679_v32 = vmax.f32 %v8870_v44, %v8874_v34 }
 0x51d   : > { %15287 = dma.done.wait [#allocation7], 32768 }
 0x51e   : > { %15288 = vsyncadd [#allocation7], 4294934528  ;;  %v13391_v7 = vld [vmem:[#allocation6 + $0xe0] sm:$0xf]  ;;  %v14915_v61 = vld [vmem:[#allocation6 + $0xec] sm:$0xf0]  ;;  %s11742_s17 = scalar_lea.hbm %s18119_s9, %s15382_s13 }
 0x51f   : > { %v14913_v12 = vld [vmem:[#allocation6 + $0xe4] sm:$0xf]  ;;  %v13392_v55 = vor.u32 %v14915_v61, %v13391_v7  ;;  %v13393_v51 = vld [vmem:[#allocation6 + $0xf0] sm:$0xf0]  ;;  %v13399_v37 = vld [vmem:[#allocation6 + $0xe8] sm:$0xf] }
 0x520   : > { %v14916_v35 = vld [vmem:[#allocation6 + $0xf4] sm:$0xf0]  ;;  %v13396_v22 = vor.u32 %v14913_v12, %v13393_v51  ;;  %v13595_v20 = vld [vmem:[#allocation6 + $0x1e0] sm:$0xf]  ;;  %v14947_v8 = vld [vmem:[#allocation6 + $0x1ec] sm:$0xf0] }
 0x521   : > { %v13400_v6 = vor.u32 %v14916_v35, %v13399_v37  ;;  %v13375_v29 = vld [vmem:[#allocation6 + $0xc0] sm:$0xf]  ;;  %9033 = vmatpush.bf16.msrb.mxu1 %v13392_v55  ;;  %v13596_v45 = vor.u32 %v14947_v8, %v13595_v20  ;;  %v14911_v39 = vld [vmem:[#allocation6 + $0xcc] sm:$0xf0]  ;;  %v14909_v59 = vld [vmem:[#allocation6 + $0xc4] sm:$0xf] }
 0x522   : > { %v13377_v38 = vld [vmem:[#allocation6 + $0xd0] sm:$0xf0]  ;;  %9046 = vmatpush.bf16.msrb.mxu2 %v13396_v22  ;;  %v13376_v24 = vor.u32 %v14911_v39, %v13375_v29  ;;  %v13383_v52 = vld [vmem:[#allocation6 + $0xc8] sm:$0xf]  ;;  %v14912_v15 = vld [vmem:[#allocation6 + $0xd4] sm:$0xf0] }
 0x523   : > { %9059 = vmatpush.bf16.msrb.mxu3 %v13400_v6  ;;  %v13380_v33 = vor.u32 %v14909_v59, %v13377_v38  ;;  %v13579_v3 = vld [vmem:[#allocation6 + $0x1c0] sm:$0xf]  ;;  %9476 = vmatpush.bf16.msrb.mxu0 %v13596_v45  ;;  %v13384_v46 = vor.u32 %v14912_v15, %v13383_v52  ;;  %v14943_v42 = vld [vmem:[#allocation6 + $0x1cc] sm:$0xf0]  ;;  %v14905_v5 = vld [vmem:[#allocation6 + $0xa4] sm:$0xf]  ;;  %v17687_v6 = vpack.c.bf16 %v17644_v43, %v17644_v43 }
 0x524   : > { %v13359_v56 = vld [vmem:[#allocation6 + $0xa0] sm:$0xf]  ;;  %v14907_v54 = vld [vmem:[#allocation6 + $0xac] sm:$0xf0]  ;;  %v13580_v17 = vor.u32 %v14943_v42, %v13579_v3  ;;  %v13361_v26 = vld [vmem:[#allocation6 + $0xb0] sm:$0xf0]  ;;  %v17691_v38 = vpack.c.bf16 %v17648_v63, %v17648_v63 }
 0x525   : > { %v13367_v49 = vld [vmem:[#allocation6 + $0xa8] sm:$0xf]  ;;  %9034 = vmatpush.bf16.msrb.mxu1 %v13376_v24  ;;  %v13360_v21 = vor.u32 %v14907_v54, %v13359_v56  ;;  %v14908_v4 = vld [vmem:[#allocation6 + $0xb4] sm:$0xf0]  ;;  %v13563_v23 = vld [vmem:[#allocation6 + $0x1a0] sm:$0xf]  ;;  %v13364_v48 = vor.u32 %v14905_v5, %v13361_v26 }
 0x526   : > { %v14939_v36 = vld [vmem:[#allocation6 + $0x1ac] sm:$0xf0]  ;;  %9047 = vmatpush.bf16.msrb.mxu2 %v13380_v33  ;;  %v13368_v19 = vor.u32 %v14908_v4, %v13367_v49  ;;  %v13343_v28 = vld [vmem:[#allocation6 + $0x80] sm:$0xf]  ;;  %v14901_v57 = vld [vmem:[#allocation6 + $0x84] sm:$0xf] }
 0x527   : > { %9060 = vmatpush.bf16.msrb.mxu3 %v13384_v46  ;;  %v14903_v9 = vld [vmem:[#allocation6 + $0x8c] sm:$0xf0]  ;;  %9477 = vmatpush.bf16.msrb.mxu0 %v13580_v17  ;;  %v13564_v30 = vor.u32 %v14939_v36, %v13563_v23  ;;  %v13345_v25 = vld [vmem:[#allocation6 + $0x90] sm:$0xf0]  ;;  %v13351_v2 = vld [vmem:[#allocation6 + $0x88] sm:$0xf] }
 0x528   : > { %v14904_v1 = vld [vmem:[#allocation6 + $0x94] sm:$0xf0]  ;;  %v13547_v13 = vld [vmem:[#allocation6 + $0x180] sm:$0xf]  ;;  %v14935_v60 = vld [vmem:[#allocation6 + $0x18c] sm:$0xf0]  ;;  %v13344_v53 = vor.u32 %v14903_v9, %v13343_v28  ;;  %v13348_v61 = vor.u32 %v14901_v57, %v13345_v25 }
 0x529   : > { %v13459_v44 = vld [vmem:[#allocation6 + $0x60] sm:$0xf]  ;;  %9035 = vmatpush.bf16.msrb.mxu1 %v13360_v21  ;;  %v14899_v41 = vld [vmem:[#allocation6 + $0x6c] sm:$0xf0]  ;;  %v14897_v34 = vld [vmem:[#allocation6 + $0x64] sm:$0xf]  ;;  %v13352_v12 = vor.u32 %v14904_v1, %v13351_v2  ;;  %v13548_v55 = vor.u32 %v14935_v60, %v13547_v13 }
 0x52a   : > { %v13461_v7 = vld [vmem:[#allocation6 + $0x70] sm:$0xf0]  ;;  %9048 = vmatpush.bf16.msrb.mxu2 %v13364_v48  ;;  %v13460_v51 = vor.u32 %v14899_v41, %v13459_v44  ;;  %v14914_v37 = vld [vmem:[#allocation6 + $0xec] sm:$0xf]  ;;  %v13401_v35 = vld [vmem:[#allocation6 + $0xf8] sm:$0xf0] }
 0x52b   : > { %9061 = vmatpush.bf16.msrb.mxu3 %v13368_v19  ;;  %9478 = vmatpush.bf16.msrb.mxu0 %v13564_v30  ;;  %v13663_v22 = vld [vmem:[#allocation6 + $0x260] sm:$0xf]  ;;  %v13464_v20 = vor.u32 %v14897_v34, %v13461_v7  ;;  %v14963_v8 = vld [vmem:[#allocation6 + $0x26c] sm:$0xf0]  ;;  %vm9025_vm3 = vcmask 523264   ;;  %v13404_v24 = vor.u32 %v14914_v37, %v13401_v35  ;;  %s11744_s21 = sshll.u32 %s17683_s16, 4  ;;  %s11745_s21 = int_to_ptr.vmem [resolvable:$true] %s11744_s21 }
 0x52c   : > { %v13443_v29 = vld [vmem:[#allocation6 + $0x40] sm:$0xf]  ;;  %v14895_v45 = vld [vmem:[#allocation6 + $0x4c] sm:$0xf0]  ;;  %v14893_v39 = vld [vmem:[#allocation6 + $0x44] sm:$0xf]  ;;  %v13664_v33 = vor.u32 %v14963_v8, %v13663_v22 }
 0x52d   : > { %9036 = vmatpush.bf16.msrb.mxu1 %v13344_v53  ;;  %v13445_v59 = vld [vmem:[#allocation6 + $0x50] sm:$0xf0]  ;;  %v13444_v43 = vor.u32 %v14895_v45, %v13443_v29  ;;  %v14910_v52 = vld [vmem:[#allocation6 + $0xcc] sm:$0xf]  ;;  %v13385_v15 = vld [vmem:[#allocation6 + $0xd8] sm:$0xf0] }
 0x52e   : > { %9049 = vmatpush.bf16.msrb.mxu2 %v13348_v61  ;;  %v13647_v3 = vld [vmem:[#allocation6 + $0x240] sm:$0xf]  ;;  %v13448_v46 = vor.u32 %v14893_v39, %v13445_v59  ;;  %v14959_v42 = vld [vmem:[#allocation6 + $0x24c] sm:$0xf0]  ;;  %v14889_v63 = vld [vmem:[#allocation6 + $0x24] sm:$0xf]  ;;  %v13388_v5 = vor.u32 %v14910_v52, %v13385_v15 }
 0x52f   : > { %9062 = vmatpush.bf16.msrb.mxu3 %v13352_v12  ;;  %9479 = vmatpush.bf16.msrb.mxu0 %v13548_v55  ;;  %v13427_v56 = vld [vmem:[#allocation6 + $0x20] sm:$0xf]  ;;  %v14891_v54 = vld [vmem:[#allocation6 + $0x2c] sm:$0xf0]  ;;  %v13429_v17 = vld [vmem:[#allocation6 + $0x30] sm:$0xf0]  ;;  %v13648_v49 = vor.u32 %v14959_v42, %v13647_v3 }
 0x530   : > { %13405 = vmatmul.msk.bf16.vlgmr.msrb.gmra.mxu1 %vm9025_vm3, %v17687_v6  ;;  %v14906_v26 = vld [vmem:[#allocation6 + $0xac] sm:$0xf]  ;;  %v13428_v21 = vor.u32 %v14891_v54, %v13427_v56  ;;  %v13369_v4 = vld [vmem:[#allocation6 + $0xb8] sm:$0xf0]  ;;  %v13631_v23 = vld [vmem:[#allocation6 + $0x220] sm:$0xf]  ;;  %v13432_v48 = vor.u32 %v14889_v63, %v13429_v17  ;;  %v17707_v63 = vpack.c.bf16 %v17651_v18, %v17651_v18 }
 0x531   : > { %13406 = vmatmul.msk.bf16.vlgmr.msrb.gmra.mxu2 %vm9025_vm3, %v17687_v6  ;;  %9072 = vmatpush.bf16.msra.mxu1 %v13404_v24  ;;  %v14955_v36 = vld [vmem:[#allocation6 + $0x22c] sm:$0xf0]  ;;  %v13411_v19 = vld [vmem:[#allocation6] sm:$0xf]  ;;  %v14885_v9 = vld [vmem:[#allocation6 + $0x4] sm:$0xf]  ;;  %v13372_v2 = vor.u32 %v14906_v26, %v13369_v4 }
 0x532   : > { %9168 = vmatpush.bf16.msra.mxu2 %v13460_v51  ;;  %13407 = vmatmul.msk.bf16.vlgmr.msrb.gmra.mxu3 %vm9025_vm3, %v17687_v6  ;;  %v14887_v28 = vld [vmem:[#allocation6 + $0xc] sm:$0xf0]  ;;  %v13413_v57 = vld [vmem:[#allocation6 + $0x10] sm:$0xf0]  ;;  %v14898_v30 = vld [vmem:[#allocation6 + $0x6c] sm:$0xf]  ;;  %v13632_v44 = vor.u32 %v14955_v36, %v13631_v23 }
 0x533   : > { %9181 = vmatpush.bf16.msra.mxu3 %v13464_v20  ;;  %13609 = vmatmul.msk.bf16.vlgmr.msrb.gmra.mxu0 %vm9025_vm3, %v17691_v38  ;;  %v13469_v25 = vld [vmem:[#allocation6 + $0x78] sm:$0xf0]  ;;  %v14902_v1 = vld [vmem:[#allocation6 + $0x8c] sm:$0xf]  ;;  %v13527_v13 = vld [vmem:[#allocation6 + $0x160] sm:$0xf]  ;;  %v13412_v53 = vor.u32 %v14887_v28, %v13411_v19  ;;  %v13416_v61 = vor.u32 %v14885_v9, %v13413_v57 }
 0x534   : > { %9632 = vmatpush.bf16.msra.mxu0 %v13664_v33  ;;  %v14931_v60 = vld [vmem:[#allocation6 + $0x16c] sm:$0xf0]  ;;  %v13353_v41 = vld [vmem:[#allocation6 + $0x98] sm:$0xf0]  ;;  %v13615_v34 = vld [vmem:[#allocation6 + $0x200] sm:$0xf]  ;;  %v13472_v12 = vor.u32 %v14898_v30, %v13469_v25 }
 0x535   : > { %9073 = vmatpush.bf16.msra.mxu1 %v13388_v5  ;;  %v14951_v7 = vld [vmem:[#allocation6 + $0x20c] sm:$0xf0]  ;;  %v13467_v55 = vld [vmem:[#allocation6 + $0x68] sm:$0xf]  ;;  %v14900_v51 = vld [vmem:[#allocation6 + $0x74] sm:$0xf0]  ;;  %v13528_v35 = vor.u32 %v14931_v60, %v13527_v13  ;;  %v13356_v29 = vor.u32 %v14902_v1, %v13353_v41 }
 0x536   : > { %9169 = vmatpush.bf16.msra.mxu2 %v13444_v43  ;;  %v13731_v37 = vld [vmem:[#allocation6 + $0x2e0] sm:$0xf]  ;;  %v14979_v22 = vld [vmem:[#allocation6 + $0x2ec] sm:$0xf0]  ;;  %v14894_v20 = vld [vmem:[#allocation6 + $0x4c] sm:$0xf]  ;;  %v13616_v45 = vor.u32 %v14951_v7, %v13615_v34  ;;  %v13468_v39 = vor.u32 %v14900_v51, %v13467_v55 }
 0x537   : > { %9182 = vmatpush.bf16.msra.mxu3 %v13448_v46  ;;  %v13453_v8 = vld [vmem:[#allocation6 + $0x58] sm:$0xf0]  ;;  %v13511_v59 = vld [vmem:[#allocation6 + $0x140] sm:$0xf]  ;;  %v14927_v24 = vld [vmem:[#allocation6 + $0x14c] sm:$0xf0]  ;;  %v13732_v33 = vor.u32 %v14979_v22, %v13731_v37  ;;  %v17703_v46 = vpack.c.bf16 %v17642_v40, %v17642_v40 }
 0x538   : > { %9633 = vmatpush.bf16.msra.mxu0 %v13648_v49  ;;  %v13456_v43 = vor.u32 %v14894_v20, %v13453_v8  ;;  %v13451_v52 = vld [vmem:[#allocation6 + $0x48] sm:$0xf]  ;;  %v14896_v15 = vld [vmem:[#allocation6 + $0x54] sm:$0xf0]  ;;  %v13715_v3 = vld [vmem:[#allocation6 + $0x2c0] sm:$0xf]  ;;  %v13512_v17 = vor.u32 %v14927_v24, %v13511_v59 }
 0x539   : > { %9074 = vmatpush.bf16.msra.mxu1 %v13372_v2  ;;  %v14975_v42 = vld [vmem:[#allocation6 + $0x2cc] sm:$0xf0]  ;;  %v14890_v56 = vld [vmem:[#allocation6 + $0x2c] sm:$0xf]  ;;  %v13437_v54 = vld [vmem:[#allocation6 + $0x38] sm:$0xf0]  ;;  %v13452_v5 = vor.u32 %v14896_v15, %v13451_v52 }
 0x53a   : > { %9170 = vmatpush.bf16.msra.mxu2 %v13428_v21  ;;  %v13495_v26 = vld [vmem:[#allocation6 + $0x120] sm:$0xf]  ;;  %v14923_v49 = vld [vmem:[#allocation6 + $0x12c] sm:$0xf0]  ;;  %v13716_v21 = vor.u32 %v14975_v42, %v13715_v3  ;;  %v13440_v40 = vor.u32 %v14890_v56, %v13437_v54  ;;  %v13435_v4 = vld [vmem:[#allocation6 + $0x28] sm:$0xf] }
 0x53b   : > { %9183 = vmatpush.bf16.msra.mxu3 %v13432_v48  ;;  %v14892_v23 = vld [vmem:[#allocation6 + $0x34] sm:$0xf0]  ;;  %v13699_v36 = vld [vmem:[#allocation6 + $0x2a0] sm:$0xf]  ;;  %v14971_v18 = vld [vmem:[#allocation6 + $0x2ac] sm:$0xf0]  ;;  %v13496_v57 = vor.u32 %v14923_v49, %v13495_v26  ;;  %v17719_v26 = vpack.c.bf16 %v17646_v62, %v17646_v62  ;;  %v17723_v49 = vpack.c.bf16 %v17653_v11, %v17653_v11 }
 0x53c   : > { %9634 = vmatpush.bf16.msra.mxu0 %v13632_v44  ;;  %v14886_v48 = vld [vmem:[#allocation6 + $0xc] sm:$0xf]  ;;  %v13421_v19 = vld [vmem:[#allocation6 + $0x18] sm:$0xf0]  ;;  %v13535_v28 = vld [vmem:[#allocation6 + $0x168] sm:$0xf]  ;;  %v13436_v30 = vor.u32 %v14892_v23, %v13435_v4  ;;  %v13700_v1 = vor.u32 %v14971_v18, %v13699_v36 }
 0x53d   : > { %9075 = vmatpush.bf16.msra.mxu1 %v13356_v29  ;;  %v14932_v9 = vld [vmem:[#allocation6 + $0x174] sm:$0xf0]  ;;  %v13479_v25 = vld [vmem:[#allocation6 + $0x100] sm:$0xf]  ;;  %v13419_v2 = vld [vmem:[#allocation6 + $0x8] sm:$0xf]  ;;  %v13424_v13 = vor.u32 %v14886_v48, %v13421_v19 }
 0x53e   : > { %9171 = vmatpush.bf16.msra.mxu2 %v13412_v53  ;;  %v14888_v60 = vld [vmem:[#allocation6 + $0x14] sm:$0xf0]  ;;  %v13683_v44 = vld [vmem:[#allocation6 + $0x280] sm:$0xf]  ;;  %v14967_v53 = vld [vmem:[#allocation6 + $0x28c] sm:$0xf0]  ;;  %v13536_v41 = vor.u32 %v14932_v9, %v13535_v28 }
 0x53f   : > { %9184 = vmatpush.bf16.msra.mxu3 %v13416_v61  ;;  %v14930_v34 = vld [vmem:[#allocation6 + $0x16c] sm:$0xf]  ;;  %v13537_v7 = vld [vmem:[#allocation6 + $0x178] sm:$0xf0]  ;;  %v14929_v61 = vld [vmem:[#allocation6 + $0x164] sm:$0xf]  ;;  %v13684_v8 = vor.u32 %v14967_v53, %v13683_v44 }
 0x540   : > { %9635 = vmatpush.bf16.msra.mxu0 %v13616_v45  ;;  %13408 = vmatmul.msk.bf16.vlgmr.msra.gmra.mxu1 %vm9025_vm3, %v17687_v6  ;;  %v14919_v6 = vld [vmem:[#allocation6 + $0x10c] sm:$0xf0]  ;;  %v13799_v55 = vld [vmem:[#allocation6 + $0x360] sm:$0xf]  ;;  %v13519_v22 = vld [vmem:[#allocation6 + $0x148] sm:$0xf]  ;;  %v13540_v29 = vor.u32 %v14930_v34, %v13537_v7 }
 0x541   : > { %9194 = vmatpush.bf16.msrb.mxu1 %v13468_v39  ;;  %13473 = vmatmul.msk.bf16.vlgmr.msra.gmra.mxu2 %vm9025_vm3, %v17703_v46  ;;  %v14995_v51 = vld [vmem:[#allocation6 + $0x36c] sm:$0xf0]  ;;  %v13480_v37 = vor.u32 %v14919_v6, %v13479_v25  ;;  %v14928_v20 = vld [vmem:[#allocation6 + $0x154] sm:$0xf0]  ;;  %v14926_v59 = vld [vmem:[#allocation6 + $0x14c] sm:$0xf] }
 0x542   : > { %9207 = vmatpush.bf16.msrb.mxu2 %v13472_v12  ;;  %13474 = vmatmul.msk.bf16.vlgmr.msra.gmra.mxu3 %vm9025_vm3, %v17703_v46  ;;  %v13529_v12 = vld [vmem:[#allocation6 + $0x170] sm:$0xf0]  ;;  %v13800_v39 = vor.u32 %v14995_v51, %v13799_v55  ;;  %v13521_v24 = vld [vmem:[#allocation6 + $0x158] sm:$0xf0]  ;;  %v13783_v3 = vld [vmem:[#allocation6 + $0x340] sm:$0xf] }
 0x543   : > { %9320 = vmatpush.bf16.msrb.mxu3 %v13528_v35  ;;  %13677 = vmatmul.msk.bf16.vlgmr.msra.gmra.mxu0 %vm9025_vm3, %v17707_v63  ;;  %v13420_v35 = vor.u32 %v14888_v60, %v13419_v2  ;;  %v13532_v45 = vor.u32 %v14929_v61, %v13529_v12  ;;  %v13513_v52 = vld [vmem:[#allocation6 + $0x150] sm:$0xf0]  ;;  %v13524_v15 = vor.u32 %v14926_v59, %v13521_v24  ;;  %v14991_v42 = vld [vmem:[#allocation6 + $0x34c] sm:$0xf0]  ;;  %v13503_v56 = vld [vmem:[#allocation6 + $0x128] sm:$0xf] }
 0x544   : > { %9788 = vmatpush.bf16.msrb.mxu0 %v13732_v33  ;;  %v13520_v33 = vor.u32 %v14928_v20, %v13519_v22  ;;  %v14924_v54 = vld [vmem:[#allocation6 + $0x134] sm:$0xf0]  ;;  %v14921_v4 = vld [vmem:[#allocation6 + $0x124] sm:$0xf]  ;;  %v13497_v23 = vld [vmem:[#allocation6 + $0x130] sm:$0xf0] }
 0x545   : > { %9195 = vmatpush.bf16.msrb.mxu1 %v13452_v5  ;;  %v13505_v5 = vld [vmem:[#allocation6 + $0x138] sm:$0xf0]  ;;  %v13767_v36 = vld [vmem:[#allocation6 + $0x320] sm:$0xf]  ;;  %v13504_v18 = vor.u32 %v14924_v54, %v13503_v56  ;;  %v14987_v19 = vld [vmem:[#allocation6 + $0x32c] sm:$0xf0]  ;;  %v13500_v2 = vor.u32 %v14921_v4, %v13497_v23 }
 0x546   : > { %9208 = vmatpush.bf16.msrb.mxu2 %v13456_v43  ;;  %v14925_v43 = vld [vmem:[#allocation6 + $0x144] sm:$0xf]  ;;  %v13487_v28 = vld [vmem:[#allocation6 + $0x108] sm:$0xf]  ;;  %v14920_v9 = vld [vmem:[#allocation6 + $0x114] sm:$0xf0] }
 0x547   : > { %9321 = vmatpush.bf16.msrb.mxu3 %v13512_v17  ;;  %v14922_v17 = vld [vmem:[#allocation6 + $0x12c] sm:$0xf]  ;;  %v13489_v11 = vld [vmem:[#allocation6 + $0x118] sm:$0xf0]  ;;  %v13481_v60 = vld [vmem:[#allocation6 + $0x110] sm:$0xf0] }
 0x548   : > { %9789 = vmatpush.bf16.msrb.mxu0 %v13716_v21  ;;  %v13516_v21 = vor.u32 %v14925_v43, %v13513_v52  ;;  %v13508_v48 = vor.u32 %v14922_v17, %v13505_v5  ;;  %v14918_v62 = vld [vmem:[#allocation6 + $0x10c] sm:$0xf]  ;;  %v13605_v6 = vld [vmem:[#allocation6 + $0x1f8] sm:$0xf0]  ;;  %v13751_v44 = vld [vmem:[#allocation6 + $0x300] sm:$0xf] }
 0x549   : > { %9196 = vmatpush.bf16.msrb.mxu1 %v13436_v30  ;;  %v14948_v30 = vld [vmem:[#allocation6 + $0x1f4] sm:$0xf0]  ;;  %v14946_v25 = vld [vmem:[#allocation6 + $0x1ec] sm:$0xf]  ;;  %v13492_v53 = vor.u32 %v14918_v62, %v13489_v11  ;;  %v14945_v34 = vld [vmem:[#allocation6 + $0x1e4] sm:$0xf] }
 0x54a   : > { %9209 = vmatpush.bf16.msrb.mxu2 %v13440_v40  ;;  %v13784_v40 = vor.u32 %v14991_v42, %v13783_v3  ;;  %v13597_v7 = vld [vmem:[#allocation6 + $0x1f0] sm:$0xf0]  ;;  %v13608_v12 = vor.u32 %v14946_v25, %v13605_v6  ;;  %v13867_v55 = vld [vmem:[#allocation6 + $0x3e0] sm:$0xf]  ;;  %v15011_v51 = vld [vmem:[#allocation6 + $0x3ec] sm:$0xf0] }
 0x54b   : > { %9322 = vmatpush.bf16.msrb.mxu3 %v13496_v57  ;;  %v13603_v57 = vld [vmem:[#allocation6 + $0x1e8] sm:$0xf]  ;;  %v14942_v22 = vld [vmem:[#allocation6 + $0x1cc] sm:$0xf]  ;;  %v13589_v20 = vld [vmem:[#allocation6 + $0x1d8] sm:$0xf0] }
 0x54c   : > { %9790 = vmatpush.bf16.msrb.mxu0 %v13700_v1  ;;  %v13768_v1 = vor.u32 %v14987_v19, %v13767_v36  ;;  %v13604_v61 = vor.u32 %v14948_v30, %v13603_v57  ;;  %v14941_v59 = vld [vmem:[#allocation6 + $0x1c4] sm:$0xf]  ;;  %v13581_v43 = vld [vmem:[#allocation6 + $0x1d0] sm:$0xf0]  ;;  %v13851_v52 = vld [vmem:[#allocation6 + $0x3c0] sm:$0xf]  ;;  %v17735_v36 = vpack.c.bf16 %v17655_v50, %v17655_v50 }
 0x54d   : > { %9197 = vmatpush.bf16.msrb.mxu1 %v13420_v35  ;;  %v14944_v35 = vld [vmem:[#allocation6 + $0x1d4] sm:$0xf0]  ;;  %v13571_v3 = vld [vmem:[#allocation6 + $0x1a8] sm:$0xf]  ;;  %v13584_v56 = vor.u32 %v14941_v59, %v13581_v43  ;;  %v14938_v17 = vld [vmem:[#allocation6 + $0x1ac] sm:$0xf] }
 0x54e   : > { %9210 = vmatpush.bf16.msrb.mxu2 %v13424_v13  ;;  %v14917_v13 = vld [vmem:[#allocation6 + $0x104] sm:$0xf]  ;;  %v14940_v42 = vld [vmem:[#allocation6 + $0x1b4] sm:$0xf0]  ;;  %v13573_v5 = vld [vmem:[#allocation6 + $0x1b8] sm:$0xf0] }
 0x54f   : > { %9323 = vmatpush.bf16.msrb.mxu3 %v13480_v37  ;;  %v13587_v37 = vld [vmem:[#allocation6 + $0x1c8] sm:$0xf]  ;;  %v13835_v4 = vld [vmem:[#allocation6 + $0x3a0] sm:$0xf]  ;;  %v15003_v23 = vld [vmem:[#allocation6 + $0x3ac] sm:$0xf0]  ;;  %v13576_v19 = vor.u32 %v14938_v17, %v13573_v5 }
 0x550   : > { %9791 = vmatpush.bf16.msrb.mxu0 %v13684_v8  ;;  %13475 = vmatmul.msk.bf16.vlgmr.msrb.gmra.mxu1 %vm9025_vm3, %v17703_v46  ;;  %v13484_v8 = vor.u32 %v14917_v13, %v13481_v60  ;;  %v13588_v24 = vor.u32 %v14944_v35, %v13587_v37  ;;  %v13557_v62 = vld [vmem:[#allocation6 + $0x198] sm:$0xf0]  ;;  %v13836_v57 = vor.u32 %v15003_v23, %v13835_v4  ;;  %v14933_v30 = vld [vmem:[#allocation6 + $0x184] sm:$0xf]  ;;  %v13549_v25 = vld [vmem:[#allocation6 + $0x190] sm:$0xf0] }
 0x551   : > { %9333 = vmatpush.bf16.msra.mxu1 %v13532_v45  ;;  %13476 = vmatmul.msk.bf16.vlgmr.msrb.gmra.mxu2 %vm9025_vm3, %v17703_v46  ;;  %v13488_v46 = vor.u32 %v14920_v9, %v13487_v28  ;;  %v13600_v45 = vor.u32 %v14945_v34, %v13597_v7  ;;  %v14936_v28 = vld [vmem:[#allocation6 + $0x194] sm:$0xf0]  ;;  %v14934_v9 = vld [vmem:[#allocation6 + $0x18c] sm:$0xf]  ;;  %v13819_v6 = vld [vmem:[#allocation6 + $0x380] sm:$0xf] }
 0x552   : > { %9346 = vmatpush.bf16.msra.mxu2 %v13536_v41  ;;  %13541 = vmatmul.msk.bf16.vlgmr.msrb.gmra.mxu3 %vm9025_vm3, %v17719_v26  ;;  %v14983_v41 = vld [vmem:[#allocation6 + $0x30c] sm:$0xf0]  ;;  %v14962_v13 = vld [vmem:[#allocation6 + $0x26c] sm:$0xf]  ;;  %v13673_v60 = vld [vmem:[#allocation6 + $0x278] sm:$0xf0] }
 0x553   : > { %9359 = vmatpush.bf16.msra.mxu3 %v13540_v29  ;;  %13745 = vmatmul.msk.bf16.vlgmr.msrb.gmra.mxu0 %vm9025_vm3, %v17723_v49  ;;  %v13752_v29 = vor.u32 %v14983_v41, %v13751_v44  ;;  %v14999_v50 = vld [vmem:[#allocation6 + $0x38c] sm:$0xf0]  ;;  %v14961_v44 = vld [vmem:[#allocation6 + $0x264] sm:$0xf]  ;;  %v13665_v41 = vld [vmem:[#allocation6 + $0x270] sm:$0xf0] }
 0x554   : > { %9944 = vmatpush.bf16.msra.mxu0 %v13800_v39  ;;  %v13868_v39 = vor.u32 %v15011_v51, %v13867_v55  ;;  %v13935_v34 = vld [vmem:[#allocation6 + $0x460] sm:$0xf]  ;;  %v15027_v7 = vld [vmem:[#allocation6 + $0x46c] sm:$0xf0]  ;;  %v13676_v51 = vor.u32 %v14962_v13, %v13673_v60  ;;  %v14960_v37 = vld [vmem:[#allocation6 + $0x254] sm:$0xf0]  ;;  %v13668_v35 = vor.u32 %v14961_v44, %v13665_v41 }
 0x555   : > { %9334 = vmatpush.bf16.msra.mxu1 %v13516_v21  ;;  %v14937_v21 = vld [vmem:[#allocation6 + $0x1a4] sm:$0xf]  ;;  %v15023_v59 = vld [vmem:[#allocation6 + $0x44c] sm:$0xf0]  ;;  %v13633_v17 = vld [vmem:[#allocation6 + $0x230] sm:$0xf0] }
 0x556   : > { %9347 = vmatpush.bf16.msra.mxu2 %v13520_v33  ;;  %v13592_v33 = vor.u32 %v14942_v22, %v13589_v20  ;;  %v13936_v22 = vor.u32 %v15027_v7, %v13935_v34  ;;  %v14958_v20 = vld [vmem:[#allocation6 + $0x24c] sm:$0xf]  ;;  %v13903_v5 = vld [vmem:[#allocation6 + $0x420] sm:$0xf]  ;;  %v13623_v4 = vld [vmem:[#allocation6 + $0x208] sm:$0xf] }
 0x557   : > { %9360 = vmatpush.bf16.msra.mxu3 %v13524_v15  ;;  %v15007_v15 = vld [vmem:[#allocation6 + $0x3cc] sm:$0xf0]  ;;  %v13733_v44 = vld [vmem:[#allocation6 + $0x2f0] sm:$0xf0]  ;;  %s11746_s22 = sshll.u32 %s11742_s17, 4  ;;  %vm11731_vm7 = vcmask 57344   ;;  %s11747_s22 = int_to_ptr.hbm [resolvable:$true] %s11746_s22 }
 0x558   : > { %9945 = vmatpush.bf16.msra.mxu0 %v13784_v40  ;;  %v13852_v54 = vor.u32 %v15007_v15, %v13851_v52  ;;  %v13565_v40 = vld [vmem:[#allocation6 + $0x1b0] sm:$0xf0]  ;;  %v13639_v15 = vld [vmem:[#allocation6 + $0x228] sm:$0xf]  ;;  %s11734_s23 = scalar_lea.sflag [#allocation9], %s297_s25  ;;  %s15257_s24 = sshra.s32 %s11747_s22, 4  ;;  %s15258_s24 = int_to_ptr.hbm [resolvable:$true] %s15257_s24 }
 0x559   : > { %9335 = vmatpush.bf16.msra.mxu1 %v13500_v2  ;;  %v13568_v11 = vor.u32 %v14937_v21, %v13565_v40  ;;  %v13671_v2 = vld [vmem:[#allocation6 + $0x268] sm:$0xf]  ;;  %v15019_v21 = vld [vmem:[#allocation6 + $0x42c] sm:$0xf0]  ;;  %v17747_v40 = vpack.c.bf16 %v17657_v14, %v17657_v14  ;;  %s15259_s26 = scalar_lea.hbm %s15258_s24, 1  ;;  %s15263_s27 = scalar_lea.hbm %s18119_s9, 2 }
 0x55a   : > { %9348 = vmatpush.bf16.msra.mxu2 %v13504_v18  ;;  %v13555_v18 = vld [vmem:[#allocation6 + $0x188] sm:$0xf]  ;;  %v15015_v14 = vld [vmem:[#allocation6 + $0x40c] sm:$0xf0]  ;;  %p15260_p11 = scmp.ne.s32.totalorder %s15258_s24, %s15259_s26  ;;  %p15264_p0 = scmp.lt.s32.totalorder %s15258_s24, %s18119_s9 }
 0x55b   : > { %9361 = vmatpush.bf16.msra.mxu3 %v13508_v48  ;;  %v13572_v48 = vor.u32 %v14940_v42, %v13571_v3  ;;  %v14956_v3 = vld [vmem:[#allocation6 + $0x234] sm:$0xf0]  ;;  %v14954_v42 = vld [vmem:[#allocation6 + $0x22c] sm:$0xf]  ;;  %p15265_p1 = scmp.lt.s32.totalorder %s15263_s27, %s15259_s26 }
 0x55c   : > { %9946 = vmatpush.bf16.msra.mxu0 %v13768_v1  ;;  %v14964_v1 = vld [vmem:[#allocation6 + $0x274] sm:$0xf0]  ;;  %v13640_v23 = vor.u32 %v14956_v3, %v13639_v15  ;;  %v14969_v15 = vld [vmem:[#allocation6 + $0x2a4] sm:$0xf]  ;;  %v13701_v3 = vld [vmem:[#allocation6 + $0x2b0] sm:$0xf0]  ;;  %p15261_p12 = pnand %p15260_p11, %p15399_p5 }
 0x55d   : > { %9336 = vmatpush.bf16.msra.mxu1 %v13484_v8  ;;  %v13672_v55 = vor.u32 %v14964_v1, %v13671_v2  ;;  %v13657_v8 = vld [vmem:[#allocation6 + $0x258] sm:$0xf0]  ;;  %v14977_v1 = vld [vmem:[#allocation6 + $0x2e4] sm:$0xf]  ;;  %p15266_p2 = por %p15265_p1, %p15264_p0 }
 0x55e   : > { %9349 = vmatpush.bf16.msra.mxu2 %v13488_v46  ;;  %v13556_v46 = vor.u32 %v14936_v28, %v13555_v18  ;;  %v13625_v28 = vld [vmem:[#allocation6 + $0x218] sm:$0xf0]  ;;  %p15262_p13 = pneg %p15261_p12 }
 0x55f   : > { %9362 = vmatpush.bf16.msra.mxu3 %v13492_v53  ;;  %v13560_v53 = vor.u32 %v14934_v9, %v13557_v62  ;;  %v13904_v62 = vor.u32 %v15019_v21, %v13903_v5  ;;  %v13741_v2 = vld [vmem:[#allocation6 + $0x2f8] sm:$0xf0] }
 0x560   : > { %9947 = vmatpush.bf16.msra.mxu0 %v13752_v29  ;;  %13542 = vmatmul.msk.bf16.vlgmr.msra.gmra.mxu1 %vm9025_vm3, %v17719_v26  ;;  %v14957_v29 = vld [vmem:[#allocation6 + $0x244] sm:$0xf]  ;;  %p15267_p3 = pnand %p15266_p2, %p15262_p13 }
 0x561   : > { %9489 = vmatpush.bf16.msrb.mxu1 %v13600_v45  ;;  %13543 = vmatmul.msk.bf16.vlgmr.msra.gmra.mxu2 %vm9025_vm3, %v17719_v26  ;;  %v13649_v45 = vld [vmem:[#allocation6 + $0x250] sm:$0xf0] }
 0x562   : > { %9502 = vmatpush.bf16.msrb.mxu2 %v13604_v61  ;;  %13544 = vmatmul.msk.bf16.vlgmr.msra.gmra.mxu3 %vm9025_vm3, %v17719_v26  ;;  %v13552_v61 = vor.u32 %v14933_v30, %v13549_v25  ;;  %v13655_v26 = vld [vmem:[#allocation6 + $0x248] sm:$0xf]  ;;  %v13652_v43 = vor.u32 %v14957_v29, %v13649_v45  ;;  %v13887_v30 = vld [vmem:[#allocation6 + $0x400] sm:$0xf] }
 0x563   : > { %9515 = vmatpush.bf16.msrb.mxu3 %v13608_v12  ;;  %13813 = vmatmul.msk.bf16.vlgmr.msra.gmra.mxu0 %vm9025_vm3, %v17735_v36  ;;  %v13820_v12 = vor.u32 %v14999_v50, %v13819_v6  ;;  %v13739_v25 = vld [vmem:[#allocation6 + $0x2e8] sm:$0xf]  ;;  %v14980_v6 = vld [vmem:[#allocation6 + $0x2f4] sm:$0xf0]  ;;  %v14978_v50 = vld [vmem:[#allocation6 + $0x2ec] sm:$0xf]  ;;  %v13888_v34 = vor.u32 %v15015_v14, %v13887_v30 }
 0x564   : > { %10100 = vmatpush.bf16.msrb.mxu0 %v13868_v39  ;;  %v13919_v39 = vld [vmem:[#allocation6 + $0x440] sm:$0xf]  ;;  %v13740_v7 = vor.u32 %v14980_v6, %v13739_v25  ;;  %v14994_v30 = vld [vmem:[#allocation6 + $0x36c] sm:$0xf]  ;;  %v13809_v14 = vld [vmem:[#allocation6 + $0x378] sm:$0xf0] }
 0x565   : > { %9490 = vmatpush.bf16.msrb.mxu1 %v13584_v56  ;;  %v13920_v52 = vor.u32 %v15023_v59, %v13919_v39  ;;  %v13641_v56 = vld [vmem:[#allocation6 + $0x238] sm:$0xf0]  ;;  %v14993_v25 = vld [vmem:[#allocation6 + $0x364] sm:$0xf] }
 0x566   : > { %9503 = vmatpush.bf16.msrb.mxu2 %v13588_v24  ;;  %v13656_v24 = vor.u32 %v14960_v37, %v13655_v26  ;;  %v13644_v18 = vor.u32 %v14954_v42, %v13641_v56  ;;  %v14974_v26 = vld [vmem:[#allocation6 + $0x2cc] sm:$0xf]  ;;  %v13725_v37 = vld [vmem:[#allocation6 + $0x2d8] sm:$0xf0]  ;;  %v13971_v42 = vld [vmem:[#allocation6 + $0x4a0] sm:$0xf] }
 0x567   : > { %9516 = vmatpush.bf16.msrb.mxu3 %v13592_v33  ;;  %v13660_v33 = vor.u32 %v14958_v20, %v13657_v8  ;;  %v13987_v20 = vld [vmem:[#allocation6 + $0x4c0] sm:$0xf]  ;;  %v15039_v8 = vld [vmem:[#allocation6 + $0x4cc] sm:$0xf0]  ;;  %v13728_v45 = vor.u32 %v14974_v26, %v13725_v37 }
 0x568   : > { %10101 = vmatpush.bf16.msrb.mxu0 %v13852_v54  ;;  %v14953_v54 = vld [vmem:[#allocation6 + $0x224] sm:$0xf]  ;;  %v13988_v59 = vor.u32 %v15039_v8, %v13987_v20  ;;  %v15035_v56 = vld [vmem:[#allocation6 + $0x4ac] sm:$0xf0]  ;;  %v13775_v8 = vld [vmem:[#allocation6 + $0x328] sm:$0xf] }
 0x569   : > { %9491 = vmatpush.bf16.msrb.mxu1 %v13568_v11  ;;  %v13636_v9 = vor.u32 %v14953_v54, %v13633_v17  ;;  %v14949_v11 = vld [vmem:[#allocation6 + $0x204] sm:$0xf]  ;;  %v17759_v54 = vpack.c.bf16 %v17664_v0, %v17664_v0  ;;  %v13691_v17 = vld [vmem:[#allocation6 + $0x288] sm:$0xf]  ;;  %v15031_v0 = vld [vmem:[#allocation6 + $0x48c] sm:$0xf0] }
 0x56a   : > { %9504 = vmatpush.bf16.msrb.mxu2 %v13572_v48  ;;  %v14952_v48 = vld [vmem:[#allocation6 + $0x214] sm:$0xf0]  ;;  %v15055_v26 = vld [vmem:[#allocation6 + $0x54c] sm:$0xf0] }
 0x56b   : > { %9517 = vmatpush.bf16.msrb.mxu3 %v13576_v19  ;;  %v14950_v19 = vld [vmem:[#allocation6 + $0x20c] sm:$0xf]  ;;  %v13624_v13 = vor.u32 %v14952_v48, %v13623_v4  ;;  %v14968_v4 = vld [vmem:[#allocation6 + $0x294] sm:$0xf0]  ;;  %v13704_v48 = vor.u32 %v14969_v15, %v13701_v3  ;;  %v13759_v15 = vld [vmem:[#allocation6 + $0x308] sm:$0xf] }
 0x56c   : > { %10102 = vmatpush.bf16.msrb.mxu0 %v13836_v57  ;;  %v13617_v57 = vld [vmem:[#allocation6 + $0x210] sm:$0xf0]  ;;  %v13628_v60 = vor.u32 %v14950_v19, %v13625_v28  ;;  %v13972_v19 = vor.u32 %v15035_v56, %v13971_v42  ;;  %v14965_v28 = vld [vmem:[#allocation6 + $0x284] sm:$0xf]  ;;  %v13692_v6 = vor.u32 %v14968_v4, %v13691_v17  ;;  %v14984_v56 = vld [vmem:[#allocation6 + $0x314] sm:$0xf0] }
 0x56d   : > { %9492 = vmatpush.bf16.msrb.mxu1 %v13552_v61  ;;  %v13620_v41 = vor.u32 %v14949_v11, %v13617_v57  ;;  %v13744_v61 = vor.u32 %v14978_v50, %v13741_v2  ;;  %v13807_v11 = vld [vmem:[#allocation6 + $0x368] sm:$0xf]  ;;  %v14996_v57 = vld [vmem:[#allocation6 + $0x374] sm:$0xf0]  ;;  %v13801_v2 = vld [vmem:[#allocation6 + $0x370] sm:$0xf0] }
 0x56e   : > { %9505 = vmatpush.bf16.msrb.mxu2 %v13556_v46  ;;  %v14003_v46 = vld [vmem:[#allocation6 + $0x4e0] sm:$0xf]  ;;  %v14982_v17 = vld [vmem:[#allocation6 + $0x30c] sm:$0xf] }
 0x56f   : > { %9518 = vmatpush.bf16.msrb.mxu3 %v13560_v53  ;;  %v15043_v53 = vld [vmem:[#allocation6 + $0x4ec] sm:$0xf0] }
 0x570   : > { %10103 = vmatpush.bf16.msrb.mxu0 %v13820_v12  ;;  %13610 = vmatmul.msk.bf16.vlgmr.msrb.gmra.mxu1 %vm9025_vm3, %v17691_v38  ;;  %v14976_v12 = vld [vmem:[#allocation6 + $0x2d4] sm:$0xf0] }
 0x571   : > { %9645 = vmatpush.bf16.msra.mxu1 %v13668_v35  ;;  %13611 = vmatmul.msk.bf16.vlgmr.msrb.gmra.mxu2 %vm9025_vm3, %v17691_v38  ;;  %v14973_v35 = vld [vmem:[#allocation6 + $0x2c4] sm:$0xf] }
 0x572   : > { %9658 = vmatpush.bf16.msra.mxu2 %v13672_v55  ;;  %13612 = vmatmul.msk.bf16.vlgmr.msrb.gmra.mxu3 %vm9025_vm3, %v17691_v38  ;;  %v13723_v38 = vld [vmem:[#allocation6 + $0x2c8] sm:$0xf]  ;;  %v13736_v55 = vor.u32 %v14977_v1, %v13733_v44  ;;  %v14071_v1 = vld [vmem:[#allocation6 + $0x560] sm:$0xf] }
 0x573   : > { %9671 = vmatpush.bf16.msra.mxu3 %v13676_v51  ;;  %13881 = vmatmul.msk.bf16.vlgmr.msrb.gmra.mxu0 %vm9025_vm3, %v17747_v40  ;;  %v14004_v51 = vor.u32 %v15043_v53, %v14003_v46  ;;  %v13724_v29 = vor.u32 %v14976_v12, %v13723_v38  ;;  %v13808_v46 = vor.u32 %v14996_v57, %v13807_v11  ;;  %v13793_v38 = vld [vmem:[#allocation6 + $0x358] sm:$0xf0]  ;;  %v14989_v12 = vld [vmem:[#allocation6 + $0x344] sm:$0xf] }
 0x574   : > { %10256 = vmatpush.bf16.msra.mxu0 %v13936_v22  ;;  %v13717_v22 = vld [vmem:[#allocation6 + $0x2d0] sm:$0xf0]  ;;  %v13812_v53 = vor.u32 %v14994_v30, %v13809_v14  ;;  %v13760_v11 = vor.u32 %v14984_v56, %v13759_v15  ;;  %v14139_v14 = vld [vmem:[#allocation6 + $0x5e0] sm:$0xf]  ;;  %v13829_v15 = vld [vmem:[#allocation6 + $0x398] sm:$0xf0] }
 0x575   : > { %9646 = vmatpush.bf16.msra.mxu1 %v13652_v43  ;;  %v13720_v39 = vor.u32 %v14973_v35, %v13717_v22  ;;  %v14970_v43 = vld [vmem:[#allocation6 + $0x2ac] sm:$0xf]  ;;  %v13869_v30 = vld [vmem:[#allocation6 + $0x3f0] sm:$0xf0]  ;;  %v14997_v56 = vld [vmem:[#allocation6 + $0x384] sm:$0xf] }
 0x576   : > { %9659 = vmatpush.bf16.msra.mxu2 %v13656_v24  ;;  %v13707_v24 = vld [vmem:[#allocation6 + $0x2a8] sm:$0xf] }
 0x577   : > { %9672 = vmatpush.bf16.msra.mxu3 %v13660_v33  ;;  %v14972_v33 = vld [vmem:[#allocation6 + $0x2b4] sm:$0xf0] }
 0x578   : > { %10257 = vmatpush.bf16.msra.mxu0 %v13920_v52  ;;  %v13709_v52 = vld [vmem:[#allocation6 + $0x2b8] sm:$0xf0]  ;;  %v13708_v5 = vor.u32 %v14972_v33, %v13707_v24  ;;  %v13769_v24 = vld [vmem:[#allocation6 + $0x330] sm:$0xf0]  ;;  %v14039_v33 = vld [vmem:[#allocation6 + $0x520] sm:$0xf] }
 0x579   : > { %9647 = vmatpush.bf16.msra.mxu1 %v13636_v9  ;;  %v13712_v21 = vor.u32 %v14970_v43, %v13709_v52  ;;  %v13685_v9 = vld [vmem:[#allocation6 + $0x290] sm:$0xf0]  ;;  %v15051_v43 = vld [vmem:[#allocation6 + $0x52c] sm:$0xf0]  ;;  %v17771_v52 = vpack.c.bf16 %v17666_v16, %v17666_v16 }
 0x57a   : > { %9660 = vmatpush.bf16.msra.mxu2 %v13640_v23  ;;  %v14966_v23 = vld [vmem:[#allocation6 + $0x28c] sm:$0xf]  ;;  %v14040_v4 = vor.u32 %v15051_v43, %v14039_v33  ;;  %v15047_v16 = vld [vmem:[#allocation6 + $0x50c] sm:$0xf0]  ;;  %v15000_v33 = vld [vmem:[#allocation6 + $0x394] sm:$0xf0] }
 0x57b   : > { %9673 = vmatpush.bf16.msra.mxu3 %v13644_v18  ;;  %v13693_v18 = vld [vmem:[#allocation6 + $0x298] sm:$0xf0]  ;;  %v14998_v43 = vld [vmem:[#allocation6 + $0x38c] sm:$0xf] }
 0x57c   : > { %10258 = vmatpush.bf16.msra.mxu0 %v13904_v62  ;;  %v13955_v62 = vld [vmem:[#allocation6 + $0x480] sm:$0xf]  ;;  %v13696_v50 = vor.u32 %v14966_v23, %v13693_v18  ;;  %v14981_v23 = vld [vmem:[#allocation6 + $0x304] sm:$0xf]  ;;  %v13753_v18 = vld [vmem:[#allocation6 + $0x310] sm:$0xf0] }
 0x57d   : > { %9648 = vmatpush.bf16.msra.mxu1 %v13620_v41  ;;  %v13956_v44 = vor.u32 %v15031_v0, %v13955_v62  ;;  %v14992_v41 = vld [vmem:[#allocation6 + $0x354] sm:$0xf0]  ;;  %v13877_v62 = vld [vmem:[#allocation6 + $0x3f8] sm:$0xf0]  ;;  %v15009_v0 = vld [vmem:[#allocation6 + $0x3e4] sm:$0xf] }
 0x57e   : > { %9661 = vmatpush.bf16.msra.mxu2 %v13624_v13  ;;  %v15059_v13 = vld [vmem:[#allocation6 + $0x56c] sm:$0xf0] }
 0x57f   : > { %9674 = vmatpush.bf16.msra.mxu3 %v13628_v60  ;;  %v13688_v60 = vor.u32 %v14965_v28, %v13685_v9  ;;  %v15012_v28 = vld [vmem:[#allocation6 + $0x3f4] sm:$0xf0]  ;;  %v15010_v9 = vld [vmem:[#allocation6 + $0x3ec] sm:$0xf] }
 0x580   : > { %10259 = vmatpush.bf16.msra.mxu0 %v13888_v34  ;;  %13678 = vmatmul.msk.bf16.vlgmr.msra.gmra.mxu1 %vm9025_vm3, %v17707_v63  ;;  %v13804_v34 = vor.u32 %v14993_v25, %v13801_v2  ;;  %v15075_v25 = vld [vmem:[#allocation6 + $0x5ec] sm:$0xf0] }
 0x581   : > { %9801 = vmatpush.bf16.msrb.mxu1 %v13736_v55  ;;  %13679 = vmatmul.msk.bf16.vlgmr.msra.gmra.mxu2 %vm9025_vm3, %v17707_v63  ;;  %v13785_v55 = vld [vmem:[#allocation6 + $0x350] sm:$0xf0] }
 0x582   : > { %9814 = vmatpush.bf16.msrb.mxu2 %v13740_v7  ;;  %13680 = vmatmul.msk.bf16.vlgmr.msra.gmra.mxu3 %vm9025_vm3, %v17707_v63  ;;  %v13791_v63 = vld [vmem:[#allocation6 + $0x348] sm:$0xf]  ;;  %v14072_v7 = vor.u32 %v15059_v13, %v14071_v1  ;;  %v13788_v22 = vor.u32 %v14989_v12, %v13785_v55  ;;  %v13880_v1 = vor.u32 %v15010_v9, %v13877_v62  ;;  %v15008_v13 = vld [vmem:[#allocation6 + $0x3d4] sm:$0xf0]  ;;  %v14207_v9 = vld [vmem:[#allocation6 + $0x660] sm:$0xf] }
 0x583   : > { %9827 = vmatpush.bf16.msrb.mxu3 %v13744_v61  ;;  %13949 = vmatmul.msk.bf16.vlgmr.msra.gmra.mxu0 %vm9025_vm3, %v17759_v54  ;;  %v14990_v61 = vld [vmem:[#allocation6 + $0x34c] sm:$0xf]  ;;  %v13792_v37 = vor.u32 %v14992_v41, %v13791_v63  ;;  %v15005_v63 = vld [vmem:[#allocation6 + $0x3c4] sm:$0xf]  ;;  %v13853_v41 = vld [vmem:[#allocation6 + $0x3d0] sm:$0xf0] }
 0x584   : > { %10412 = vmatpush.bf16.msrb.mxu0 %v14004_v51  ;;  %v14055_v51 = vld [vmem:[#allocation6 + $0x540] sm:$0xf]  ;;  %v13796_v35 = vor.u32 %v14990_v61, %v13793_v38  ;;  %v13856_v12 = vor.u32 %v15005_v63, %v13853_v41  ;;  %v15091_v62 = vld [vmem:[#allocation6 + $0x66c] sm:$0xf0]  ;;  %v13911_v41 = vld [vmem:[#allocation6 + $0x428] sm:$0xf] }
 0x585   : > { %9802 = vmatpush.bf16.msrb.mxu1 %v13720_v39  ;;  %v14056_v20 = vor.u32 %v15055_v26, %v14055_v51  ;;  %v13777_v39 = vld [vmem:[#allocation6 + $0x338] sm:$0xf0]  ;;  %v13843_v51 = vld [vmem:[#allocation6 + $0x3a8] sm:$0xf]  ;;  %v15004_v26 = vld [vmem:[#allocation6 + $0x3b4] sm:$0xf0] }
 0x586   : > { %9815 = vmatpush.bf16.msrb.mxu2 %v13724_v29  ;;  %v14988_v29 = vld [vmem:[#allocation6 + $0x334] sm:$0xf0] }
 0x587   : > { %9828 = vmatpush.bf16.msrb.mxu3 %v13728_v45  ;;  %v14986_v45 = vld [vmem:[#allocation6 + $0x32c] sm:$0xf]  ;;  %v13776_v3 = vor.u32 %v14988_v29, %v13775_v8  ;;  %v14107_v8 = vld [vmem:[#allocation6 + $0x5a0] sm:$0xf]  ;;  %v15067_v29 = vld [vmem:[#allocation6 + $0x5ac] sm:$0xf0] }
 0x588   : > { %10413 = vmatpush.bf16.msrb.mxu0 %v13988_v59  ;;  %v14985_v59 = vld [vmem:[#allocation6 + $0x324] sm:$0xf]  ;;  %v13780_v42 = vor.u32 %v14986_v45, %v13777_v39  ;;  %v17783_v45 = vpack.c.bf16 %v17668_v58, %v17668_v58  ;;  %v13827_v39 = vld [vmem:[#allocation6 + $0x388] sm:$0xf]  ;;  %v15063_v58 = vld [vmem:[#allocation6 + $0x58c] sm:$0xf0] }
 0x589   : > { %9803 = vmatpush.bf16.msrb.mxu1 %v13704_v48  ;;  %v14023_v48 = vld [vmem:[#allocation6 + $0x500] sm:$0xf] }
 0x58a   : > { %9816 = vmatpush.bf16.msrb.mxu2 %v13708_v5  ;;  %v13761_v5 = vld [vmem:[#allocation6 + $0x318] sm:$0xf0] }
 0x58b   : > { %9829 = vmatpush.bf16.msrb.mxu3 %v13712_v21  ;;  %v13772_v21 = vor.u32 %v14985_v59, %v13769_v24  ;;  %v13764_v57 = vor.u32 %v14982_v17, %v13761_v5  ;;  %v13844_v59 = vor.u32 %v15004_v26, %v13843_v51  ;;  %v13821_v17 = vld [vmem:[#allocation6 + $0x390] sm:$0xf0]  ;;  %v14091_v5 = vld [vmem:[#allocation6 + $0x580] sm:$0xf]  ;;  %v15083_v26 = vld [vmem:[#allocation6 + $0x62c] sm:$0xf0] }
 0x58c   : > { %10414 = vmatpush.bf16.msrb.mxu0 %v13972_v19  ;;  %v13875_v19 = vld [vmem:[#allocation6 + $0x3e8] sm:$0xf]  ;;  %v14175_v51 = vld [vmem:[#allocation6 + $0x620] sm:$0xf] }
 0x58d   : > { %9804 = vmatpush.bf16.msrb.mxu1 %v13688_v60  ;;  %v13876_v2 = vor.u32 %v15012_v28, %v13875_v19  ;;  %v13872_v60 = vor.u32 %v15009_v0, %v13869_v30  ;;  %v13832_v19 = vor.u32 %v14998_v43, %v13829_v15  ;;  %v13937_v28 = vld [vmem:[#allocation6 + $0x470] sm:$0xf0]  ;;  %v13824_v0 = vor.u32 %v14997_v56, %v13821_v17  ;;  %v15013_v43 = vld [vmem:[#allocation6 + $0x404] sm:$0xf]  ;;  %v15044_v56 = vld [vmem:[#allocation6 + $0x4f4] sm:$0xf0] }
 0x58e   : > { %9817 = vmatpush.bf16.msrb.mxu2 %v13692_v6  ;;  %v13756_v6 = vor.u32 %v14981_v23, %v13753_v18  ;;  %v15026_v23 = vld [vmem:[#allocation6 + $0x46c] sm:$0xf]  ;;  %v13945_v18 = vld [vmem:[#allocation6 + $0x478] sm:$0xf0]  ;;  %v13889_v15 = vld [vmem:[#allocation6 + $0x410] sm:$0xf0] }
 0x58f   : > { %9830 = vmatpush.bf16.msrb.mxu3 %v13696_v50  ;;  %v14024_v50 = vor.u32 %v15047_v16, %v14023_v48  ;;  %v15025_v48 = vld [vmem:[#allocation6 + $0x464] sm:$0xf]  ;;  %v13828_v16 = vor.u32 %v15000_v33, %v13827_v39  ;;  %v13948_v30 = vor.u32 %v15026_v23, %v13945_v18  ;;  %v15014_v39 = vld [vmem:[#allocation6 + $0x40c] sm:$0xf]  ;;  %v14176_v33 = vor.u32 %v15083_v26, %v14175_v51  ;;  %v14005_v23 = vld [vmem:[#allocation6 + $0x4f0] sm:$0xf0] }
 0x590   : > { %10415 = vmatpush.bf16.msrb.mxu0 %v13956_v44  ;;  %13746 = vmatmul.msk.bf16.vlgmr.msrb.gmra.mxu1 %vm9025_vm3, %v17723_v49  ;;  %v14140_v44 = vor.u32 %v15075_v25, %v14139_v14  ;;  %v15024_v14 = vld [vmem:[#allocation6 + $0x454] sm:$0xf0]  ;;  %v13940_v25 = vor.u32 %v15025_v48, %v13937_v28  ;;  %v15042_v17 = vld [vmem:[#allocation6 + $0x4ec] sm:$0xf]  ;;  %v14275_v18 = vld [vmem:[#allocation6 + $0x6e0] sm:$0xf] }
 0x591   : > { %9957 = vmatpush.bf16.msra.mxu1 %v13804_v34  ;;  %13747 = vmatmul.msk.bf16.vlgmr.msrb.gmra.mxu2 %vm9025_vm3, %v17723_v49  ;;  %v14123_v34 = vld [vmem:[#allocation6 + $0x5c0] sm:$0xf]  ;;  %v15107_v48 = vld [vmem:[#allocation6 + $0x6ec] sm:$0xf0] }
 0x592   : > { %9970 = vmatpush.bf16.msra.mxu2 %v13808_v46  ;;  %13748 = vmatmul.msk.bf16.vlgmr.msrb.gmra.mxu3 %vm9025_vm3, %v17723_v49  ;;  %v13859_v49 = vld [vmem:[#allocation6 + $0x3c8] sm:$0xf]  ;;  %v15006_v46 = vld [vmem:[#allocation6 + $0x3cc] sm:$0xf]  ;;  %v14243_v51 = vld [vmem:[#allocation6 + $0x6a0] sm:$0xf] }
 0x593   : > { %9983 = vmatpush.bf16.msra.mxu3 %v13812_v53  ;;  %14017 = vmatmul.msk.bf16.vlgmr.msrb.gmra.mxu0 %vm9025_vm3, %v17771_v52  ;;  %v13861_v53 = vld [vmem:[#allocation6 + $0x3d8] sm:$0xf0]  ;;  %v13860_v61 = vor.u32 %v15008_v13, %v13859_v49  ;;  %v13921_v49 = vld [vmem:[#allocation6 + $0x450] sm:$0xf0]  ;;  %v14191_v13 = vld [vmem:[#allocation6 + $0x640] sm:$0xf] }
 0x594   : > { %10568 = vmatpush.bf16.msra.mxu0 %v14072_v7  ;;  %v15071_v7 = vld [vmem:[#allocation6 + $0x5cc] sm:$0xf0]  ;;  %v13864_v38 = vor.u32 %v15006_v46, %v13861_v53 }
 0x595   : > { %9958 = vmatpush.bf16.msra.mxu1 %v13788_v22  ;;  %v14124_v55 = vor.u32 %v15071_v7, %v14123_v34  ;;  %v15001_v22 = vld [vmem:[#allocation6 + $0x3a4] sm:$0xf]  ;;  %v15020_v34 = vld [vmem:[#allocation6 + $0x434] sm:$0xf0]  ;;  %v15018_v7 = vld [vmem:[#allocation6 + $0x42c] sm:$0xf] }
 0x596   : > { %9971 = vmatpush.bf16.msra.mxu2 %v13792_v37  ;;  %v15002_v37 = vld [vmem:[#allocation6 + $0x3ac] sm:$0xf]  ;;  %v15099_v26 = vld [vmem:[#allocation6 + $0x6ac] sm:$0xf0] }
 0x597   : > { %9984 = vmatpush.bf16.msra.mxu3 %v13796_v35  ;;  %v13845_v35 = vld [vmem:[#allocation6 + $0x3b8] sm:$0xf0] }
 0x598   : > { %10569 = vmatpush.bf16.msra.mxu0 %v14056_v20  ;;  %v13837_v20 = vld [vmem:[#allocation6 + $0x3b0] sm:$0xf0]  ;;  %v13848_v24 = vor.u32 %v15002_v37, %v13845_v35  ;;  %v17797_v37 = vpack.c.bf16 %v17670_v31, %v17670_v31  ;;  %v13895_v35 = vld [vmem:[#allocation6 + $0x408] sm:$0xf]  ;;  %v15079_v31 = vld [vmem:[#allocation6 + $0x60c] sm:$0xf0] }
 0x599   : > { %9959 = vmatpush.bf16.msra.mxu1 %v13772_v21  ;;  %v13943_v21 = vld [vmem:[#allocation6 + $0x468] sm:$0xf] }
 0x59a   : > { %9972 = vmatpush.bf16.msra.mxu2 %v13776_v3  ;;  %v13840_v3 = vor.u32 %v15001_v22, %v13837_v20  ;;  %v13912_v20 = vor.u32 %v15020_v34, %v13911_v41 }
 0x59b   : > { %9985 = vmatpush.bf16.msra.mxu3 %v13780_v42  ;;  %v14108_v42 = vor.u32 %v15067_v29, %v14107_v8  ;;  %v15016_v29 = vld [vmem:[#allocation6 + $0x414] sm:$0xf0] }
 0x59c   : > { %10570 = vmatpush.bf16.msra.mxu0 %v14040_v4  ;;  %v15028_v4 = vld [vmem:[#allocation6 + $0x474] sm:$0xf0] }
 0x59d   : > { %9960 = vmatpush.bf16.msra.mxu1 %v13756_v6  ;;  %v14208_v6 = vor.u32 %v15091_v62, %v14207_v9 }
 0x59e   : > { %9973 = vmatpush.bf16.msra.mxu2 %v13760_v11  ;;  %v14092_v11 = vor.u32 %v15063_v58, %v14091_v5  ;;  %v14013_v5 = vld [vmem:[#allocation6 + $0x4f8] sm:$0xf0]  ;;  %v15041_v58 = vld [vmem:[#allocation6 + $0x4e4] sm:$0xf] }
 0x59f   : > { %9986 = vmatpush.bf16.msra.mxu3 %v13764_v57  ;;  %v13944_v57 = vor.u32 %v15028_v4, %v13943_v21  ;;  %v13896_v21 = vor.u32 %v15016_v29, %v13895_v35 }
 0x5a0   : > { %10571 = vmatpush.bf16.msra.mxu0 %v14024_v50  ;;  %13814 = vmatmul.msk.bf16.vlgmr.msra.gmra.mxu1 %vm9025_vm3, %v17735_v36  ;;  %v15022_v50 = vld [vmem:[#allocation6 + $0x44c] sm:$0xf] }
 0x5a1   : > { %10113 = vmatpush.bf16.msrb.mxu1 %v13872_v60  ;;  %13815 = vmatmul.msk.bf16.vlgmr.msra.gmra.mxu2 %vm9025_vm3, %v17735_v36  ;;  %v15087_v60 = vld [vmem:[#allocation6 + $0x64c] sm:$0xf0] }
 0x5a2   : > { %10126 = vmatpush.bf16.msrb.mxu2 %v13876_v2  ;;  %13816 = vmatmul.msk.bf16.vlgmr.msra.gmra.mxu3 %vm9025_vm3, %v17735_v36  ;;  %v13927_v36 = vld [vmem:[#allocation6 + $0x448] sm:$0xf]  ;;  %v13929_v2 = vld [vmem:[#allocation6 + $0x458] sm:$0xf0]  ;;  %v14192_v63 = vor.u32 %v15087_v60, %v14191_v13 }
 0x5a3   : > { %10139 = vmatpush.bf16.msrb.mxu3 %v13880_v1  ;;  %14085 = vmatmul.msk.bf16.vlgmr.msra.gmra.mxu0 %vm9025_vm3, %v17783_v45  ;;  %v15021_v1 = vld [vmem:[#allocation6 + $0x444] sm:$0xf]  ;;  %v13932_v46 = vor.u32 %v15022_v50, %v13929_v2  ;;  %v13989_v2 = vld [vmem:[#allocation6 + $0x4d0] sm:$0xf0] }
 0x5a4   : > { %10724 = vmatpush.bf16.msrb.mxu0 %v14140_v44  ;;  %v13928_v44 = vor.u32 %v15024_v14, %v13927_v36  ;;  %v13924_v53 = vor.u32 %v15021_v1, %v13921_v49  ;;  %v14276_v36 = vor.u32 %v15107_v48, %v14275_v18  ;;  %v15038_v14 = vld [vmem:[#allocation6 + $0x4cc] sm:$0xf]  ;;  %v14259_v1 = vld [vmem:[#allocation6 + $0x6c0] sm:$0xf]  ;;  %v15103_v49 = vld [vmem:[#allocation6 + $0x6cc] sm:$0xf0] }
 0x5a5   : > { %10114 = vmatpush.bf16.msrb.mxu1 %v13856_v12  ;;  %v14073_v48 = vld [vmem:[#allocation6 + $0x570] sm:$0xf0] }
 0x5a6   : > { %10127 = vmatpush.bf16.msrb.mxu2 %v13860_v61  ;;  %v13913_v61 = vld [vmem:[#allocation6 + $0x438] sm:$0xf0] }
 0x5a7   : > { %10140 = vmatpush.bf16.msrb.mxu3 %v13864_v38  ;;  %v15017_v38 = vld [vmem:[#allocation6 + $0x424] sm:$0xf]  ;;  %v13916_v8 = vor.u32 %v15018_v7, %v13913_v61  ;;  %v15034_v7 = vld [vmem:[#allocation6 + $0x4ac] sm:$0xf]  ;;  %v13981_v61 = vld [vmem:[#allocation6 + $0x4b8] sm:$0xf0] }
 0x5a8   : > { %10725 = vmatpush.bf16.msrb.mxu0 %v14124_v55  ;;  %v13905_v55 = vld [vmem:[#allocation6 + $0x430] sm:$0xf0] }
 0x5a9   : > { %10115 = vmatpush.bf16.msrb.mxu1 %v13840_v3  ;;  %v14159_v3 = vld [vmem:[#allocation6 + $0x600] sm:$0xf] }
 0x5aa   : > { %10128 = vmatpush.bf16.msrb.mxu2 %v13844_v59  ;;  %v13897_v59 = vld [vmem:[#allocation6 + $0x418] sm:$0xf0]  ;;  %v14160_v28 = vor.u32 %v15079_v31, %v14159_v3  ;;  %v14244_v3 = vor.u32 %v15099_v26, %v14243_v51  ;;  %v15029_v31 = vld [vmem:[#allocation6 + $0x484] sm:$0xf] }
 0x5ab   : > { %10141 = vmatpush.bf16.msrb.mxu3 %v13848_v24  ;;  %v13908_v24 = vor.u32 %v15017_v38, %v13905_v55  ;;  %v13900_v4 = vor.u32 %v15014_v39, %v13897_v59  ;;  %v15033_v38 = vld [vmem:[#allocation6 + $0x4a4] sm:$0xf]  ;;  %v13973_v55 = vld [vmem:[#allocation6 + $0x4b0] sm:$0xf0]  ;;  %v13984_v59 = vor.u32 %v15034_v7, %v13981_v61  ;;  %v15052_v7 = vld [vmem:[#allocation6 + $0x534] sm:$0xf0] }
 0x5ac   : > { %10726 = vmatpush.bf16.msrb.mxu0 %v14108_v42  ;;  %v14011_v42 = vld [vmem:[#allocation6 + $0x4e8] sm:$0xf]  ;;  %v15049_v51 = vld [vmem:[#allocation6 + $0x524] sm:$0xf] }
 0x5ad   : > { %10116 = vmatpush.bf16.msrb.mxu1 %v13824_v0  ;;  %v17793_v12 = vpop.f32.mrf.mxu1  ;;  %v14012_v62 = vor.u32 %v15044_v56, %v14011_v42  ;;  %v14016_v0 = vor.u32 %v15042_v17, %v14013_v5  ;;  %v13957_v42 = vld [vmem:[#allocation6 + $0x490] sm:$0xf0]  ;;  %v14227_v56 = vld [vmem:[#allocation6 + $0x680] sm:$0xf]  ;;  %v14079_v17 = vld [vmem:[#allocation6 + $0x568] sm:$0xf] }
 0x5ae   : > { %10129 = vmatpush.bf16.msrb.mxu2 %v13828_v16  ;;  %v15060_v5 = vld [vmem:[#allocation6 + $0x574] sm:$0xf0] }
 0x5af   : > { %10142 = vmatpush.bf16.msrb.mxu3 %v13832_v19 }
 0x5b0   : > { %10727 = vmatpush.bf16.msrb.mxu0 %v14092_v11  ;;  %v17799_v22 = vpop.f32.mrf.mxu0  ;;  %13882 = vmatmul.msk.bf16.vlgmr.msrb.gmra.mxu1 %vm9025_vm3, %v17747_v40  ;;  %v13995_v11 = vld [vmem:[#allocation6 + $0x4c8] sm:$0xf] }
 0x5b1   : > { %10269 = vmatpush.bf16.msra.mxu1 %v13940_v25  ;;  %13883 = vmatmul.msk.bf16.vlgmr.msrb.gmra.mxu2 %vm9025_vm3, %v17747_v40  ;;  %v13997_v25 = vld [vmem:[#allocation6 + $0x4d8] sm:$0xf0] }
 0x5b2   : > { %10282 = vmatpush.bf16.msra.mxu2 %v13944_v57  ;;  %13884 = vmatmul.msk.bf16.vlgmr.msrb.gmra.mxu3 %vm9025_vm3, %v17747_v40  ;;  %v13892_v40 = vor.u32 %v15013_v43, %v13889_v15  ;;  %v15040_v57 = vld [vmem:[#allocation6 + $0x4d4] sm:$0xf0]  ;;  %v14000_v60 = vor.u32 %v15038_v14, %v13997_v25  ;;  %v13965_v43 = vld [vmem:[#allocation6 + $0x498] sm:$0xf0]  ;;  %v13976_v15 = vor.u32 %v15033_v38, %v13973_v55  ;;  %v15050_v38 = vld [vmem:[#allocation6 + $0x52c] sm:$0xf] }
 0x5b3   : > { %10295 = vmatpush.bf16.msra.mxu3 %v13948_v30  ;;  %14153 = vmatmul.msk.bf16.vlgmr.msrb.gmra.mxu0 %vm9025_vm3, %v17797_v37  ;;  %v14008_v30 = vor.u32 %v15041_v58, %v14005_v23  ;;  %v13996_v13 = vor.u32 %v15040_v57, %v13995_v11  ;;  %v15058_v58 = vld [vmem:[#allocation6 + $0x56c] sm:$0xf]  ;;  %v14080_v57 = vor.u32 %v15060_v5, %v14079_v17  ;;  %v15056_v14 = vld [vmem:[#allocation6 + $0x554] sm:$0xf0]  ;;  %v14049_v55 = vld [vmem:[#allocation6 + $0x538] sm:$0xf0] }
 0x5b4   : > { %10880 = vmatpush.bf16.msra.mxu0 %v14208_v6  ;;  %v17809_v16 = vpop.f32.mrf.mxu2  ;;  %v15037_v6 = vld [vmem:[#allocation6 + $0x4c4] sm:$0xf]  ;;  %v14033_v17 = vld [vmem:[#allocation6 + $0x518] sm:$0xf0] }
 0x5b5   : > { %10270 = vmatpush.bf16.msra.mxu1 %v13924_v53  ;;  %v17811_v19 = vpop.f32.mrf.mxu3  ;;  %v9040_v9 = vpop.f32.mrf.mxu1  ;;  %v13979_v53 = vld [vmem:[#allocation6 + $0x4a8] sm:$0xf] }
 0x5b6   : > { %10283 = vmatpush.bf16.msra.mxu2 %v13928_v44  ;;  %v13992_v44 = vor.u32 %v15037_v6, %v13989_v2 }
 0x5b7   : > { %10296 = vmatpush.bf16.msra.mxu3 %v13932_v46  ;;  %v14260_v46 = vor.u32 %v15103_v49, %v14259_v1  ;;  %v15054_v1 = vld [vmem:[#allocation6 + $0x54c] sm:$0xf]  ;;  %v14065_v49 = vld [vmem:[#allocation6 + $0x558] sm:$0xf0] }
 0x5b8   : > { %10881 = vmatpush.bf16.msra.mxu0 %v14192_v63  ;;  %v9483_v50 = vpop.f32.mrf.mxu0  ;;  %v15036_v63 = vld [vmem:[#allocation6 + $0x4b4] sm:$0xf0] }
 0x5b9   : > { %10271 = vmatpush.bf16.msra.mxu1 %v13908_v24  ;;  %v13980_v39 = vor.u32 %v15036_v63, %v13979_v53  ;;  %v15032_v24 = vld [vmem:[#allocation6 + $0x494] sm:$0xf0]  ;;  %v14068_v63 = vor.u32 %v15054_v1, %v14065_v49  ;;  %v14131_v1 = vld [vmem:[#allocation6 + $0x5c8] sm:$0xf] }
 0x5ba   : > { %10284 = vmatpush.bf16.msra.mxu2 %v13912_v20  ;;  %v17817_v20 = vpack.c.bf16 %v17673_v47, %v17673_v47  ;;  %v15095_v47 = vld [vmem:[#allocation6 + $0x68c] sm:$0xf0]  ;;  %v15072_v49 = vld [vmem:[#allocation6 + $0x5d4] sm:$0xf0] }
 0x5bb   : > { %10297 = vmatpush.bf16.msra.mxu3 %v13916_v8  ;;  %v13963_v8 = vld [vmem:[#allocation6 + $0x488] sm:$0xf] }
 0x5bc   : > { %10882 = vmatpush.bf16.msra.mxu0 %v14176_v33  ;;  %v9053_v41 = vpop.f32.mrf.mxu2  ;;  %v15030_v33 = vld [vmem:[#allocation6 + $0x48c] sm:$0xf]  ;;  %v13964_v23 = vor.u32 %v15032_v24, %v13963_v8  ;;  %v14041_v8 = vld [vmem:[#allocation6 + $0x530] sm:$0xf0] }
 0x5bd   : > { %10272 = vmatpush.bf16.msra.mxu1 %v13892_v40  ;;  %v9066_v34 = vpop.f32.mrf.mxu3  ;;  %v17813_v35 = vpop.f32.mrf.mxu1  ;;  %v13968_v18 = vor.u32 %v15030_v33, %v13965_v43  ;;  %v14343_v40 = vld [vmem:[#allocation6 + $0x760] sm:$0xf]  ;;  %v17837_v33 = vpack.c.bf16 %v17675_v10, %v17675_v10  ;;  %v14031_v43 = vld [vmem:[#allocation6 + $0x508] sm:$0xf]  ;;  %v14044_v5 = vor.u32 %v15049_v51, %v14041_v8  ;;  %v15111_v10 = vld [vmem:[#allocation6 + $0x70c] sm:$0xf0] }
 0x5be   : > { %10285 = vmatpush.bf16.msra.mxu2 %v13896_v21  ;;  %v14081_v21 = vld [vmem:[#allocation6 + $0x578] sm:$0xf0]  ;;  %v14047_v34 = vld [vmem:[#allocation6 + $0x528] sm:$0xf]  ;;  %v15068_v8 = vld [vmem:[#allocation6 + $0x5b4] sm:$0xf0] }
 0x5bf   : > { %10298 = vmatpush.bf16.msra.mxu3 %v13900_v4  ;;  %v15057_v4 = vld [vmem:[#allocation6 + $0x564] sm:$0xf] }
 0x5c0   : > { %10883 = vmatpush.bf16.msra.mxu0 %v14160_v28  ;;  %v17819_v29 = vpop.f32.mrf.mxu0  ;;  %13950 = vmatmul.msk.bf16.vlgmr.msra.gmra.mxu1 %vm9025_vm3, %v17759_v54  ;;  %v15123_v28 = vld [vmem:[#allocation6 + $0x76c] sm:$0xf0]  ;;  %v14076_v50 = vor.u32 %v15057_v4, %v14073_v48  ;;  %v14025_v4 = vld [vmem:[#allocation6 + $0x510] sm:$0xf0]  ;;  %v15074_v48 = vld [vmem:[#allocation6 + $0x5ec] sm:$0xf] }
 0x5c1   : > { %10425 = vmatpush.bf16.msrb.mxu1 %v14008_v30  ;;  %13951 = vmatmul.msk.bf16.vlgmr.msra.gmra.mxu2 %vm9025_vm3, %v17759_v54  ;;  %v14084_v30 = vor.u32 %v15058_v58, %v14081_v21  ;;  %v14344_v2 = vor.u32 %v15123_v28, %v14343_v40  ;;  %v15045_v21 = vld [vmem:[#allocation6 + $0x504] sm:$0xf]  ;;  %v14149_v40 = vld [vmem:[#allocation6 + $0x5f8] sm:$0xf0] }
 0x5c2   : > { %10438 = vmatpush.bf16.msrb.mxu2 %v14012_v62  ;;  %13952 = vmatmul.msk.bf16.vlgmr.msra.gmra.mxu3 %vm9025_vm3, %v17759_v54  ;;  %v13960_v62 = vor.u32 %v15029_v31, %v13957_v42  ;;  %v14048_v31 = vor.u32 %v15052_v7, %v14047_v34  ;;  %v14052_v42 = vor.u32 %v15050_v38, %v14049_v55  ;;  %v15073_v28 = vld [vmem:[#allocation6 + $0x5e4] sm:$0xf]  ;;  %v14395_v34 = vld [vmem:[#allocation6 + $0x7c0] sm:$0xf] }
 0x5c3   : > { %10451 = vmatpush.bf16.msrb.mxu3 %v14016_v0  ;;  %14221 = vmatmul.msk.bf16.vlgmr.msra.gmra.mxu0 %vm9025_vm3, %v17817_v20  ;;  %v14228_v0 = vor.u32 %v15095_v47, %v14227_v56  ;;  %v15048_v56 = vld [vmem:[#allocation6 + $0x514] sm:$0xf0]  ;;  %v15046_v47 = vld [vmem:[#allocation6 + $0x50c] sm:$0xf] }
 0x5c4   : > { %11036 = vmatpush.bf16.msrb.mxu0 %v14276_v36  ;;  %v9173_v9 = vpop.f32.mrf.mxu2  ;;  %v14063_v36 = vld [vmem:[#allocation6 + $0x548] sm:$0xf] }
 0x5c5   : > { %10426 = vmatpush.bf16.msrb.mxu1 %v13992_v44  ;;  %v17830_v54 = vadd.f32 %v9173_v9, %v17793_v12  ;;  %v9186_v11 = vpop.f32.mrf.mxu3  ;;  %v9079_v6 = vpop.f32.mrf.mxu1  ;;  %v14057_v44 = vld [vmem:[#allocation6 + $0x550] sm:$0xf0]  ;;  %v14327_v12 = vld [vmem:[#allocation6 + $0x740] sm:$0xf]  ;;  %v14064_v53 = vor.u32 %v15056_v14, %v14063_v36  ;;  %v14032_v9 = vor.u32 %v15048_v56, %v14031_v43  ;;  %v14028_v36 = vor.u32 %v15045_v21, %v14025_v4  ;;  %v14117_v43 = vld [vmem:[#allocation6 + $0x5b8] sm:$0xf0] }
 0x5c6   : > { %10439 = vmatpush.bf16.msrb.mxu2 %v13996_v13  ;;  %v17833_v25 = vadd.f32 %v9186_v11, %v17809_v16  ;;  %v15053_v13 = vld [vmem:[#allocation6 + $0x544] sm:$0xf]  ;;  %v14411_v11 = vld [vmem:[#allocation6 + $0x7e0] sm:$0xf]  ;;  %v14099_v4 = vld [vmem:[#allocation6 + $0x588] sm:$0xf] }
 0x5c7   : > { %10452 = vmatpush.bf16.msrb.mxu3 %v14000_v60  ;;  %v14060_v16 = vor.u32 %v15053_v13, %v14057_v44  ;;  %v14379_v56 = vld [vmem:[#allocation6 + $0x7a0] sm:$0xf] }
 0x5c8   : > { %11037 = vmatpush.bf16.msrb.mxu0 %v14260_v46  ;;  %v9639_v60 = vpop.f32.mrf.mxu0  ;;  %v15119_v46 = vld [vmem:[#allocation6 + $0x74c] sm:$0xf0] }
 0x5c9   : > { %10427 = vmatpush.bf16.msrb.mxu1 %v13976_v15  ;;  %v14328_v41 = vor.u32 %v15119_v46, %v14327_v12  ;;  %v15070_v46 = vld [vmem:[#allocation6 + $0x5cc] sm:$0xf] }
 0x5ca   : > { %10440 = vmatpush.bf16.msrb.mxu2 %v13980_v39  ;;  %v14311_v39 = vld [vmem:[#allocation6 + $0x720] sm:$0xf] }
 0x5cb   : > { %10453 = vmatpush.bf16.msrb.mxu3 %v13984_v59  ;;  %v15115_v59 = vld [vmem:[#allocation6 + $0x72c] sm:$0xf0] }
 0x5cc   : > { %11038 = vmatpush.bf16.msrb.mxu0 %v14244_v3  ;;  %v9175_v61 = vpop.f32.mrf.mxu2  ;;  %v14312_v58 = vor.u32 %v15115_v59, %v14311_v39 }
 0x5cd   : > { %10428 = vmatpush.bf16.msrb.mxu1 %v13960_v62  ;;  %v9188_v26 = vpop.f32.mrf.mxu3  ;;  %v9199_v24 = vpop.f32.mrf.mxu1  ;;  %v14036_v62 = vor.u32 %v15046_v47, %v14033_v17  ;;  %v14132_v61 = vor.u32 %v15072_v49, %v14131_v1  ;;  %v15131_v47 = vld [vmem:[#allocation6 + $0x7ac] sm:$0xf0] }
 0x5ce   : > { %10441 = vmatpush.bf16.msrb.mxu2 %v13964_v23  ;;  %v17840_v15 = vadd.f32 %v9199_v24, %v17811_v19  ;;  %v14295_v23 = vld [vmem:[#allocation6 + $0x700] sm:$0xf]  ;;  %v14147_v19 = vld [vmem:[#allocation6 + $0x5e8] sm:$0xf]  ;;  %v15066_v24 = vld [vmem:[#allocation6 + $0x5ac] sm:$0xf] }
 0x5cf   : > { %10454 = vmatpush.bf16.msrb.mxu3 %v13968_v18  ;;  %v15076_v18 = vld [vmem:[#allocation6 + $0x5f4] sm:$0xf0]  ;;  %v14296_v14 = vor.u32 %v15111_v10, %v14295_v23  ;;  %v14115_v26 = vld [vmem:[#allocation6 + $0x5a8] sm:$0xf]  ;;  %v14120_v21 = vor.u32 %v15066_v24, %v14117_v43  ;;  %v15062_v10 = vld [vmem:[#allocation6 + $0x58c] sm:$0xf]  ;;  %v17884_v43 = vpack.c.bf16 %v17679_v32, %v17679_v32 }
 0x5d0   : > { %11039 = vmatpush.bf16.msrb.mxu0 %v14228_v0  ;;  %v17842_v3 = vpop.f32.mrf.mxu0  ;;  %14018 = vmatmul.msk.bf16.vlgmr.msrb.gmra.mxu1 %vm9025_vm3, %v17771_v52  ;;  %v14141_v0 = vld [vmem:[#allocation6 + $0x5f0] sm:$0xf0]  ;;  %v15064_v23 = vld [vmem:[#allocation6 + $0x594] sm:$0xf0]  ;;  %v14283_v32 = vld [vmem:[#allocation6 + $0x6e8] sm:$0xf] }
 0x5d1   : > { %10581 = vmatpush.bf16.msra.mxu1 %v14076_v50  ;;  %14019 = vmatmul.msk.bf16.vlgmr.msrb.gmra.mxu2 %vm9025_vm3, %v17771_v52  ;;  %v14148_v50 = vor.u32 %v15076_v18, %v14147_v19  ;;  %v14144_v44 = vor.u32 %v15073_v28, %v14141_v0  ;;  %v15061_v28 = vld [vmem:[#allocation6 + $0x584] sm:$0xf]  ;;  %v15092_v0 = vld [vmem:[#allocation6 + $0x674] sm:$0xf0] }
 0x5d2   : > { %10594 = vmatpush.bf16.msra.mxu2 %v14080_v57  ;;  %14020 = vmatmul.msk.bf16.vlgmr.msrb.gmra.mxu3 %vm9025_vm3, %v17771_v52  ;;  %v15139_v57 = vld [vmem:[#allocation6 + $0x7ec] sm:$0xf0] }
 0x5d3   : > { %10607 = vmatpush.bf16.msra.mxu3 %v14084_v30  ;;  %14289 = vmatmul.msk.bf16.vlgmr.msrb.gmra.mxu0 %vm9025_vm3, %v17837_v33  ;;  %v14412_v12 = vor.u32 %v15139_v57, %v14411_v11  ;;  %v15090_v11 = vld [vmem:[#allocation6 + $0x66c] sm:$0xf]  ;;  %v14217_v57 = vld [vmem:[#allocation6 + $0x678] sm:$0xf0] }
 0x5d4   : > { %11192 = vmatpush.bf16.msra.mxu0 %v14344_v2  ;;  %v9212_v30 = vpop.f32.mrf.mxu2  ;;  %v14152_v2 = vor.u32 %v15074_v48, %v14149_v40  ;;  %v14380_v48 = vor.u32 %v15131_v47, %v14379_v56  ;;  %v14101_v40 = vld [vmem:[#allocation6 + $0x598] sm:$0xf0]  ;;  %v14167_v47 = vld [vmem:[#allocation6 + $0x608] sm:$0xf] }
 0x5d5   : > { %10582 = vmatpush.bf16.msra.mxu1 %v14060_v16  ;;  %v17853_v52 = vadd.f32 %v9212_v30, %v17813_v35  ;;  %v9325_v6 = vpop.f32.mrf.mxu3  ;;  %v9201_v60 = vpop.f32.mrf.mxu1  ;;  %v15135_v35 = vld [vmem:[#allocation6 + $0x7cc] sm:$0xf0]  ;;  %v14100_v30 = vor.u32 %v15064_v23, %v14099_v4  ;;  %v14169_v4 = vld [vmem:[#allocation6 + $0x618] sm:$0xf0]  ;;  %v15077_v23 = vld [vmem:[#allocation6 + $0x604] sm:$0xf] }
 0x5d6   : > { %10595 = vmatpush.bf16.msra.mxu2 %v14064_v53  ;;  %v9368_v13 = vadd.f32 %v9325_v6, %v17830_v54  ;;  %v14133_v53 = vld [vmem:[#allocation6 + $0x5d8] sm:$0xf0]  ;;  %v14396_v51 = vor.u32 %v15135_v35, %v14395_v34  ;;  %v14209_v6 = vld [vmem:[#allocation6 + $0x670] sm:$0xf0]  ;;  %v14220_v60 = vor.u32 %v15090_v11, %v14217_v57  ;;  %v15085_v35 = vld [vmem:[#allocation6 + $0x644] sm:$0xf] }
 0x5d7   : > { %10608 = vmatpush.bf16.msra.mxu3 %v14068_v63  ;;  %v15069_v63 = vld [vmem:[#allocation6 + $0x5c4] sm:$0xf]  ;;  %v14136_v54 = vor.u32 %v15070_v46, %v14133_v53 }
 0x5d8   : > { %11193 = vmatpush.bf16.msra.mxu0 %v14328_v41  ;;  %v9795_v16 = vpop.f32.mrf.mxu0  ;;  %v14125_v41 = vld [vmem:[#allocation6 + $0x5d0] sm:$0xf0]  ;;  %v9524_v7 = vadd.f32 %v17799_v22, %v9368_v13  ;;  %v15065_v22 = vld [vmem:[#allocation6 + $0x5a4] sm:$0xf] }
 0x5d9   : > { %10583 = vmatpush.bf16.msra.mxu1 %v14044_v5  ;;  %v14128_v55 = vor.u32 %v15069_v63, %v14125_v41  ;;  %v15088_v63 = vld [vmem:[#allocation6 + $0x654] sm:$0xf0]  ;;  %v15086_v16 = vld [vmem:[#allocation6 + $0x64c] sm:$0xf]  ;;  %v14201_v41 = vld [vmem:[#allocation6 + $0x658] sm:$0xf0] }
 0x5da   : > { %10596 = vmatpush.bf16.msra.mxu2 %v14048_v31  ;;  %v9680_v38 = vadd.f32 %v17819_v29, %v9524_v7  ;;  %v17861_v29 = vpack.c.bf16 %v17677_v27, %v17677_v27  ;;  %v14363_v27 = vld [vmem:[#allocation6 + $0x780] sm:$0xf]  ;;  %v14193_v7 = vld [vmem:[#allocation6 + $0x650] sm:$0xf0] }
 0x5db   : > { %10609 = vmatpush.bf16.msra.mxu3 %v14052_v42  ;;  %v14109_v42 = vld [vmem:[#allocation6 + $0x5b0] sm:$0xf0] }
 0x5dc   : > { %11194 = vmatpush.bf16.msra.mxu0 %v14312_v58  ;;  %v9214_v39 = vpop.f32.mrf.mxu2  ;;  %v9836_v59 = vadd.f32 %v17842_v3, %v9680_v38  ;;  %v14116_v58 = vor.u32 %v15068_v8, %v14115_v26  ;;  %v14112_v18 = vor.u32 %v15065_v22, %v14109_v42  ;;  %v14185_v26 = vld [vmem:[#allocation6 + $0x638] sm:$0xf0] }
 0x5dd   : > { %10584 = vmatpush.bf16.msra.mxu1 %v14028_v36  ;;  %v9327_v31 = vpop.f32.mrf.mxu3  ;;  %v9338_v17 = vpop.f32.mrf.mxu1  ;;  %v14104_v36 = vor.u32 %v15062_v10, %v14101_v40  ;;  %v15081_v39 = vld [vmem:[#allocation6 + $0x624] sm:$0xf]  ;;  %v14161_v10 = vld [vmem:[#allocation6 + $0x610] sm:$0xf0] }
 0x5de   : > { %10597 = vmatpush.bf16.msra.mxu2 %v14032_v9  ;;  %v17864_v5 = vadd.f32 %v9338_v17, %v17833_v25  ;;  %v14093_v9 = vld [vmem:[#allocation6 + $0x590] sm:$0xf0]  ;;  %v15127_v25 = vld [vmem:[#allocation6 + $0x78c] sm:$0xf0]  ;;  %v15080_v17 = vld [vmem:[#allocation6 + $0x614] sm:$0xf0] }
 0x5df   : > { %10610 = vmatpush.bf16.msra.mxu3 %v14036_v62  ;;  %v14215_v62 = vld [vmem:[#allocation6 + $0x668] sm:$0xf]  ;;  %v14364_v1 = vor.u32 %v15127_v25, %v14363_v27  ;;  %v14277_v40 = vld [vmem:[#allocation6 + $0x6f0] sm:$0xf0]  ;;  %v14164_v25 = vor.u32 %v15077_v23, %v14161_v10  ;;  %v15120_v23 = vld [vmem:[#allocation6 + $0x754] sm:$0xf0] }
 0x5e0   : > { %11195 = vmatpush.bf16.msra.mxu0 %v14296_v14  ;;  %v9949_v3 = vpop.f32.mrf.mxu0  ;;  %14086 = vmatmul.msk.bf16.vlgmr.msra.gmra.mxu1 %vm9025_vm3, %v17783_v45  ;;  %v15089_v14 = vld [vmem:[#allocation6 + $0x664] sm:$0xf]  ;;  %v14216_v13 = vor.u32 %v15092_v0, %v14215_v62 }
 0x5e1   : > { %10737 = vmatpush.bf16.msrb.mxu1 %v14144_v44  ;;  %v17866_v19 = vadd.f32 %v9949_v3, %v9836_v59  ;;  %14087 = vmatmul.msk.bf16.vlgmr.msra.gmra.mxu2 %vm9025_vm3, %v17783_v45  ;;  %v14199_v44 = vld [vmem:[#allocation6 + $0x648] sm:$0xf]  ;;  %v14212_v53 = vor.u32 %v15089_v14, %v14209_v6  ;;  %v14177_v59 = vld [vmem:[#allocation6 + $0x630] sm:$0xf0]  ;;  %v15078_v3 = vld [vmem:[#allocation6 + $0x60c] sm:$0xf] }
 0x5e2   : > { %10750 = vmatpush.bf16.msrb.mxu2 %v14148_v50  ;;  %14088 = vmatmul.msk.bf16.vlgmr.msra.gmra.mxu3 %vm9025_vm3, %v17783_v45  ;;  %v15102_v14 = vld [vmem:[#allocation6 + $0x6cc] sm:$0xf] }
 0x5e3   : > { %10763 = vmatpush.bf16.msrb.mxu3 %v14152_v2  ;;  %14357 = vmatmul.msk.bf16.vlgmr.msra.gmra.mxu0 %vm9025_vm3, %v17861_v29  ;;  %v14096_v2 = vor.u32 %v15061_v28, %v14093_v9  ;;  %v14168_v28 = vor.u32 %v15080_v17, %v14167_v47  ;;  %v14172_v9 = vor.u32 %v15078_v3, %v14169_v4  ;;  %v15121_v47 = vld [vmem:[#allocation6 + $0x764] sm:$0xf]  ;;  %v14345_v17 = vld [vmem:[#allocation6 + $0x770] sm:$0xf0]  ;;  %v15122_v3 = vld [vmem:[#allocation6 + $0x76c] sm:$0xf] }
 0x5e4   : > { %11348 = vmatpush.bf16.msrb.mxu0 %v14412_v12  ;;  %v9351_v50 = vpop.f32.mrf.mxu2  ;;  %v14335_v4 = vld [vmem:[#allocation6 + $0x748] sm:$0xf] }
 0x5e5   : > { %10738 = vmatpush.bf16.msrb.mxu1 %v14128_v55  ;;  %v17877_v49 = vadd.f32 %v9351_v50, %v17840_v15  ;;  %v9364_v45 = vpop.f32.mrf.mxu3  ;;  %v9340_v46 = vpop.f32.mrf.mxu1  ;;  %v14200_v15 = vor.u32 %v15088_v63, %v14199_v44  ;;  %v15084_v55 = vld [vmem:[#allocation6 + $0x634] sm:$0xf0]  ;;  %v15097_v63 = vld [vmem:[#allocation6 + $0x6a4] sm:$0xf] }
 0x5e6   : > { %10751 = vmatpush.bf16.msrb.mxu2 %v14132_v61  ;;  %v17880_v12 = vadd.f32 %v9364_v45, %v17853_v52  ;;  %v14204_v61 = vor.u32 %v15086_v16, %v14201_v41  ;;  %v14183_v52 = vld [vmem:[#allocation6 + $0x628] sm:$0xf]  ;;  %v14261_v45 = vld [vmem:[#allocation6 + $0x6d0] sm:$0xf0] }
 0x5e7   : > { %10764 = vmatpush.bf16.msrb.mxu3 %v14136_v54  ;;  %v14196_v54 = vor.u32 %v15085_v35, %v14193_v7  ;;  %v14184_v42 = vor.u32 %v15084_v55, %v14183_v52  ;;  %v14251_v46 = vld [vmem:[#allocation6 + $0x6a8] sm:$0xf]  ;;  %v14245_v16 = vld [vmem:[#allocation6 + $0x6b0] sm:$0xf0]  ;;  %v14253_v35 = vld [vmem:[#allocation6 + $0x6b8] sm:$0xf0] }
 0x5e8   : > { %11349 = vmatpush.bf16.msrb.mxu0 %v14396_v51  ;;  %v9951_v34 = vpop.f32.mrf.mxu0  ;;  %v15082_v51 = vld [vmem:[#allocation6 + $0x62c] sm:$0xf]  ;;  %v14248_v52 = vor.u32 %v15097_v63, %v14245_v16  ;;  %v15124_v55 = vld [vmem:[#allocation6 + $0x774] sm:$0xf0]  ;;  %v14419_v63 = vld [vmem:[#allocation6 + $0x7e8] sm:$0xf] }
 0x5e9   : > { %10739 = vmatpush.bf16.msrb.mxu1 %v14112_v18  ;;  %v14188_v56 = vor.u32 %v15082_v51, %v14185_v26  ;;  %v15106_v18 = vld [vmem:[#allocation6 + $0x6ec] sm:$0xf]  ;;  %v15140_v16 = vld [vmem:[#allocation6 + $0x7f4] sm:$0xf0] }
 0x5ea   : > { %10752 = vmatpush.bf16.msrb.mxu2 %v14116_v58  ;;  %v15098_v34 = vld [vmem:[#allocation6 + $0x6ac] sm:$0xf] }
 0x5eb   : > { %10765 = vmatpush.bf16.msrb.mxu3 %v14120_v21  ;;  %v14180_v21 = vor.u32 %v15081_v39, %v14177_v59  ;;  %v15094_v39 = vld [vmem:[#allocation6 + $0x68c] sm:$0xf]  ;;  %v15093_v59 = vld [vmem:[#allocation6 + $0x684] sm:$0xf] }
 0x5ec   : > { %11350 = vmatpush.bf16.msrb.mxu0 %v14380_v48  ;;  %v9353_v38 = vpop.f32.mrf.mxu2  ;;  %v15105_v48 = vld [vmem:[#allocation6 + $0x6e4] sm:$0xf] }
 0x5ed   : > { %10740 = vmatpush.bf16.msrb.mxu1 %v14096_v2  ;;  %v9366_v8 = vpop.f32.mrf.mxu3  ;;  %v9494_v24 = vpop.f32.mrf.mxu1  ;;  %v14269_v2 = vld [vmem:[#allocation6 + $0x6d8] sm:$0xf0]  ;;  %v14351_v38 = vld [vmem:[#allocation6 + $0x768] sm:$0xf] }
 0x5ee   : > { %10753 = vmatpush.bf16.msrb.mxu2 %v14100_v30  ;;  %v17887_v22 = vadd.f32 %v9494_v24, %v17864_v5  ;;  %v15108_v5 = vld [vmem:[#allocation6 + $0x6f4] sm:$0xf0]  ;;  %v14267_v30 = vld [vmem:[#allocation6 + $0x6c8] sm:$0xf]  ;;  %v14256_v8 = vor.u32 %v15098_v34, %v14253_v35  ;;  %v14229_v24 = vld [vmem:[#allocation6 + $0x690] sm:$0xf0] }
 0x5ef   : > { %10766 = vmatpush.bf16.msrb.mxu3 %v14104_v36  ;;  %v14284_v62 = vor.u32 %v15108_v5, %v14283_v32  ;;  %v15104_v36 = vld [vmem:[#allocation6 + $0x6d4] sm:$0xf0]  ;;  %v14348_v32 = vor.u32 %v15121_v47, %v14345_v17  ;;  %v15137_v34 = vld [vmem:[#allocation6 + $0x7e4] sm:$0xf]  ;;  %v14413_v35 = vld [vmem:[#allocation6 + $0x7f0] sm:$0xf0] }
 0x5f0   : > { %11351 = vmatpush.bf16.msrb.mxu0 %v14364_v1  ;;  %v10105_v31 = vpop.f32.mrf.mxu0  ;;  %14154 = vmatmul.msk.bf16.vlgmr.msrb.gmra.mxu1 %vm9025_vm3, %v17797_v37  ;;  %v15101_v1 = vld [vmem:[#allocation6 + $0x6c4] sm:$0xf]  ;;  %v15134_v17 = vld [vmem:[#allocation6 + $0x7cc] sm:$0xf] }
 0x5f1   : > { %10893 = vmatpush.bf16.msra.mxu1 %v14212_v53  ;;  %v17890_v58 = vadd.f32 %v10105_v31, %v17866_v19  ;;  %14155 = vmatmul.msk.bf16.vlgmr.msrb.gmra.mxu2 %vm9025_vm3, %v17797_v37  ;;  %v14285_v19 = vld [vmem:[#allocation6 + $0x6f8] sm:$0xf0]  ;;  %v14264_v44 = vor.u32 %v15101_v1, %v14261_v45  ;;  %v15100_v53 = vld [vmem:[#allocation6 + $0x6b4] sm:$0xf0]  ;;  %v14303_v45 = vld [vmem:[#allocation6 + $0x708] sm:$0xf] }
 0x5f2   : > { %10906 = vmatpush.bf16.msra.mxu2 %v14216_v13  ;;  %14156 = vmatmul.msk.bf16.vlgmr.msrb.gmra.mxu3 %vm9025_vm3, %v17797_v37  ;;  %v14288_v57 = vor.u32 %v15106_v18, %v14285_v19  ;;  %v14280_v37 = vor.u32 %v15105_v48, %v14277_v40  ;;  %v14252_v41 = vor.u32 %v15100_v53, %v14251_v46  ;;  %v15117_v19 = vld [vmem:[#allocation6 + $0x744] sm:$0xf]  ;;  %v14329_v48 = vld [vmem:[#allocation6 + $0x750] sm:$0xf0]  ;;  %v14321_v1 = vld [vmem:[#allocation6 + $0x738] sm:$0xf0] }
 0x5f3   : > { %10919 = vmatpush.bf16.msra.mxu3 %v14220_v60  ;;  %14425 = vmatmul.msk.bf16.vlgmr.msrb.gmra.mxu0 %vm9025_vm3, %v17884_v43  ;;  %v14272_v60 = vor.u32 %v15102_v14, %v14269_v2  ;;  %v14313_v14 = vld [vmem:[#allocation6 + $0x730] sm:$0xf0]  ;;  %v15114_v2 = vld [vmem:[#allocation6 + $0x72c] sm:$0xf]  ;;  %v15133_v47 = vld [vmem:[#allocation6 + $0x7c4] sm:$0xf] }
 0x5f4   : > { %v9507_v27 = vpop.f32.mrf.mxu2  ;;  %v14324_v46 = vor.u32 %v15114_v2, %v14321_v1  ;;  %v14297_v53 = vld [vmem:[#allocation6 + $0x710] sm:$0xf0] }
 0x5f5   : > { %10894 = vmatpush.bf16.msra.mxu1 %v14196_v54  ;;  %v17901_v0 = vadd.f32 %v9507_v27, %v17877_v49  ;;  %v9520_v11 = vpop.f32.mrf.mxu3  ;;  %v9496_v50 = vpop.f32.mrf.mxu1  ;;  %v14268_v49 = vor.u32 %v15104_v36, %v14267_v30  ;;  %v15118_v27 = vld [vmem:[#allocation6 + $0x74c] sm:$0xf]  ;;  %v14332_v30 = vor.u32 %v15117_v19, %v14329_v48 }
 0x5f6   : > { %10907 = vmatpush.bf16.msra.mxu2 %v14200_v15  ;;  %v17904_v6 = vadd.f32 %v9520_v11, %v17880_v12  ;;  %v14235_v15 = vld [vmem:[#allocation6 + $0x688] sm:$0xf]  ;;  %v15130_v48 = vld [vmem:[#allocation6 + $0x7ac] sm:$0xf] }
 0x5f7   : > { %10920 = vmatpush.bf16.msra.mxu3 %v14204_v61  ;;  %v15096_v61 = vld [vmem:[#allocation6 + $0x694] sm:$0xf0]  ;;  %v14319_v11 = vld [vmem:[#allocation6 + $0x728] sm:$0xf] }
 0x5f8   : > { %v10107_v13 = vpop.f32.mrf.mxu0 }
 0x5f9   : > { %10895 = vmatpush.bf16.msra.mxu1 %v14180_v21  ;;  %v14353_v21 = vld [vmem:[#allocation6 + $0x778] sm:$0xf0]  ;;  %v15112_v13 = vld [vmem:[#allocation6 + $0x714] sm:$0xf0] }
 0x5fa   : > { %10908 = vmatpush.bf16.msra.mxu2 %v14184_v42  ;;  %v14236_v42 = vor.u32 %v15096_v61, %v14235_v15  ;;  %v14356_v18 = vor.u32 %v15122_v3, %v14353_v21  ;;  %v14304_v15 = vor.u32 %v15112_v13, %v14303_v45  ;;  %v15138_v61 = vld [vmem:[#allocation6 + $0x7ec] sm:$0xf] }
 0x5fb   : > { %10921 = vmatpush.bf16.msra.mxu3 %v14188_v56  ;;  %v14237_v56 = vld [vmem:[#allocation6 + $0x698] sm:$0xf0] }
 0x5fc   : > { %v9509_v12 = vpop.f32.mrf.mxu2  ;;  %v14240_v10 = vor.u32 %v15094_v39, %v14237_v56 }
 0x5fd   : > { %10896 = vmatpush.bf16.msra.mxu1 %v14164_v25  ;;  %v9522_v7 = vpop.f32.mrf.mxu3  ;;  %v9650_v54 = vpop.f32.mrf.mxu1 }
 0x5fe   : > { %10909 = vmatpush.bf16.msra.mxu2 %v14168_v28  ;;  %v17907_v51 = vadd.f32 %v9650_v54, %v17887_v22  ;;  %v14352_v22 = vor.u32 %v15124_v55, %v14351_v38  ;;  %v14421_v54 = vld [vmem:[#allocation6 + $0x7f8] sm:$0xf0] }
 0x5ff   : > { %10922 = vmatpush.bf16.msra.mxu3 %v14172_v9  ;;  %v14336_v9 = vor.u32 %v15120_v23, %v14335_v4  ;;  %v14424_v56 = vor.u32 %v15138_v61, %v14421_v54  ;;  %v15132_v4 = vld [vmem:[#allocation6 + $0x7b4] sm:$0xf0] }
 0x600   : > { %v10261_v26 = vpop.f32.mrf.mxu0  ;;  %14222 = vmatmul.msk.bf16.vlgmr.msra.gmra.mxu1 %vm9025_vm3, %v17817_v20 }
 0x601   : > { %11049 = vmatpush.bf16.msrb.mxu1 %v14280_v37  ;;  %v17910_v31 = vadd.f32 %v10261_v26, %v17890_v58  ;;  %14223 = vmatmul.msk.bf16.vlgmr.msra.gmra.mxu2 %vm9025_vm3, %v17817_v20  ;;  %v14232_v58 = vor.u32 %v15093_v59, %v14229_v24  ;;  %v14420_v26 = vor.u32 %v15140_v16, %v14419_v63  ;;  %v14403_v24 = vld [vmem:[#allocation6 + $0x7c8] sm:$0xf] }
 0x602   : > { %11062 = vmatpush.bf16.msrb.mxu2 %v14284_v62  ;;  %14224 = vmatmul.msk.bf16.vlgmr.msra.gmra.mxu3 %vm9025_vm3, %v17817_v20  ;;  %v14337_v20 = vld [vmem:[#allocation6 + $0x758] sm:$0xf0]  ;;  %v14416_v59 = vor.u32 %v15137_v34, %v14413_v35 }
 0x603   : > { %11075 = vmatpush.bf16.msrb.mxu3 %v14288_v57  ;;  %v15116_v57 = vld [vmem:[#allocation6 + $0x734] sm:$0xf0]  ;;  %v14340_v36 = vor.u32 %v15118_v27, %v14337_v20 }
 0x604   : > { %v9663_v5 = vpop.f32.mrf.mxu2  ;;  %v14320_v50 = vor.u32 %v15116_v57, %v14319_v11  ;;  %v15128_v11 = vld [vmem:[#allocation6 + $0x794] sm:$0xf0] }
 0x605   : > { %11050 = vmatpush.bf16.msrb.mxu1 %v14264_v44  ;;  %v17919_v40 = vadd.f32 %v9663_v5, %v17901_v0  ;;  %v9676_v28 = vpop.f32.mrf.mxu3  ;;  %v9652_v62 = vpop.f32.mrf.mxu1  ;;  %v15113_v0 = vld [vmem:[#allocation6 + $0x724] sm:$0xf] }
 0x606   : > { %11063 = vmatpush.bf16.msrb.mxu2 %v14268_v49  ;;  %v17922_v25 = vadd.f32 %v9676_v28, %v17904_v6  ;;  %v14316_v6 = vor.u32 %v15113_v0, %v14313_v14  ;;  %v15110_v49 = vld [vmem:[#allocation6 + $0x70c] sm:$0xf]  ;;  %v15129_v5 = vld [vmem:[#allocation6 + $0x7a4] sm:$0xf]  ;;  %v14389_v28 = vld [vmem:[#allocation6 + $0x7b8] sm:$0xf0] }
 0x607   : > { %11076 = vmatpush.bf16.msrb.mxu3 %v14272_v60  ;;  %v15109_v60 = vld [vmem:[#allocation6 + $0x704] sm:$0xf]  ;;  %v14371_v62 = vld [vmem:[#allocation6 + $0x788] sm:$0xf]  ;;  %v14392_v57 = vor.u32 %v15130_v48, %v14389_v28  ;;  %v15126_v0 = vld [vmem:[#allocation6 + $0x78c] sm:$0xf] }
 0x608   : > { %v10263_v37 = vpop.f32.mrf.mxu0  ;;  %v14300_v55 = vor.u32 %v15109_v60, %v14297_v53 }
 0x609   : > { %11051 = vmatpush.bf16.msrb.mxu1 %v14248_v52  ;;  %v14365_v37 = vld [vmem:[#allocation6 + $0x790] sm:$0xf0] }
 0x60a   : > { %11064 = vmatpush.bf16.msrb.mxu2 %v14252_v41  ;;  %v14305_v41 = vld [vmem:[#allocation6 + $0x718] sm:$0xf0] }
 0x60b   : > { %11077 = vmatpush.bf16.msrb.mxu3 %v14256_v8  ;;  %v14308_v39 = vor.u32 %v15110_v49, %v14305_v41 }
 0x60c   : > { %v9665_v44 = vpop.f32.mrf.mxu2 }
 0x60d   : > { %11052 = vmatpush.bf16.msrb.mxu1 %v14232_v58  ;;  %v9678_v12 = vpop.f32.mrf.mxu3  ;;  %v9806_v7 = vpop.f32.mrf.mxu1  ;;  %v14387_v58 = vld [vmem:[#allocation6 + $0x7a8] sm:$0xf] }
 0x60e   : > { %11065 = vmatpush.bf16.msrb.mxu2 %v14236_v42  ;;  %v9837_v52 = vadd.f32 %v9806_v7, %v17907_v51  ;;  %v15136_v42 = vld [vmem:[#allocation6 + $0x7d4] sm:$0xf0]  ;;  %v14397_v51 = vld [vmem:[#allocation6 + $0x7d0] sm:$0xf0]  ;;  %v14388_v27 = vor.u32 %v15132_v4, %v14387_v58 }
 0x60f   : > { %11078 = vmatpush.bf16.msrb.mxu3 %v14240_v10  ;;  %v14400_v21 = vor.u32 %v15133_v47, %v14397_v51 }
 0x610   : > { %v10417_v38 = vpop.f32.mrf.mxu0  ;;  %14290 = vmatmul.msk.bf16.vlgmr.msrb.gmra.mxu1 %vm9025_vm3, %v17837_v33 }
 0x611   : > { %11205 = vmatpush.bf16.msra.mxu1 %v14348_v32  ;;  %v10460_v8 = vadd.f32 %v10417_v38, %v17910_v31  ;;  %14291 = vmatmul.msk.bf16.vlgmr.msrb.gmra.mxu2 %vm9025_vm3, %v17837_v33  ;;  %v14405_v31 = vld [vmem:[#allocation6 + $0x7d8] sm:$0xf0]  ;;  %v15148_v38 = vld [vmem:[%s18117_s7 + $0x38] sm:$0xff] }
 0x612   : > { %11218 = vmatpush.bf16.msra.mxu2 %v14352_v22  ;;  %14292 = vmatmul.msk.bf16.vlgmr.msrb.gmra.mxu3 %vm9025_vm3, %v17837_v33  ;;  %v14404_v22 = vor.u32 %v15136_v42, %v14403_v24  ;;  %v14408_v32 = vor.u32 %v15134_v17, %v14405_v31  ;;  %v15146_v24 = vld [vmem:[%s18117_s7 + $0x28] sm:$0xff]  ;;  %v15145_v42 = vld [vmem:[%s18117_s7 + $0x20] sm:$0xff] }
 0x613   : > { %11231 = vmatpush.bf16.msra.mxu3 %v14356_v18  ;;  %v14381_v18 = vld [vmem:[#allocation6 + $0x7b0] sm:$0xf0]  ;;  %11679 = vmatpush.bf16.msra.mxu0 %v15148_v38 }
 0x614   : > { %v9819_v3 = vpop.f32.mrf.mxu2  ;;  %v14384_v20 = vor.u32 %v15129_v5, %v14381_v18  ;;  %v15142_v5 = vld [vmem:[%s18117_s7 + $0x8] sm:$0xff]  ;;  %v15141_v18 = vld [vmem:[%s18117_s7] sm:$0xff]  ;;  %v15172_v38 = vld [vmem:[%s18117_s7 + $0xf8] sm:$0xff] }
 0x615   : > { %11206 = vmatpush.bf16.msra.mxu1 %v14332_v30  ;;  %v9838_v23 = vadd.f32 %v9819_v3, %v17919_v40  ;;  %v9832_v10 = vpop.f32.mrf.mxu3  ;;  %v9808_v19 = vpop.f32.mrf.mxu1  ;;  %v15125_v40 = vld [vmem:[#allocation6 + $0x784] sm:$0xf]  ;;  %v14372_v30 = vor.u32 %v15128_v11, %v14371_v62  ;;  %v15144_v3 = vld [vmem:[%s18117_s7 + $0x18] sm:$0xff] }
 0x616   : > { %11219 = vmatpush.bf16.msra.mxu2 %v14336_v9  ;;  %v9839_v33 = vadd.f32 %v9832_v10, %v17922_v25  ;;  %v14373_v25 = vld [vmem:[#allocation6 + $0x798] sm:$0xf0]  ;;  %v14368_v14 = vor.u32 %v15125_v40, %v14365_v37 }
 0x617   : > { %11232 = vmatpush.bf16.msra.mxu3 %v14340_v36 }
 0x618   : > { %v10419_v9 = vpop.f32.mrf.mxu0 }
 0x619   : > { %11207 = vmatpush.bf16.msra.mxu1 %v14316_v6  ;;  %v14376_v6 = vor.u32 %v15126_v0, %v14373_v25 }
 0x61a   : > { %11220 = vmatpush.bf16.msra.mxu2 %v14320_v50 }
 0x61b   : > { %11233 = vmatpush.bf16.msra.mxu3 %v14324_v46 }
 0x61c   : > { %v9821_v36 = vpop.f32.mrf.mxu2 }
 0x61d   : > { %11208 = vmatpush.bf16.msra.mxu1 %v14300_v55  ;;  %v9834_v50 = vpop.f32.mrf.mxu3  ;;  %v9962_v2 = vpop.f32.mrf.mxu1  ;;  %v15147_v55 = vld [vmem:[%s18117_s7 + $0x30] sm:$0xff] }
 0x61e   : > { %11221 = vmatpush.bf16.msra.mxu2 %v14304_v15  ;;  %v9993_v1 = vadd.f32 %v9962_v2, %v9837_v52  ;;  %11680 = vmatpush.bf16.msra.mxu0 %v15147_v55 }
 0x61f   : > { %11234 = vmatpush.bf16.msra.mxu3 %v14308_v39 }
 0x620   : > { %v10573_v45 = vpop.f32.mrf.mxu0  ;;  %14358 = vmatmul.msk.bf16.vlgmr.msra.gmra.mxu1 %vm9025_vm3, %v17861_v29 }
 0x621   : > { %11361 = vmatpush.bf16.msrb.mxu1 %v14416_v59  ;;  %v17934_v13 = vadd.f32 %v10573_v45, %v10460_v8  ;;  %14359 = vmatmul.msk.bf16.vlgmr.msra.gmra.mxu2 %vm9025_vm3, %v17861_v29 }
 0x622   : > { %11374 = vmatpush.bf16.msrb.mxu2 %v14420_v26  ;;  %14360 = vmatmul.msk.bf16.vlgmr.msra.gmra.mxu3 %vm9025_vm3, %v17861_v29 }
 0x623   : > { %11387 = vmatpush.bf16.msrb.mxu3 %v14424_v56  ;;  %11681 = vmatpush.bf16.msra.mxu0 %v15146_v24 }
 0x624   : > { %v9975_v49 = vpop.f32.mrf.mxu2 }
 0x625   : > { %11362 = vmatpush.bf16.msrb.mxu1 %v14400_v21  ;;  %v9994_v60 = vadd.f32 %v9975_v49, %v9838_v23  ;;  %v9988_v44 = vpop.f32.mrf.mxu3  ;;  %v9964_v53 = vpop.f32.mrf.mxu1  ;;  %v15143_v21 = vld [vmem:[%s18117_s7 + $0x10] sm:$0xff] }
 0x626   : > { %11375 = vmatpush.bf16.msrb.mxu2 %v14404_v22  ;;  %v9995_v46 = vadd.f32 %v9988_v44, %v9839_v33 }
 0x627   : > { %11388 = vmatpush.bf16.msrb.mxu3 %v14408_v32  ;;  %11682 = vmatpush.bf16.msra.mxu0 %v15145_v42  ;;  %v15162_v42 = vld [vmem:[%s18117_s7 + $0xa8] sm:$0xff] }
 0x628   : > { %v10575_v63 = vpop.f32.mrf.mxu0 }
 0x629   : > { %11363 = vmatpush.bf16.msrb.mxu1 %v14384_v20 }
 0x62a   : > { %11376 = vmatpush.bf16.msrb.mxu2 %v14388_v27 }
 0x62b   : > { %11389 = vmatpush.bf16.msrb.mxu3 %v14392_v57  ;;  %11683 = vmatpush.bf16.msra.mxu0 %v15144_v3 }
 0x62c   : > { %v9977_v16 = vpop.f32.mrf.mxu2 }
 0x62d   : > { %11364 = vmatpush.bf16.msrb.mxu1 %v14368_v14  ;;  %v9990_v12 = vpop.f32.mrf.mxu3  ;;  %v10118_v41 = vpop.f32.mrf.mxu1 }
 0x62e   : > { %11377 = vmatpush.bf16.msrb.mxu2 %v14372_v30  ;;  %v10149_v34 = vadd.f32 %v10118_v41, %v9993_v1  ;;  %v17982_v1 = vld [vmem:[%s18116_s6] sm:$0xf] }
 0x62f   : > { %11390 = vmatpush.bf16.msrb.mxu3 %v14376_v6  ;;  %11684 = vmatpush.bf16.msra.mxu0 %v15143_v21 }
 0x630   : > { %v10729_v35 = vpop.f32.mrf.mxu0  ;;  %14426 = vmatmul.msk.bf16.vlgmr.msrb.gmra.mxu1 %vm9025_vm3, %v17884_v43 }
 0x631   : > { %14427 = vmatmul.msk.bf16.vlgmr.msrb.gmra.mxu2 %vm9025_vm3, %v17884_v43  ;;  %v10772_v50 = vadd.f32 %v10729_v35, %v17934_v13 }
 0x632   : > { %14428 = vmatmul.msk.bf16.vlgmr.msrb.gmra.mxu3 %vm9025_vm3, %v17884_v43 }
 0x633   : > { %11685 = vmatpush.bf16.msra.mxu0 %v15142_v5  ;;  %11718 = vmatpush.bf16.msra.mxu3 %v15172_v38  ;;  %v15167_v5 = vld [vmem:[%s18117_s7 + $0xd0] sm:$0xff] }
 0x634   : > { %v10131_v29 = vpop.f32.mrf.mxu2 }
 0x635   : > { %v10150_v7 = vadd.f32 %v10131_v29, %v9994_v60  ;;  %v10144_v15 = vpop.f32.mrf.mxu3  ;;  %v10120_v54 = vpop.f32.mrf.mxu1  ;;  %v15156_v29 = vld [vmem:[%s18117_s7 + $0x78] sm:$0xff] }
 0x636   : > { %v10151_v61 = vadd.f32 %v10144_v15, %v9995_v46  ;;  %v11402_v46 = vperm.slane %v17982_v1, 0  ;;  %11692 = vmatpush.bf16.msra.mxu1 %v15156_v29  ;;  %v15155_v15 = vld [vmem:[%s18117_s7 + $0x70] sm:$0xff] }
 0x637   : > { %11686 = vmatpush.bf16.msra.mxu0 %v15141_v18  ;;  %v15149_v18 = vld [vmem:[%s18117_s7 + $0x40] sm:$0xff] }
 0x638   : > { %v10731_v52 = vpop.f32.mrf.mxu0 }
 0x639   : > { %v15164_v52 = vld [vmem:[%s18117_s7 + $0xb8] sm:$0xff] }
 0x63a   : > { %11693 = vmatpush.bf16.msra.mxu1 %v15155_v15  ;;  %11705 = vmatpush.bf16.msra.mxu2 %v15164_v52  ;;  %v11404_v15 = vperm.slane %v17982_v1, 2 }
 0x63c   : > { %v10133_v26 = vpop.f32.mrf.mxu2 }
 0x63d   : > { %v10146_v8 = vpop.f32.mrf.mxu3  ;;  %v10274_v39 = vpop.f32.mrf.mxu1  ;;  %v15154_v26 = vld [vmem:[%s18117_s7 + $0x68] sm:$0xff] }
 0x63e   : > { %v10305_v43 = vadd.f32 %v10274_v39, %v10149_v34  ;;  %v15163_v8 = vld [vmem:[%s18117_s7 + $0xb0] sm:$0xff]  ;;  %11694 = vmatpush.bf16.msra.mxu1 %v15154_v26 }
 0x63f   : > { %v15171_v39 = vld [vmem:[%s18117_s7 + $0xf0] sm:$0xff]  ;;  %11706 = vmatpush.bf16.msra.mxu2 %v15163_v8 }
 0x640   : > { %v10885_v59 = vpop.f32.mrf.mxu0  ;;  %11719 = vmatpush.bf16.msra.mxu3 %v15171_v39 }
 0x641   : > { %v10928_v2 = vadd.f32 %v10885_v59, %v10772_v50 }
 0x643   : > { %11707 = vmatpush.bf16.msra.mxu2 %v15162_v42 }
 0x644   : > { %v10287_v56 = vpop.f32.mrf.mxu2 }
 0x645   : > { %v10306_v47 = vadd.f32 %v10287_v56, %v10150_v7  ;;  %v10300_v51 = vpop.f32.mrf.mxu3  ;;  %v10276_v31 = vpop.f32.mrf.mxu1  ;;  %v15170_v56 = vld [vmem:[%s18117_s7 + $0xe8] sm:$0xff] }
 0x646   : > { %v10307_v17 = vadd.f32 %v10300_v51, %v10151_v61  ;;  %v15152_v51 = vld [vmem:[%s18117_s7 + $0x58] sm:$0xff]  ;;  %11720 = vmatpush.bf16.msra.mxu3 %v15170_v56  ;;  %v15169_v31 = vld [vmem:[%s18117_s7 + $0xe0] sm:$0xff] }
 0x648   : > { %v10887_v22 = vpop.f32.mrf.mxu0 }
 0x649   : > { %v15151_v22 = vld [vmem:[%s18117_s7 + $0x50] sm:$0xff] }
 0x64a   : > { %11721 = vmatpush.bf16.msra.mxu3 %v15169_v31 }
 0x64c   : > { %v10289_v58 = vpop.f32.mrf.mxu2 }
 0x64d   : > { %v10302_v4 = vpop.f32.mrf.mxu3  ;;  %v10430_v23 = vpop.f32.mrf.mxu1  ;;  %v15160_v58 = vld [vmem:[%s18117_s7 + $0x98] sm:$0xff] }
 0x64e   : > { %v10461_v10 = vadd.f32 %v10430_v23, %v10305_v43  ;;  %v15153_v43 = vld [vmem:[%s18117_s7 + $0x60] sm:$0xff]  ;;  %v15168_v4 = vld [vmem:[%s18117_s7 + $0xd8] sm:$0xff] }
 0x64f   : > { %11695 = vmatpush.bf16.msra.mxu1 %v15153_v43  ;;  %11722 = vmatpush.bf16.msra.mxu3 %v15168_v4 }
 0x650   : > { %v11041_v32 = vpop.f32.mrf.mxu0 }
 0x651   : > { %v11084_v45 = vadd.f32 %v11041_v32, %v10928_v2  ;;  %v15159_v32 = vld [vmem:[%s18117_s7 + $0x90] sm:$0xff] }
 0x653   : > { %11696 = vmatpush.bf16.msra.mxu1 %v15152_v51  ;;  %11723 = vmatpush.bf16.msra.mxu3 %v15167_v5  ;;  %v11486_v51 = vld [vmem:[%s18118_s8] sm:$0x1] }
 0x654   : > { %v10443_v33 = vpop.f32.mrf.mxu2 }
 0x655   : > { %v10462_v19 = vadd.f32 %v10443_v33, %v10306_v47  ;;  %v10456_v48 = vpop.f32.mrf.mxu3  ;;  %v10432_v9 = vpop.f32.mrf.mxu1 }
 0x656   : > { %v10463_v28 = vadd.f32 %v10456_v48, %v10307_v17  ;;  %v15161_v17 = vld [vmem:[%s18117_s7 + $0xa0] sm:$0xff]  ;;  %v15158_v48 = vld [vmem:[%s18117_s7 + $0x88] sm:$0xff] }
 0x657   : > { %11708 = vmatpush.bf16.msra.mxu2 %v15161_v17  ;;  %11697 = vmatpush.bf16.msra.mxu1 %v15151_v22 }
 0x658   : > { %v11043_v27 = vpop.f32.mrf.mxu0 }
 0x659   : > { %v15157_v27 = vld [vmem:[%s18117_s7 + $0x80] sm:$0xff] }
 0x65b   : > { %11709 = vmatpush.bf16.msra.mxu2 %v15160_v58 }
 0x65c   : > { %v10445_v20 = vpop.f32.mrf.mxu2 }
 0x65d   : > { %v10458_v62 = vpop.f32.mrf.mxu3  ;;  %v10586_v11 = vpop.f32.mrf.mxu1  ;;  %v15165_v20 = vld [vmem:[%s18117_s7 + $0xc0] sm:$0xff] }
 0x65e   : > { %v17972_v57 = vadd.f32 %v10586_v11, %v10461_v10  ;;  %v15150_v10 = vld [vmem:[%s18117_s7 + $0x48] sm:$0xff] }
 0x65f   : > { %11698 = vmatpush.bf16.msra.mxu1 %v15150_v10  ;;  %11710 = vmatpush.bf16.msra.mxu2 %v15159_v32 }
 0x660   : > { %v11197_v40 = vpop.f32.mrf.mxu0 }
 0x661   : > { %v11240_v60 = vadd.f32 %v11197_v40, %v11084_v45 }
 0x663   : > { %11699 = vmatpush.bf16.msra.mxu1 %v15149_v18  ;;  %11711 = vmatpush.bf16.msra.mxu2 %v15158_v48 }
 0x664   : > { %v10599_v37 = vpop.f32.mrf.mxu2 }
 0x665   : > { %v17974_v30 = vadd.f32 %v10599_v37, %v10462_v19  ;;  %v10612_v36 = vpop.f32.mrf.mxu3  ;;  %v10588_v25 = vpop.f32.mrf.mxu1 }
 0x666   : > { %v17976_v0 = vadd.f32 %v10612_v36, %v10463_v28  ;;  %v15166_v28 = vld [vmem:[%s18117_s7 + $0xc8] sm:$0xff] }
 0x667   : > { %11724 = vmatpush.bf16.msra.mxu3 %v15166_v28  ;;  %11712 = vmatpush.bf16.msra.mxu2 %v15157_v27 }
 0x668   : > { %v11199_v14 = vpop.f32.mrf.mxu0 }
 0x66b   : > { %11725 = vmatpush.bf16.msra.mxu3 %v15165_v20 }
 0x66c   : > { %v10601_v6 = vpop.f32.mrf.mxu2 }
 0x66d   : > { %v10614_v49 = vpop.f32.mrf.mxu3  ;;  %v17984_v44 = vpop.f32.mrf.mxu1 }
 0x66e   : > { %v10773_v14 = vadd.f32 %v17984_v44, %v17972_v57 }
 0x670   : > { %v11353_v53 = vpop.f32.mrf.mxu0 }
 0x671   : > { %v11396_v63 = vadd.f32 %v11353_v53, %v11240_v60 }
 0x673   : > { %v11410_v16 = vadd.f32 %v11402_v46, %v11396_v63  ;;  %v11403_v46 = vperm.slane %v17982_v1, 1 }
 0x674   : > { %v17987_v41 = vpop.f32.mrf.mxu2 }
 0x675   : > { %v11414_v12 = vmax.f32 %v11410_v16, 0.0  ;;  %v17989_v13 = vpop.f32.mrf.mxu3  ;;  %v10744_v35 = vpop.f32.mrf.mxu1  ;;  %v10774_v6 = vadd.f32 %v17987_v41, %v17974_v30  ;;  %v11405_v41 = vperm.slane %v17982_v1, 3 }
 0x676   : > { %v10775_v53 = vadd.f32 %v17989_v13, %v17976_v0 }
 0x677   : > { %v11418_v34 = vpack.c.bf16 %v11414_v12, %v11414_v12 }
 0x678   : > { %v11355_v7 = vpop.f32.mrf.mxu0 }
 0x679   : > { %11687 = vmatmul.bf16.vlgmr.msra.gmra.mxu0 %v11418_v34 }
 0x67c   : > { %v10757_v61 = vpop.f32.mrf.mxu2 }
 0x67d   : > { %v10770_v54 = vpop.f32.mrf.mxu3  ;;  %v10898_v55 = vpop.f32.mrf.mxu1 }
 0x67e   : > { %v10929_v50 = vadd.f32 %v10898_v55, %v10773_v14 }
 0x684   : > { %v10911_v59 = vpop.f32.mrf.mxu2 }
 0x685   : > { %v10924_v24 = vpop.f32.mrf.mxu3  ;;  %v10900_v47 = vpop.f32.mrf.mxu1  ;;  %v10930_v16 = vadd.f32 %v10911_v59, %v10774_v6 }
 0x686   : > { %v10931_v34 = vadd.f32 %v10924_v24, %v10775_v53 }
 0x68c   : > { %v10913_v3 = vpop.f32.mrf.mxu2 }
 0x68d   : > { %v10926_v21 = vpop.f32.mrf.mxu3  ;;  %v11054_v23 = vpop.f32.mrf.mxu1 }
 0x68e   : > { %v11085_v2 = vadd.f32 %v11054_v23, %v10929_v50 }
 0x694   : > { %v11067_v33 = vpop.f32.mrf.mxu2 }
 0x695   : > { %v11080_v19 = vpop.f32.mrf.mxu3  ;;  %v11056_v9 = vpop.f32.mrf.mxu1  ;;  %v11086_v35 = vadd.f32 %v11067_v33, %v10930_v16 }
 0x696   : > { %v11087_v57 = vadd.f32 %v11080_v19, %v10931_v34 }
 0x69c   : > { %v11069_v62 = vpop.f32.mrf.mxu2 }
 0x69d   : > { %v11082_v11 = vpop.f32.mrf.mxu3  ;;  %v11210_v40 = vpop.f32.mrf.mxu1 }
 0x69e   : > { %v11241_v49 = vadd.f32 %v11210_v40, %v11085_v2 }
 0x6a4   : > { %v11223_v37 = vpop.f32.mrf.mxu2 }
 0x6a5   : > { %v11236_v36 = vpop.f32.mrf.mxu3  ;;  %v11212_v25 = vpop.f32.mrf.mxu1  ;;  %v11242_v44 = vadd.f32 %v11223_v37, %v11086_v35 }
 0x6a6   : > { %v11243_v61 = vadd.f32 %v11236_v36, %v11087_v57 }
 0x6ac   : > { %v11225_v45 = vpop.f32.mrf.mxu2 }
 0x6ad   : > { %v11238_v60 = vpop.f32.mrf.mxu3  ;;  %v11366_v63 = vpop.f32.mrf.mxu1 }
 0x6ae   : > { %v11397_v12 = vadd.f32 %v11366_v63, %v11241_v49 }
 0x6b0   : > { %v11411_v29 = vadd.f32 %v11403_v46, %v11397_v12 }
 0x6b2   : > { %v11415_v7 = vmax.f32 %v11411_v29, 0.0 }
 0x6b4   : > { %v11379_v30 = vpop.f32.mrf.mxu2  ;;  %v11419_v54 = vpack.c.bf16 %v11415_v7, %v11415_v7 }
 0x6b5   : > { %v11398_v52 = vadd.f32 %v11379_v30, %v11242_v44  ;;  %v11392_v38 = vpop.f32.mrf.mxu3  ;;  %v11368_v0 = vpop.f32.mrf.mxu1 }
 0x6b6   : > { %v11399_v55 = vadd.f32 %v11392_v38, %v11243_v61  ;;  %11700 = vmatmul.bf16.vlgmr.msra.gmra.mxu1 %v11419_v54 }
 0x6b7   : > { %v11412_v13 = vadd.f32 %v11404_v15, %v11398_v52 }
 0x6b8   : > { %v11413_v26 = vadd.f32 %v11405_v41, %v11399_v55 }
 0x6b9   : > { %v11416_v8 = vmax.f32 %v11412_v13, 0.0 }
 0x6ba   : > { %v11417_v39 = vmax.f32 %v11413_v26, 0.0 }
 0x6bb   : > { %v11420_v43 = vpack.c.bf16 %v11416_v8, %v11416_v8 }
 0x6bc   : > { %v11421_v59 = vpack.c.bf16 %v11417_v39, %v11417_v39  ;;  %v11381_v24 = vpop.f32.mrf.mxu2 }
 0x6bd   : > { %v11394_v42 = vpop.f32.mrf.mxu3  ;;  %11713 = vmatmul.bf16.vlgmr.msra.gmra.mxu2 %v11420_v43 }
 0x6be   : > { %11726 = vmatmul.bf16.vlgmr.msra.gmra.mxu3 %v11421_v59 }
 0x6f6   : > { %v11688_v56 = vpop.f32.mrf.mxu0 }
 0x6f7   : > { %v11689_v31 = vadd.f32 %v11688_v56, %v11486_v51 }
 0x6fe   : > { %v11690_v1 = vpop.f32.mrf.mxu0 }
 0x733   : > { %v11701_v47 = vpop.f32.mrf.mxu1 }
 0x734   : > { %v11702_v22 = vadd.f32 %v11701_v47, %v11689_v31 }
 0x73b   : > { %v11703_v17 = vpop.f32.mrf.mxu1 }
 0x740   : > { %v11714_v3 = vpop.f32.mrf.mxu2 }
 0x741   : > { %v11715_v21 = vadd.f32 %v11714_v3, %v11702_v22  ;;  %v11727_v58 = vpop.f32.mrf.mxu3 }
 0x743   : > { %v11728_v4 = vadd.f32 %v11727_v58, %v11715_v21 }
 0x745   : > { %11732 = vst.msk [vmem:[%s17683_s16] sm:$0x1] %vm11731_vm7, %v11728_v4 }
 0x746   : > { %15270 = shalt.err (!%p15267_p3)
}
 0x747   : > { %15173 = dma.vmem_to_hbm [thread:$0]  (%p15399_p5), %s11745_s21, 16, %s11747_s22, %s11734_s23  }
 0x748   : > { %v11716_v23 = vpop.f32.mrf.mxu2 }
 0x749   : > { %v11729_v10 = vpop.f32.mrf.mxu3 }
 0x74a PF: > { %p15179_p4 = scmp.ge.s32.totalorder %s15307_s12, 2  ;;  %s11758_s25 = sand.u32 1, %s15295_s30  }
 0x74b   : > { %s11759_s16 = scalar_lea.sflag [#allocation9], %s11758_s25 }
 0x74c   : > { %p15176_p7 = pnand %p15179_p4, %p15403_p6 }
 0x74e   : > { %p15177_p8 = pneg %p15176_p7 }
 0x750   : > { %15290 = dma.done.wait (%p15177_p8), %s11759_s16, 16  }
 0x751   : > { %15292 = vsyncadd (%p15177_p8), %s11759_s16, 4294967280  ;;  %p19_p5 = scmp.ge.s32.totalorder %s15386_s15, 4   ;;  %s18154_s30 = smov %s15299_s10 }
 0x752   : > { %s18155_s10 = smov %s15303_s11  ;;  %s18156_s11 = smov %s15397_s18 }
 0x753   : > { %s18157_s12 = smov %s15386_s15  ;;  %21 = sbr.rel (!%p19_p5) target bundleno = 3 (0x3), region = 110 }
 0x758   :  { %11764 = vsyncpa [#allocation9], 1 }
 0x759   :  { %11766 = vsyncpa [#allocation9 + $0x1], 1 }
 0x75a   :  { %11767 = vsyncmov [#allocation7] }
 0x75d   :  { %s11768_s12 = vpop.sfrf %11767 }
 0x75e   :  { %p14559_p6 = scmp.ne.s32.totalorder %s11768_s12, 0 }
 0x760   :  { %11772 = shalt.err (%p14559_p6)  }

</bundles_post_ra>
